<compile_context>
chip_gen: v7x
topology: tpu7x:2x2x1
jax: 0.10.0
libtpu: 0.0.40
codegen_flags: <defaults>
</compile_context>

<pallas_src>
import functools
import math

import jax
import jax.numpy as jnp
from jax.experimental import pallas as pl
from jax.experimental.pallas import tpu as pltpu

LRELU_SLOPE = 0.2
BN_EPS = 1e-5
LANE = 128


def _round_up(x, m):
    return (x + m - 1) // m * m


def _lrelu(y):
    return jnp.where(y >= 0, y, LRELU_SLOPE * y)


# ----------------------------- Pallas kernels ------------------------------
def mm_bias_lrelu_kernel(x_ref, w_ref, b_ref, o_ref):
    # (tile_m, K) @ (K, N) on the MXU, bf16 in / f32 accumulate.
    y = jnp.dot(x_ref[...], w_ref[...], preferred_element_type=jnp.float32)
    y = y + b_ref[...]
    o_ref[...] = _lrelu(y).astype(o_ref.dtype)


def mm_bias_bn_lrelu_kernel(x_ref, w_ref, b_ref, g_ref, beta_ref, o_ref):
    # GEMM + bias, then training-mode BatchNorm over rows (rows = N*H*W for the
    # conv layer), then LeakyReLU.  Correctness requires the full M dimension
    # to be resident in this block, so this kernel is only used with grid=(1,).
    y = jnp.dot(x_ref[...], w_ref[...], preferred_element_type=jnp.float32)
    y = y + b_ref[...]
    mean = jnp.mean(y, axis=0, keepdims=True)
    var = jnp.mean(jnp.square(y - mean), axis=0, keepdims=True)
    y = (y - mean) * jax.lax.rsqrt(var + BN_EPS)
    y = y * g_ref[...] + beta_ref[...]
    o_ref[...] = _lrelu(y).astype(o_ref.dtype)


def fc_fused_kernel(x_ref, w1_ref, b1_ref, g_ref, beta_ref, w2_ref, b2_ref, o_ref):
    # Linear(feat,1024) + BatchNorm1d(1024) + LeakyReLU(0.2), with the tiny fc2
    # (1024 -> output_dim, lane-padded to 128) matvec + bias fused as an
    # epilogue so the (M,1024) activation never round-trips HBM.
    h = jnp.dot(x_ref[...], w1_ref[...], preferred_element_type=jnp.float32)
    h = h + b1_ref[...]
    mean = jnp.mean(h, axis=0, keepdims=True)
    var = jnp.mean(jnp.square(h - mean), axis=0, keepdims=True)
    h = (h - mean) * jax.lax.rsqrt(var + BN_EPS)
    h = _lrelu(h * g_ref[...] + beta_ref[...])
    y = jnp.dot(h.astype(w2_ref.dtype), w2_ref[...],
                preferred_element_type=jnp.float32)
    o_ref[...] = y + b2_ref[...]


# --------------------------- pallas_call wrappers ---------------------------
def _full_spec(shape):
    nd = len(shape)
    return pl.BlockSpec(shape, lambda i, _nd=nd: (0,) * _nd)


def pallas_single_block(kernel_fn, args, out_shape, *, flops, transcendentals=0):
    # Whole-operand single block: used only where BatchNorm forces full-M
    # residency.  Everything here is far below the 32 MiB scoped VMEM default.
    bytes_accessed = sum(int(a.size) * a.dtype.itemsize for a in args)
    bytes_accessed += math.prod(out_shape.shape) * out_shape.dtype.itemsize
    return pl.pallas_call(
        kernel_fn,
        grid=(1,),
        in_specs=[_full_spec(a.shape) for a in args],
        out_specs=_full_spec(out_shape.shape),
        out_shape=out_shape,
        compiler_params=pltpu.CompilerParams(
            dimension_semantics=("arbitrary",),
            vmem_limit_bytes=32 * 1024 * 1024,
        ),
        cost_estimate=pl.CostEstimate(
            flops=int(flops),
            transcendentals=int(transcendentals),
            bytes_accessed=int(bytes_accessed),
        ),
    )(*args)


def conv1_gemm(cols, w, b):
    # M-tiled GEMM + bias + LeakyReLU.  No BN here, so tiling over M is exact.
    m, k = cols.shape
    n = w.shape[1]
    m8 = _round_up(m, 8)
    # >= 2 tiles when possible so v7x's two TensorCores split the parallel grid;
    # cap the tile at 512 rows so VMEM stays batch-independent on 64 MiB v7x.
    tile = m8 if m8 <= 8 else min(512, _round_up(pl.cdiv(m8, 2), 8))
    grid_m = pl.cdiv(m8, tile)
    m_pad = grid_m * tile
    if m_pad != m:
        cols = jnp.pad(cols, ((0, m_pad - m), (0, 0)))
    out = pl.pallas_call(
        mm_bias_lrelu_kernel,
        grid=(grid_m,),
        in_specs=[
            pl.BlockSpec((tile, k), lambda i: (i, 0)),   # im2col rows, tiled
            pl.BlockSpec((k, n), lambda i: (0, 0)),      # weight, resident
            pl.BlockSpec((1, n), lambda i: (0, 0)),      # bias, resident
        ],
        out_specs=pl.BlockSpec((tile, n), lambda i: (i, 0)),
        out_shape=jax.ShapeDtypeStruct((m_pad, n), jnp.bfloat16),
        compiler_params=pltpu.CompilerParams(
            dimension_semantics=("parallel",),
            vmem_limit_bytes=32 * 1024 * 1024,
        ),
        cost_estimate=pl.CostEstimate(
            flops=2 * m_pad * k * n,
            transcendentals=0,
            bytes_accessed=(m_pad * k + k * n + m_pad * n) * 2 + n * 4,
        ),
    )(cols, w, b)
    return out if m_pad == m else out[:m]


# ------------------------------- JAX glue ----------------------------------
def im2col(x_nhwc, k, stride, pad):
    # Pure data rearrangement (kept in bf16 to halve HBM traffic of the
    # inflated buffer).  Row order: (n, ho, wo); col order: (kh, kw, c).
    n, h, w, c = x_nhwc.shape
    xp = jnp.pad(x_nhwc, ((0, 0), (pad, pad), (pad, pad), (0, 0)))
    ho = (h + 2 * pad - k) // stride + 1
    wo = (w + 2 * pad - k) // stride + 1
    patches = []
    for i in range(k):
        for j in range(k):
            patches.append(
                xp[:, i:i + ho * stride:stride, j:j + wo * stride:stride, :]
            )
    cols = jnp.stack(patches, axis=3)  # (n, ho, wo, k*k, c)
    return cols.reshape(n * ho * wo, k * k * c), (n, ho, wo)


def init_params(key, input_dim=1, output_dim=1, input_size=16, hidden=32):
    # Matches utils.initialize_weights: conv/linear weights ~ N(0, 0.02),
    # biases = 0, BatchNorm gamma = 1, beta = 0 (deterministic via PRNGKey).
    ks = jax.random.split(key, 4)
    s4 = input_size // 4                     # spatial size after the two convs
    hidden_pad = _round_up(hidden, LANE)     # lane-dense conv2 output
    out_pad = _round_up(output_dim, LANE)    # lane-dense fc2 output

    conv1_w = 0.02 * jax.random.normal(ks[0], (4 * 4 * input_dim, 64), jnp.float32)
    conv2_w = 0.02 * jax.random.normal(ks[1], (4 * 4 * 64, hidden), jnp.float32)
    fc1_w = 0.02 * jax.random.normal(ks[2], (hidden * s4 * s4, 1024), jnp.float32)
    fc2_w = 0.02 * jax.random.normal(ks[3], (1024, output_dim), jnp.float32)

    # --- init-time layout folding (zero runtime cost) -----------------------
    # conv2: zero-pad output channels hidden -> hidden_pad (lane-dense stores;
    # padded channels come out exactly 0 through bias/BN/LeakyReLU).
    conv2_w_p = jnp.pad(conv2_w, ((0, 0), (0, hidden_pad - hidden)))
    # fc1: PyTorch flattens NCHW (c, h, w); our conv2 GEMM output flattens
    # NHWC (h, w, c_pad).  Permute + zero-pad the fc1 rows once here so the
    # runtime jnp.transpose(.., (0,3,1,2)) disappears.
    fc1_w_chw = fc1_w.reshape(hidden, s4, s4, 1024)
    fc1_w_hwc = jnp.transpose(fc1_w_chw, (1, 2, 0, 3))          # (h, w, c, 1024)
    fc1_w_hwc = jnp.pad(fc1_w_hwc,
                        ((0, 0), (0, 0), (0, hidden_pad - hidden), (0, 0)))
    fc1_w_fold = fc1_w_hwc.reshape(s4 * s4 * hidden_pad, 1024)
    # fc2: zero-pad output columns output_dim -> out_pad.
    fc2_w_p = jnp.pad(fc2_w, ((0, 0), (0, out_pad - output_dim)))

    return {
        # bf16 GEMM weights (MXU-native); bias / BN affine stay f32.
        "conv1_w": conv1_w.astype(jnp.bfloat16),
        "conv1_b": jnp.zeros((1, 64), jnp.float32),
        "conv2_w": conv2_w_p.astype(jnp.bfloat16),
        "conv2_b": jnp.zeros((1, hidden_pad), jnp.float32),
        "bn2_g": jnp.pad(jnp.ones((1, hidden), jnp.float32),
                         ((0, 0), (0, hidden_pad - hidden))),
        "bn2_b": jnp.zeros((1, hidden_pad), jnp.float32),
        "fc1_w": fc1_w_fold.astype(jnp.bfloat16),
        "fc1_b": jnp.zeros((1, 1024), jnp.float32),
        "bn1d_g": jnp.ones((1, 1024), jnp.float32),
        "bn1d_b": jnp.zeros((1, 1024), jnp.float32),
        "fc2_w": fc2_w_p.astype(jnp.bfloat16),
        "fc2_b": jnp.zeros((1, out_pad), jnp.float32),
    }


def discriminator_forward(params, x_nchw, *, output_dim):
    x = jnp.transpose(x_nchw, (0, 2, 3, 1)).astype(jnp.bfloat16)  # NHWC, bf16

    # Conv2d(input_dim, 64, 4, 2, 1) + LeakyReLU(0.2)  -- M-tiled, parallel grid
    cols, (n, ho, wo) = im2col(x, 4, 2, 1)
    y = conv1_gemm(cols, params["conv1_w"], params["conv1_b"])
    y = y.reshape(n, ho, wo, 64)

    # Conv2d(64, hidden, 4, 2, 1) + BatchNorm2d(hidden) + LeakyReLU(0.2)
    # BatchNorm batch statistics need every (n, h, w) row -> full-M block.
    cols, (n, ho, wo) = im2col(y, 4, 2, 1)
    m2, k2 = cols.shape
    hidden_pad = params["conv2_w"].shape[1]
    y2 = pallas_single_block(
        mm_bias_bn_lrelu_kernel,
        (cols, params["conv2_w"], params["conv2_b"],
         params["bn2_g"], params["bn2_b"]),
        jax.ShapeDtypeStruct((m2, hidden_pad), jnp.bfloat16),
        flops=2 * m2 * k2 * hidden_pad + 8 * m2 * hidden_pad,
        transcendentals=hidden_pad,
    )

    # Flatten.  The original x.view(-1, hidden*(s//4)**2) on an NCHW tensor is
    # realized by the fc1 weight fold done at init; here we only reshape the
    # NHWC-major GEMM output (padded channels contribute exactly 0).
    y2 = y2.reshape(n, ho * wo * hidden_pad)

    # Linear(feat, 1024) + BatchNorm1d(1024) + LeakyReLU(0.2) + Linear(1024, out)
    # fused into one kernel (BN needs the full batch resident anyway).
    k_fc = y2.shape[1]
    out_pad = params["fc2_w"].shape[1]
    out = pallas_single_block(
        fc_fused_kernel,
        (y2, params["fc1_w"], params["fc1_b"], params["bn1d_g"], params["bn1d_b"],
         params["fc2_w"], params["fc2_b"]),
        jax.ShapeDtypeStruct((n, out_pad), jnp.float32),
        flops=2 * n * k_fc * 1024 + 2 * n * 1024 * out_pad + 8 * n * 1024,
        transcendentals=1024,
    )
    return out[:, :output_dim]


if __name__ == "__main__":
    key = jax.random.PRNGKey(0)
    pkey, xkey = jax.random.split(key)

    batch, input_dim, output_dim, input_size, hidden = 2, 1, 1, 16, 32
    params = init_params(pkey, input_dim, output_dim, input_size, hidden)
    x = jax.random.normal(
        xkey, (batch, input_dim, input_size, input_size), jnp.float32
    )

    fwd = jax.jit(functools.partial(discriminator_forward, output_dim=output_dim))
    out = fwd(params, x)
    jax.block_until_ready(out)
    assert out.shape == (batch, output_dim), out.shape
    assert bool(jnp.all(jnp.isfinite(out))), "non-finite output"
    print("KERNEL_OK")
</pallas_src>

<mosaic_0001>
module attributes {stable_mosaic.version = 11 : i64} {
  func.func @mm_bias_lrelu_kernel(%arg0: i32, %arg1: memref<64x16xbf16, #tpu.memory_space<vmem>>, %arg2: memref<16x64xbf16, #tpu.memory_space<vmem>>, %arg3: memref<1x64xf32, #tpu.memory_space<vmem>>, %arg4: memref<64x64xbf16, #tpu.memory_space<vmem>>) attributes {dimension_semantics = [#tpu.dimension_semantics<parallel>], iteration_bounds = array<i64: 2>, scalar_prefetch = 0 : i64, scratch_operands = 0 : i64, tpu.core_type = #tpu.core_type<tc>, window_params = [{transform_indices = @transform_0, window_bounds = array<i64: 64, 16>}, {pipeline_mode = #tpu.pipeline_mode<synchronous>, transform_indices = @transform_1, window_bounds = array<i64: 16, 64>}, {pipeline_mode = #tpu.pipeline_mode<synchronous>, transform_indices = @transform_2, window_bounds = array<i64: 1, 64>}, {transform_indices = @transform_3, window_bounds = array<i64: 64, 64>}]} {
    %c0 = arith.constant 0 : index
    %c0_0 = arith.constant 0 : index
    %0 = vector.load %arg1[%c0, %c0_0] : memref<64x16xbf16, #tpu.memory_space<vmem>>, vector<64x16xbf16>
    %c0_1 = arith.constant 0 : index
    %c0_2 = arith.constant 0 : index
    %1 = vector.load %arg2[%c0_1, %c0_2] : memref<16x64xbf16, #tpu.memory_space<vmem>>, vector<16x64xbf16>
    %cst = arith.constant dense<0.000000e+00> : vector<64x64xf32>
    %2 = tpu.matmul %0, %1, %cst {dimension_numbers = #tpu.dot_dimension_numbers<[1], [0], [0], [1], [0, 0, 1, 1], [], []>} : vector<64x16xbf16>, vector<16x64xbf16>, vector<64x64xf32> -> vector<64x64xf32>
    %c0_3 = arith.constant 0 : index
    %c0_4 = arith.constant 0 : index
    %3 = vector.load %arg3[%c0_3, %c0_4] : memref<1x64xf32, #tpu.memory_space<vmem>>, vector<1x64xf32>
    %4 = vector.broadcast %3 : vector<1x64xf32> to vector<64x64xf32>
    %5 = arith.addf %2, %4 : vector<64x64xf32>
    %cst_5 = arith.constant 0.000000e+00 : f32
    %6 = vector.broadcast %cst_5 : f32 to vector<64x64xf32>
    %7 = arith.cmpf oge, %5, %6 : vector<64x64xf32>
    %cst_6 = arith.constant 2.000000e-01 : f32
    %8 = vector.broadcast %cst_6 : f32 to vector<64x64xf32>
    %9 = arith.mulf %8, %5 : vector<64x64xf32>
    %10 = arith.select %7, %5, %9 : vector<64x64xi1>, vector<64x64xf32>
    %11 = arith.truncf %10 : vector<64x64xf32> to vector<64x64xbf16>
    %c0_7 = arith.constant 0 : index
    %c0_8 = arith.constant 0 : index
    %12 = vector.load %arg4[%c0_7, %c0_8] : memref<64x64xbf16, #tpu.memory_space<vmem>>, vector<64x64xbf16>
    tpu.vector_store %arg4[%c0_7, %c0_8], %11 {strides = array<i32>} : memref<64x64xbf16, #tpu.memory_space<vmem>>, vector<64x64xbf16>,
    return
  }
  func.func @transform_0(%arg0: i32) -> (i32, i32) {
    %c0_i32 = arith.constant 0 : i32
    %c0_i32_0 = arith.constant 0 : i32
    return %arg0, %c0_i32 : i32, i32
  }
  func.func @transform_1(%arg0: i32) -> (i32, i32) {
    %c0_i32 = arith.constant 0 : i32
    %c0_i32_0 = arith.constant 0 : i32
    %c0_i32_1 = arith.constant 0 : i32
    return %c0_i32, %c0_i32_0 : i32, i32
  }
  func.func @transform_2(%arg0: i32) -> (i32, i32) {
    %c0_i32 = arith.constant 0 : i32
    %c0_i32_0 = arith.constant 0 : i32
    %c0_i32_1 = arith.constant 0 : i32
    return %c0_i32, %c0_i32_0 : i32, i32
  }
  func.func @transform_3(%arg0: i32) -> (i32, i32) {
    %c0_i32 = arith.constant 0 : i32
    %c0_i32_0 = arith.constant 0 : i32
    return %arg0, %c0_i32 : i32, i32
  }
}

module attributes {stable_mosaic.version = 11 : i64} {
  func.func @mm_bias_bn_lrelu_kernel(%arg0: i32, %arg1: memref<32x1024xbf16, #tpu.memory_space<vmem>>, %arg2: memref<1024x128xbf16, #tpu.memory_space<vmem>>, %arg3: memref<1x128xf32, #tpu.memory_space<vmem>>, %arg4: memref<1x128xf32, #tpu.memory_space<vmem>>, %arg5: memref<1x128xf32, #tpu.memory_space<vmem>>, %arg6: memref<32x128xbf16, #tpu.memory_space<vmem>>) attributes {dimension_semantics = [#tpu.dimension_semantics<arbitrary>], iteration_bounds = array<i64: 1>, scalar_prefetch = 0 : i64, scratch_operands = 0 : i64, tpu.core_type = #tpu.core_type<tc>, window_params = [{pipeline_mode = #tpu.pipeline_mode<synchronous>, transform_indices = @transform_0, window_bounds = array<i64: 32, 1024>}, {pipeline_mode = #tpu.pipeline_mode<synchronous>, transform_indices = @transform_1, window_bounds = array<i64: 1024, 128>}, {pipeline_mode = #tpu.pipeline_mode<synchronous>, transform_indices = @transform_2, window_bounds = array<i64: 1, 128>}, {pipeline_mode = #tpu.pipeline_mode<synchronous>, transform_indices = @transform_3, window_bounds = array<i64: 1, 128>}, {pipeline_mode = #tpu.pipeline_mode<synchronous>, transform_indices = @transform_4, window_bounds = array<i64: 1, 128>}, {pipeline_mode = #tpu.pipeline_mode<synchronous>, transform_indices = @transform_5, window_bounds = array<i64: 32, 128>}]} {
    %c0 = arith.constant 0 : index
    %c0_0 = arith.constant 0 : index
    %0 = vector.load %arg1[%c0, %c0_0] : memref<32x1024xbf16, #tpu.memory_space<vmem>>, vector<32x1024xbf16>
    %c0_1 = arith.constant 0 : index
    %c0_2 = arith.constant 0 : index
    %1 = vector.load %arg2[%c0_1, %c0_2] : memref<1024x128xbf16, #tpu.memory_space<vmem>>, vector<1024x128xbf16>
    %cst = arith.constant dense<0.000000e+00> : vector<32x128xf32>
    %2 = tpu.matmul %0, %1, %cst {dimension_numbers = #tpu.dot_dimension_numbers<[1], [0], [0], [1], [0, 0, 1, 1], [], []>} : vector<32x1024xbf16>, vector<1024x128xbf16>, vector<32x128xf32> -> vector<32x128xf32>
    %c0_3 = arith.constant 0 : index
    %c0_4 = arith.constant 0 : index
    %3 = vector.load %arg3[%c0_3, %c0_4] : memref<1x128xf32, #tpu.memory_space<vmem>>, vector<1x128xf32>
    %4 = vector.broadcast %3 : vector<1x128xf32> to vector<32x128xf32>
    %5 = arith.addf %2, %4 : vector<32x128xf32>
    %cst_5 = arith.constant dense<0.000000e+00> : vector<128xf32>
    %6 = vector.multi_reduction <add>, %5, %cst_5 [0] : vector<32x128xf32> to vector<128xf32>
    %7 = vector.shape_cast %6 : vector<128xf32> to vector<1x128xf32>
    %cst_6 = arith.constant 3.200000e+01 : f32
    %8 = vector.broadcast %cst_6 : f32 to vector<1x128xf32>
    %9 = arith.divf %7, %8 : vector<1x128xf32>
    %10 = vector.broadcast %9 : vector<1x128xf32> to vector<32x128xf32>
    %11 = arith.subf %5, %10 : vector<32x128xf32>
    %12 = arith.mulf %11, %11 : vector<32x128xf32>
    %cst_7 = arith.constant dense<0.000000e+00> : vector<128xf32>
    %13 = vector.multi_reduction <add>, %12, %cst_7 [0] : vector<32x128xf32> to vector<128xf32>
    %14 = vector.shape_cast %13 : vector<128xf32> to vector<1x128xf32>
    %cst_8 = arith.constant 3.200000e+01 : f32
    %15 = vector.broadcast %cst_8 : f32 to vector<1x128xf32>
    %16 = arith.divf %14, %15 : vector<1x128xf32>
    %17 = vector.broadcast %9 : vector<1x128xf32> to vector<32x128xf32>
    %18 = arith.subf %5, %17 : vector<32x128xf32>
    %cst_9 = arith.constant 9.99999974E-6 : f32
    %19 = vector.broadcast %cst_9 : f32 to vector<1x128xf32>
    %20 = arith.addf %16, %19 : vector<1x128xf32>
    %21 = math.rsqrt %20 : vector<1x128xf32>
    %22 = vector.broadcast %21 : vector<1x128xf32> to vector<32x128xf32>
    %23 = arith.mulf %18, %22 : vector<32x128xf32>
    %c0_10 = arith.constant 0 : index
    %c0_11 = arith.constant 0 : index
    %24 = vector.load %arg4[%c0_10, %c0_11] : memref<1x128xf32, #tpu.memory_space<vmem>>, vector<1x128xf32>
    %25 = vector.broadcast %24 : vector<1x128xf32> to vector<32x128xf32>
    %26 = arith.mulf %23, %25 : vector<32x128xf32>
    %c0_12 = arith.constant 0 : index
    %c0_13 = arith.constant 0 : index
    %27 = vector.load %arg5[%c0_12, %c0_13] : memref<1x128xf32, #tpu.memory_space<vmem>>, vector<1x128xf32>
    %28 = vector.broadcast %27 : vector<1x128xf32> to vector<32x128xf32>
    %29 = arith.addf %26, %28 : vector<32x128xf32>
    %cst_14 = arith.constant 0.000000e+00 : f32
    %30 = vector.broadcast %cst_14 : f32 to vector<32x128xf32>
    %31 = arith.cmpf oge, %29, %30 : vector<32x128xf32>
    %cst_15 = arith.constant 2.000000e-01 : f32
    %32 = vector.broadcast %cst_15 : f32 to vector<32x128xf32>
    %33 = arith.mulf %32, %29 : vector<32x128xf32>
    %34 = arith.select %31, %29, %33 : vector<32x128xi1>, vector<32x128xf32>
    %35 = arith.truncf %34 : vector<32x128xf32> to vector<32x128xbf16>
    %c0_16 = arith.constant 0 : index
    %c0_17 = arith.constant 0 : index
    %36 = vector.load %arg6[%c0_16, %c0_17] : memref<32x128xbf16, #tpu.memory_space<vmem>>, vector<32x128xbf16>
    tpu.vector_store %arg6[%c0_16, %c0_17], %35 {strides = array<i32>} : memref<32x128xbf16, #tpu.memory_space<vmem>>, vector<32x128xbf16>,
    return
  }
  func.func @transform_0(%arg0: i32) -> (i32, i32) {
    %c0_i32 = arith.constant 0 : i32
    %c0_i32_0 = arith.constant 0 : i32
    %c0_i32_1 = arith.constant 0 : i32
    return %c0_i32, %c0_i32_0 : i32, i32
  }
  func.func @transform_1(%arg0: i32) -> (i32, i32) {
    %c0_i32 = arith.constant 0 : i32
    %c0_i32_0 = arith.constant 0 : i32
    %c0_i32_1 = arith.constant 0 : i32
    return %c0_i32, %c0_i32_0 : i32, i32
  }
  func.func @transform_2(%arg0: i32) -> (i32, i32) {
    %c0_i32 = arith.constant 0 : i32
    %c0_i32_0 = arith.constant 0 : i32
    %c0_i32_1 = arith.constant 0 : i32
    return %c0_i32, %c0_i32_0 : i32, i32
  }
  func.func @transform_3(%arg0: i32) -> (i32, i32) {
    %c0_i32 = arith.constant 0 : i32
    %c0_i32_0 = arith.constant 0 : i32
    %c0_i32_1 = arith.constant 0 : i32
    return %c0_i32, %c0_i32_0 : i32, i32
  }
  func.func @transform_4(%arg0: i32) -> (i32, i32) {
    %c0_i32 = arith.constant 0 : i32
    %c0_i32_0 = arith.constant 0 : i32
    %c0_i32_1 = arith.constant 0 : i32
    return %c0_i32, %c0_i32_0 : i32, i32
  }
  func.func @transform_5(%arg0: i32) -> (i32, i32) {
    %c0_i32 = arith.constant 0 : i32
    %c0_i32_0 = arith.constant 0 : i32
    %c0_i32_1 = arith.constant 0 : i32
    return %c0_i32, %c0_i32_0 : i32, i32
  }
}

module attributes {stable_mosaic.version = 11 : i64} {
  func.func @fc_fused_kernel(%arg0: i32, %arg1: memref<2x2048xbf16, #tpu.memory_space<vmem>>, %arg2: memref<2048x1024xbf16, #tpu.memory_space<vmem>>, %arg3: memref<1x1024xf32, #tpu.memory_space<vmem>>, %arg4: memref<1x1024xf32, #tpu.memory_space<vmem>>, %arg5: memref<1x1024xf32, #tpu.memory_space<vmem>>, %arg6: memref<1024x128xbf16, #tpu.memory_space<vmem>>, %arg7: memref<1x128xf32, #tpu.memory_space<vmem>>, %arg8: memref<2x128xf32, #tpu.memory_space<vmem>>) attributes {dimension_semantics = [#tpu.dimension_semantics<arbitrary>], iteration_bounds = array<i64: 1>, scalar_prefetch = 0 : i64, scratch_operands = 0 : i64, tpu.core_type = #tpu.core_type<tc>, window_params = [{pipeline_mode = #tpu.pipeline_mode<synchronous>, transform_indices = @transform_0, window_bounds = array<i64: 2, 2048>}, {pipeline_mode = #tpu.pipeline_mode<synchronous>, transform_indices = @transform_1, window_bounds = array<i64: 2048, 1024>}, {pipeline_mode = #tpu.pipeline_mode<synchronous>, transform_indices = @transform_2, window_bounds = array<i64: 1, 1024>}, {pipeline_mode = #tpu.pipeline_mode<synchronous>, transform_indices = @transform_3, window_bounds = array<i64: 1, 1024>}, {pipeline_mode = #tpu.pipeline_mode<synchronous>, transform_indices = @transform_4, window_bounds = array<i64: 1, 1024>}, {pipeline_mode = #tpu.pipeline_mode<synchronous>, transform_indices = @transform_5, window_bounds = array<i64: 1024, 128>}, {pipeline_mode = #tpu.pipeline_mode<synchronous>, transform_indices = @transform_6, window_bounds = array<i64: 1, 128>}, {pipeline_mode = #tpu.pipeline_mode<synchronous>, transform_indices = @transform_7, window_bounds = array<i64: 2, 128>}]} {
    %c0 = arith.constant 0 : index
    %c0_0 = arith.constant 0 : index
    %0 = vector.load %arg1[%c0, %c0_0] : memref<2x2048xbf16, #tpu.memory_space<vmem>>, vector<2x2048xbf16>
    %c0_1 = arith.constant 0 : index
    %c0_2 = arith.constant 0 : index
    %1 = vector.load %arg2[%c0_1, %c0_2] : memref<2048x1024xbf16, #tpu.memory_space<vmem>>, vector<2048x1024xbf16>
    %cst = arith.constant dense<0.000000e+00> : vector<2x1024xf32>
    %2 = tpu.matmul %0, %1, %cst {dimension_numbers = #tpu.dot_dimension_numbers<[1], [0], [0], [1], [0, 0, 1, 1], [], []>} : vector<2x2048xbf16>, vector<2048x1024xbf16>, vector<2x1024xf32> -> vector<2x1024xf32>
    %c0_3 = arith.constant 0 : index
    %c0_4 = arith.constant 0 : index
    %3 = vector.load %arg3[%c0_3, %c0_4] : memref<1x1024xf32, #tpu.memory_space<vmem>>, vector<1x1024xf32>
    %4 = vector.broadcast %3 : vector<1x1024xf32> to vector<2x1024xf32>
    %5 = arith.addf %2, %4 : vector<2x1024xf32>
    %cst_5 = arith.constant dense<0.000000e+00> : vector<1024xf32>
    %6 = vector.multi_reduction <add>, %5, %cst_5 [0] : vector<2x1024xf32> to vector<1024xf32>
    %7 = vector.shape_cast %6 : vector<1024xf32> to vector<1x1024xf32>
    %cst_6 = arith.constant 2.000000e+00 : f32
    %8 = vector.broadcast %cst_6 : f32 to vector<1x1024xf32>
    %9 = arith.divf %7, %8 : vector<1x1024xf32>
    %10 = vector.broadcast %9 : vector<1x1024xf32> to vector<2x1024xf32>
    %11 = arith.subf %5, %10 : vector<2x1024xf32>
    %12 = arith.mulf %11, %11 : vector<2x1024xf32>
    %cst_7 = arith.constant dense<0.000000e+00> : vector<1024xf32>
    %13 = vector.multi_reduction <add>, %12, %cst_7 [0] : vector<2x1024xf32> to vector<1024xf32>
    %14 = vector.shape_cast %13 : vector<1024xf32> to vector<1x1024xf32>
    %cst_8 = arith.constant 2.000000e+00 : f32
    %15 = vector.broadcast %cst_8 : f32 to vector<1x1024xf32>
    %16 = arith.divf %14, %15 : vector<1x1024xf32>
    %17 = vector.broadcast %9 : vector<1x1024xf32> to vector<2x1024xf32>
    %18 = arith.subf %5, %17 : vector<2x1024xf32>
    %cst_9 = arith.constant 9.99999974E-6 : f32
    %19 = vector.broadcast %cst_9 : f32 to vector<1x1024xf32>
    %20 = arith.addf %16, %19 : vector<1x1024xf32>
    %21 = math.rsqrt %20 : vector<1x1024xf32>
    %22 = vector.broadcast %21 : vector<1x1024xf32> to vector<2x1024xf32>
    %23 = arith.mulf %18, %22 : vector<2x1024xf32>
    %c0_10 = arith.constant 0 : index
    %c0_11 = arith.constant 0 : index
    %24 = vector.load %arg4[%c0_10, %c0_11] : memref<1x1024xf32, #tpu.memory_space<vmem>>, vector<1x1024xf32>
    %25 = vector.broadcast %24 : vector<1x1024xf32> to vector<2x1024xf32>
    %26 = arith.mulf %23, %25 : vector<2x1024xf32>
    %c0_12 = arith.constant 0 : index
    %c0_13 = arith.constant 0 : index
    %27 = vector.load %arg5[%c0_12, %c0_13] : memref<1x1024xf32, #tpu.memory_space<vmem>>, vector<1x1024xf32>
    %28 = vector.broadcast %27 : vector<1x1024xf32> to vector<2x1024xf32>
    %29 = arith.addf %26, %28 : vector<2x1024xf32>
    %cst_14 = arith.constant 0.000000e+00 : f32
    %30 = vector.broadcast %cst_14 : f32 to vector<2x1024xf32>
    %31 = arith.cmpf oge, %29, %30 : vector<2x1024xf32>
    %cst_15 = arith.constant 2.000000e-01 : f32
    %32 = vector.broadcast %cst_15 : f32 to vector<2x1024xf32>
    %33 = arith.mulf %32, %29 : vector<2x1024xf32>
    %34 = arith.select %31, %29, %33 : vector<2x1024xi1>, vector<2x1024xf32>
    %35 = arith.truncf %34 : vector<2x1024xf32> to vector<2x1024xbf16>
    %c0_16 = arith.constant 0 : index
    %c0_17 = arith.constant 0 : index
    %36 = vector.load %arg6[%c0_16, %c0_17] : memref<1024x128xbf16, #tpu.memory_space<vmem>>, vector<1024x128xbf16>
    %cst_18 = arith.constant dense<0.000000e+00> : vector<2x128xf32>
    %37 = tpu.matmul %35, %36, %cst_18 {dimension_numbers = #tpu.dot_dimension_numbers<[1], [0], [0], [1], [0, 0, 1, 1], [], []>} : vector<2x1024xbf16>, vector<1024x128xbf16>, vector<2x128xf32> -> vector<2x128xf32>
    %c0_19 = arith.constant 0 : index
    %c0_20 = arith.constant 0 : index
    %38 = vector.load %arg7[%c0_19, %c0_20] : memref<1x128xf32, #tpu.memory_space<vmem>>, vector<1x128xf32>
    %39 = vector.broadcast %38 : vector<1x128xf32> to vector<2x128xf32>
    %40 = arith.addf %37, %39 : vector<2x128xf32>
    %c0_21 = arith.constant 0 : index
    %c0_22 = arith.constant 0 : index
    %41 = vector.load %arg8[%c0_21, %c0_22] : memref<2x128xf32, #tpu.memory_space<vmem>>, vector<2x128xf32>
    tpu.vector_store %arg8[%c0_21, %c0_22], %40 {strides = array<i32>} : memref<2x128xf32, #tpu.memory_space<vmem>>, vector<2x128xf32>,
    return
  }
  func.func @transform_0(%arg0: i32) -> (i32, i32) {
    %c0_i32 = arith.constant 0 : i32
    %c0_i32_0 = arith.constant 0 : i32
    %c0_i32_1 = arith.constant 0 : i32
    return %c0_i32, %c0_i32_0 : i32, i32
  }
  func.func @transform_1(%arg0: i32) -> (i32, i32) {
    %c0_i32 = arith.constant 0 : i32
    %c0_i32_0 = arith.constant 0 : i32
    %c0_i32_1 = arith.constant 0 : i32
    return %c0_i32, %c0_i32_0 : i32, i32
  }
  func.func @transform_2(%arg0: i32) -> (i32, i32) {
    %c0_i32 = arith.constant 0 : i32
    %c0_i32_0 = arith.constant 0 : i32
    %c0_i32_1 = arith.constant 0 : i32
    return %c0_i32, %c0_i32_0 : i32, i32
  }
  func.func @transform_3(%arg0: i32) -> (i32, i32) {
    %c0_i32 = arith.constant 0 : i32
    %c0_i32_0 = arith.constant 0 : i32
    %c0_i32_1 = arith.constant 0 : i32
    return %c0_i32, %c0_i32_0 : i32, i32
  }
  func.func @transform_4(%arg0: i32) -> (i32, i32) {
    %c0_i32 = arith.constant 0 : i32
    %c0_i32_0 = arith.constant 0 : i32
    %c0_i32_1 = arith.constant 0 : i32
    return %c0_i32, %c0_i32_0 : i32, i32
  }
  func.func @transform_5(%arg0: i32) -> (i32, i32) {
    %c0_i32 = arith.constant 0 : i32
    %c0_i32_0 = arith.constant 0 : i32
    %c0_i32_1 = arith.constant 0 : i32
    return %c0_i32, %c0_i32_0 : i32, i32
  }
  func.func @transform_6(%arg0: i32) -> (i32, i32) {
    %c0_i32 = arith.constant 0 : i32
    %c0_i32_0 = arith.constant 0 : i32
    %c0_i32_1 = arith.constant 0 : i32
    return %c0_i32, %c0_i32_0 : i32, i32
  }
  func.func @transform_7(%arg0: i32) -> (i32, i32) {
    %c0_i32 = arith.constant 0 : i32
    %c0_i32_0 = arith.constant 0 : i32
    %c0_i32_1 = arith.constant 0 : i32
    return %c0_i32, %c0_i32_0 : i32, i32
  }
}

</mosaic_0001>

<bundles_post_ra>
// kernel: discriminator_forward.3
= control target key start
LH: loop header
LB: loop body
LE: loop exit
PB: predicated region body
PF: predicated region fallthrough
CT: control target
= control target key end

     0   :  { %8 = vsyncpa [#allocation3], 0  ;;  %s779_s0 = inlined_call_operand.vmem [shape: bf16[128,16], index: 0, kind: input, shape index: {}]   ;;  %s780_s1 = inlined_call_operand.hbm [shape: bf16[16,64], index: 1, kind: input, shape index: {}]   ;;  %s781_s2 = inlined_call_operand.hbm [shape: f32[1,64], index: 2, kind: input, shape index: {}]   ;;  %s782_s3 = inlined_call_operand.vmem [shape: bf16[128,64], index: 3, kind: output, shape index: {}]  }
   0x1   :  { %9 = vsyncpa [#allocation5], 0  ;;  %s657_s12 = smov 0  }
   0x2 LB: > { %s467_s13 = sadd.s32 4294967295, %s631_s12   ;;  %p469_p0 = scmp.ge.s32.totalorder %s631_s12, 1  ;;  %s631_s12 = sphi %s657_s12, %s15_s12  }
   0x3   : > { %p114_p1 = scmp.lt.s32.totalorder %s631_s12, 3  ;;  %s633_s14 = smov [#allocation2]  }
   0x4   : > { %s126_s15 = sshll.u32 %s633_s14, 4  ;;  %p671_p3 = scmp.eq.s32.totalorder %s467_s13, 0  ;;  %s127_s15 = int_to_ptr.vmem [resolvable:$true] %s126_s15 }
   0x5   : > { %p665_p2 = pnand %p469_p0, %p114_p1  ;;  %s634_s18 = smov [#allocation4]  }
   0x6   : > { %s787_s17 = scalar_select %p671_p3, 1, 0 }
   0x7   : > { %s786_s16 = scalar_select %p665_p2, 1, 0 }
   0x8   : > { %p533_p4 = pneg %p665_p2  ;;  %s140_s19 = sshll.u32 %s634_s18, 4  ;;  %s683_s19 = int_to_ptr.vmem [resolvable:$true] %s140_s19 }
   0x9   : > { %s561_s23 = scalar_lea.hbm %s780_s1, 128 }
   0xa   : > { %p679_p5 = pnand %p671_p3, %p533_p4  ;;  %p562_p6 = scmp.ne.s32.totalorder %s780_s1, %s561_s23 }
   0xb   : > { %p568_p10 = scmp.lt.u32.totalorder %s561_s23, %s780_s1 }
   0xc   : > { %p563_p7 = pneg %p679_p5 }
   0xe   : > { %p564_p8 = pnand %p563_p7, %p562_p6 }
  0x10   : > { %p565_p9 = pneg %p564_p8 }
  0x12   : > { %p570_p11 = pnand %p568_p10, %p565_p9 }
  0x14   : > { %573 = shalt.err (!%p570_p11)
}
  0x15   : > { %s574_s28 = scalar_lea.vmem %s127_s15, 128  ;;  %p582_p1 = scmp.lt.s32.totalorder %s127_s15, %s127_s15 }
  0x16   : > { %p575_p12 = scmp.ne.s32.totalorder %s127_s15, %s574_s28  ;;  %p583_p4 = scmp.lt.s32.totalorder %s574_s28, %s574_s28 }
  0x18   : > { %p577_p13 = pnand %p575_p12, %p563_p7  ;;  %p584_p3 = por %p583_p4, %p582_p1 }
  0x1a   : > { %p578_p0 = pneg %p577_p13 }
  0x1c   : > { %p585_p2 = pnand %p584_p3, %p578_p0 }
  0x1e   : > { %588 = shalt.err (!%p585_p2)
}
  0x1f   : > { %s635_s29 = smov 64   ;;  %s636_s30 = smov 4  }
  0x20   : > { %536 = dma.hbm_to_vmem [thread:$0]  (!%p679_p5), %s780_s1, 128, %s127_s15, [#allocation3], %s635_s29, %s635_s29, %s636_s30  }
  0x21   : > { %s589_s8 = scalar_lea.hbm %s781_s2, 16 }
  0x22   : > { %p590_p6 = scmp.ne.s32.totalorder %s781_s2, %s589_s8  ;;  %p596_p8 = scmp.lt.u32.totalorder %s589_s8, %s781_s2 }
  0x24   : > { %p592_p2 = pnand %p590_p6, %p563_p7 }
  0x26   : > { %p593_p3 = pneg %p592_p2 }
  0x28   : > { %p598_p9 = pnand %p596_p8, %p593_p3 }
  0x2a   : > { %601 = shalt.err (!%p598_p9)
}
  0x2b   : > { %s602_s15 = scalar_lea.vmem %s683_s19, 16  ;;  %s609_s18 = scalar_lea.vmem %s683_s19, 32 }
  0x2c   : > { %p603_p10 = scmp.ne.s32.totalorder %s683_s19, %s602_s15  ;;  %p610_p13 = scmp.lt.s32.totalorder %s683_s19, %s683_s19 }
  0x2d   : > { %p611_p0 = scmp.lt.s32.totalorder %s609_s18, %s602_s15 }
  0x2e   : > { %p605_p11 = pnand %p603_p10, %p563_p7 }
  0x2f   : > { %p612_p1 = por %p611_p0, %p610_p13 }
  0x30   : > { %p606_p12 = pneg %p605_p11 }
  0x32   : > { %p613_p4 = pnand %p612_p1, %p606_p12 }
  0x34   : > { %616 = shalt.err (!%p613_p4)
}
  0x35   : > { %539 = dma.hbm_to_vmem [thread:$0]  (!%p679_p5), %s781_s2, 16, %s683_s19, [#allocation5]  }
  0x36   : > { %p789_p6 = scmp.ne.s32.totalorder %s786_s16, 0 }
  0x37   : > { %p790_p7 = scmp.ne.s32.totalorder (!%p789_p6), %s787_s17, 0 }
  0x38   : > { %162 = sbr.rel (%p789_p6) target bundleno = 302 (0x12e), region = 32 }
  0x3f   : > { %622 = dma.done.wait (%p790_p7), [#allocation3], 128  }
  0x40   : > { %624 = vsyncadd (%p790_p7), [#allocation3], 4294967168 }
  0x41   : > { %626 = dma.done.wait (%p790_p7), [#allocation5], 16  }
  0x42   : > { %628 = vsyncadd (%p790_p7), [#allocation5], 4294967280  ;;  %s476_s20 = sshll.u32 %s467_s13, 3  ;;  %v556_v0 = vld [vmem:[#allocation2] sm:$0xff]   ;;  %vm246_vm0 = vcmask 130048   ;;  %vm380_vm1 = vcmask 519168  }
  0x43   : > { %p191_p2 = scmp.lt.s32.totalorder %s476_s20, 15  ;;  %513 = vmatprep.subr.bf16.mxu0 %v556_v0  ;;  %523 = vmatprep.subr.bf16.mxu1 %v556_v0  ;;  %v480_v5 = vld [vmem:[#allocation4] ss:$0 sm:$0xff] }
  0x44   : > { %514 = vmatpush3.bf16.msra.mxu0 %v556_v0  ;;  %524 = vmatpush3.bf16.msra.mxu1 %v556_v0 }
  0x45   : > { %s792_s20 = smov (!%p191_p2, %s476_s20), 15 }
  0x46   : > { %s477_s16 = sshll.u32 %s792_s20, 2 }
  0x47   : > { %s194_s24 = scalar_lea.vmem %s779_s0, %s477_s16  ;;  %s758_s25 = scalar_lea.vmem %s782_s3, %s477_s16 }
  0x48   : > { %v557_v1 = vld [vmem:[%s194_s24] sm:$0xff]   ;;  %v558_v2 = vld [vmem:[%s194_s24 + $0x10] sm:$0xff]   ;;  %v559_v3 = vld [vmem:[%s194_s24 + $0x8] sm:$0xff]  }
  0x49   : > { %515 = vmatprep.mubr.msk.bf16.mxu0 %vm246_vm0, %v557_v1  ;;  %519 = vmatprep.mubr.msk.bf16.mxu1 %vm246_vm0, %v558_v2  ;;  %v560_v4 = vld [vmem:[%s194_s24 + $0x18] sm:$0xff]  }
  0x4a   : > { %516 = vmatmul.mubr.msk.bf16.vlgmr.msra.gmra.mrb[0].mxu0 %vm246_vm0, %v559_v3  ;;  %520 = vmatmul.mubr.msk.bf16.vlgmr.msra.gmra.mrb[0].mxu1 %vm246_vm0, %v560_v4 }
 0x11d   : > { %v517_v6 = vpop.f32.mrb[0].mxu0  ;;  %v521_v7 = vpop.f32.mrb[0].mxu1 }
 0x11e   : > { %v302_v8 = vadd.f32 %v517_v6, %v480_v5  ;;  %v318_v9 = vadd.f32 %v521_v7, %v480_v5  ;;  %v293_v10 = vpop.f32.mrb[1].mxu0  ;;  %v309_v11 = vpop.f32.mrb[1].mxu1 }
 0x11f   : > { %v294_v12 = vadd.f32 %v480_v5, %v293_v10  ;;  %v310_v13 = vadd.f32 %v480_v5, %v309_v11  ;;  %v518_v14 = vpop.f32.mrb[2].mxu0  ;;  %v522_v15 = vpop.f32.mrb[2].mxu1 }
 0x120   : > { %vm326_vm2 = vcmp.ge.f32.partialorder %v302_v8, 0.0  ;;  %v334_v16 = vmul.f32 0.2, %v302_v8  ;;  %vm330_vm3 = vcmp.ge.f32.partialorder %v318_v9, 0.0  ;;  %v338_v17 = vmul.f32 0.2, %v318_v9 }
 0x121   : > { %vm324_vm4 = vcmp.ge.f32.partialorder %v294_v12, 0.0  ;;  %v332_v18 = vmul.f32 0.2, %v294_v12  ;;  %vm328_vm5 = vcmp.ge.f32.partialorder %v310_v13, 0.0  ;;  %v336_v19 = vmul.f32 0.2, %v310_v13 }
 0x122   : > { %v342_v20 = vsel %vm326_vm2, %v302_v8, %v334_v16  ;;  %v346_v21 = vsel %vm330_vm3, %v318_v9, %v338_v17  ;;  %v305_v22 = vadd.f32 %v518_v14, %v480_v5  ;;  %v321_v23 = vadd.f32 %v522_v15, %v480_v5  ;;  %v296_v24 = vpop.f32.mrb[3].mxu0  ;;  %v312_v25 = vpop.f32.mrb[3].mxu1 }
 0x123   : > { %v502_v26 = vpack.c.bf16 %v342_v20, %v342_v20  ;;  %v506_v27 = vpack.c.bf16 %v346_v21, %v346_v21  ;;  %v340_v28 = vsel %vm324_vm4, %v294_v12, %v332_v18  ;;  %v344_v29 = vsel %vm328_vm5, %v310_v13, %v336_v19 }
 0x124   : > { %v500_v30 = vpack.c.bf16 %v340_v28, %v340_v28  ;;  %v504_v31 = vpack.c.bf16 %v344_v29, %v344_v29  ;;  %vm327_vm6 = vcmp.ge.f32.partialorder %v305_v22, 0.0  ;;  %v335_v32 = vmul.f32 0.2, %v305_v22 }
 0x125   : > { %383 = vst.msk [vmem:[%s758_s25 + $0x8] sm:$0xf] %vm380_vm1, %v502_v26  ;;  %387 = vst.msk [vmem:[%s758_s25 + $0x18] sm:$0xf] %vm380_vm1, %v506_v27  ;;  %vm331_vm7 = vcmp.ge.f32.partialorder %v321_v23, 0.0  ;;  %v297_v34 = vadd.f32 %v480_v5, %v296_v24  ;;  %v313_v35 = vadd.f32 %v480_v5, %v312_v25 }
 0x126   : > { %v339_v33 = vmul.f32 0.2, %v321_v23  ;;  %381 = vst.msk [vmem:[%s758_s25] sm:$0xf] %vm380_vm1, %v500_v30  ;;  %385 = vst.msk [vmem:[%s758_s25 + $0x10] sm:$0xf] %vm380_vm1, %v504_v31  ;;  %v343_v36 = vsel %vm327_vm6, %v305_v22, %v335_v32 }
 0x127   : > { %v503_v37 = vpack.c.bf16 %v343_v36, %v343_v36  ;;  %vm325_vm8 = vcmp.ge.f32.partialorder %v297_v34, 0.0  ;;  %v333_v39 = vmul.f32 0.2, %v297_v34  ;;  %vm329_vm9 = vcmp.ge.f32.partialorder %v313_v35, 0.0 }
 0x128   : > { %v347_v38 = vsel %vm331_vm7, %v321_v23, %v339_v33  ;;  %v337_v41 = vmul.f32 0.2, %v313_v35 }
 0x129   : > { %v507_v40 = vpack.c.bf16 %v347_v38, %v347_v38  ;;  %384 = vst.msk [vmem:[%s758_s25 + $0xc] sm:$0xf] %vm380_vm1, %v503_v37  ;;  %v341_v42 = vsel %vm325_vm8, %v297_v34, %v333_v39 }
 0x12a   : > { %v501_v43 = vpack.c.bf16 %v341_v42, %v341_v42  ;;  %v345_v44 = vsel %vm329_vm9, %v313_v35, %v337_v41 }
 0x12b   : > { %388 = vst.msk [vmem:[%s758_s25 + $0x1c] sm:$0xf] %vm380_vm1, %v507_v40  ;;  %v505_v45 = vpack.c.bf16 %v345_v44, %v345_v44 }
 0x12c   : > { %382 = vst.msk [vmem:[%s758_s25 + $0x4] sm:$0xf] %vm380_vm1, %v501_v43 }
 0x12d   : > { %386 = vst.msk [vmem:[%s758_s25 + $0x14] sm:$0xf] %vm380_vm1, %v505_v45 }
 0x12e PF: > { %s15_s12 = sadd.s32 1, %s631_s12  }
 0x12f   : > { %p12_p5 = scmp.ge.s32.totalorder %s15_s12, 4  }
 0x131   :  { %14 = sbr.rel (!%p12_p5) target bundleno = 2 (0x2), region = 71 }
 0x138   :  { %411 = vsyncpa [#allocation3], 1 }
 0x139   :  { %413 = vsyncpa [#allocation3 + $0x1], 1 }
 0x13a   :  { %414 = vsyncpa [#allocation5], 1 }

// kernel: discriminator_forward.4
= control target key start
LH: loop header
LB: loop body
LE: loop exit
PB: predicated region body
PF: predicated region fallthrough
CT: control target
= control target key end

     0   :  { %10 = vsyncpa [#allocation3], 0  ;;  %s1502_s0 = inlined_call_operand.vmem [shape: bf16[32,1024], index: 0, kind: input, shape index: {}]   ;;  %s1503_s1 = inlined_call_operand.hbm [shape: bf16[1024,128], index: 1, kind: input, shape index: {}]   ;;  %s1504_s2 = inlined_call_operand.hbm [shape: f32[1,128], index: 2, kind: input, shape index: {}]   ;;  %s1505_s3 = inlined_call_operand.hbm [shape: f32[1,128], index: 3, kind: input, shape index: {}]   ;;  %s1506_s4 = inlined_call_operand.hbm [shape: f32[1,128], index: 4, kind: input, shape index: {}]   ;;  %s1507_s5 = inlined_call_operand.vmem [shape: bf16[32,128], index: 5, kind: output, shape index: {}]  }
   0x1   :  { %11 = vsyncpa [#allocation5], 0 }
   0x2   :  { %12 = vsyncpa [#allocation8], 0  ;;  %s1357_s18 = smov [#allocation4]   ;;  %s1358_s20 = smov [#allocation2]  }
   0x3   :  { %s33_s19 = sshll.u32 %s1357_s18, 4  ;;  %s20_s21 = sshll.u32 %s1358_s20, 4  ;;  %s34_s19 = int_to_ptr.vmem [resolvable:$true] %s33_s19  ;;  %s1393_s21 = int_to_ptr.vmem [resolvable:$true] %s20_s21 }
   0x4   :  { %s1263_s24 = scalar_lea.hbm %s1504_s2, 16 }
   0x5   :  { %p1264_p0 = scmp.ne.s32.totalorder %s1504_s2, %s1263_s24  ;;  %p1267_p1 = scmp.lt.u32.totalorder %s1263_s24, %s1504_s2 }
   0x7   :  { %p1269_p2 = pnand %p1267_p1, %p1264_p0 }
   0x9   :  { %1272 = shalt.err (!%p1269_p2)
}
   0xa   :  { %s1273_s29 = scalar_lea.vmem %s34_s19, 16  ;;  %s1277_s30 = scalar_lea.vmem %s34_s19, 32 }
   0xb   :  { %p1274_p3 = scmp.ne.s32.totalorder %s34_s19, %s1273_s29  ;;  %p1278_p4 = scmp.lt.s32.totalorder %s34_s19, %s34_s19 }
   0xc   :  { %p1279_p5 = scmp.lt.s32.totalorder %s1277_s30, %s1273_s29 }
   0xe   :  { %p1280_p6 = por %p1279_p5, %p1278_p4 }
  0x10   :  { %p1281_p7 = pnand %p1280_p6, %p1274_p3 }
  0x12   :  { %1284 = shalt.err (!%p1281_p7)
}
  0x13   :  { %36 = dma.hbm_to_vmem [thread:$0]  %s1504_s2, 16, %s34_s19, [#allocation5]  }
  0x14   :  { %s1285_s10 = scalar_lea.hbm %s1503_s1, 8192 }
  0x15   :  { %p1286_p8 = scmp.ne.s32.totalorder %s1503_s1, %s1285_s10  ;;  %p1289_p9 = scmp.lt.u32.totalorder %s1285_s10, %s1503_s1 }
  0x17   :  { %p1291_p10 = pnand %p1289_p9, %p1286_p8 }
  0x19   :  { %1294 = shalt.err (!%p1291_p10)
}
  0x1a   :  { %s1295_s15 = scalar_lea.vmem %s1393_s21, 8192  ;;  %p1300_p12 = scmp.lt.s32.totalorder %s1393_s21, %s1393_s21 }
  0x1b   :  { %p1296_p11 = scmp.ne.s32.totalorder %s1393_s21, %s1295_s15  ;;  %p1301_p13 = scmp.lt.s32.totalorder %s1295_s15, %s1295_s15 }
  0x1d   :  { %p1302_p0 = por %p1301_p13, %p1300_p12 }
  0x1f   :  { %p1303_p1 = pnand %p1302_p0, %p1296_p11 }
  0x21   :  { %1306 = shalt.err (!%p1303_p1)
}
  0x22   :  { %s1359_s2 = smov 64   ;;  %s1360_s16 = smov 4  }
  0x23   :  { %26 = dma.hbm_to_vmem [thread:$0]  %s1503_s1, 8192, %s1393_s21, [#allocation3], %s1359_s2, %s1359_s2, %s1360_s16  }
  0x24   :  { %s1361_s19 = smov [#allocation6]   ;;  %s1362_s22 = smov [#allocation7]  }
  0x25   :  { %s43_s20 = sshll.u32 %s1361_s19, 4  ;;  %s53_s23 = sshll.u32 %s1362_s22, 4  ;;  %s44_s20 = int_to_ptr.vmem [resolvable:$true] %s43_s20  ;;  %s54_s23 = int_to_ptr.vmem [resolvable:$true] %s53_s23 }
  0x26   :  { %s1307_s26 = scalar_lea.hbm %s1505_s3, 16 }
  0x27   :  { %p1308_p2 = scmp.ne.s32.totalorder %s1505_s3, %s1307_s26  ;;  %p1311_p3 = scmp.lt.u32.totalorder %s1307_s26, %s1505_s3 }
  0x29   :  { %p1313_p4 = pnand %p1311_p3, %p1308_p2 }
  0x2b   :  { %1316 = shalt.err (!%p1313_p4)
}
  0x2c   :  { %s1317_s1 = scalar_lea.vmem %s44_s20, 16  ;;  %s1321_s21 = scalar_lea.vmem %s44_s20, 32 }
  0x2d   :  { %p1318_p5 = scmp.ne.s32.totalorder %s44_s20, %s1317_s1  ;;  %p1322_p6 = scmp.lt.s32.totalorder %s44_s20, %s44_s20 }
  0x2e   :  { %p1323_p7 = scmp.lt.s32.totalorder %s1321_s21, %s1317_s1 }
  0x30   :  { %p1324_p8 = por %p1323_p7, %p1322_p6 }
  0x32   :  { %p1325_p9 = pnand %p1324_p8, %p1318_p5 }
  0x34   :  { %1328 = shalt.err (!%p1325_p9)
}
  0x35   :  { %46 = dma.hbm_to_vmem [thread:$0]  %s1505_s3, 16, %s44_s20, [#allocation5]  }
  0x36   :  { %s1329_s10 = scalar_lea.hbm %s1506_s4, 16 }
  0x37   :  { %p1330_p10 = scmp.ne.s32.totalorder %s1506_s4, %s1329_s10  ;;  %p1333_p11 = scmp.lt.u32.totalorder %s1329_s10, %s1506_s4 }
  0x39   :  { %p1335_p12 = pnand %p1333_p11, %p1330_p10 }
  0x3b   :  { %1338 = shalt.err (!%p1335_p12)
}
  0x3c   :  { %s1339_s15 = scalar_lea.vmem %s54_s23, 16  ;;  %s1343_s2 = scalar_lea.vmem %s54_s23, 32 }
  0x3d   :  { %p1340_p13 = scmp.ne.s32.totalorder %s54_s23, %s1339_s15  ;;  %p1344_p0 = scmp.lt.s32.totalorder %s54_s23, %s54_s23 }
  0x3e   :  { %p1345_p1 = scmp.lt.s32.totalorder %s1343_s2, %s1339_s15 }
  0x40   :  { %p1346_p2 = por %p1345_p1, %p1344_p0 }
  0x42   :  { %p1347_p3 = pnand %p1346_p2, %p1340_p13 }
  0x44   :  { %1350 = shalt.err (!%p1347_p3)
}
  0x45   :  { %56 = dma.hbm_to_vmem [thread:$0]  %s1506_s4, 16, %s54_s23, [#allocation8]  }
  0x46   :  { %1351 = dma.done.wait [#allocation3], 8192  }
  0x47   :  { %1352 = vsyncadd [#allocation3], 4294959104 }
  0x48   :  { %1353 = dma.done.wait [#allocation5], 32  }
  0x49   :  { %1354 = vsyncadd [#allocation5], 4294967264 }
  0x4a   :  { %1355 = dma.done.wait [#allocation8], 16  }
  0x4b   :  { %1356 = vsyncadd [#allocation8], 4294967280  ;;  %v1197_v0 = vld [vmem:[#allocation2 + $0x40] sm:$0xff]   ;;  %v1201_v4 = vld [vmem:[#allocation2 + $0x48] sm:$0xff]  }
  0x4c   :  { %v1198_v1 = vld [vmem:[#allocation2 + $0xc0] sm:$0xff]   ;;  %1079 = vmatprep.subr.bf16.mxu0 %v1197_v0  ;;  %v1202_v5 = vld [vmem:[#allocation2 + $0xc8] sm:$0xff]   ;;  %v1205_v8 = vld [vmem:[#allocation2 + $0x50] sm:$0xff]  }
  0x4d   :  { %v1199_v2 = vld [vmem:[#allocation2] sm:$0xff]   ;;  %1107 = vmatprep.subr.bf16.mxu1 %v1198_v1  ;;  %v1203_v6 = vld [vmem:[#allocation2 + $0x8] sm:$0xff]   ;;  %v1206_v9 = vld [vmem:[#allocation2 + $0xd0] sm:$0xff]  }
  0x4e   :  { %v1200_v3 = vld [vmem:[#allocation2 + $0x80] sm:$0xff]   ;;  %1080 = vmatpush3.bf16.msra.mxu0 %v1199_v2  ;;  %v1204_v7 = vld [vmem:[#allocation2 + $0x88] sm:$0xff]   ;;  %v1207_v10 = vld [vmem:[#allocation2 + $0x10] sm:$0xff]  }
  0x4f   :  { %1108 = vmatpush3.bf16.msra.mxu1 %v1200_v3  ;;  %1081 = vmatprep.subr.bf16.mxu0 %v1201_v4  ;;  %v1208_v11 = vld [vmem:[#allocation2 + $0x90] sm:$0xff]   ;;  %v1209_v12 = vld [vmem:[#allocation2 + $0x58] sm:$0xff]   ;;  %v1213_v16 = vld [vmem:[#allocation2 + $0x60] sm:$0xff]  }
  0x50   :  { %1109 = vmatprep.subr.bf16.mxu1 %v1202_v5  ;;  %v1210_v13 = vld [vmem:[#allocation2 + $0xd8] sm:$0xff]   ;;  %v1214_v17 = vld [vmem:[#allocation2 + $0xe0] sm:$0xff]   ;;  %v1217_v20 = vld [vmem:[#allocation2 + $0x68] sm:$0xff]  }
  0x51   :  { %v1211_v14 = vld [vmem:[#allocation2 + $0x18] sm:$0xff]   ;;  %v1215_v18 = vld [vmem:[#allocation2 + $0x20] sm:$0xff]   ;;  %v1218_v21 = vld [vmem:[#allocation2 + $0xe8] sm:$0xff]  }
  0x52   :  { %1082 = vmatpush3.bf16.msra.mxu0 %v1203_v6  ;;  %v1212_v15 = vld [vmem:[#allocation2 + $0x98] sm:$0xff]   ;;  %v1216_v19 = vld [vmem:[#allocation2 + $0xa0] sm:$0xff]   ;;  %v1219_v22 = vld [vmem:[#allocation2 + $0x28] sm:$0xff]  }
  0x53   :  { %1110 = vmatpush3.bf16.msra.mxu1 %v1204_v7  ;;  %1083 = vmatprep.subr.bf16.mxu0 %v1205_v8  ;;  %v1220_v23 = vld [vmem:[#allocation2 + $0xa8] sm:$0xff]   ;;  %v1221_v24 = vld [vmem:[#allocation2 + $0x70] sm:$0xff]   ;;  %v1225_v28 = vld [vmem:[#allocation2 + $0x78] sm:$0xff]  }
  0x54   :  { %1111 = vmatprep.subr.bf16.mxu1 %v1206_v9  ;;  %v1222_v25 = vld [vmem:[#allocation2 + $0xf0] sm:$0xff]   ;;  %v1226_v29 = vld [vmem:[#allocation2 + $0xf8] sm:$0xff]   ;;  %v70_v32 = vld [vmem:[%s1502_s0] sm:$0xff] }
  0x55   :  { %v1223_v26 = vld [vmem:[#allocation2 + $0x30] sm:$0xff]   ;;  %v1227_v30 = vld [vmem:[#allocation2 + $0x38] sm:$0xff]   ;;  %v74_v33 = vld [vmem:[%s1502_s0 + $0x20] sm:$0xff] }
  0x56   :  { %1084 = vmatpush3.bf16.msra.mxu0 %v1207_v10  ;;  %v1224_v27 = vld [vmem:[#allocation2 + $0xb0] sm:$0xff]   ;;  %v1228_v31 = vld [vmem:[#allocation2 + $0xb8] sm:$0xff]   ;;  %v71_v34 = vld [vmem:[%s1502_s0 + $0x8] sm:$0xff]  ;;  %v978_v35 = vcombine.low %v70_v32, %v74_v33  ;;  %v979_v36 = vcombine.high %v70_v32, %v74_v33 }
  0x57   :  { %1112 = vmatpush3.bf16.msra.mxu1 %v1208_v11  ;;  %1085 = vmatprep.subr.bf16.mxu0 %v1209_v12  ;;  %v75_v37 = vld [vmem:[%s1502_s0 + $0x28] sm:$0xff]  ;;  %v1229_v40 = vld [vmem:[#allocation2 + $0x140] sm:$0xff]   ;;  %v1237_v48 = vld [vmem:[#allocation2 + $0x150] sm:$0xff]  }
  0x58   :  { %1113 = vmatprep.subr.bf16.mxu1 %v1210_v13  ;;  %v980_v38 = vcombine.low %v71_v34, %v75_v37  ;;  %v981_v39 = vcombine.high %v71_v34, %v75_v37  ;;  %717 = vmatprep.mubr.bf16.mxu0 %v979_v36  ;;  %v1230_v41 = vld [vmem:[#allocation2 + $0x1c0] sm:$0xff]   ;;  %v1233_v44 = vld [vmem:[#allocation2 + $0x148] sm:$0xff]   ;;  %v1238_v49 = vld [vmem:[#allocation2 + $0x1d0] sm:$0xff]  }
  0x59   :  { %v1231_v42 = vld [vmem:[#allocation2 + $0x100] sm:$0xff]   ;;  %v1234_v45 = vld [vmem:[#allocation2 + $0x1c8] sm:$0xff]   ;;  %v1239_v50 = vld [vmem:[#allocation2 + $0x110] sm:$0xff]  }
  0x5a   :  { %1086 = vmatpush3.bf16.msra.mxu0 %v1211_v14  ;;  %766 = vmatprep.mubr.bf16.mxu1 %v981_v39  ;;  %v1232_v43 = vld [vmem:[#allocation2 + $0x180] sm:$0xff]   ;;  %v1235_v46 = vld [vmem:[#allocation2 + $0x108] sm:$0xff]   ;;  %v1240_v51 = vld [vmem:[#allocation2 + $0x190] sm:$0xff]  }
  0x5b   :  { %1114 = vmatpush3.bf16.msra.mxu1 %v1212_v15  ;;  %1087 = vmatprep.subr.bf16.mxu0 %v1213_v16  ;;  %v1236_v47 = vld [vmem:[#allocation2 + $0x188] sm:$0xff]   ;;  %v1241_v52 = vld [vmem:[#allocation2 + $0x158] sm:$0xff]   ;;  %v1245_v56 = vld [vmem:[#allocation2 + $0x160] sm:$0xff]  }
  0x5c   :  { %1115 = vmatprep.subr.bf16.mxu1 %v1214_v17  ;;  %v1242_v53 = vld [vmem:[#allocation2 + $0x1d8] sm:$0xff]   ;;  %v1246_v57 = vld [vmem:[#allocation2 + $0x1e0] sm:$0xff]   ;;  %v1249_v63 = vld [vmem:[#allocation2 + $0x168] sm:$0xff]  }
  0x5d   :  { %v1243_v54 = vld [vmem:[#allocation2 + $0x118] sm:$0xff]   ;;  %v1247_v58 = vld [vmem:[#allocation2 + $0x120] sm:$0xff]   ;;  %v1250_v1 = vld [vmem:[#allocation2 + $0x1e8] sm:$0xff]  }
  0x5e   :  { %1088 = vmatpush3.bf16.msra.mxu0 %v1215_v18  ;;  %v1244_v55 = vld [vmem:[#allocation2 + $0x198] sm:$0xff]   ;;  %v1248_v59 = vld [vmem:[#allocation2 + $0x1a0] sm:$0xff]   ;;  %v1251_v2 = vld [vmem:[#allocation2 + $0x128] sm:$0xff]  }
  0x5f   :  { %1116 = vmatpush3.bf16.msra.mxu1 %v1216_v19  ;;  %1089 = vmatprep.subr.bf16.mxu0 %v1217_v20  ;;  %v78_v60 = vld [vmem:[%s1502_s0 + $0x40] sm:$0xff]  ;;  %v1252_v3 = vld [vmem:[#allocation2 + $0x1a8] sm:$0xff]   ;;  %v1253_v8 = vld [vmem:[#allocation2 + $0x170] sm:$0xff]  }
  0x60   :  { %1117 = vmatprep.subr.bf16.mxu1 %v1218_v21  ;;  %v82_v61 = vld [vmem:[%s1502_s0 + $0x60] sm:$0xff]  ;;  %v79_v4 = vld [vmem:[%s1502_s0 + $0x48] sm:$0xff]  ;;  %v1254_v9 = vld [vmem:[#allocation2 + $0x1f0] sm:$0xff]  }
  0x61   :  { %v987_v62 = vcombine.high %v78_v60, %v82_v61  ;;  %v986_v0 = vcombine.low %v78_v60, %v82_v61  ;;  %v83_v5 = vld [vmem:[%s1502_s0 + $0x68] sm:$0xff]  ;;  %v1255_v10 = vld [vmem:[#allocation2 + $0x130] sm:$0xff]   ;;  %v1257_v12 = vld [vmem:[#allocation2 + $0x178] sm:$0xff]  }
  0x62   :  { %1090 = vmatpush3.bf16.msra.mxu0 %v1219_v22  ;;  %v989_v6 = vcombine.high %v79_v4, %v83_v5  ;;  %v988_v7 = vcombine.low %v79_v4, %v83_v5  ;;  %v1256_v11 = vld [vmem:[#allocation2 + $0x1b0] sm:$0xff]   ;;  %v1258_v13 = vld [vmem:[#allocation2 + $0x1f8] sm:$0xff]   ;;  %v977_v34 = vld [vmem:[#allocation4] ss:$0 sm:$0xff] }
  0x63   :  { %1118 = vmatpush3.bf16.msra.mxu1 %v1220_v23  ;;  %1091 = vmatprep.subr.bf16.mxu0 %v1221_v24  ;;  %v1259_v14 = vld [vmem:[#allocation2 + $0x138] sm:$0xff]   ;;  %v72_v16 = vld [vmem:[%s1502_s0 + $0x10] sm:$0xff] }
  0x64   :  { %1119 = vmatprep.subr.bf16.mxu1 %v1222_v25  ;;  %v1260_v15 = vld [vmem:[#allocation2 + $0x1b8] sm:$0xff]   ;;  %v76_v17 = vld [vmem:[%s1502_s0 + $0x30] sm:$0xff] }
  0x65   :  { %v73_v18 = vld [vmem:[%s1502_s0 + $0x18] sm:$0xff]  ;;  %v982_v20 = vcombine.low %v72_v16, %v76_v17  ;;  %v983_v21 = vcombine.high %v72_v16, %v76_v17  ;;  %v80_v24 = vld [vmem:[%s1502_s0 + $0x50] sm:$0xff] }
  0x66   :  { %1092 = vmatpush3.bf16.msra.mxu0 %v1223_v26  ;;  %v77_v19 = vld [vmem:[%s1502_s0 + $0x38] sm:$0xff]  ;;  %v84_v25 = vld [vmem:[%s1502_s0 + $0x70] sm:$0xff] }
  0x67   :  { %1120 = vmatpush3.bf16.msra.mxu1 %v1224_v27  ;;  %1093 = vmatprep.subr.bf16.mxu0 %v1225_v28  ;;  %v984_v22 = vcombine.low %v73_v18, %v77_v19  ;;  %v985_v23 = vcombine.high %v73_v18, %v77_v19  ;;  %v81_v26 = vld [vmem:[%s1502_s0 + $0x58] sm:$0xff]  ;;  %v991_v27 = vcombine.high %v80_v24, %v84_v25 }
  0x68   :  { %1121 = vmatprep.subr.bf16.mxu1 %v1226_v29  ;;  %v85_v28 = vld [vmem:[%s1502_s0 + $0x78] sm:$0xff] }
  0x69   :  { %v993_v29 = vcombine.high %v81_v26, %v85_v28 }
  0x6a   :  { %1094 = vmatpush3.bf16.msra.mxu0 %v1227_v30  ;;  %v990_v30 = vcombine.low %v80_v24, %v84_v25 }
  0x6b   :  { %1122 = vmatpush3.bf16.msra.mxu1 %v1228_v31  ;;  %1135 = vmatprep.subr.bf16.mxu0 %v1229_v40  ;;  %v992_v31 = vcombine.low %v81_v26, %v85_v28 }
  0x6c   :  { %1163 = vmatprep.subr.bf16.mxu1 %v1230_v41 }
  0x6d   :  { %718 = vmatmul.mubr.bf16.vlgmr.msra.gmra.mrb[0].mxu0 %v978_v35 }
  0x6e   :  { %767 = vmatmul.mubr.bf16.vlgmr.msra.gmra.mrb[0].mxu1 %v980_v38  ;;  %1136 = vmatpush3.bf16.msra.mxu0 %v1231_v42 }
  0x6f   :  { %1164 = vmatpush3.bf16.msra.mxu1 %v1232_v43  ;;  %1137 = vmatprep.subr.bf16.mxu0 %v1233_v44 }
  0x70   :  { %1165 = vmatprep.subr.bf16.mxu1 %v1234_v45  ;;  %725 = vmatprep.mubr.bf16.mxu0 %v987_v62 }
  0x71   :  { %774 = vmatprep.mubr.bf16.mxu1 %v989_v6 }
  0x72   :  { %1138 = vmatpush3.bf16.msra.mxu0 %v1235_v46 }
  0x73   :  { %1166 = vmatpush3.bf16.msra.mxu1 %v1236_v47  ;;  %1139 = vmatprep.subr.bf16.mxu0 %v1237_v48 }
  0x74   :  { %1167 = vmatprep.subr.bf16.mxu1 %v1238_v49 }
  0x75   :  { %726 = vmatmul.mubr.bf16.gmra.mrb[4].mxu0 %v986_v0 }
  0x76   :  { %1140 = vmatpush3.bf16.msra.mxu0 %v1239_v50  ;;  %775 = vmatmul.mubr.bf16.gmra.mrb[4].mxu1 %v988_v7 }
  0x77   :  { %1168 = vmatpush3.bf16.msra.mxu1 %v1240_v51  ;;  %1141 = vmatprep.subr.bf16.mxu0 %v1241_v52 }
  0x78   :  { %1169 = vmatprep.subr.bf16.mxu1 %v1242_v53  ;;  %815 = vmatprep.mubr.bf16.mxu0 %v983_v21 }
  0x79   :  { %864 = vmatprep.mubr.bf16.mxu1 %v985_v23 }
  0x7a   :  { %1142 = vmatpush3.bf16.msra.mxu0 %v1243_v54 }
  0x7b   :  { %1170 = vmatpush3.bf16.msra.mxu1 %v1244_v55  ;;  %1143 = vmatprep.subr.bf16.mxu0 %v1245_v56 }
  0x7c   :  { %1171 = vmatprep.subr.bf16.mxu1 %v1246_v57 }
  0x7e   :  { %1144 = vmatpush3.bf16.msra.mxu0 %v1247_v58 }
  0x7f   :  { %1172 = vmatpush3.bf16.msra.mxu1 %v1248_v59  ;;  %1145 = vmatprep.subr.bf16.mxu0 %v1249_v63 }
  0x80   :  { %1173 = vmatprep.subr.bf16.mxu1 %v1250_v1 }
  0x82   :  { %1146 = vmatpush3.bf16.msra.mxu0 %v1251_v2 }
  0x83   :  { %1174 = vmatpush3.bf16.msra.mxu1 %v1252_v3  ;;  %1147 = vmatprep.subr.bf16.mxu0 %v1253_v8 }
  0x84   :  { %1175 = vmatprep.subr.bf16.mxu1 %v1254_v9 }
  0x86   :  { %1148 = vmatpush3.bf16.msra.mxu0 %v1255_v10 }
  0x87   :  { %1176 = vmatpush3.bf16.msra.mxu1 %v1256_v11  ;;  %1149 = vmatprep.subr.bf16.mxu0 %v1257_v12 }
  0x88   :  { %1177 = vmatprep.subr.bf16.mxu1 %v1258_v13 }
  0x8a   :  { %1150 = vmatpush3.bf16.msra.mxu0 %v1259_v14 }
  0x8b   :  { %1178 = vmatpush3.bf16.msra.mxu1 %v1260_v15 }
  0x8d   :  { %816 = vmatmul.mubr.bf16.vlgmr.msra.gmra.mrb[8].mxu0 %v982_v20 }
  0x8e   :  { %865 = vmatmul.mubr.bf16.vlgmr.msra.gmra.mrb[8].mxu1 %v984_v22  ;;  %823 = vmatprep.mubr.bf16.mxu0 %v991_v27 }
  0x8f   :  { %872 = vmatprep.mubr.bf16.mxu1 %v993_v29 }
  0x95   :  { %824 = vmatmul.mubr.bf16.gmra.mrb[12].mxu0 %v990_v30 }
  0x96   :  { %873 = vmatmul.mubr.bf16.gmra.mrb[12].mxu1 %v992_v31 }
 0x140   :  { %v1095_v32 = vpop.f32.mrb[0].mxu0 }
 0x141   :  { %v1123_v33 = vpop.f32.mrb[0].mxu1  ;;  %v1096_v35 = vpop.f32.mrb[1].mxu0 }
 0x142   :  { %v1097_v36 = vadd.f32 %v1096_v35, %v1095_v32  ;;  %v1124_v37 = vpop.f32.mrb[1].mxu1  ;;  %v1098_v38 = vpop.f32.mrb[2].mxu0 }
 0x143   :  { %v1125_v39 = vadd.f32 %v1124_v37, %v1123_v33  ;;  %v1126_v40 = vpop.f32.mrb[2].mxu1  ;;  %v1099_v41 = vpop.f32.mrb[3].mxu0 }
 0x144   :  { %v720_v42 = vadd.f32 %v1097_v36, %v977_v34  ;;  %v1100_v43 = vadd.f32 %v1099_v41, %v1098_v38  ;;  %v1127_v44 = vpop.f32.mrb[3].mxu1 }
 0x145   :  { %v1128_v45 = vadd.f32 %v1127_v44, %v1126_v40 }
 0x146   :  { %v769_v46 = vadd.f32 %v1125_v39, %v720_v42  ;;  %v723_v47 = vadd.f32 %v1100_v43, %v977_v34 }
 0x148   :  { %v772_v48 = vadd.f32 %v1128_v45, %v723_v47  ;;  %v1101_v49 = vpop.f32.mrb[4].mxu0 }
 0x149   :  { %v1102_v50 = vpop.f32.mrb[5].mxu0  ;;  %v1129_v56 = vpop.f32.mrb[4].mxu1 }
 0x14a   :  { %v1103_v51 = vadd.f32 %v1102_v50, %v1101_v49  ;;  %v1104_v52 = vpop.f32.mrb[6].mxu0  ;;  %v1130_v57 = vpop.f32.mrb[5].mxu1 }
 0x14b   :  { %v1105_v53 = vpop.f32.mrb[7].mxu0  ;;  %v1131_v59 = vadd.f32 %v1130_v57, %v1129_v56  ;;  %v1132_v60 = vpop.f32.mrb[6].mxu1 }
 0x14c   :  { %v1106_v54 = vadd.f32 %v1105_v53, %v1104_v52  ;;  %v728_v55 = vadd.f32 %v1103_v51, %v977_v34  ;;  %v1133_v61 = vpop.f32.mrb[7].mxu1 }
 0x14d   :  { %v1134_v63 = vadd.f32 %v1133_v61, %v1132_v60 }
 0x14e   :  { %v731_v58 = vadd.f32 %v1106_v54, %v977_v34  ;;  %v777_v62 = vadd.f32 %v1131_v59, %v728_v55 }
 0x150   :  { %v780_v0 = vadd.f32 %v1134_v63, %v731_v58  ;;  %v1058_v63 = vld [vmem:[#allocation6] ss:$0 sm:$0xff] }
 0x160   :  { %v1151_v1 = vpop.f32.mrb[8].mxu0 }
 0x161   :  { %v1179_v2 = vpop.f32.mrb[8].mxu1  ;;  %v1152_v3 = vpop.f32.mrb[9].mxu0 }
 0x162   :  { %v1180_v4 = vpop.f32.mrb[9].mxu1  ;;  %v1153_v5 = vadd.f32 %v1152_v3, %v1151_v1  ;;  %v1154_v7 = vpop.f32.mrb[10].mxu0 }
 0x163   :  { %v1181_v6 = vadd.f32 %v1180_v4, %v1179_v2  ;;  %v1182_v8 = vpop.f32.mrb[10].mxu1  ;;  %v1155_v9 = vpop.f32.mrb[11].mxu0  ;;  %v1059_v4 = vld [vmem:[#allocation7] ss:$0 sm:$0xff] }
 0x164   :  { %v1183_v10 = vpop.f32.mrb[11].mxu1  ;;  %v818_v11 = vadd.f32 %v1153_v5, %v769_v46  ;;  %v1156_v12 = vadd.f32 %v1155_v9, %v1154_v7 }
 0x165   :  { %v1184_v13 = vadd.f32 %v1183_v10, %v1182_v8 }
 0x166   :  { %v867_v14 = vadd.f32 %v1181_v6, %v818_v11  ;;  %v821_v15 = vadd.f32 %v1156_v12, %v772_v48 }
 0x168   :  { %v870_v16 = vadd.f32 %v1184_v13, %v821_v15  ;;  %v1157_v17 = vpop.f32.mrb[12].mxu0 }
 0x169   :  { %v1185_v18 = vpop.f32.mrb[12].mxu1  ;;  %v1158_v19 = vpop.f32.mrb[13].mxu0 }
 0x16a   :  { %v1186_v20 = vpop.f32.mrb[13].mxu1  ;;  %v881_v21 = vadd.f32 %v870_v16, %v867_v14  ;;  %v1159_v22 = vadd.f32 %v1158_v19, %v1157_v17  ;;  %v1160_v24 = vpop.f32.mrb[14].mxu0 }
 0x16b   :  { %v1187_v23 = vadd.f32 %v1186_v20, %v1185_v18  ;;  %v1188_v25 = vpop.f32.mrb[14].mxu1  ;;  %v1161_v26 = vpop.f32.mrb[15].mxu0 }
 0x16c   :  { %v1189_v27 = vpop.f32.mrb[15].mxu1  ;;  %v826_v28 = vadd.f32 %v1159_v22, %v777_v62  ;;  %v1162_v29 = vadd.f32 %v1161_v26, %v1160_v24 }
 0x16d   :  { %v1190_v30 = vadd.f32 %v1189_v27, %v1188_v25 }
 0x16e   :  { %v875_v31 = vadd.f32 %v1187_v23, %v826_v28  ;;  %v829_v32 = vadd.f32 %v1162_v29, %v780_v0 }
 0x170   :  { %v882_v33 = vadd.f32 %v881_v21, %v875_v31  ;;  %v878_v34 = vadd.f32 %v1190_v30, %v829_v32 }
 0x172   :  { %v883_v35 = vadd.f32 %v882_v33, %v878_v34 }
 0x174   :  { %v884_v36 = vrot.slane %v883_v35, 4 }
 0x176   :  { %v885_v37 = vadd.f32 %v884_v36, %v883_v35 }
 0x178   :  { %v886_v38 = vrot.slane %v885_v37, 2 }
 0x17a   :  { %v887_v39 = vadd.f32 %v886_v38, %v885_v37 }
 0x17c   :  { %v888_v40 = vrot.slane %v887_v39, 1 }
 0x17e   :  { %v889_v41 = vadd.f32 %v888_v40, %v887_v39 }
 0x180   :  { %v891_v42 = vmul.f32 0.03125, %v889_v41 }
 0x182   :  { %v892_v43 = vsub.f32 %v867_v14, %v891_v42  ;;  %v893_v44 = vsub.f32 %v870_v16, %v891_v42  ;;  %v894_v45 = vsub.f32 %v875_v31, %v891_v42  ;;  %v895_v46 = vsub.f32 %v878_v34, %v891_v42 }
 0x184   :  { %v896_v47 = vmul.f32 %v892_v43, %v892_v43  ;;  %v897_v48 = vmul.f32 %v893_v44, %v893_v44  ;;  %v898_v49 = vmul.f32 %v894_v45, %v894_v45  ;;  %v899_v51 = vmul.f32 %v895_v46, %v895_v46 }
 0x186   :  { %v900_v50 = vadd.f32 %v897_v48, %v896_v47 }
 0x188   :  { %v901_v52 = vadd.f32 %v900_v50, %v898_v49 }
 0x18a   :  { %v902_v53 = vadd.f32 %v901_v52, %v899_v51 }
 0x18c   :  { %v903_v54 = vrot.slane %v902_v53, 4 }
 0x18e   :  { %v904_v55 = vadd.f32 %v903_v54, %v902_v53 }
 0x190   :  { %v905_v56 = vrot.slane %v904_v55, 2 }
 0x192   :  { %v906_v57 = vadd.f32 %v905_v56, %v904_v55 }
 0x194   :  { %v907_v58 = vrot.slane %v906_v57, 1 }
 0x196   :  { %v908_v59 = vadd.f32 %v907_v58, %v906_v57 }
 0x198   :  { %v909_v60 = vmul.f32 0.03125, %v908_v59 }
 0x19a   :  { %v910_v61 = vadd.f32 1e-05, %v909_v60 }
 0x19c   :  { %1261 = vrsqrt.f32 %v910_v61 }
 0x1a6   :  { %v1262_v62 = vpop.eup %1261 }
 0x1a7   :  { %v912_v0 = vmul.f32 %v1262_v62, %v892_v43  ;;  %v913_v1 = vmul.f32 %v1262_v62, %v893_v44  ;;  %v914_v2 = vmul.f32 %v1262_v62, %v894_v45  ;;  %v915_v3 = vmul.f32 %v1262_v62, %v895_v46 }
 0x1a9   :  { %v923_v5 = vmul.f32 %v1058_v63, %v912_v0  ;;  %v924_v6 = vmul.f32 %v1058_v63, %v913_v1  ;;  %v925_v7 = vmul.f32 %v1058_v63, %v914_v2  ;;  %v926_v8 = vmul.f32 %v1058_v63, %v915_v3 }
 0x1ab   :  { %v934_v9 = vadd.f32 %v1059_v4, %v923_v5  ;;  %v935_v10 = vadd.f32 %v1059_v4, %v924_v6  ;;  %v936_v11 = vadd.f32 %v1059_v4, %v925_v7  ;;  %v937_v12 = vadd.f32 %v1059_v4, %v926_v8 }
 0x1ad   :  { %vm938_vm0 = vcmp.ge.f32.partialorder %v934_v9, 0.0  ;;  %vm939_vm1 = vcmp.ge.f32.partialorder %v935_v10, 0.0  ;;  %vm940_vm2 = vcmp.ge.f32.partialorder %v936_v11, 0.0  ;;  %vm941_vm3 = vcmp.ge.f32.partialorder %v937_v12, 0.0 }
 0x1ae   :  { %v942_v13 = vmul.f32 0.2, %v934_v9  ;;  %v943_v14 = vmul.f32 0.2, %v935_v10  ;;  %v944_v15 = vmul.f32 0.2, %v936_v11 }
 0x1af   :  { %v945_v16 = vmul.f32 0.2, %v937_v12 }
 0x1b0   :  { %v946_v17 = vsel %vm938_vm0, %v934_v9, %v942_v13  ;;  %v947_v18 = vsel %vm939_vm1, %v935_v10, %v943_v14  ;;  %v948_v19 = vsel %vm940_vm2, %v936_v11, %v944_v15 }
 0x1b1   :  { %v949_v20 = vsel %vm941_vm3, %v937_v12, %v945_v16  ;;  %v1071_v21 = vpack.c.bf16 %v947_v18, %v946_v17 }
 0x1b2   :  { %v1076_v22 = vpack.c.bf16 %v949_v20, %v948_v19 }
 0x1b3   :  { %1072 = vst [vmem:[%s1507_s5] sm:$0xff] %v1071_v21  }
 0x1b4   :  { %1078 = vst [vmem:[%s1507_s5 + $0x8] sm:$0xff] %v1076_v22  }
 0x1b5   :  { %974 = vsyncpa [#allocation3], 1 }
 0x1b6   :  { %975 = vsyncpa [#allocation5], 1 }
 0x1b7   :  { %976 = vsyncpa [#allocation8], 1 }

// kernel: discriminator_forward.5
= control target key start
LH: loop header
LB: loop body
LE: loop exit
PB: predicated region body
PF: predicated region fallthrough
CT: control target
= control target key end

     0   :  { %12 = vsyncpa [#allocation3], 0  ;;  %s10687_s0 = inlined_call_operand.vmem [shape: bf16[2,2048], index: 0, kind: input, shape index: {}]   ;;  %s10688_s1 = inlined_call_operand.hbm [shape: bf16[2048,1024], index: 1, kind: input, shape index: {}]   ;;  %s10689_s2 = inlined_call_operand.hbm [shape: f32[1,1024], index: 2, kind: input, shape index: {}]   ;;  %s10690_s3 = inlined_call_operand.hbm [shape: f32[1,1024], index: 3, kind: input, shape index: {}]   ;;  %s10691_s4 = inlined_call_operand.hbm [shape: f32[1,1024], index: 4, kind: input, shape index: {}]   ;;  %s10692_s5 = inlined_call_operand.hbm [shape: bf16[1024,128], index: 5, kind: input, shape index: {}]   ;;  %s10693_s6 = inlined_call_operand.hbm [shape: f32[1,128], index: 6, kind: input, shape index: {}]   ;;  %s10694_s7 = inlined_call_operand.vmem [shape: f32[2,128], index: 7, kind: output, shape index: {}]  }
   0x1   :  { %13 = vsyncpa [#allocation5], 0 }
   0x2   :  { %14 = vsyncpa [#allocation8], 0 }
   0x3   :  { %15 = vsyncpa [#allocation11], 0  ;;  %s10238_s24 = smov [#allocation4]   ;;  %s10239_s26 = smov [#allocation7]  }
   0x4   :  { %s36_s25 = sshll.u32 %s10238_s24, 4  ;;  %s56_s27 = sshll.u32 %s10239_s26, 4  ;;  %s37_s25 = int_to_ptr.vmem [resolvable:$true] %s36_s25  ;;  %s57_s27 = int_to_ptr.vmem [resolvable:$true] %s56_s27 }
   0x5   :  { %s10098_s30 = scalar_lea.hbm %s10689_s2, 128 }
   0x6   :  { %p10099_p0 = scmp.ne.s32.totalorder %s10689_s2, %s10098_s30  ;;  %p10102_p1 = scmp.lt.u32.totalorder %s10098_s30, %s10689_s2 }
   0x8   :  { %p10104_p2 = pnand %p10102_p1, %p10099_p0 }
   0xa   :  { %10107 = shalt.err (!%p10104_p2)
}
   0xb   :  { %s10108_s12 = scalar_lea.vmem %s37_s25, 128  ;;  %p10113_p4 = scmp.lt.s32.totalorder %s37_s25, %s37_s25 }
   0xc   :  { %p10109_p3 = scmp.ne.s32.totalorder %s37_s25, %s10108_s12  ;;  %p10114_p5 = scmp.lt.s32.totalorder %s10108_s12, %s10108_s12 }
   0xe   :  { %p10115_p6 = por %p10114_p5, %p10113_p4 }
  0x10   :  { %p10116_p7 = pnand %p10115_p6, %p10109_p3 }
  0x12   :  { %10119 = shalt.err (!%p10116_p7)
}
  0x13   :  { %39 = dma.hbm_to_vmem [thread:$0]  %s10689_s2, 128, %s37_s25, [#allocation5]  }
  0x14   :  { %s10120_s17 = scalar_lea.hbm %s10691_s4, 128 }
  0x15   :  { %p10121_p8 = scmp.ne.s32.totalorder %s10691_s4, %s10120_s17  ;;  %p10124_p9 = scmp.lt.u32.totalorder %s10120_s17, %s10691_s4 }
  0x17   :  { %p10126_p10 = pnand %p10124_p9, %p10121_p8 }
  0x19   :  { %10129 = shalt.err (!%p10126_p10)
}
  0x1a   :  { %s10130_s22 = scalar_lea.vmem %s57_s27, 128  ;;  %p10135_p12 = scmp.lt.s32.totalorder %s57_s27, %s57_s27 }
  0x1b   :  { %p10131_p11 = scmp.ne.s32.totalorder %s57_s27, %s10130_s22  ;;  %p10136_p13 = scmp.lt.s32.totalorder %s10130_s22, %s10130_s22 }
  0x1d   :  { %p10137_p0 = por %p10136_p13, %p10135_p12 }
  0x1f   :  { %p10138_p1 = pnand %p10137_p0, %p10131_p11 }
  0x21   :  { %10141 = shalt.err (!%p10138_p1)
}
  0x22   :  { %59 = dma.hbm_to_vmem [thread:$0]  %s10691_s4, 128, %s57_s27, [#allocation8]  }
  0x23   :  { %s10240_s24 = smov [#allocation2]   ;;  %s10142_s29 = scalar_lea.hbm %s10688_s1, 131072 }
  0x24   :  { %s23_s25 = sshll.u32 %s10240_s24, 4  ;;  %p10143_p2 = scmp.ne.s32.totalorder %s10688_s1, %s10142_s29  ;;  %s24_s25 = int_to_ptr.vmem [resolvable:$true] %s23_s25 }
  0x25   :  { %p10146_p3 = scmp.lt.u32.totalorder %s10142_s29, %s10688_s1 }
  0x27   :  { %p10148_p4 = pnand %p10146_p3, %p10143_p2 }
  0x29   :  { %10151 = shalt.err (!%p10148_p4)
}
  0x2a   :  { %s10152_s11 = scalar_lea.vmem %s24_s25, 131072  ;;  %p10157_p6 = scmp.lt.s32.totalorder %s24_s25, %s24_s25 }
  0x2b   :  { %p10153_p5 = scmp.ne.s32.totalorder %s24_s25, %s10152_s11  ;;  %p10158_p7 = scmp.lt.s32.totalorder %s10152_s11, %s10152_s11 }
  0x2d   :  { %p10159_p8 = por %p10158_p7, %p10157_p6 }
  0x2f   :  { %p10160_p9 = pnand %p10159_p8, %p10153_p5 }
  0x31   :  { %10163 = shalt.err (!%p10160_p9)
}
  0x32   :  { %s10241_s4 = smov 512   ;;  %s10242_s27 = smov 32  }
  0x33   :  { %29 = dma.hbm_to_vmem [thread:$0]  %s10688_s1, 131072, %s24_s25, [#allocation3], %s10241_s4, %s10241_s4, %s10242_s27  }
  0x34   :  { %s10243_s14 = smov [#allocation6]   ;;  %s10244_s16 = smov [#allocation9]  }
  0x35   :  { %s46_s15 = sshll.u32 %s10243_s14, 4  ;;  %s65_s17 = sshll.u32 %s10244_s16, 4  ;;  %s47_s15 = int_to_ptr.vmem [resolvable:$true] %s46_s15  ;;  %s66_s17 = int_to_ptr.vmem [resolvable:$true] %s65_s17 }
  0x36   :  { %s10164_s20 = scalar_lea.hbm %s10690_s3, 128 }
  0x37   :  { %p10165_p10 = scmp.ne.s32.totalorder %s10690_s3, %s10164_s20  ;;  %p10168_p11 = scmp.lt.u32.totalorder %s10164_s20, %s10690_s3 }
  0x39   :  { %p10170_p12 = pnand %p10168_p11, %p10165_p10 }
  0x3b   :  { %10173 = shalt.err (!%p10170_p12)
}
  0x3c   :  { %s10174_s1 = scalar_lea.vmem %s47_s15, 128  ;;  %p10179_p0 = scmp.lt.s32.totalorder %s47_s15, %s47_s15 }
  0x3d   :  { %p10175_p13 = scmp.ne.s32.totalorder %s47_s15, %s10174_s1  ;;  %p10180_p1 = scmp.lt.s32.totalorder %s10174_s1, %s10174_s1 }
  0x3f   :  { %p10181_p2 = por %p10180_p1, %p10179_p0 }
  0x41   :  { %p10182_p3 = pnand %p10181_p2, %p10175_p13 }
  0x43   :  { %10185 = shalt.err (!%p10182_p3)
}
  0x44   :  { %49 = dma.hbm_to_vmem [thread:$0]  %s10690_s3, 128, %s47_s15, [#allocation5]  }
  0x45   :  { %s10186_s29 = scalar_lea.hbm %s10692_s5, 8192 }
  0x46   :  { %p10187_p4 = scmp.ne.s32.totalorder %s10692_s5, %s10186_s29  ;;  %p10190_p5 = scmp.lt.u32.totalorder %s10186_s29, %s10692_s5 }
  0x48   :  { %p10192_p6 = pnand %p10190_p5, %p10187_p4 }
  0x4a   :  { %10195 = shalt.err (!%p10192_p6)
}
  0x4b   :  { %s10196_s11 = scalar_lea.vmem %s66_s17, 8192  ;;  %p10201_p8 = scmp.lt.s32.totalorder %s66_s17, %s66_s17 }
  0x4c   :  { %p10197_p7 = scmp.ne.s32.totalorder %s66_s17, %s10196_s11  ;;  %p10202_p9 = scmp.lt.s32.totalorder %s10196_s11, %s10196_s11 }
  0x4e   :  { %p10203_p10 = por %p10202_p9, %p10201_p8 }
  0x50   :  { %p10204_p11 = pnand %p10203_p10, %p10197_p7 }
  0x52   :  { %10207 = shalt.err (!%p10204_p11)
}
  0x53   :  { %s10245_s3 = smov 64   ;;  %s10246_s4 = smov 4  }
  0x54   :  { %71 = dma.hbm_to_vmem [thread:$0]  %s10692_s5, 8192, %s66_s17, [#allocation8], %s10245_s3, %s10245_s3, %s10246_s4  }
  0x55   :  { %s10247_s13 = smov [#allocation10]   ;;  %s10208_s18 = scalar_lea.hbm %s10693_s6, 16 }
  0x56   :  { %s78_s14 = sshll.u32 %s10247_s13, 4  ;;  %p10209_p12 = scmp.ne.s32.totalorder %s10693_s6, %s10208_s18  ;;  %s79_s14 = int_to_ptr.vmem [resolvable:$true] %s78_s14 }
  0x57   :  { %p10212_p13 = scmp.lt.u32.totalorder %s10208_s18, %s10693_s6 }
  0x59   :  { %p10214_p0 = pnand %p10212_p13, %p10209_p12 }
  0x5b   :  { %10217 = shalt.err (!%p10214_p0)
}
  0x5c   :  { %s10218_s2 = scalar_lea.vmem %s79_s14, 16  ;;  %s10222_s5 = scalar_lea.vmem %s79_s14, 32 }
  0x5d   :  { %p10219_p1 = scmp.ne.s32.totalorder %s79_s14, %s10218_s2  ;;  %p10223_p2 = scmp.lt.s32.totalorder %s79_s14, %s79_s14 }
  0x5e   :  { %p10224_p3 = scmp.lt.s32.totalorder %s10222_s5, %s10218_s2 }
  0x60   :  { %p10225_p4 = por %p10224_p3, %p10223_p2 }
  0x62   :  { %p10226_p5 = pnand %p10225_p4, %p10219_p1 }
  0x64   :  { %10229 = shalt.err (!%p10226_p5)
}
  0x65   :  { %81 = dma.hbm_to_vmem [thread:$0]  %s10693_s6, 16, %s79_s14, [#allocation11]  }
  0x66   :  { %10230 = dma.done.wait [#allocation3], 131072  }
  0x67   :  { %10231 = vsyncadd [#allocation3], 4294836224 }
  0x68   :  { %10232 = dma.done.wait [#allocation5], 256  }
  0x69   :  { %10233 = vsyncadd [#allocation5], 4294967040 }
  0x6a   :  { %10234 = dma.done.wait [#allocation8], 8320  }
  0x6b   :  { %10235 = vsyncadd [#allocation8], 4294958976 }
  0x6c   :  { %10236 = dma.done.wait [#allocation11], 16  }
  0x6d   :  { %10237 = vsyncadd [#allocation11], 4294967280  ;;  %v103_v0 = vld [vmem:[#allocation2] sm:$0xff]  ;;  %v104_v2 = vld [vmem:[#allocation2 + $0x8] sm:$0xff]  ;;  %v1129_v32 = vlaneseq  ;;  %v10248_v33 = vmov 1966171168  }
  0x6e   :  { %v107_v1 = vld [vmem:[#allocation2 + $0x20] sm:$0xff]  ;;  %v108_v4 = vld [vmem:[#allocation2 + $0x28] sm:$0xff]  ;;  %v1173_v34 = vunpack.c.l.s4 %v10248_v33  ;;  %vm7717_vm0 = vcmask 1041408  }
  0x6f   :  { %v8708_v3 = vcombine.high %v103_v0, %v107_v1  ;;  %v8707_v5 = vcombine.low %v103_v0, %v107_v1  ;;  %v111_v6 = vld [vmem:[#allocation2 + $0x40] sm:$0xff]  ;;  %v8710_v8 = vcombine.high %v104_v2, %v108_v4  ;;  %v8709_v9 = vcombine.low %v104_v2, %v108_v4  ;;  %v112_v11 = vld [vmem:[#allocation2 + $0x48] sm:$0xff] }
  0x70   :  { %v115_v7 = vld [vmem:[#allocation2 + $0x60] sm:$0xff]  ;;  %v116_v12 = vld [vmem:[#allocation2 + $0x68] sm:$0xff]  ;;  %v10361_v43 = vshrl.u32 %v1129_v32, 7  ;;  %v1174_v44 = vunpack.c.0.s8 %v1173_v34 }
  0x71   :  { %v8716_v10 = vcombine.high %v111_v6, %v115_v7  ;;  %v119_v13 = vld [vmem:[#allocation2 + $0x80] sm:$0xff]  ;;  %6405 = vmatprep.subr.bf16.mxu0 %v8708_v3  ;;  %v8718_v14 = vcombine.high %v112_v11, %v116_v12  ;;  %v120_v16 = vld [vmem:[#allocation2 + $0x88] sm:$0xff]  ;;  %6733 = vmatprep.subr.bf16.mxu1 %v8710_v8  ;;  %v8715_v18 = vcombine.low %v111_v6, %v115_v7 }
  0x72   :  { %v123_v15 = vld [vmem:[#allocation2 + $0xa0] sm:$0xff]  ;;  %v124_v17 = vld [vmem:[#allocation2 + $0xa8] sm:$0xff]  ;;  %6406 = vmatpush1.bf16.msra.mxu0 %v8707_v5  ;;  %6734 = vmatpush1.bf16.msra.mxu1 %v8709_v9  ;;  %v8717_v19 = vcombine.low %v112_v11, %v116_v12  ;;  %v10364_v53 = vsub.s32 %v1174_v44, %v10361_v43 }
  0x73   :  { %6407 = vmatprep.subr.bf16.mxu0 %v8716_v10  ;;  %v8724_v20 = vcombine.high %v119_v13, %v123_v15  ;;  %6735 = vmatprep.subr.bf16.mxu1 %v8718_v14  ;;  %v8726_v21 = vcombine.high %v120_v16, %v124_v17  ;;  %v127_v22 = vld [vmem:[#allocation2 + $0xc0] sm:$0xff]  ;;  %v128_v24 = vld [vmem:[#allocation2 + $0xc8] sm:$0xff]  ;;  %v8723_v26 = vcombine.low %v119_v13, %v123_v15 }
  0x74   :  { %v131_v23 = vld [vmem:[#allocation2 + $0xe0] sm:$0xff]  ;;  %v132_v25 = vld [vmem:[#allocation2 + $0xe8] sm:$0xff]  ;;  %v8725_v27 = vcombine.low %v120_v16, %v124_v17 }
  0x75   :  { %v8732_v28 = vcombine.high %v127_v22, %v131_v23  ;;  %v8734_v29 = vcombine.high %v128_v24, %v132_v25  ;;  %v135_v30 = vld [vmem:[#allocation2 + $0x100] sm:$0xff]  ;;  %v136_v35 = vld [vmem:[#allocation2 + $0x108] sm:$0xff]  ;;  %v8731_v37 = vcombine.low %v127_v22, %v131_v23  ;;  %v8733_v38 = vcombine.low %v128_v24, %v132_v25 }
  0x76   :  { %6408 = vmatpush1.bf16.msra.mxu0 %v8715_v18  ;;  %6736 = vmatpush1.bf16.msra.mxu1 %v8717_v19  ;;  %v139_v31 = vld [vmem:[#allocation2 + $0x120] sm:$0xff]  ;;  %v140_v36 = vld [vmem:[#allocation2 + $0x128] sm:$0xff] }
  0x77   :  { %6409 = vmatprep.subr.bf16.mxu0 %v8724_v20  ;;  %6737 = vmatprep.subr.bf16.mxu1 %v8726_v21  ;;  %v8740_v39 = vcombine.high %v135_v30, %v139_v31  ;;  %v8742_v40 = vcombine.high %v136_v35, %v140_v36  ;;  %v143_v41 = vld [vmem:[#allocation2 + $0x140] sm:$0xff]  ;;  %v144_v45 = vld [vmem:[#allocation2 + $0x148] sm:$0xff]  ;;  %v8739_v47 = vcombine.low %v135_v30, %v139_v31 }
  0x78   :  { %v147_v42 = vld [vmem:[#allocation2 + $0x160] sm:$0xff]  ;;  %v148_v46 = vld [vmem:[#allocation2 + $0x168] sm:$0xff]  ;;  %v8741_v48 = vcombine.low %v136_v35, %v140_v36 }
  0x79   :  { %v8748_v49 = vcombine.high %v143_v41, %v147_v42  ;;  %v8750_v50 = vcombine.high %v144_v45, %v148_v46  ;;  %v151_v51 = vld [vmem:[#allocation2 + $0x180] sm:$0xff]  ;;  %v152_v54 = vld [vmem:[#allocation2 + $0x188] sm:$0xff]  ;;  %v8747_v56 = vcombine.low %v143_v41, %v147_v42  ;;  %v8749_v57 = vcombine.low %v144_v45, %v148_v46 }
  0x7a   :  { %6410 = vmatpush1.bf16.msra.mxu0 %v8723_v26  ;;  %6738 = vmatpush1.bf16.msra.mxu1 %v8725_v27  ;;  %v155_v52 = vld [vmem:[#allocation2 + $0x1a0] sm:$0xff]  ;;  %v156_v55 = vld [vmem:[#allocation2 + $0x1a8] sm:$0xff] }
  0x7b   :  { %6411 = vmatprep.subr.bf16.mxu0 %v8732_v28  ;;  %6739 = vmatprep.subr.bf16.mxu1 %v8734_v29  ;;  %v8756_v58 = vcombine.high %v151_v51, %v155_v52  ;;  %v10369_v59 = vld [vmem:[%s10687_s0] sm:$0xff]  ;;  %v8758_v60 = vcombine.high %v152_v54, %v156_v55  ;;  %v160_v0 = vld [vmem:[#allocation2 + $0x1c8] sm:$0xff]  ;;  %v8755_v2 = vcombine.low %v151_v51, %v155_v52 }
  0x7c   :  { %v159_v61 = vld [vmem:[#allocation2 + $0x1c0] sm:$0xff]  ;;  %v10373_v63 = vrot.slane %v10369_v59, %v10364_v53  ;;  %v164_v1 = vld [vmem:[#allocation2 + $0x1e8] sm:$0xff]  ;;  %v8757_v4 = vcombine.low %v152_v54, %v156_v55 }
  0x7d   :  { %v163_v62 = vld [vmem:[#allocation2 + $0x1e0] sm:$0xff]  ;;  %v8766_v6 = vcombine.high %v160_v0, %v164_v1  ;;  %v168_v10 = vld [vmem:[#allocation2 + $0x208] sm:$0xff]  ;;  %v8765_v13 = vcombine.low %v160_v0, %v164_v1 }
  0x7e   :  { %6412 = vmatpush1.bf16.msra.mxu0 %v8731_v37  ;;  %6740 = vmatpush1.bf16.msra.mxu1 %v8733_v38  ;;  %v1186_v3 = vcombine.high %v10373_v63, %v10373_v63  ;;  %v8764_v5 = vcombine.high %v159_v61, %v163_v62  ;;  %v167_v7 = vld [vmem:[#allocation2 + $0x200] sm:$0xff]  ;;  %v172_v11 = vld [vmem:[#allocation2 + $0x228] sm:$0xff]  ;;  %v8763_v12 = vcombine.low %v159_v61, %v163_v62 }
  0x7f   :  { %6413 = vmatprep.subr.bf16.mxu0 %v8740_v39  ;;  %6741 = vmatprep.subr.bf16.mxu1 %v8742_v40  ;;  %v171_v8 = vld [vmem:[#allocation2 + $0x220] sm:$0xff]  ;;  %v8774_v15 = vcombine.high %v168_v10, %v172_v11  ;;  %v176_v18 = vld [vmem:[#allocation2 + $0x248] sm:$0xff]  ;;  %v8773_v21 = vcombine.low %v168_v10, %v172_v11 }
  0x80   :  { %v10378_v9 = vrot.slane %v1186_v3, %v10364_v53  ;;  %v8772_v14 = vcombine.high %v167_v7, %v171_v8  ;;  %v175_v16 = vld [vmem:[#allocation2 + $0x240] sm:$0xff]  ;;  %v180_v19 = vld [vmem:[#allocation2 + $0x268] sm:$0xff]  ;;  %v8771_v20 = vcombine.low %v167_v7, %v171_v8 }
  0x81   :  { %v179_v17 = vld [vmem:[#allocation2 + $0x260] sm:$0xff]  ;;  %v8782_v23 = vcombine.high %v176_v18, %v180_v19  ;;  %v184_v26 = vld [vmem:[#allocation2 + $0x288] sm:$0xff]  ;;  %v8781_v29 = vcombine.low %v176_v18, %v180_v19 }
  0x82   :  { %6414 = vmatpush1.bf16.msra.mxu0 %v8739_v47  ;;  %6742 = vmatpush1.bf16.msra.mxu1 %v8741_v48  ;;  %v8780_v22 = vcombine.high %v175_v16, %v179_v17  ;;  %v183_v24 = vld [vmem:[#allocation2 + $0x280] sm:$0xff]  ;;  %v188_v27 = vld [vmem:[#allocation2 + $0x2a8] sm:$0xff]  ;;  %v8779_v28 = vcombine.low %v175_v16, %v179_v17 }
  0x83   :  { %6415 = vmatprep.subr.bf16.mxu0 %v8748_v49  ;;  %6743 = vmatprep.subr.bf16.mxu1 %v8750_v50  ;;  %v187_v25 = vld [vmem:[#allocation2 + $0x2a0] sm:$0xff]  ;;  %v8790_v31 = vcombine.high %v184_v26, %v188_v27  ;;  %v192_v34 = vld [vmem:[#allocation2 + $0x2c8] sm:$0xff]  ;;  %v8789_v37 = vcombine.low %v184_v26, %v188_v27 }
  0x84   :  { %6437 = vmatprep.mubr.bf16.mxu0 %v10378_v9  ;;  %6765 = vmatprep.mubr.bf16.mxu1 %v10378_v9  ;;  %v8788_v30 = vcombine.high %v183_v24, %v187_v25  ;;  %v191_v32 = vld [vmem:[#allocation2 + $0x2c0] sm:$0xff]  ;;  %v196_v35 = vld [vmem:[#allocation2 + $0x2e8] sm:$0xff]  ;;  %v8787_v36 = vcombine.low %v183_v24, %v187_v25 }
  0x85   :  { %v195_v33 = vld [vmem:[#allocation2 + $0x2e0] sm:$0xff]  ;;  %v8798_v39 = vcombine.high %v192_v34, %v196_v35  ;;  %v200_v42 = vld [vmem:[#allocation2 + $0x308] sm:$0xff]  ;;  %v8797_v46 = vcombine.low %v192_v34, %v196_v35  ;;  %v10388_v34 = vcombine.high %v10378_v9, %v10378_v9 }
  0x86   :  { %6416 = vmatpush1.bf16.msra.mxu0 %v8747_v56  ;;  %6744 = vmatpush1.bf16.msra.mxu1 %v8749_v57  ;;  %v8796_v38 = vcombine.high %v191_v32, %v195_v33  ;;  %v199_v40 = vld [vmem:[#allocation2 + $0x300] sm:$0xff]  ;;  %v204_v44 = vld [vmem:[#allocation2 + $0x328] sm:$0xff]  ;;  %v8795_v45 = vcombine.low %v191_v32, %v195_v33 }
  0x87   :  { %6417 = vmatprep.subr.bf16.mxu0 %v8756_v58  ;;  %6745 = vmatprep.subr.bf16.mxu1 %v8758_v60  ;;  %v203_v41 = vld [vmem:[#allocation2 + $0x320] sm:$0xff]  ;;  %v8806_v48 = vcombine.high %v200_v42, %v204_v44  ;;  %v208_v51 = vld [vmem:[#allocation2 + $0x348] sm:$0xff]  ;;  %v8805_v55 = vcombine.low %v200_v42, %v204_v44 }
  0x88   :  { %v8804_v47 = vcombine.high %v199_v40, %v203_v41  ;;  %v207_v49 = vld [vmem:[#allocation2 + $0x340] sm:$0xff]  ;;  %v212_v52 = vld [vmem:[#allocation2 + $0x368] sm:$0xff]  ;;  %v8803_v54 = vcombine.low %v199_v40, %v203_v41 }
  0x89   :  { %v211_v50 = vld [vmem:[#allocation2 + $0x360] sm:$0xff]  ;;  %v8814_v57 = vcombine.high %v208_v51, %v212_v52  ;;  %v216_v61 = vld [vmem:[#allocation2 + $0x388] sm:$0xff]  ;;  %v8813_v1 = vcombine.low %v208_v51, %v212_v52 }
  0x8a   :  { %6418 = vmatpush1.bf16.msra.mxu0 %v8755_v2  ;;  %6746 = vmatpush1.bf16.msra.mxu1 %v8757_v4  ;;  %v8812_v56 = vcombine.high %v207_v49, %v211_v50  ;;  %v215_v58 = vld [vmem:[#allocation2 + $0x380] sm:$0xff]  ;;  %v220_v62 = vld [vmem:[#allocation2 + $0x3a8] sm:$0xff]  ;;  %v8811_v0 = vcombine.low %v207_v49, %v211_v50 }
  0x8b   :  { %6419 = vmatprep.subr.bf16.mxu0 %v8764_v5  ;;  %6747 = vmatprep.subr.bf16.mxu1 %v8766_v6  ;;  %v219_v60 = vld [vmem:[#allocation2 + $0x3a0] sm:$0xff]  ;;  %v8822_v3 = vcombine.high %v216_v61, %v220_v62  ;;  %v224_v6 = vld [vmem:[#allocation2 + $0x3c8] sm:$0xff]  ;;  %v8821_v10 = vcombine.low %v216_v61, %v220_v62 }
  0x8c   :  { %v8820_v2 = vcombine.high %v215_v58, %v219_v60  ;;  %v223_v4 = vld [vmem:[#allocation2 + $0x3c0] sm:$0xff]  ;;  %v228_v7 = vld [vmem:[#allocation2 + $0x3e8] sm:$0xff]  ;;  %v8819_v8 = vcombine.low %v215_v58, %v219_v60 }
  0x8d   :  { %v227_v5 = vld [vmem:[#allocation2 + $0x3e0] sm:$0xff]  ;;  %v236_v16 = vld [vmem:[#allocation2 + $0x428] sm:$0xff]  ;;  %v8829_v18 = vcombine.low %v224_v6, %v228_v7 }
  0x8e   :  { %6420 = vmatpush1.bf16.msra.mxu0 %v8763_v12  ;;  %6748 = vmatpush1.bf16.msra.mxu1 %v8765_v13  ;;  %v8828_v11 = vcombine.high %v223_v4, %v227_v5  ;;  %v8830_v12 = vcombine.high %v224_v6, %v228_v7  ;;  %v231_v13 = vld [vmem:[#allocation2 + $0x400] sm:$0xff]  ;;  %v8827_v17 = vcombine.low %v223_v4, %v227_v5  ;;  %v240_v24 = vld [vmem:[#allocation2 + $0x448] sm:$0xff] }
  0x8f   :  { %6421 = vmatprep.subr.bf16.mxu0 %v8772_v14  ;;  %6749 = vmatprep.subr.bf16.mxu1 %v8774_v15  ;;  %v235_v14 = vld [vmem:[#allocation2 + $0x420] sm:$0xff]  ;;  %v232_v15 = vld [vmem:[#allocation2 + $0x408] sm:$0xff] }
  0x90   :  { %v8836_v19 = vcombine.high %v231_v13, %v235_v14  ;;  %v244_v25 = vld [vmem:[#allocation2 + $0x468] sm:$0xff]  ;;  %v8835_v26 = vcombine.low %v231_v13, %v235_v14  ;;  %v8837_v27 = vcombine.low %v232_v15, %v236_v16 }
  0x91   :  { %v8846_v32 = vcombine.high %v240_v24, %v244_v25  ;;  %v252_v33 = vld [vmem:[#allocation2 + $0x4a8] sm:$0xff]  ;;  %v8845_v35 = vcombine.low %v240_v24, %v244_v25 }
  0x92   :  { %6422 = vmatpush1.bf16.msra.mxu0 %v8771_v20  ;;  %6750 = vmatpush1.bf16.msra.mxu1 %v8773_v21  ;;  %v8838_v20 = vcombine.high %v232_v15, %v236_v16  ;;  %v239_v21 = vld [vmem:[#allocation2 + $0x440] sm:$0xff]  ;;  %v260_v41 = vld [vmem:[#allocation2 + $0x4e8] sm:$0xff] }
  0x93   :  { %6423 = vmatprep.subr.bf16.mxu0 %v8780_v22  ;;  %6751 = vmatprep.subr.bf16.mxu1 %v8782_v23  ;;  %v243_v22 = vld [vmem:[#allocation2 + $0x460] sm:$0xff]  ;;  %v10384_v23 = vrot.slane %v10373_v63, %v10364_v53  ;;  %v268_v50 = vld [vmem:[#allocation2 + $0x528] sm:$0xff] }
  0x94   :  { %v8843_v63 = vcombine.low %v239_v21, %v243_v22  ;;  %v276_v60 = vld [vmem:[#allocation2 + $0x568] sm:$0xff] }
  0x95   :  { %v284_v5 = vld [vmem:[#allocation2 + $0x5a8] sm:$0xff] }
  0x96   :  { %6424 = vmatpush1.bf16.msra.mxu0 %v8779_v28  ;;  %6752 = vmatpush1.bf16.msra.mxu1 %v8781_v29  ;;  %v8844_v28 = vcombine.high %v239_v21, %v243_v22  ;;  %v247_v29 = vld [vmem:[#allocation2 + $0x480] sm:$0xff]  ;;  %v292_v14 = vld [vmem:[#allocation2 + $0x5e8] sm:$0xff] }
  0x97   :  { %6425 = vmatprep.subr.bf16.mxu0 %v8788_v30  ;;  %6753 = vmatprep.subr.bf16.mxu1 %v8790_v31  ;;  %v251_v30 = vld [vmem:[#allocation2 + $0x4a0] sm:$0xff]  ;;  %v248_v31 = vld [vmem:[#allocation2 + $0x488] sm:$0xff] }
  0x98   :  { %v8854_v40 = vcombine.high %v248_v31, %v252_v33  ;;  %v8851_v42 = vcombine.low %v247_v29, %v251_v30  ;;  %v8853_v44 = vcombine.low %v248_v31, %v252_v33  ;;  %v300_v22 = vld [vmem:[#allocation2 + $0x628] sm:$0xff] }
  0x99   :  { %v308_v31 = vld [vmem:[#allocation2 + $0x668] sm:$0xff] }
  0x9a   :  { %6426 = vmatpush1.bf16.msra.mxu0 %v8787_v36  ;;  %6754 = vmatpush1.bf16.msra.mxu1 %v8789_v37  ;;  %v8852_v36 = vcombine.high %v247_v29, %v251_v30  ;;  %v255_v37 = vld [vmem:[#allocation2 + $0x4c0] sm:$0xff]  ;;  %v304_v29 = vld [vmem:[#allocation2 + $0x648] sm:$0xff] }
  0x9b   :  { %6427 = vmatprep.subr.bf16.mxu0 %v8796_v38  ;;  %6755 = vmatprep.subr.bf16.mxu1 %v8798_v39  ;;  %v259_v38 = vld [vmem:[#allocation2 + $0x4e0] sm:$0xff]  ;;  %v256_v39 = vld [vmem:[#allocation2 + $0x4c8] sm:$0xff] }
  0x9c   :  { %v8862_v49 = vcombine.high %v256_v39, %v260_v41  ;;  %v8859_v51 = vcombine.low %v255_v37, %v259_v38  ;;  %v8861_v52 = vcombine.low %v256_v39, %v260_v41  ;;  %v316_v39 = vld [vmem:[#allocation2 + $0x6a8] sm:$0xff]  ;;  %v8909_v41 = vcombine.low %v304_v29, %v308_v31 }
  0x9e   :  { %6428 = vmatpush1.bf16.msra.mxu0 %v8795_v45  ;;  %6756 = vmatpush1.bf16.msra.mxu1 %v8797_v46  ;;  %v8860_v45 = vcombine.high %v255_v37, %v259_v38  ;;  %v263_v46 = vld [vmem:[#allocation2 + $0x500] sm:$0xff]  ;;  %v312_v37 = vld [vmem:[#allocation2 + $0x688] sm:$0xff]  ;;  %v8910_v38 = vcombine.high %v304_v29, %v308_v31 }
  0x9f   :  { %6429 = vmatprep.subr.bf16.mxu0 %v8804_v47  ;;  %6757 = vmatprep.subr.bf16.mxu1 %v8806_v48  ;;  %v267_v47 = vld [vmem:[#allocation2 + $0x520] sm:$0xff]  ;;  %v264_v48 = vld [vmem:[#allocation2 + $0x508] sm:$0xff] }
  0xa0   :  { %v8870_v58 = vcombine.high %v264_v48, %v268_v50  ;;  %v8867_v61 = vcombine.low %v263_v46, %v267_v47  ;;  %v8869_v62 = vcombine.low %v264_v48, %v268_v50  ;;  %v324_v48 = vld [vmem:[#allocation2 + $0x6e8] sm:$0xff]  ;;  %v8917_v50 = vcombine.low %v312_v37, %v316_v39 }
  0xa2   :  { %6430 = vmatpush1.bf16.msra.mxu0 %v8803_v54  ;;  %6758 = vmatpush1.bf16.msra.mxu1 %v8805_v55  ;;  %v8868_v54 = vcombine.high %v263_v46, %v267_v47  ;;  %v271_v55 = vld [vmem:[#allocation2 + $0x540] sm:$0xff]  ;;  %v320_v46 = vld [vmem:[#allocation2 + $0x6c8] sm:$0xff]  ;;  %v8918_v47 = vcombine.high %v312_v37, %v316_v39 }
  0xa3   :  { %6431 = vmatprep.subr.bf16.mxu0 %v8812_v56  ;;  %6759 = vmatprep.subr.bf16.mxu1 %v8814_v57  ;;  %v275_v56 = vld [vmem:[#allocation2 + $0x560] sm:$0xff]  ;;  %v272_v57 = vld [vmem:[#allocation2 + $0x548] sm:$0xff] }
  0xa4   :  { %v8878_v4 = vcombine.high %v272_v57, %v276_v60  ;;  %v8875_v6 = vcombine.low %v271_v55, %v275_v56  ;;  %v8877_v7 = vcombine.low %v272_v57, %v276_v60  ;;  %v332_v57 = vld [vmem:[#allocation2 + $0x728] sm:$0xff]  ;;  %v8925_v60 = vcombine.low %v320_v46, %v324_v48 }
  0xa6   :  { %6432 = vmatpush1.bf16.msra.mxu0 %v8811_v0  ;;  %6760 = vmatpush1.bf16.msra.mxu1 %v8813_v1  ;;  %v8876_v0 = vcombine.high %v271_v55, %v275_v56  ;;  %v279_v1 = vld [vmem:[#allocation2 + $0x580] sm:$0xff]  ;;  %v328_v55 = vld [vmem:[#allocation2 + $0x708] sm:$0xff]  ;;  %v8926_v56 = vcombine.high %v320_v46, %v324_v48 }
  0xa7   :  { %6433 = vmatprep.subr.bf16.mxu0 %v8820_v2  ;;  %6761 = vmatprep.subr.bf16.mxu1 %v8822_v3  ;;  %v283_v2 = vld [vmem:[#allocation2 + $0x5a0] sm:$0xff]  ;;  %v280_v3 = vld [vmem:[#allocation2 + $0x588] sm:$0xff] }
  0xa8   :  { %v8886_v13 = vcombine.high %v280_v3, %v284_v5  ;;  %v8883_v15 = vcombine.low %v279_v1, %v283_v2  ;;  %v8885_v16 = vcombine.low %v280_v3, %v284_v5  ;;  %v340_v3 = vld [vmem:[#allocation2 + $0x768] sm:$0xff]  ;;  %v8933_v5 = vcombine.low %v328_v55, %v332_v57  ;;  %v375_v46 = vld [vmem:[#allocation2 + $0x880] sm:$0xff] }
  0xaa   :  { %6434 = vmatpush1.bf16.msra.mxu0 %v8819_v8  ;;  %6762 = vmatpush1.bf16.msra.mxu1 %v8821_v10  ;;  %v8884_v8 = vcombine.high %v279_v1, %v283_v2  ;;  %v287_v10 = vld [vmem:[#allocation2 + $0x5c0] sm:$0xff]  ;;  %v336_v1 = vld [vmem:[#allocation2 + $0x748] sm:$0xff]  ;;  %v8934_v2 = vcombine.high %v328_v55, %v332_v57 }
  0xab   :  { %6435 = vmatprep.subr.bf16.mxu0 %v8828_v11  ;;  %6763 = vmatprep.subr.bf16.mxu1 %v8830_v12  ;;  %v291_v11 = vld [vmem:[#allocation2 + $0x5e0] sm:$0xff]  ;;  %v288_v12 = vld [vmem:[#allocation2 + $0x5c8] sm:$0xff] }
  0xac   :  { %v8894_v21 = vcombine.high %v288_v12, %v292_v14  ;;  %v8891_v24 = vcombine.low %v287_v10, %v291_v11  ;;  %v8893_v25 = vcombine.low %v288_v12, %v292_v14  ;;  %v348_v12 = vld [vmem:[#allocation2 + $0x7a8] sm:$0xff]  ;;  %v8941_v14 = vcombine.low %v336_v1, %v340_v3  ;;  %v387_v57 = vld [vmem:[#allocation2 + $0x8e0] sm:$0xff] }
  0xae   :  { %6436 = vmatpush1.bf16.msra.mxu0 %v8827_v17  ;;  %6764 = vmatpush1.bf16.msra.mxu1 %v8829_v18  ;;  %v8892_v17 = vcombine.high %v287_v10, %v291_v11  ;;  %v295_v18 = vld [vmem:[#allocation2 + $0x600] sm:$0xff]  ;;  %v344_v10 = vld [vmem:[#allocation2 + $0x788] sm:$0xff]  ;;  %v8942_v11 = vcombine.high %v336_v1, %v340_v3 }
  0xaf   :  { %6446 = vmatprep.subr.bf16.mxu0 %v8836_v19  ;;  %6774 = vmatprep.subr.bf16.mxu1 %v8838_v20  ;;  %v299_v19 = vld [vmem:[#allocation2 + $0x620] sm:$0xff]  ;;  %v296_v20 = vld [vmem:[#allocation2 + $0x608] sm:$0xff] }
  0xb0   :  { %v8902_v30 = vcombine.high %v296_v20, %v300_v22  ;;  %v8901_v33 = vcombine.low %v296_v20, %v300_v22  ;;  %v356_v20 = vld [vmem:[#allocation2 + $0x7e8] sm:$0xff]  ;;  %v395_v3 = vld [vmem:[#allocation2 + $0x920] sm:$0xff] }
  0xb1   :  { %6438 = vmatmul.mubr.bf16.vlgmr.msra.gmra.mrb[0].mxu0 %v10384_v23  ;;  %6766 = vmatmul.mubr.bf16.vlgmr.msra.gmra.mrb[0].mxu1 %v10384_v23 }
  0xb2   :  { %6447 = vmatpush1.bf16.msra.mxu0 %v8835_v26  ;;  %6775 = vmatpush1.bf16.msra.mxu1 %v8837_v27  ;;  %v8900_v26 = vcombine.high %v295_v18, %v299_v19  ;;  %v303_v27 = vld [vmem:[#allocation2 + $0x640] sm:$0xff] }
  0xb3   :  { %6448 = vmatprep.subr.bf16.mxu0 %v8844_v28  ;;  %6776 = vmatprep.subr.bf16.mxu1 %v8846_v32  ;;  %v307_v28 = vld [vmem:[#allocation2 + $0x660] sm:$0xff]  ;;  %v8899_v32 = vcombine.low %v295_v18, %v299_v19  ;;  %v352_v18 = vld [vmem:[#allocation2 + $0x7c8] sm:$0xff]  ;;  %v8950_v19 = vcombine.high %v344_v10, %v348_v12 }
  0xb4   :  { %6478 = vmatprep.mubr.bf16.mxu0 %v10388_v34  ;;  %6806 = vmatprep.mubr.bf16.mxu1 %v10388_v34  ;;  %v8958_v29 = vcombine.high %v352_v18, %v356_v20 }
  0xb6   :  { %6449 = vmatpush1.bf16.msra.mxu0 %v8843_v63  ;;  %6777 = vmatpush1.bf16.msra.mxu1 %v8845_v35  ;;  %v8908_v63 = vcombine.high %v303_v27, %v307_v28  ;;  %v311_v35 = vld [vmem:[#allocation2 + $0x680] sm:$0xff] }
  0xb7   :  { %6450 = vmatprep.subr.bf16.mxu0 %v8852_v36  ;;  %6778 = vmatprep.subr.bf16.mxu1 %v8854_v40  ;;  %v315_v36 = vld [vmem:[#allocation2 + $0x6a0] sm:$0xff]  ;;  %v8907_v40 = vcombine.low %v303_v27, %v307_v28  ;;  %v360_v28 = vld [vmem:[#allocation2 + $0x808] sm:$0xff] }
  0xb8   :  { %v363_v27 = vld [vmem:[#allocation2 + $0x820] sm:$0xff] }
  0xba   :  { %6451 = vmatpush1.bf16.msra.mxu0 %v8851_v42  ;;  %6779 = vmatpush1.bf16.msra.mxu1 %v8853_v44  ;;  %v8916_v42 = vcombine.high %v311_v35, %v315_v36  ;;  %v319_v44 = vld [vmem:[#allocation2 + $0x6c0] sm:$0xff] }
  0xbb   :  { %6452 = vmatprep.subr.bf16.mxu0 %v8860_v45  ;;  %6780 = vmatprep.subr.bf16.mxu1 %v8862_v49  ;;  %v323_v45 = vld [vmem:[#allocation2 + $0x6e0] sm:$0xff]  ;;  %v8915_v49 = vcombine.low %v311_v35, %v315_v36  ;;  %v368_v36 = vld [vmem:[#allocation2 + $0x848] sm:$0xff] }
  0xbc   :  { %v371_v35 = vld [vmem:[#allocation2 + $0x860] sm:$0xff] }
  0xbe   :  { %6453 = vmatpush1.bf16.msra.mxu0 %v8859_v51  ;;  %6781 = vmatpush1.bf16.msra.mxu1 %v8861_v52  ;;  %v8924_v51 = vcombine.high %v319_v44, %v323_v45  ;;  %v327_v52 = vld [vmem:[#allocation2 + $0x700] sm:$0xff] }
  0xbf   :  { %6454 = vmatprep.subr.bf16.mxu0 %v8868_v54  ;;  %6782 = vmatprep.subr.bf16.mxu1 %v8870_v58  ;;  %v331_v54 = vld [vmem:[#allocation2 + $0x720] sm:$0xff]  ;;  %v8923_v58 = vcombine.low %v319_v44, %v323_v45 }
  0xc2   :  { %6455 = vmatpush1.bf16.msra.mxu0 %v8867_v61  ;;  %6783 = vmatpush1.bf16.msra.mxu1 %v8869_v62  ;;  %v8932_v61 = vcombine.high %v327_v52, %v331_v54  ;;  %v335_v62 = vld [vmem:[#allocation2 + $0x740] sm:$0xff] }
  0xc3   :  { %6456 = vmatprep.subr.bf16.mxu0 %v8876_v0  ;;  %6784 = vmatprep.subr.bf16.mxu1 %v8878_v4  ;;  %v339_v0 = vld [vmem:[#allocation2 + $0x760] sm:$0xff]  ;;  %v8931_v4 = vcombine.low %v327_v52, %v331_v54 }
  0xc6   :  { %6457 = vmatpush1.bf16.msra.mxu0 %v8875_v6  ;;  %6785 = vmatpush1.bf16.msra.mxu1 %v8877_v7  ;;  %v8940_v6 = vcombine.high %v335_v62, %v339_v0  ;;  %v343_v7 = vld [vmem:[#allocation2 + $0x780] sm:$0xff] }
  0xc7   :  { %6458 = vmatprep.subr.bf16.mxu0 %v8884_v8  ;;  %6786 = vmatprep.subr.bf16.mxu1 %v8886_v13  ;;  %v347_v8 = vld [vmem:[#allocation2 + $0x7a0] sm:$0xff]  ;;  %v8939_v13 = vcombine.low %v335_v62, %v339_v0 }
  0xc8   :  { %v8947_v22 = vcombine.low %v343_v7, %v347_v8 }
  0xca   :  { %6459 = vmatpush1.bf16.msra.mxu0 %v8883_v15  ;;  %6787 = vmatpush1.bf16.msra.mxu1 %v8885_v16  ;;  %v8948_v15 = vcombine.high %v343_v7, %v347_v8  ;;  %v351_v16 = vld [vmem:[#allocation2 + $0x7c0] sm:$0xff] }
  0xcb   :  { %6460 = vmatprep.subr.bf16.mxu0 %v8892_v17  ;;  %6788 = vmatprep.subr.bf16.mxu1 %v8894_v21  ;;  %v355_v17 = vld [vmem:[#allocation2 + $0x7e0] sm:$0xff]  ;;  %v1171_v21 = vcombine.high %v10369_v59, %v10369_v59  ;;  %v8957_v59 = vcombine.low %v352_v18, %v356_v20 }
  0xcc   :  { %v411_v20 = vld [vmem:[#allocation2 + $0x9a0] sm:$0xff] }
  0xcd   :  { %v10397_v31 = vrot.slane %v1171_v21, %v10364_v53  ;;  %v408_v21 = vld [vmem:[#allocation2 + $0x988] sm:$0xff] }
  0xce   :  { %6461 = vmatpush1.bf16.msra.mxu0 %v8891_v24  ;;  %6789 = vmatpush1.bf16.msra.mxu1 %v8893_v25  ;;  %v8949_v24 = vcombine.low %v344_v10, %v348_v12  ;;  %v8956_v25 = vcombine.high %v351_v16, %v355_v17  ;;  %v403_v12 = vld [vmem:[#allocation2 + $0x960] sm:$0xff] }
  0xcf   :  { %6462 = vmatprep.subr.bf16.mxu0 %v8900_v26  ;;  %6790 = vmatprep.subr.bf16.mxu1 %v8902_v30  ;;  %v359_v26 = vld [vmem:[#allocation2 + $0x800] sm:$0xff]  ;;  %v364_v30 = vld [vmem:[#allocation2 + $0x828] sm:$0xff]  ;;  %v1187_v39 = vcombine.high %v10397_v31, %v10397_v31 }
  0xd0   :  { %v8966_v37 = vcombine.high %v360_v28, %v364_v30 }
  0xd1   :  { %v10406_v48 = vrot.slane %v1187_v39, %v10364_v53  ;;  %v428_v39 = vld [vmem:[#allocation2 + $0xa28] sm:$0xff] }
  0xd2   :  { %6463 = vmatpush1.bf16.msra.mxu0 %v8899_v32  ;;  %6791 = vmatpush1.bf16.msra.mxu1 %v8901_v33  ;;  %v8955_v32 = vcombine.low %v351_v16, %v355_v17  ;;  %v8964_v33 = vcombine.high %v359_v26, %v363_v27 }
  0xd3   :  { %6464 = vmatprep.subr.bf16.mxu0 %v8908_v63  ;;  %6792 = vmatprep.subr.bf16.mxu1 %v8910_v38  ;;  %v367_v63 = vld [vmem:[#allocation2 + $0x840] sm:$0xff]  ;;  %v372_v38 = vld [vmem:[#allocation2 + $0x868] sm:$0xff] }
  0xd4   :  { %v8972_v44 = vcombine.high %v367_v63, %v371_v35  ;;  %v8974_v45 = vcombine.high %v368_v36, %v372_v38  ;;  %v8973_v52 = vcombine.low %v368_v36, %v372_v38  ;;  %v423_v36 = vld [vmem:[#allocation2 + $0xa00] sm:$0xff]  ;;  %v424_v38 = vld [vmem:[#allocation2 + $0xa08] sm:$0xff] }
  0xd6   :  { %6465 = vmatpush1.bf16.msra.mxu0 %v8907_v40  ;;  %6793 = vmatpush1.bf16.msra.mxu1 %v8909_v41  ;;  %v10403_v40 = vcombine.high %v10384_v23, %v10384_v23  ;;  %v8963_v41 = vcombine.low %v359_v26, %v363_v27 }
  0xd7   :  { %6466 = vmatprep.subr.bf16.mxu0 %v8916_v42  ;;  %6794 = vmatprep.subr.bf16.mxu1 %v8918_v47  ;;  %v8965_v42 = vcombine.low %v360_v28, %v364_v30  ;;  %v379_v47 = vld [vmem:[#allocation2 + $0x8a0] sm:$0xff]  ;;  %v416_v30 = vld [vmem:[#allocation2 + $0x9c8] sm:$0xff] }
  0xd8   :  { %v8980_v54 = vcombine.high %v375_v46, %v379_v47  ;;  %v415_v28 = vld [vmem:[#allocation2 + $0x9c0] sm:$0xff] }
  0xda   :  { %6467 = vmatpush1.bf16.msra.mxu0 %v8915_v49  ;;  %6795 = vmatpush1.bf16.msra.mxu1 %v8917_v50  ;;  %v376_v49 = vld [vmem:[#allocation2 + $0x888] sm:$0xff] }
  0xdb   :  { %6468 = vmatprep.subr.bf16.mxu0 %v8924_v51  ;;  %6796 = vmatprep.subr.bf16.mxu1 %v8926_v56  ;;  %v380_v50 = vld [vmem:[#allocation2 + $0x8a8] sm:$0xff]  ;;  %v8971_v51 = vcombine.low %v367_v63, %v371_v35  ;;  %v383_v56 = vld [vmem:[#allocation2 + $0x8c0] sm:$0xff] }
  0xdc   :  { %v8982_v55 = vcombine.high %v376_v49, %v380_v50  ;;  %v8981_v62 = vcombine.low %v376_v49, %v380_v50  ;;  %v8988_v0 = vcombine.high %v383_v56, %v387_v57  ;;  %v432_v49 = vld [vmem:[#allocation2 + $0xa48] sm:$0xff] }
  0xdd   :  { %v436_v50 = vld [vmem:[#allocation2 + $0xa68] sm:$0xff] }
  0xde   :  { %6469 = vmatpush1.bf16.msra.mxu0 %v8923_v58  ;;  %6797 = vmatpush1.bf16.msra.mxu1 %v8925_v60  ;;  %v384_v58 = vld [vmem:[#allocation2 + $0x8c8] sm:$0xff] }
  0xdf   :  { %6470 = vmatprep.subr.bf16.mxu0 %v8932_v61  ;;  %6798 = vmatprep.subr.bf16.mxu1 %v8934_v2  ;;  %v388_v60 = vld [vmem:[#allocation2 + $0x8e8] sm:$0xff]  ;;  %v8979_v61 = vcombine.low %v375_v46, %v379_v47  ;;  %v391_v2 = vld [vmem:[#allocation2 + $0x900] sm:$0xff] }
  0xe0   :  { %v8990_v1 = vcombine.high %v384_v58, %v388_v60  ;;  %v8989_v7 = vcombine.low %v384_v58, %v388_v60  ;;  %v8996_v8 = vcombine.high %v391_v2, %v395_v3  ;;  %v431_v46 = vld [vmem:[#allocation2 + $0xa40] sm:$0xff]  ;;  %v440_v58 = vld [vmem:[#allocation2 + $0xa88] sm:$0xff] }
  0xe1   :  { %v435_v47 = vld [vmem:[#allocation2 + $0xa60] sm:$0xff]  ;;  %v444_v60 = vld [vmem:[#allocation2 + $0xaa8] sm:$0xff] }
  0xe2   :  { %6471 = vmatpush1.bf16.msra.mxu0 %v8931_v4  ;;  %6799 = vmatpush1.bf16.msra.mxu1 %v8933_v5  ;;  %v392_v4 = vld [vmem:[#allocation2 + $0x908] sm:$0xff] }
  0xe3   :  { %6472 = vmatprep.subr.bf16.mxu0 %v8940_v6  ;;  %6800 = vmatprep.subr.bf16.mxu1 %v8942_v11  ;;  %v396_v5 = vld [vmem:[#allocation2 + $0x928] sm:$0xff]  ;;  %v8987_v6 = vcombine.low %v383_v56, %v387_v57  ;;  %v399_v11 = vld [vmem:[#allocation2 + $0x940] sm:$0xff] }
  0xe4   :  { %v8998_v10 = vcombine.high %v392_v4, %v396_v5  ;;  %v8997_v16 = vcombine.low %v392_v4, %v396_v5  ;;  %v9004_v17 = vcombine.high %v399_v11, %v403_v12  ;;  %v439_v56 = vld [vmem:[#allocation2 + $0xa80] sm:$0xff]  ;;  %v448_v4 = vld [vmem:[#allocation2 + $0xac8] sm:$0xff] }
  0xe5   :  { %v443_v57 = vld [vmem:[#allocation2 + $0xaa0] sm:$0xff]  ;;  %v452_v5 = vld [vmem:[#allocation2 + $0xae8] sm:$0xff] }
  0xe6   :  { %6473 = vmatpush1.bf16.msra.mxu0 %v8939_v13  ;;  %6801 = vmatpush1.bf16.msra.mxu1 %v8941_v14  ;;  %v400_v13 = vld [vmem:[#allocation2 + $0x948] sm:$0xff] }
  0xe7   :  { %6474 = vmatprep.subr.bf16.mxu0 %v8948_v15  ;;  %6802 = vmatprep.subr.bf16.mxu1 %v8950_v19  ;;  %v404_v14 = vld [vmem:[#allocation2 + $0x968] sm:$0xff]  ;;  %v8995_v15 = vcombine.low %v391_v2, %v395_v3  ;;  %v407_v19 = vld [vmem:[#allocation2 + $0x980] sm:$0xff] }
  0xe8   :  { %v9006_v18 = vcombine.high %v400_v13, %v404_v14  ;;  %v9012_v26 = vcombine.high %v407_v19, %v411_v20  ;;  %v447_v2 = vld [vmem:[#allocation2 + $0xac0] sm:$0xff] }
  0xe9   :  { %v451_v3 = vld [vmem:[#allocation2 + $0xae0] sm:$0xff] }
  0xea   :  { %6475 = vmatpush1.bf16.msra.mxu0 %v8947_v22  ;;  %6803 = vmatpush1.bf16.msra.mxu1 %v8949_v24  ;;  %v412_v22 = vld [vmem:[#allocation2 + $0x9a8] sm:$0xff]  ;;  %v9003_v24 = vcombine.low %v399_v11, %v403_v12  ;;  %v455_v11 = vld [vmem:[#allocation2 + $0xb00] sm:$0xff] }
  0xeb   :  { %6476 = vmatprep.subr.bf16.mxu0 %v8956_v25  ;;  %6804 = vmatprep.subr.bf16.mxu1 %v8958_v29  ;;  %v9005_v25 = vcombine.low %v400_v13, %v404_v14  ;;  %v9014_v27 = vcombine.high %v408_v21, %v412_v22  ;;  %v419_v29 = vld [vmem:[#allocation2 + $0x9e0] sm:$0xff]  ;;  %v456_v13 = vld [vmem:[#allocation2 + $0xb08] sm:$0xff] }
  0xec   :  { %v9020_v63 = vcombine.high %v415_v28, %v419_v29  ;;  %v459_v12 = vld [vmem:[#allocation2 + $0xb20] sm:$0xff]  ;;  %v460_v14 = vld [vmem:[#allocation2 + $0xb28] sm:$0xff] }
  0xee   :  { %6477 = vmatpush1.bf16.msra.mxu0 %v8955_v32  ;;  %6805 = vmatpush1.bf16.msra.mxu1 %v8957_v59  ;;  %v420_v32 = vld [vmem:[#allocation2 + $0x9e8] sm:$0xff]  ;;  %v9011_v59 = vcombine.low %v407_v19, %v411_v20  ;;  %v463_v19 = vld [vmem:[#allocation2 + $0xb40] sm:$0xff] }
  0xef   :  { %6487 = vmatprep.subr.bf16.mxu0 %v8964_v33  ;;  %6815 = vmatprep.subr.bf16.mxu1 %v8966_v37  ;;  %v9013_v33 = vcombine.low %v408_v21, %v412_v22  ;;  %v9022_v35 = vcombine.high %v416_v30, %v420_v32  ;;  %v427_v37 = vld [vmem:[#allocation2 + $0xa20] sm:$0xff]  ;;  %v464_v21 = vld [vmem:[#allocation2 + $0xb48] sm:$0xff] }
  0xf0   :  { %v467_v20 = vld [vmem:[#allocation2 + $0xb60] sm:$0xff]  ;;  %v468_v22 = vld [vmem:[#allocation2 + $0xb68] sm:$0xff] }
  0xf1   :  { %6479 = vmatmul.mubr.bf16.vlgmr.msra.gmra.mrb[0].mxu0 %v10403_v40  ;;  %6807 = vmatmul.mubr.bf16.vlgmr.msra.gmra.mrb[0].mxu1 %v10403_v40 }
  0xf2   :  { %6488 = vmatpush1.bf16.msra.mxu0 %v8963_v41  ;;  %6816 = vmatpush1.bf16.msra.mxu1 %v8965_v42  ;;  %v9019_v41 = vcombine.low %v415_v28, %v419_v29  ;;  %v9021_v42 = vcombine.low %v416_v30, %v420_v32  ;;  %v471_v28 = vld [vmem:[#allocation2 + $0xb80] sm:$0xff]  ;;  %v472_v30 = vld [vmem:[#allocation2 + $0xb88] sm:$0xff] }
  0xf3   :  { %6489 = vmatprep.subr.bf16.mxu0 %v8972_v44  ;;  %6817 = vmatprep.subr.bf16.mxu1 %v8974_v45  ;;  %v9028_v44 = vcombine.high %v423_v36, %v427_v37  ;;  %v9030_v45 = vcombine.high %v424_v38, %v428_v39  ;;  %v475_v29 = vld [vmem:[#allocation2 + $0xba0] sm:$0xff]  ;;  %v476_v32 = vld [vmem:[#allocation2 + $0xba8] sm:$0xff] }
  0xf4   :  { %6519 = vmatprep.mubr.bf16.mxu0 %v10406_v48  ;;  %6847 = vmatprep.mubr.bf16.mxu1 %v10406_v48 }
  0xf6   :  { %6490 = vmatpush1.bf16.msra.mxu0 %v8971_v51  ;;  %6818 = vmatpush1.bf16.msra.mxu1 %v8973_v52  ;;  %v9027_v51 = vcombine.low %v423_v36, %v427_v37  ;;  %v9029_v52 = vcombine.low %v424_v38, %v428_v39  ;;  %v479_v36 = vld [vmem:[#allocation2 + $0xbc0] sm:$0xff]  ;;  %v480_v38 = vld [vmem:[#allocation2 + $0xbc8] sm:$0xff] }
  0xf7   :  { %6491 = vmatprep.subr.bf16.mxu0 %v8980_v54  ;;  %6819 = vmatprep.subr.bf16.mxu1 %v8982_v55  ;;  %v9036_v54 = vcombine.high %v431_v46, %v435_v47  ;;  %v9038_v55 = vcombine.high %v432_v49, %v436_v50  ;;  %v483_v37 = vld [vmem:[#allocation2 + $0xbe0] sm:$0xff]  ;;  %v484_v39 = vld [vmem:[#allocation2 + $0xbe8] sm:$0xff] }
  0xfa   :  { %6492 = vmatpush1.bf16.msra.mxu0 %v8979_v61  ;;  %6820 = vmatpush1.bf16.msra.mxu1 %v8981_v62  ;;  %v9035_v61 = vcombine.low %v431_v46, %v435_v47  ;;  %v9037_v62 = vcombine.low %v432_v49, %v436_v50  ;;  %v487_v46 = vld [vmem:[#allocation2 + $0xc00] sm:$0xff]  ;;  %v488_v49 = vld [vmem:[#allocation2 + $0xc08] sm:$0xff] }
  0xfb   :  { %6493 = vmatprep.subr.bf16.mxu0 %v8988_v0  ;;  %6821 = vmatprep.subr.bf16.mxu1 %v8990_v1  ;;  %v9044_v0 = vcombine.high %v439_v56, %v443_v57  ;;  %v9046_v1 = vcombine.high %v440_v58, %v444_v60  ;;  %v491_v47 = vld [vmem:[#allocation2 + $0xc20] sm:$0xff]  ;;  %v492_v50 = vld [vmem:[#allocation2 + $0xc28] sm:$0xff] }
  0xfe   :  { %6494 = vmatpush1.bf16.msra.mxu0 %v8987_v6  ;;  %6822 = vmatpush1.bf16.msra.mxu1 %v8989_v7  ;;  %v9043_v6 = vcombine.low %v439_v56, %v443_v57  ;;  %v9045_v7 = vcombine.low %v440_v58, %v444_v60  ;;  %v495_v56 = vld [vmem:[#allocation2 + $0xc40] sm:$0xff]  ;;  %v10414_v58 = vrot.slane %v10397_v31, %v10364_v53  ;;  %v496_v60 = vld [vmem:[#allocation2 + $0xc48] sm:$0xff] }
  0xff   :  { %6495 = vmatprep.subr.bf16.mxu0 %v8996_v8  ;;  %6823 = vmatprep.subr.bf16.mxu1 %v8998_v10  ;;  %v9052_v8 = vcombine.high %v447_v2, %v451_v3  ;;  %v9054_v10 = vcombine.high %v448_v4, %v452_v5  ;;  %v499_v57 = vld [vmem:[#allocation2 + $0xc60] sm:$0xff]  ;;  %v504_v31 = vld [vmem:[#allocation2 + $0xc88] sm:$0xff] }
 0x102   :  { %6496 = vmatpush1.bf16.msra.mxu0 %v8995_v15  ;;  %6824 = vmatpush1.bf16.msra.mxu1 %v8997_v16  ;;  %v9051_v15 = vcombine.low %v447_v2, %v451_v3  ;;  %v9053_v16 = vcombine.low %v448_v4, %v452_v5  ;;  %v503_v3 = vld [vmem:[#allocation2 + $0xc80] sm:$0xff]  ;;  %v10418_v5 = vcombine.high %v10406_v48, %v10406_v48 }
 0x103   :  { %6497 = vmatprep.subr.bf16.mxu0 %v9004_v17  ;;  %6825 = vmatprep.subr.bf16.mxu1 %v9006_v18  ;;  %v9060_v17 = vcombine.high %v455_v11, %v459_v12  ;;  %v9062_v18 = vcombine.high %v456_v13, %v460_v14  ;;  %v507_v4 = vld [vmem:[#allocation2 + $0xca0] sm:$0xff] }
 0x106   :  { %6498 = vmatpush1.bf16.msra.mxu0 %v9003_v24  ;;  %6826 = vmatpush1.bf16.msra.mxu1 %v9005_v25  ;;  %v9059_v24 = vcombine.low %v455_v11, %v459_v12  ;;  %v9061_v25 = vcombine.low %v456_v13, %v460_v14  ;;  %v511_v12 = vld [vmem:[#allocation2 + $0xcc0] sm:$0xff]  ;;  %v512_v14 = vld [vmem:[#allocation2 + $0xcc8] sm:$0xff] }
 0x107   :  { %6499 = vmatprep.subr.bf16.mxu0 %v9012_v26  ;;  %6827 = vmatprep.subr.bf16.mxu1 %v9014_v27  ;;  %v9068_v26 = vcombine.high %v463_v19, %v467_v20  ;;  %v9070_v27 = vcombine.high %v464_v21, %v468_v22  ;;  %v515_v13 = vld [vmem:[#allocation2 + $0xce0] sm:$0xff] }
 0x10a   :  { %6500 = vmatpush1.bf16.msra.mxu0 %v9011_v59  ;;  %6828 = vmatpush1.bf16.msra.mxu1 %v9013_v33  ;;  %v9067_v59 = vcombine.low %v463_v19, %v467_v20  ;;  %v9069_v33 = vcombine.low %v464_v21, %v468_v22  ;;  %v519_v20 = vld [vmem:[#allocation2 + $0xd00] sm:$0xff]  ;;  %v520_v22 = vld [vmem:[#allocation2 + $0xd08] sm:$0xff] }
 0x10b   :  { %6501 = vmatprep.subr.bf16.mxu0 %v9020_v63  ;;  %6829 = vmatprep.subr.bf16.mxu1 %v9022_v35  ;;  %v9076_v63 = vcombine.high %v471_v28, %v475_v29  ;;  %v9078_v35 = vcombine.high %v472_v30, %v476_v32  ;;  %v523_v21 = vld [vmem:[#allocation2 + $0xd20] sm:$0xff] }
 0x10e   :  { %6502 = vmatpush1.bf16.msra.mxu0 %v9019_v41  ;;  %6830 = vmatpush1.bf16.msra.mxu1 %v9021_v42  ;;  %v9075_v41 = vcombine.low %v471_v28, %v475_v29  ;;  %v9077_v42 = vcombine.low %v472_v30, %v476_v32  ;;  %v527_v29 = vld [vmem:[#allocation2 + $0xd40] sm:$0xff]  ;;  %v528_v32 = vld [vmem:[#allocation2 + $0xd48] sm:$0xff] }
 0x10f   :  { %6503 = vmatprep.subr.bf16.mxu0 %v9028_v44  ;;  %6831 = vmatprep.subr.bf16.mxu1 %v9030_v45  ;;  %v9084_v44 = vcombine.high %v479_v36, %v483_v37  ;;  %v9086_v45 = vcombine.high %v480_v38, %v484_v39  ;;  %v531_v30 = vld [vmem:[#allocation2 + $0xd60] sm:$0xff] }
 0x112   :  { %6504 = vmatpush1.bf16.msra.mxu0 %v9027_v51  ;;  %6832 = vmatpush1.bf16.msra.mxu1 %v9029_v52  ;;  %v9083_v51 = vcombine.low %v479_v36, %v483_v37  ;;  %v9085_v52 = vcombine.low %v480_v38, %v484_v39  ;;  %v535_v37 = vld [vmem:[#allocation2 + $0xd80] sm:$0xff]  ;;  %v536_v39 = vld [vmem:[#allocation2 + $0xd88] sm:$0xff] }
 0x113   :  { %6505 = vmatprep.subr.bf16.mxu0 %v9036_v54  ;;  %6833 = vmatprep.subr.bf16.mxu1 %v9038_v55  ;;  %v9092_v54 = vcombine.high %v487_v46, %v491_v47  ;;  %v9094_v55 = vcombine.high %v488_v49, %v492_v50  ;;  %v539_v38 = vld [vmem:[#allocation2 + $0xda0] sm:$0xff] }
 0x116   :  { %6506 = vmatpush1.bf16.msra.mxu0 %v9035_v61  ;;  %6834 = vmatpush1.bf16.msra.mxu1 %v9037_v62  ;;  %v500_v61 = vld [vmem:[#allocation2 + $0xc68] sm:$0xff]  ;;  %v9091_v62 = vcombine.low %v487_v46, %v491_v47  ;;  %v543_v47 = vld [vmem:[#allocation2 + $0xdc0] sm:$0xff] }
 0x117   :  { %6507 = vmatprep.subr.bf16.mxu0 %v9044_v0  ;;  %6835 = vmatprep.subr.bf16.mxu1 %v9046_v1  ;;  %v9093_v0 = vcombine.low %v488_v49, %v492_v50  ;;  %v9100_v1 = vcombine.high %v495_v56, %v499_v57  ;;  %v9102_v2 = vcombine.high %v496_v60, %v500_v61  ;;  %v547_v49 = vld [vmem:[#allocation2 + $0xde0] sm:$0xff]  ;;  %v544_v50 = vld [vmem:[#allocation2 + $0xdc8] sm:$0xff] }
 0x11a   :  { %6508 = vmatpush1.bf16.msra.mxu0 %v9043_v6  ;;  %6836 = vmatpush1.bf16.msra.mxu1 %v9045_v7  ;;  %v508_v6 = vld [vmem:[#allocation2 + $0xca8] sm:$0xff]  ;;  %v9099_v7 = vcombine.low %v495_v56, %v499_v57  ;;  %v551_v57 = vld [vmem:[#allocation2 + $0xe00] sm:$0xff] }
 0x11b   :  { %6509 = vmatprep.subr.bf16.mxu0 %v9052_v8  ;;  %6837 = vmatprep.subr.bf16.mxu1 %v9054_v10  ;;  %v9101_v8 = vcombine.low %v496_v60, %v500_v61  ;;  %v9108_v10 = vcombine.high %v503_v3, %v507_v4  ;;  %v9110_v11 = vcombine.high %v504_v31, %v508_v6  ;;  %v555_v60 = vld [vmem:[#allocation2 + $0xe20] sm:$0xff]  ;;  %v552_v61 = vld [vmem:[#allocation2 + $0xe08] sm:$0xff] }
 0x11e   :  { %6510 = vmatpush1.bf16.msra.mxu0 %v9051_v15  ;;  %6838 = vmatpush1.bf16.msra.mxu1 %v9053_v16  ;;  %v516_v15 = vld [vmem:[#allocation2 + $0xce8] sm:$0xff]  ;;  %v9107_v16 = vcombine.low %v503_v3, %v507_v4  ;;  %v559_v4 = vld [vmem:[#allocation2 + $0xe40] sm:$0xff] }
 0x11f   :  { %6511 = vmatprep.subr.bf16.mxu0 %v9060_v17  ;;  %6839 = vmatprep.subr.bf16.mxu1 %v9062_v18  ;;  %v9109_v17 = vcombine.low %v504_v31, %v508_v6  ;;  %v9116_v18 = vcombine.high %v511_v12, %v515_v13  ;;  %v9118_v19 = vcombine.high %v512_v14, %v516_v15  ;;  %v563_v31 = vld [vmem:[#allocation2 + $0xe60] sm:$0xff]  ;;  %v560_v6 = vld [vmem:[#allocation2 + $0xe48] sm:$0xff] }
 0x122   :  { %6512 = vmatpush1.bf16.msra.mxu0 %v9059_v24  ;;  %6840 = vmatpush1.bf16.msra.mxu1 %v9061_v25  ;;  %v524_v24 = vld [vmem:[#allocation2 + $0xd28] sm:$0xff]  ;;  %v9115_v25 = vcombine.low %v511_v12, %v515_v13  ;;  %v567_v13 = vld [vmem:[#allocation2 + $0xe80] sm:$0xff] }
 0x123   :  { %6513 = vmatprep.subr.bf16.mxu0 %v9068_v26  ;;  %6841 = vmatprep.subr.bf16.mxu1 %v9070_v27  ;;  %v9117_v26 = vcombine.low %v512_v14, %v516_v15  ;;  %v9124_v27 = vcombine.high %v519_v20, %v523_v21  ;;  %v9126_v28 = vcombine.high %v520_v22, %v524_v24  ;;  %v571_v14 = vld [vmem:[#allocation2 + $0xea0] sm:$0xff]  ;;  %v568_v15 = vld [vmem:[#allocation2 + $0xe88] sm:$0xff] }
 0x126   :  { %6514 = vmatpush1.bf16.msra.mxu0 %v9067_v59  ;;  %6842 = vmatpush1.bf16.msra.mxu1 %v9069_v33  ;;  %v532_v59 = vld [vmem:[#allocation2 + $0xd68] sm:$0xff]  ;;  %v9123_v33 = vcombine.low %v519_v20, %v523_v21  ;;  %v575_v21 = vld [vmem:[#allocation2 + $0xec0] sm:$0xff] }
 0x127   :  { %6515 = vmatprep.subr.bf16.mxu0 %v9076_v63  ;;  %6843 = vmatprep.subr.bf16.mxu1 %v9078_v35  ;;  %v9125_v63 = vcombine.low %v520_v22, %v524_v24  ;;  %v9132_v35 = vcombine.high %v527_v29, %v531_v30  ;;  %v9134_v36 = vcombine.high %v528_v32, %v532_v59  ;;  %v579_v22 = vld [vmem:[#allocation2 + $0xee0] sm:$0xff]  ;;  %v576_v24 = vld [vmem:[#allocation2 + $0xec8] sm:$0xff] }
 0x12a   :  { %6516 = vmatpush1.bf16.msra.mxu0 %v9075_v41  ;;  %6844 = vmatpush1.bf16.msra.mxu1 %v9077_v42  ;;  %v540_v41 = vld [vmem:[#allocation2 + $0xda8] sm:$0xff]  ;;  %v9131_v42 = vcombine.low %v527_v29, %v531_v30  ;;  %v583_v30 = vld [vmem:[#allocation2 + $0xf00] sm:$0xff] }
 0x12b   :  { %6517 = vmatprep.subr.bf16.mxu0 %v9084_v44  ;;  %6845 = vmatprep.subr.bf16.mxu1 %v9086_v45  ;;  %v9133_v44 = vcombine.low %v528_v32, %v532_v59  ;;  %v9140_v45 = vcombine.high %v535_v37, %v539_v38  ;;  %v9142_v46 = vcombine.high %v536_v39, %v540_v41  ;;  %v587_v32 = vld [vmem:[#allocation2 + $0xf20] sm:$0xff]  ;;  %v584_v59 = vld [vmem:[#allocation2 + $0xf08] sm:$0xff] }
 0x12e   :  { %6518 = vmatpush1.bf16.msra.mxu0 %v9083_v51  ;;  %6846 = vmatpush1.bf16.msra.mxu1 %v9085_v52  ;;  %v548_v51 = vld [vmem:[#allocation2 + $0xde8] sm:$0xff]  ;;  %v9139_v52 = vcombine.low %v535_v37, %v539_v38  ;;  %v591_v38 = vld [vmem:[#allocation2 + $0xf40] sm:$0xff] }
 0x12f   :  { %6528 = vmatprep.subr.bf16.mxu0 %v9092_v54  ;;  %6856 = vmatprep.subr.bf16.mxu1 %v9094_v55  ;;  %v9141_v54 = vcombine.low %v536_v39, %v540_v41  ;;  %v9148_v55 = vcombine.high %v543_v47, %v547_v49  ;;  %v9150_v56 = vcombine.high %v544_v50, %v548_v51  ;;  %v595_v39 = vld [vmem:[#allocation2 + $0xf60] sm:$0xff]  ;;  %v592_v41 = vld [vmem:[#allocation2 + $0xf48] sm:$0xff] }
 0x131   :  { %6520 = vmatmul.mubr.bf16.vlgmr.msra.gmra.mrb[0].mxu0 %v10414_v58  ;;  %6848 = vmatmul.mubr.bf16.vlgmr.msra.gmra.mrb[0].mxu1 %v10414_v58 }
 0x132   :  { %6529 = vmatpush1.bf16.msra.mxu0 %v9091_v62  ;;  %6857 = vmatpush1.bf16.msra.mxu1 %v9093_v0  ;;  %v556_v62 = vld [vmem:[#allocation2 + $0xe28] sm:$0xff]  ;;  %v9147_v0 = vcombine.low %v543_v47, %v547_v49  ;;  %v599_v49 = vld [vmem:[#allocation2 + $0xf80] sm:$0xff] }
 0x133   :  { %6530 = vmatprep.subr.bf16.mxu0 %v9100_v1  ;;  %6858 = vmatprep.subr.bf16.mxu1 %v9102_v2  ;;  %v9149_v1 = vcombine.low %v544_v50, %v548_v51  ;;  %v9156_v2 = vcombine.high %v551_v57, %v555_v60  ;;  %v9158_v3 = vcombine.high %v552_v61, %v556_v62  ;;  %v603_v50 = vld [vmem:[#allocation2 + $0xfa0] sm:$0xff]  ;;  %v600_v51 = vld [vmem:[#allocation2 + $0xf88] sm:$0xff] }
 0x134   :  { %6560 = vmatprep.mubr.bf16.mxu0 %v10418_v5  ;;  %6888 = vmatprep.mubr.bf16.mxu1 %v10418_v5 }
 0x136   :  { %6531 = vmatpush1.bf16.msra.mxu0 %v9099_v7  ;;  %6859 = vmatpush1.bf16.msra.mxu1 %v9101_v8  ;;  %v564_v7 = vld [vmem:[#allocation2 + $0xe68] sm:$0xff]  ;;  %v9155_v8 = vcombine.low %v551_v57, %v555_v60  ;;  %v607_v60 = vld [vmem:[#allocation2 + $0xfc0] sm:$0xff] }
 0x137   :  { %6532 = vmatprep.subr.bf16.mxu0 %v9108_v10  ;;  %6860 = vmatprep.subr.bf16.mxu1 %v9110_v11  ;;  %v9157_v10 = vcombine.low %v552_v61, %v556_v62  ;;  %v9164_v11 = vcombine.high %v559_v4, %v563_v31  ;;  %v9166_v12 = vcombine.high %v560_v6, %v564_v7  ;;  %v611_v61 = vld [vmem:[#allocation2 + $0xfe0] sm:$0xff]  ;;  %v608_v62 = vld [vmem:[#allocation2 + $0xfc8] sm:$0xff] }
 0x13a   :  { %6533 = vmatpush1.bf16.msra.mxu0 %v9107_v16  ;;  %6861 = vmatpush1.bf16.msra.mxu1 %v9109_v17  ;;  %v572_v16 = vld [vmem:[#allocation2 + $0xea8] sm:$0xff]  ;;  %v9163_v17 = vcombine.low %v559_v4, %v563_v31  ;;  %v9212_v4 = vcombine.high %v607_v60, %v611_v61 }
 0x13b   :  { %6534 = vmatprep.subr.bf16.mxu0 %v9116_v18  ;;  %6862 = vmatprep.subr.bf16.mxu1 %v9118_v19  ;;  %v9165_v18 = vcombine.low %v560_v6, %v564_v7  ;;  %v9172_v19 = vcombine.high %v567_v13, %v571_v14  ;;  %v9174_v20 = vcombine.high %v568_v15, %v572_v16  ;;  %v615_v6 = vld [vmem:[#allocation2 + $0x1000] sm:$0xff] }
 0x13c   :  { %v619_v7 = vld [vmem:[#allocation2 + $0x1020] sm:$0xff] }
 0x13e   :  { %6535 = vmatpush1.bf16.msra.mxu0 %v9115_v25  ;;  %6863 = vmatpush1.bf16.msra.mxu1 %v9117_v26  ;;  %v580_v25 = vld [vmem:[#allocation2 + $0xee8] sm:$0xff]  ;;  %v9171_v26 = vcombine.low %v567_v13, %v571_v14  ;;  %v9220_v14 = vcombine.high %v615_v6, %v619_v7 }
 0x13f   :  { %6536 = vmatprep.subr.bf16.mxu0 %v9124_v27  ;;  %6864 = vmatprep.subr.bf16.mxu1 %v9126_v28  ;;  %v9173_v27 = vcombine.low %v568_v15, %v572_v16  ;;  %v9180_v28 = vcombine.high %v575_v21, %v579_v22  ;;  %v9182_v29 = vcombine.high %v576_v24, %v580_v25  ;;  %v623_v16 = vld [vmem:[#allocation2 + $0x1040] sm:$0xff] }
 0x142   :  { %6537 = vmatpush1.bf16.msra.mxu0 %v9123_v33  ;;  %6865 = vmatpush1.bf16.msra.mxu1 %v9125_v63  ;;  %v588_v33 = vld [vmem:[#allocation2 + $0xf28] sm:$0xff]  ;;  %v9179_v63 = vcombine.low %v575_v21, %v579_v22  ;;  %v9219_v22 = vcombine.low %v615_v6, %v619_v7 }
 0x143   :  { %6538 = vmatprep.subr.bf16.mxu0 %v9132_v35  ;;  %6866 = vmatprep.subr.bf16.mxu1 %v9134_v36  ;;  %v9181_v35 = vcombine.low %v576_v24, %v580_v25  ;;  %v9188_v36 = vcombine.high %v583_v30, %v587_v32  ;;  %v9190_v37 = vcombine.high %v584_v59, %v588_v33  ;;  %v628_v21 = vld [vmem:[#allocation2 + $0x1068] sm:$0xff] }
 0x144   :  { %v664_v6 = vld [vmem:[#allocation2 + $0x1188] sm:$0xff] }
 0x145   :  { %v668_v7 = vld [vmem:[#allocation2 + $0x11a8] sm:$0xff] }
 0x146   :  { %6539 = vmatpush1.bf16.msra.mxu0 %v9131_v42  ;;  %6867 = vmatpush1.bf16.msra.mxu1 %v9133_v44  ;;  %v596_v42 = vld [vmem:[#allocation2 + $0xf68] sm:$0xff]  ;;  %v9187_v44 = vcombine.low %v583_v30, %v587_v32 }
 0x147   :  { %6540 = vmatprep.subr.bf16.mxu0 %v9140_v45  ;;  %6868 = vmatprep.subr.bf16.mxu1 %v9142_v46  ;;  %v9189_v45 = vcombine.low %v584_v59, %v588_v33  ;;  %v9196_v46 = vcombine.high %v591_v38, %v595_v39  ;;  %v9198_v47 = vcombine.high %v592_v41, %v596_v42  ;;  %v632_v30 = vld [vmem:[#allocation2 + $0x1088] sm:$0xff] }
 0x148   :  { %v636_v32 = vld [vmem:[#allocation2 + $0x10a8] sm:$0xff] }
 0x14a   :  { %6541 = vmatpush1.bf16.msra.mxu0 %v9139_v52  ;;  %6869 = vmatpush1.bf16.msra.mxu1 %v9141_v54  ;;  %v604_v52 = vld [vmem:[#allocation2 + $0xfa8] sm:$0xff]  ;;  %v9195_v54 = vcombine.low %v591_v38, %v595_v39 }
 0x14b   :  { %6542 = vmatprep.subr.bf16.mxu0 %v9148_v55  ;;  %6870 = vmatprep.subr.bf16.mxu1 %v9150_v56  ;;  %v9197_v55 = vcombine.low %v592_v41, %v596_v42  ;;  %v9204_v56 = vcombine.high %v599_v49, %v603_v50  ;;  %v9206_v57 = vcombine.high %v600_v51, %v604_v52  ;;  %v640_v38 = vld [vmem:[#allocation2 + $0x10c8] sm:$0xff] }
 0x14c   :  { %v644_v39 = vld [vmem:[#allocation2 + $0x10e8] sm:$0xff]  ;;  %v9237_v42 = vcombine.low %v632_v30, %v636_v32 }
 0x14e   :  { %6543 = vmatpush1.bf16.msra.mxu0 %v9147_v0  ;;  %6871 = vmatpush1.bf16.msra.mxu1 %v9149_v1  ;;  %v612_v0 = vld [vmem:[#allocation2 + $0xfe8] sm:$0xff] }
 0x14f   :  { %6544 = vmatprep.subr.bf16.mxu0 %v9156_v2  ;;  %6872 = vmatprep.subr.bf16.mxu1 %v9158_v3  ;;  %v10427_v1 = vld [vmem:[%s10687_s0 + $0x8] sm:$0xff]  ;;  %v9203_v2 = vcombine.low %v599_v49, %v603_v50  ;;  %v9205_v3 = vcombine.low %v600_v51, %v604_v52  ;;  %v9214_v31 = vcombine.high %v608_v62, %v612_v0 }
 0x150   :  { %v9213_v13 = vcombine.low %v608_v62, %v612_v0  ;;  %v648_v49 = vld [vmem:[#allocation2 + $0x1108] sm:$0xff]  ;;  %v9245_v52 = vcombine.low %v640_v38, %v644_v39 }
 0x151   :  { %v652_v50 = vld [vmem:[#allocation2 + $0x1128] sm:$0xff] }
 0x152   :  { %6545 = vmatpush1.bf16.msra.mxu0 %v9155_v8  ;;  %6873 = vmatpush1.bf16.msra.mxu1 %v9157_v10  ;;  %v10431_v8 = vrot.slane %v10427_v1, %v10364_v53  ;;  %v616_v10 = vld [vmem:[#allocation2 + $0x1008] sm:$0xff]  ;;  %v9253_v0 = vcombine.low %v648_v49, %v652_v50 }
 0x153   :  { %6546 = vmatprep.subr.bf16.mxu0 %v9164_v11  ;;  %6874 = vmatprep.subr.bf16.mxu1 %v9166_v12  ;;  %v620_v11 = vld [vmem:[#allocation2 + $0x1028] sm:$0xff]  ;;  %v9211_v12 = vcombine.low %v607_v60, %v611_v61 }
 0x154   :  { %v9222_v15 = vcombine.high %v616_v10, %v620_v11  ;;  %v9221_v24 = vcombine.low %v616_v10, %v620_v11  ;;  %v656_v60 = vld [vmem:[#allocation2 + $0x1148] sm:$0xff] }
 0x155   :  { %v660_v61 = vld [vmem:[#allocation2 + $0x1168] sm:$0xff] }
 0x156   :  { %6547 = vmatpush1.bf16.msra.mxu0 %v9163_v17  ;;  %6875 = vmatpush1.bf16.msra.mxu1 %v9165_v18  ;;  %v627_v17 = vld [vmem:[#allocation2 + $0x1060] sm:$0xff]  ;;  %v1235_v18 = vcombine.high %v10431_v8, %v10431_v8  ;;  %v9261_v11 = vcombine.low %v656_v60, %v660_v61 }
 0x157   :  { %6548 = vmatprep.subr.bf16.mxu0 %v9172_v19  ;;  %6876 = vmatprep.subr.bf16.mxu1 %v9174_v20  ;;  %v10437_v19 = vcombine.high %v10414_v58, %v10414_v58  ;;  %v624_v20 = vld [vmem:[#allocation2 + $0x1048] sm:$0xff]  ;;  %v9228_v25 = vcombine.high %v623_v16, %v627_v17  ;;  %v9227_v59 = vcombine.low %v623_v16, %v627_v17 }
 0x158   :  { %v9229_v33 = vcombine.low %v624_v20, %v628_v21  ;;  %v672_v16 = vld [vmem:[#allocation2 + $0x11c8] sm:$0xff] }
 0x159   :  { %v676_v17 = vld [vmem:[#allocation2 + $0x11e8] sm:$0xff] }
 0x15a   :  { %6549 = vmatpush1.bf16.msra.mxu0 %v9171_v26  ;;  %6877 = vmatpush1.bf16.msra.mxu1 %v9173_v27  ;;  %v9230_v26 = vcombine.high %v624_v20, %v628_v21  ;;  %v631_v27 = vld [vmem:[#allocation2 + $0x1080] sm:$0xff]  ;;  %v9269_v20 = vcombine.low %v664_v6, %v668_v7 }
 0x15b   :  { %6550 = vmatprep.subr.bf16.mxu0 %v9180_v28  ;;  %6878 = vmatprep.subr.bf16.mxu1 %v9182_v29  ;;  %v635_v28 = vld [vmem:[#allocation2 + $0x10a0] sm:$0xff]  ;;  %v10440_v29 = vrot.slane %v1235_v18, %v10364_v53 }
 0x15c   :  { %v9235_v41 = vcombine.low %v631_v27, %v635_v28 }
 0x15e   :  { %6551 = vmatpush1.bf16.msra.mxu0 %v9179_v63  ;;  %6879 = vmatpush1.bf16.msra.mxu1 %v9181_v35  ;;  %v9236_v63 = vcombine.high %v631_v27, %v635_v28  ;;  %v9238_v35 = vcombine.high %v632_v30, %v636_v32  ;;  %v684_v27 = vld [vmem:[#allocation2 + $0x1228] sm:$0xff]  ;;  %v9277_v30 = vcombine.low %v672_v16, %v676_v17 }
 0x15f   :  { %6552 = vmatprep.subr.bf16.mxu0 %v9188_v36  ;;  %6880 = vmatprep.subr.bf16.mxu1 %v9190_v37  ;;  %v639_v36 = vld [vmem:[#allocation2 + $0x10c0] sm:$0xff] }
 0x160   :  { %v643_v37 = vld [vmem:[#allocation2 + $0x10e0] sm:$0xff] }
 0x161   :  { %v9243_v51 = vcombine.low %v639_v36, %v643_v37 }
 0x162   :  { %6553 = vmatpush1.bf16.msra.mxu0 %v9187_v44  ;;  %6881 = vmatpush1.bf16.msra.mxu1 %v9189_v45  ;;  %v9244_v44 = vcombine.high %v639_v36, %v643_v37  ;;  %v9246_v45 = vcombine.high %v640_v38, %v644_v39  ;;  %v692_v36 = vld [vmem:[#allocation2 + $0x1268] sm:$0xff] }
 0x163   :  { %6554 = vmatprep.subr.bf16.mxu0 %v9196_v46  ;;  %6882 = vmatprep.subr.bf16.mxu1 %v9198_v47  ;;  %v647_v46 = vld [vmem:[#allocation2 + $0x1100] sm:$0xff] }
 0x164   :  { %v651_v47 = vld [vmem:[#allocation2 + $0x1120] sm:$0xff] }
 0x165   :  { %v9251_v62 = vcombine.low %v647_v46, %v651_v47 }
 0x166   :  { %6555 = vmatpush1.bf16.msra.mxu0 %v9195_v54  ;;  %6883 = vmatpush1.bf16.msra.mxu1 %v9197_v55  ;;  %v9252_v54 = vcombine.high %v647_v46, %v651_v47  ;;  %v9254_v55 = vcombine.high %v648_v49, %v652_v50  ;;  %v700_v46 = vld [vmem:[#allocation2 + $0x12a8] sm:$0xff] }
 0x167   :  { %6556 = vmatprep.subr.bf16.mxu0 %v9204_v56  ;;  %6884 = vmatprep.subr.bf16.mxu1 %v9206_v57  ;;  %v655_v56 = vld [vmem:[#allocation2 + $0x1140] sm:$0xff] }
 0x168   :  { %v659_v57 = vld [vmem:[#allocation2 + $0x1160] sm:$0xff] }
 0x169   :  { %v9259_v10 = vcombine.low %v655_v56, %v659_v57 }
 0x16a   :  { %6557 = vmatpush1.bf16.msra.mxu0 %v9203_v2  ;;  %6885 = vmatpush1.bf16.msra.mxu1 %v9205_v3  ;;  %v9260_v2 = vcombine.high %v655_v56, %v659_v57  ;;  %v9262_v3 = vcombine.high %v656_v60, %v660_v61  ;;  %v708_v56 = vld [vmem:[#allocation2 + $0x12e8] sm:$0xff] }
 0x16b   :  { %6558 = vmatprep.subr.bf16.mxu0 %v9212_v4  ;;  %6886 = vmatprep.subr.bf16.mxu1 %v9214_v31  ;;  %v663_v4 = vld [vmem:[#allocation2 + $0x1180] sm:$0xff] }
 0x16c   :  { %v667_v31 = vld [vmem:[#allocation2 + $0x11a0] sm:$0xff] }
 0x16d   :  { %v9267_v18 = vcombine.low %v663_v4, %v667_v31 }
 0x16e   :  { %6559 = vmatpush1.bf16.msra.mxu0 %v9211_v12  ;;  %6887 = vmatpush1.bf16.msra.mxu1 %v9213_v13  ;;  %v9268_v12 = vcombine.high %v663_v4, %v667_v31  ;;  %v9270_v13 = vcombine.high %v664_v6, %v668_v7  ;;  %v716_v4 = vld [vmem:[#allocation2 + $0x1328] sm:$0xff] }
 0x16f   :  { %6569 = vmatprep.subr.bf16.mxu0 %v9220_v14  ;;  %6897 = vmatprep.subr.bf16.mxu1 %v9222_v15  ;;  %v671_v14 = vld [vmem:[#allocation2 + $0x11c0] sm:$0xff] }
 0x170   :  { %v675_v15 = vld [vmem:[#allocation2 + $0x11e0] sm:$0xff] }
 0x171   :  { %6561 = vmatmul.mubr.bf16.vlgmr.msra.gmra.mrb[0].mxu0 %v10437_v19  ;;  %6889 = vmatmul.mubr.bf16.vlgmr.msra.gmra.mrb[0].mxu1 %v10437_v19  ;;  %v9276_v21 = vcombine.high %v671_v14, %v675_v15  ;;  %v9275_v28 = vcombine.low %v671_v14, %v675_v15  ;;  %v724_v14 = vld [vmem:[#allocation2 + $0x1368] sm:$0xff] }
 0x172   :  { %6570 = vmatpush1.bf16.msra.mxu0 %v9219_v22  ;;  %6898 = vmatpush1.bf16.msra.mxu1 %v9221_v24  ;;  %v9278_v22 = vcombine.high %v672_v16, %v676_v17  ;;  %v679_v24 = vld [vmem:[#allocation2 + $0x1200] sm:$0xff] }
 0x173   :  { %6571 = vmatprep.subr.bf16.mxu0 %v9228_v25  ;;  %6899 = vmatprep.subr.bf16.mxu1 %v9230_v26  ;;  %v683_v25 = vld [vmem:[#allocation2 + $0x1220] sm:$0xff]  ;;  %v680_v26 = vld [vmem:[#allocation2 + $0x1208] sm:$0xff] }
 0x174   :  { %6601 = vmatprep.mubr.bf16.mxu0 %v10440_v29  ;;  %6929 = vmatprep.mubr.bf16.mxu1 %v10440_v29  ;;  %v9284_v32 = vcombine.high %v679_v24, %v683_v25  ;;  %v9283_v37 = vcombine.low %v679_v24, %v683_v25  ;;  %v9285_v38 = vcombine.low %v680_v26, %v684_v27  ;;  %v732_v24 = vld [vmem:[#allocation2 + $0x13a8] sm:$0xff] }
 0x176   :  { %6572 = vmatpush1.bf16.msra.mxu0 %v9227_v59  ;;  %6900 = vmatpush1.bf16.msra.mxu1 %v9229_v33  ;;  %v9286_v59 = vcombine.high %v680_v26, %v684_v27  ;;  %v687_v33 = vld [vmem:[#allocation2 + $0x1240] sm:$0xff] }
 0x177   :  { %6573 = vmatprep.subr.bf16.mxu0 %v9236_v63  ;;  %6901 = vmatprep.subr.bf16.mxu1 %v9238_v35  ;;  %v691_v63 = vld [vmem:[#allocation2 + $0x1260] sm:$0xff]  ;;  %v688_v35 = vld [vmem:[#allocation2 + $0x1248] sm:$0xff] }
 0x178   :  { %v9292_v39 = vcombine.high %v687_v33, %v691_v63  ;;  %v9291_v47 = vcombine.low %v687_v33, %v691_v63  ;;  %v9293_v49 = vcombine.low %v688_v35, %v692_v36  ;;  %v740_v33 = vld [vmem:[#allocation2 + $0x13e8] sm:$0xff] }
 0x17a   :  { %6574 = vmatpush1.bf16.msra.mxu0 %v9235_v41  ;;  %6902 = vmatpush1.bf16.msra.mxu1 %v9237_v42  ;;  %v9294_v41 = vcombine.high %v688_v35, %v692_v36  ;;  %v695_v42 = vld [vmem:[#allocation2 + $0x1280] sm:$0xff] }
 0x17b   :  { %6575 = vmatprep.subr.bf16.mxu0 %v9244_v44  ;;  %6903 = vmatprep.subr.bf16.mxu1 %v9246_v45  ;;  %v699_v44 = vld [vmem:[#allocation2 + $0x12a0] sm:$0xff]  ;;  %v696_v45 = vld [vmem:[#allocation2 + $0x1288] sm:$0xff] }
 0x17c   :  { %v9300_v50 = vcombine.high %v695_v42, %v699_v44  ;;  %v9299_v57 = vcombine.low %v695_v42, %v699_v44  ;;  %v9301_v60 = vcombine.low %v696_v45, %v700_v46  ;;  %v748_v42 = vld [vmem:[#allocation2 + $0x1428] sm:$0xff] }
 0x17e   :  { %6576 = vmatpush1.bf16.msra.mxu0 %v9243_v51  ;;  %6904 = vmatpush1.bf16.msra.mxu1 %v9245_v52  ;;  %v9302_v51 = vcombine.high %v696_v45, %v700_v46  ;;  %v703_v52 = vld [vmem:[#allocation2 + $0x12c0] sm:$0xff] }
 0x17f   :  { %6577 = vmatprep.subr.bf16.mxu0 %v9252_v54  ;;  %6905 = vmatprep.subr.bf16.mxu1 %v9254_v55  ;;  %v707_v54 = vld [vmem:[#allocation2 + $0x12e0] sm:$0xff]  ;;  %v704_v55 = vld [vmem:[#allocation2 + $0x12c8] sm:$0xff] }
 0x180   :  { %v9308_v61 = vcombine.high %v703_v52, %v707_v54  ;;  %v9307_v31 = vcombine.low %v703_v52, %v707_v54  ;;  %v9309_v6 = vcombine.low %v704_v55, %v708_v56  ;;  %v752_v52 = vld [vmem:[#allocation2 + $0x1448] sm:$0xff] }
 0x181   :  { %v756_v54 = vld [vmem:[#allocation2 + $0x1468] sm:$0xff] }
 0x182   :  { %6578 = vmatpush1.bf16.msra.mxu0 %v9251_v62  ;;  %6906 = vmatpush1.bf16.msra.mxu1 %v9253_v0  ;;  %v9310_v62 = vcombine.high %v704_v55, %v708_v56  ;;  %v711_v0 = vld [vmem:[#allocation2 + $0x1300] sm:$0xff] }
 0x183   :  { %6579 = vmatprep.subr.bf16.mxu0 %v9260_v2  ;;  %6907 = vmatprep.subr.bf16.mxu1 %v9262_v3  ;;  %v715_v2 = vld [vmem:[#allocation2 + $0x1320] sm:$0xff]  ;;  %v712_v3 = vld [vmem:[#allocation2 + $0x1308] sm:$0xff] }
 0x184   :  { %v9316_v7 = vcombine.high %v711_v0, %v715_v2  ;;  %v9315_v15 = vcombine.low %v711_v0, %v715_v2  ;;  %v9317_v16 = vcombine.low %v712_v3, %v716_v4  ;;  %v10452_v0 = vcombine.high %v10440_v29, %v10440_v29  ;;  %v764_v2 = vld [vmem:[#allocation2 + $0x14a8] sm:$0xff] }
 0x186   :  { %6580 = vmatpush1.bf16.msra.mxu0 %v9259_v10  ;;  %6908 = vmatpush1.bf16.msra.mxu1 %v9261_v11  ;;  %v9318_v10 = vcombine.high %v712_v3, %v716_v4  ;;  %v719_v11 = vld [vmem:[#allocation2 + $0x1340] sm:$0xff]  ;;  %v9357_v4 = vcombine.low %v752_v52, %v756_v54 }
 0x187   :  { %6581 = vmatprep.subr.bf16.mxu0 %v9268_v12  ;;  %6909 = vmatprep.subr.bf16.mxu1 %v9270_v13  ;;  %v723_v12 = vld [vmem:[#allocation2 + $0x1360] sm:$0xff]  ;;  %v720_v13 = vld [vmem:[#allocation2 + $0x1348] sm:$0xff] }
 0x188   :  { %v9324_v17 = vcombine.high %v719_v11, %v723_v12  ;;  %v9323_v25 = vcombine.low %v719_v11, %v723_v12  ;;  %v9325_v26 = vcombine.low %v720_v13, %v724_v14  ;;  %v768_v11 = vld [vmem:[#allocation2 + $0x14c8] sm:$0xff] }
 0x189   :  { %v772_v12 = vld [vmem:[#allocation2 + $0x14e8] sm:$0xff] }
 0x18a   :  { %6582 = vmatpush1.bf16.msra.mxu0 %v9267_v18  ;;  %6910 = vmatpush1.bf16.msra.mxu1 %v9269_v20  ;;  %v9326_v18 = vcombine.high %v720_v13, %v724_v14  ;;  %v727_v20 = vld [vmem:[#allocation2 + $0x1380] sm:$0xff] }
 0x18b   :  { %6583 = vmatprep.subr.bf16.mxu0 %v9276_v21  ;;  %6911 = vmatprep.subr.bf16.mxu1 %v9278_v22  ;;  %v731_v21 = vld [vmem:[#allocation2 + $0x13a0] sm:$0xff]  ;;  %v728_v22 = vld [vmem:[#allocation2 + $0x1388] sm:$0xff] }
 0x18c   :  { %v9332_v27 = vcombine.high %v727_v20, %v731_v21  ;;  %v9331_v63 = vcombine.low %v727_v20, %v731_v21  ;;  %v9333_v35 = vcombine.low %v728_v22, %v732_v24  ;;  %v776_v20 = vld [vmem:[#allocation2 + $0x1508] sm:$0xff] }
 0x18d   :  { %v780_v21 = vld [vmem:[#allocation2 + $0x1528] sm:$0xff] }
 0x18e   :  { %6584 = vmatpush1.bf16.msra.mxu0 %v9275_v28  ;;  %6912 = vmatpush1.bf16.msra.mxu1 %v9277_v30  ;;  %v9334_v28 = vcombine.high %v728_v22, %v732_v24  ;;  %v735_v30 = vld [vmem:[#allocation2 + $0x13c0] sm:$0xff]  ;;  %v9373_v24 = vcombine.low %v768_v11, %v772_v12 }
 0x18f   :  { %6585 = vmatprep.subr.bf16.mxu0 %v9284_v32  ;;  %6913 = vmatprep.subr.bf16.mxu1 %v9286_v59  ;;  %v739_v32 = vld [vmem:[#allocation2 + $0x13e0] sm:$0xff]  ;;  %v736_v59 = vld [vmem:[#allocation2 + $0x13c8] sm:$0xff] }
 0x190   :  { %v9340_v36 = vcombine.high %v735_v30, %v739_v32  ;;  %v9339_v44 = vcombine.low %v735_v30, %v739_v32  ;;  %v9341_v45 = vcombine.low %v736_v59, %v740_v33  ;;  %v784_v30 = vld [vmem:[#allocation2 + $0x1548] sm:$0xff] }
 0x191   :  { %v788_v32 = vld [vmem:[#allocation2 + $0x1568] sm:$0xff] }
 0x192   :  { %6586 = vmatpush1.bf16.msra.mxu0 %v9283_v37  ;;  %6914 = vmatpush1.bf16.msra.mxu1 %v9285_v38  ;;  %v9342_v37 = vcombine.high %v736_v59, %v740_v33  ;;  %v743_v38 = vld [vmem:[#allocation2 + $0x1400] sm:$0xff]  ;;  %v9381_v33 = vcombine.low %v776_v20, %v780_v21 }
 0x193   :  { %6587 = vmatprep.subr.bf16.mxu0 %v9292_v39  ;;  %6915 = vmatprep.subr.bf16.mxu1 %v9294_v41  ;;  %v747_v39 = vld [vmem:[#allocation2 + $0x1420] sm:$0xff]  ;;  %v744_v41 = vld [vmem:[#allocation2 + $0x1408] sm:$0xff] }
 0x194   :  { %v9348_v46 = vcombine.high %v743_v38, %v747_v39  ;;  %v9347_v55 = vcombine.low %v743_v38, %v747_v39  ;;  %v9349_v56 = vcombine.low %v744_v41, %v748_v42  ;;  %v792_v38 = vld [vmem:[#allocation2 + $0x1588] sm:$0xff] }
 0x195   :  { %v796_v39 = vld [vmem:[#allocation2 + $0x15a8] sm:$0xff] }
 0x196   :  { %6588 = vmatpush1.bf16.msra.mxu0 %v9291_v47  ;;  %6916 = vmatpush1.bf16.msra.mxu1 %v9293_v49  ;;  %v9350_v47 = vcombine.high %v744_v41, %v748_v42  ;;  %v751_v49 = vld [vmem:[#allocation2 + $0x1440] sm:$0xff]  ;;  %v9389_v42 = vcombine.low %v784_v30, %v788_v32 }
 0x197   :  { %6589 = vmatprep.subr.bf16.mxu0 %v9300_v50  ;;  %6917 = vmatprep.subr.bf16.mxu1 %v9302_v51  ;;  %v755_v50 = vld [vmem:[#allocation2 + $0x1460] sm:$0xff]  ;;  %v10448_v51 = vrot.slane %v10431_v8, %v10364_v53  ;;  %v760_v8 = vld [vmem:[#allocation2 + $0x1488] sm:$0xff] }
 0x198   :  { %v9355_v3 = vcombine.low %v751_v49, %v755_v50  ;;  %v9365_v14 = vcombine.low %v760_v8, %v764_v2 }
 0x19a   :  { %6590 = vmatpush1.bf16.msra.mxu0 %v9299_v57  ;;  %6918 = vmatpush1.bf16.msra.mxu1 %v9301_v60  ;;  %v9356_v57 = vcombine.high %v751_v49, %v755_v50  ;;  %v9358_v60 = vcombine.high %v752_v52, %v756_v54  ;;  %v800_v49 = vld [vmem:[#allocation2 + $0x15c8] sm:$0xff]  ;;  %v9397_v54 = vcombine.low %v792_v38, %v796_v39 }
 0x19b   :  { %6591 = vmatprep.subr.bf16.mxu0 %v9308_v61  ;;  %6919 = vmatprep.subr.bf16.mxu1 %v9310_v62  ;;  %v759_v61 = vld [vmem:[#allocation2 + $0x1480] sm:$0xff]  ;;  %v804_v50 = vld [vmem:[#allocation2 + $0x15e8] sm:$0xff] }
 0x19c   :  { %v763_v62 = vld [vmem:[#allocation2 + $0x14a0] sm:$0xff] }
 0x19d   :  { %v9363_v13 = vcombine.low %v759_v61, %v763_v62 }
 0x19e   :  { %6592 = vmatpush1.bf16.msra.mxu0 %v9307_v31  ;;  %6920 = vmatpush1.bf16.msra.mxu1 %v9309_v6  ;;  %v9364_v31 = vcombine.high %v759_v61, %v763_v62  ;;  %v9366_v6 = vcombine.high %v760_v8, %v764_v2  ;;  %v808_v61 = vld [vmem:[#allocation2 + $0x1608] sm:$0xff]  ;;  %v9405_v2 = vcombine.low %v800_v49, %v804_v50 }
 0x19f   :  { %6593 = vmatprep.subr.bf16.mxu0 %v9316_v7  ;;  %6921 = vmatprep.subr.bf16.mxu1 %v9318_v10  ;;  %v767_v7 = vld [vmem:[#allocation2 + $0x14c0] sm:$0xff]  ;;  %v812_v62 = vld [vmem:[#allocation2 + $0x1628] sm:$0xff] }
 0x1a0   :  { %v771_v10 = vld [vmem:[#allocation2 + $0x14e0] sm:$0xff] }
 0x1a1   :  { %v9371_v22 = vcombine.low %v767_v7, %v771_v10 }
 0x1a2   :  { %6594 = vmatpush1.bf16.msra.mxu0 %v9315_v15  ;;  %6922 = vmatpush1.bf16.msra.mxu1 %v9317_v16  ;;  %v9372_v15 = vcombine.high %v767_v7, %v771_v10  ;;  %v9374_v16 = vcombine.high %v768_v11, %v772_v12  ;;  %v816_v7 = vld [vmem:[#allocation2 + $0x1648] sm:$0xff]  ;;  %v9413_v12 = vcombine.low %v808_v61, %v812_v62 }
 0x1a3   :  { %6595 = vmatprep.subr.bf16.mxu0 %v9324_v17  ;;  %6923 = vmatprep.subr.bf16.mxu1 %v9326_v18  ;;  %v775_v17 = vld [vmem:[#allocation2 + $0x1500] sm:$0xff]  ;;  %v820_v10 = vld [vmem:[#allocation2 + $0x1668] sm:$0xff] }
 0x1a4   :  { %v779_v18 = vld [vmem:[#allocation2 + $0x1520] sm:$0xff] }
 0x1a5   :  { %v9379_v59 = vcombine.low %v775_v17, %v779_v18 }
 0x1a6   :  { %6596 = vmatpush1.bf16.msra.mxu0 %v9323_v25  ;;  %6924 = vmatpush1.bf16.msra.mxu1 %v9325_v26  ;;  %v9380_v25 = vcombine.high %v775_v17, %v779_v18  ;;  %v9382_v26 = vcombine.high %v776_v20, %v780_v21  ;;  %v824_v17 = vld [vmem:[#allocation2 + $0x1688] sm:$0xff]  ;;  %v9421_v21 = vcombine.low %v816_v7, %v820_v10 }
 0x1a7   :  { %6597 = vmatprep.subr.bf16.mxu0 %v9332_v27  ;;  %6925 = vmatprep.subr.bf16.mxu1 %v9334_v28  ;;  %v783_v27 = vld [vmem:[#allocation2 + $0x1540] sm:$0xff]  ;;  %v828_v18 = vld [vmem:[#allocation2 + $0x16a8] sm:$0xff] }
 0x1a8   :  { %v787_v28 = vld [vmem:[#allocation2 + $0x1560] sm:$0xff] }
 0x1a9   :  { %v9387_v41 = vcombine.low %v783_v27, %v787_v28 }
 0x1aa   :  { %6598 = vmatpush1.bf16.msra.mxu0 %v9331_v63  ;;  %6926 = vmatpush1.bf16.msra.mxu1 %v9333_v35  ;;  %v9388_v63 = vcombine.high %v783_v27, %v787_v28  ;;  %v9390_v35 = vcombine.high %v784_v30, %v788_v32  ;;  %v832_v27 = vld [vmem:[#allocation2 + $0x16c8] sm:$0xff]  ;;  %v9429_v32 = vcombine.low %v824_v17, %v828_v18 }
 0x1ab   :  { %6599 = vmatprep.subr.bf16.mxu0 %v9340_v36  ;;  %6927 = vmatprep.subr.bf16.mxu1 %v9342_v37  ;;  %v791_v36 = vld [vmem:[#allocation2 + $0x1580] sm:$0xff]  ;;  %v836_v28 = vld [vmem:[#allocation2 + $0x16e8] sm:$0xff] }
 0x1ac   :  { %v795_v37 = vld [vmem:[#allocation2 + $0x15a0] sm:$0xff] }
 0x1ad   :  { %v9395_v52 = vcombine.low %v791_v36, %v795_v37 }
 0x1ae   :  { %6600 = vmatpush1.bf16.msra.mxu0 %v9339_v44  ;;  %6928 = vmatpush1.bf16.msra.mxu1 %v9341_v45  ;;  %v9396_v44 = vcombine.high %v791_v36, %v795_v37  ;;  %v9398_v45 = vcombine.high %v792_v38, %v796_v39  ;;  %v840_v36 = vld [vmem:[#allocation2 + $0x1708] sm:$0xff]  ;;  %v9437_v39 = vcombine.low %v832_v27, %v836_v28 }
 0x1af   :  { %6610 = vmatprep.subr.bf16.mxu0 %v9348_v46  ;;  %6938 = vmatprep.subr.bf16.mxu1 %v9350_v47  ;;  %v799_v46 = vld [vmem:[#allocation2 + $0x15c0] sm:$0xff]  ;;  %v844_v37 = vld [vmem:[#allocation2 + $0x1728] sm:$0xff] }
 0x1b0   :  { %v803_v47 = vld [vmem:[#allocation2 + $0x15e0] sm:$0xff] }
 0x1b1   :  { %6602 = vmatmul.mubr.bf16.vlgmr.msra.gmra.mrb[0].mxu0 %v10448_v51  ;;  %6930 = vmatmul.mubr.bf16.vlgmr.msra.gmra.mrb[0].mxu1 %v10448_v51  ;;  %v9403_v8 = vcombine.low %v799_v46, %v803_v47 }
 0x1b2   :  { %6611 = vmatpush1.bf16.msra.mxu0 %v9347_v55  ;;  %6939 = vmatpush1.bf16.msra.mxu1 %v9349_v56  ;;  %v9404_v55 = vcombine.high %v799_v46, %v803_v47  ;;  %v9406_v56 = vcombine.high %v800_v49, %v804_v50  ;;  %v848_v46 = vld [vmem:[#allocation2 + $0x1748] sm:$0xff]  ;;  %v9445_v50 = vcombine.low %v840_v36, %v844_v37 }
 0x1b3   :  { %6612 = vmatprep.subr.bf16.mxu0 %v9356_v57  ;;  %6940 = vmatprep.subr.bf16.mxu1 %v9358_v60  ;;  %v807_v57 = vld [vmem:[#allocation2 + $0x1600] sm:$0xff]  ;;  %v852_v47 = vld [vmem:[#allocation2 + $0x1768] sm:$0xff] }
 0x1b4   :  { %6642 = vmatprep.mubr.bf16.mxu0 %v10452_v0  ;;  %6970 = vmatprep.mubr.bf16.mxu1 %v10452_v0  ;;  %v811_v60 = vld [vmem:[#allocation2 + $0x1620] sm:$0xff] }
 0x1b5   :  { %v9411_v11 = vcombine.low %v807_v57, %v811_v60 }
 0x1b6   :  { %6613 = vmatpush1.bf16.msra.mxu0 %v9355_v3  ;;  %6941 = vmatpush1.bf16.msra.mxu1 %v9357_v4  ;;  %v9412_v3 = vcombine.high %v807_v57, %v811_v60  ;;  %v9414_v4 = vcombine.high %v808_v61, %v812_v62  ;;  %v856_v57 = vld [vmem:[#allocation2 + $0x1788] sm:$0xff]  ;;  %v9453_v62 = vcombine.low %v848_v46, %v852_v47 }
 0x1b7   :  { %6614 = vmatprep.subr.bf16.mxu0 %v9364_v31  ;;  %6942 = vmatprep.subr.bf16.mxu1 %v9366_v6  ;;  %v815_v31 = vld [vmem:[#allocation2 + $0x1640] sm:$0xff]  ;;  %v860_v60 = vld [vmem:[#allocation2 + $0x17a8] sm:$0xff] }
 0x1b8   :  { %v819_v6 = vld [vmem:[#allocation2 + $0x1660] sm:$0xff] }
 0x1b9   :  { %v9419_v20 = vcombine.low %v815_v31, %v819_v6 }
 0x1ba   :  { %6615 = vmatpush1.bf16.msra.mxu0 %v9363_v13  ;;  %6943 = vmatpush1.bf16.msra.mxu1 %v9365_v14  ;;  %v9420_v13 = vcombine.high %v815_v31, %v819_v6  ;;  %v9422_v14 = vcombine.high %v816_v7, %v820_v10  ;;  %v1220_v31 = vcombine.high %v10427_v1, %v10427_v1  ;;  %v864_v6 = vld [vmem:[#allocation2 + $0x17c8] sm:$0xff] }
 0x1bb   :  { %6616 = vmatprep.subr.bf16.mxu0 %v9372_v15  ;;  %6944 = vmatprep.subr.bf16.mxu1 %v9374_v16  ;;  %v823_v15 = vld [vmem:[#allocation2 + $0x1680] sm:$0xff]  ;;  %v868_v7 = vld [vmem:[#allocation2 + $0x17e8] sm:$0xff] }
 0x1bc   :  { %v827_v16 = vld [vmem:[#allocation2 + $0x16a0] sm:$0xff]  ;;  %v9469_v1 = vcombine.low %v864_v6, %v868_v7 }
 0x1bd   :  { %v9427_v30 = vcombine.low %v823_v15, %v827_v16 }
 0x1be   :  { %6617 = vmatpush1.bf16.msra.mxu0 %v9371_v22  ;;  %6945 = vmatpush1.bf16.msra.mxu1 %v9373_v24  ;;  %v9428_v22 = vcombine.high %v823_v15, %v827_v16  ;;  %v9430_v24 = vcombine.high %v824_v17, %v828_v18  ;;  %v875_v15 = vld [vmem:[#allocation2 + $0x1820] sm:$0xff]  ;;  %v10461_v16 = vrot.slane %v1220_v31, %v10364_v53  ;;  %v872_v17 = vld [vmem:[#allocation2 + $0x1808] sm:$0xff] }
 0x1bf   :  { %6618 = vmatprep.subr.bf16.mxu0 %v9380_v25  ;;  %6946 = vmatprep.subr.bf16.mxu1 %v9382_v26  ;;  %v831_v25 = vld [vmem:[#allocation2 + $0x16c0] sm:$0xff]  ;;  %v876_v18 = vld [vmem:[#allocation2 + $0x1828] sm:$0xff] }
 0x1c0   :  { %v835_v26 = vld [vmem:[#allocation2 + $0x16e0] sm:$0xff] }
 0x1c1   :  { %v9435_v38 = vcombine.low %v831_v25, %v835_v26  ;;  %v911_v31 = vld [vmem:[#allocation2 + $0x1940] sm:$0xff] }
 0x1c2   :  { %6619 = vmatpush1.bf16.msra.mxu0 %v9379_v59  ;;  %6947 = vmatpush1.bf16.msra.mxu1 %v9381_v33  ;;  %v9436_v59 = vcombine.high %v831_v25, %v835_v26  ;;  %v9438_v33 = vcombine.high %v832_v27, %v836_v28  ;;  %v883_v25 = vld [vmem:[#allocation2 + $0x1860] sm:$0xff]  ;;  %v1236_v26 = vcombine.high %v10461_v16, %v10461_v16  ;;  %v880_v28 = vld [vmem:[#allocation2 + $0x1848] sm:$0xff] }
 0x1c3   :  { %6620 = vmatprep.subr.bf16.mxu0 %v9388_v63  ;;  %6948 = vmatprep.subr.bf16.mxu1 %v9390_v35  ;;  %v839_v63 = vld [vmem:[#allocation2 + $0x1700] sm:$0xff]  ;;  %v10467_v27 = vcombine.high %v10448_v51, %v10448_v51 }
 0x1c4   :  { %v843_v35 = vld [vmem:[#allocation2 + $0x1720] sm:$0xff] }
 0x1c5   :  { %v9443_v49 = vcombine.low %v839_v63, %v843_v35 }
 0x1c6   :  { %6621 = vmatpush1.bf16.msra.mxu0 %v9387_v41  ;;  %6949 = vmatpush1.bf16.msra.mxu1 %v9389_v42  ;;  %v9444_v41 = vcombine.high %v839_v63, %v843_v35  ;;  %v9446_v42 = vcombine.high %v840_v36, %v844_v37  ;;  %v887_v35 = vld [vmem:[#allocation2 + $0x1880] sm:$0xff]  ;;  %v10470_v37 = vrot.slane %v1236_v26, %v10364_v53 }
 0x1c7   :  { %6622 = vmatprep.subr.bf16.mxu0 %v9396_v44  ;;  %6950 = vmatprep.subr.bf16.mxu1 %v9398_v45  ;;  %v847_v44 = vld [vmem:[#allocation2 + $0x1740] sm:$0xff] }
 0x1c8   :  { %v851_v45 = vld [vmem:[#allocation2 + $0x1760] sm:$0xff] }
 0x1c9   :  { %v9451_v61 = vcombine.low %v847_v44, %v851_v45  ;;  %v891_v36 = vld [vmem:[#allocation2 + $0x18a0] sm:$0xff] }
 0x1ca   :  { %6623 = vmatpush1.bf16.msra.mxu0 %v9395_v52  ;;  %6951 = vmatpush1.bf16.msra.mxu1 %v9397_v54  ;;  %v9452_v52 = vcombine.high %v847_v44, %v851_v45  ;;  %v9454_v54 = vcombine.high %v848_v46, %v852_v47  ;;  %v9492_v44 = vcombine.high %v887_v35, %v891_v36  ;;  %v895_v46 = vld [vmem:[#allocation2 + $0x18c0] sm:$0xff] }
 0x1cb   :  { %6624 = vmatprep.subr.bf16.mxu0 %v9404_v55  ;;  %6952 = vmatprep.subr.bf16.mxu1 %v9406_v56  ;;  %v855_v55 = vld [vmem:[#allocation2 + $0x1780] sm:$0xff] }
 0x1cc   :  { %v859_v56 = vld [vmem:[#allocation2 + $0x17a0] sm:$0xff] }
 0x1cd   :  { %v9459_v10 = vcombine.low %v855_v55, %v859_v56  ;;  %v899_v47 = vld [vmem:[#allocation2 + $0x18e0] sm:$0xff] }
 0x1ce   :  { %6625 = vmatpush1.bf16.msra.mxu0 %v9403_v8  ;;  %6953 = vmatpush1.bf16.msra.mxu1 %v9405_v2  ;;  %v9460_v8 = vcombine.high %v855_v55, %v859_v56  ;;  %v9462_v2 = vcombine.high %v856_v57, %v860_v60  ;;  %v9500_v55 = vcombine.high %v895_v46, %v899_v47  ;;  %v931_v26 = vld [vmem:[#allocation2 + $0x19e0] sm:$0xff] }
 0x1cf   :  { %6626 = vmatprep.subr.bf16.mxu0 %v9412_v3  ;;  %6954 = vmatprep.subr.bf16.mxu1 %v9414_v4  ;;  %v863_v3 = vld [vmem:[#allocation2 + $0x17c0] sm:$0xff] }
 0x1d0   :  { %v867_v4 = vld [vmem:[#allocation2 + $0x17e0] sm:$0xff] }
 0x1d2   :  { %6627 = vmatpush1.bf16.msra.mxu0 %v9411_v11  ;;  %6955 = vmatpush1.bf16.msra.mxu1 %v9413_v12  ;;  %v9461_v11 = vcombine.low %v856_v57, %v860_v60  ;;  %v9468_v12 = vcombine.high %v863_v3, %v867_v4  ;;  %v903_v57 = vld [vmem:[#allocation2 + $0x1900] sm:$0xff] }
 0x1d3   :  { %6628 = vmatprep.subr.bf16.mxu0 %v9420_v13  ;;  %6956 = vmatprep.subr.bf16.mxu1 %v9422_v14  ;;  %v9470_v13 = vcombine.high %v864_v6, %v868_v7  ;;  %v871_v14 = vld [vmem:[#allocation2 + $0x1800] sm:$0xff]  ;;  %v912_v7 = vld [vmem:[#allocation2 + $0x1948] sm:$0xff] }
 0x1d4   :  { %v907_v60 = vld [vmem:[#allocation2 + $0x1920] sm:$0xff] }
 0x1d5   :  { %v915_v6 = vld [vmem:[#allocation2 + $0x1960] sm:$0xff] }
 0x1d6   :  { %6629 = vmatpush1.bf16.msra.mxu0 %v9419_v20  ;;  %6957 = vmatpush1.bf16.msra.mxu1 %v9421_v21  ;;  %v9467_v20 = vcombine.low %v863_v3, %v867_v4  ;;  %v9476_v21 = vcombine.high %v871_v14, %v875_v15  ;;  %v9508_v3 = vcombine.high %v903_v57, %v907_v60 }
 0x1d7   :  { %6630 = vmatprep.subr.bf16.mxu0 %v9428_v22  ;;  %6958 = vmatprep.subr.bf16.mxu1 %v9430_v24  ;;  %v9478_v22 = vcombine.high %v872_v17, %v876_v18  ;;  %v879_v24 = vld [vmem:[#allocation2 + $0x1840] sm:$0xff] }
 0x1da   :  { %6631 = vmatpush1.bf16.msra.mxu0 %v9427_v30  ;;  %6959 = vmatpush1.bf16.msra.mxu1 %v9429_v32  ;;  %v884_v30 = vld [vmem:[#allocation2 + $0x1868] sm:$0xff]  ;;  %v9475_v32 = vcombine.low %v871_v14, %v875_v15  ;;  %v919_v15 = vld [vmem:[#allocation2 + $0x1980] sm:$0xff] }
 0x1db   :  { %6632 = vmatprep.subr.bf16.mxu0 %v9436_v59  ;;  %6960 = vmatprep.subr.bf16.mxu1 %v9438_v33  ;;  %v9477_v59 = vcombine.low %v872_v17, %v876_v18  ;;  %v9484_v33 = vcombine.high %v879_v24, %v883_v25  ;;  %v9486_v63 = vcombine.high %v880_v28, %v884_v30  ;;  %v923_v17 = vld [vmem:[#allocation2 + $0x19a0] sm:$0xff]  ;;  %v920_v18 = vld [vmem:[#allocation2 + $0x1988] sm:$0xff] }
 0x1de   :  { %6633 = vmatpush1.bf16.msra.mxu0 %v9435_v38  ;;  %6961 = vmatpush1.bf16.msra.mxu1 %v9437_v39  ;;  %v888_v38 = vld [vmem:[#allocation2 + $0x1888] sm:$0xff] }
 0x1df   :  { %6634 = vmatprep.subr.bf16.mxu0 %v9444_v41  ;;  %6962 = vmatprep.subr.bf16.mxu1 %v9446_v42  ;;  %v892_v39 = vld [vmem:[#allocation2 + $0x18a8] sm:$0xff]  ;;  %v9483_v41 = vcombine.low %v879_v24, %v883_v25  ;;  %v9485_v42 = vcombine.low %v880_v28, %v884_v30  ;;  %v927_v25 = vld [vmem:[#allocation2 + $0x19c0] sm:$0xff] }
 0x1e0   :  { %v9494_v45 = vcombine.high %v888_v38, %v892_v39  ;;  %v928_v28 = vld [vmem:[#allocation2 + $0x19c8] sm:$0xff] }
 0x1e1   :  { %v932_v30 = vld [vmem:[#allocation2 + $0x19e8] sm:$0xff] }
 0x1e2   :  { %6635 = vmatpush1.bf16.msra.mxu0 %v9443_v49  ;;  %6963 = vmatpush1.bf16.msra.mxu1 %v9445_v50  ;;  %v896_v49 = vld [vmem:[#allocation2 + $0x18c8] sm:$0xff] }
 0x1e3   :  { %6636 = vmatprep.subr.bf16.mxu0 %v9452_v52  ;;  %6964 = vmatprep.subr.bf16.mxu1 %v9454_v54  ;;  %v900_v50 = vld [vmem:[#allocation2 + $0x18e8] sm:$0xff]  ;;  %v9491_v52 = vcombine.low %v887_v35, %v891_v36  ;;  %v9493_v54 = vcombine.low %v888_v38, %v892_v39  ;;  %v935_v35 = vld [vmem:[#allocation2 + $0x1a00] sm:$0xff] }
 0x1e4   :  { %v9502_v56 = vcombine.high %v896_v49, %v900_v50  ;;  %v939_v36 = vld [vmem:[#allocation2 + $0x1a20] sm:$0xff]  ;;  %v936_v38 = vld [vmem:[#allocation2 + $0x1a08] sm:$0xff] }
 0x1e5   :  { %v940_v39 = vld [vmem:[#allocation2 + $0x1a28] sm:$0xff] }
 0x1e6   :  { %6637 = vmatpush1.bf16.msra.mxu0 %v9451_v61  ;;  %6965 = vmatpush1.bf16.msra.mxu1 %v9453_v62  ;;  %v904_v61 = vld [vmem:[#allocation2 + $0x1908] sm:$0xff] }
 0x1e7   :  { %6638 = vmatprep.subr.bf16.mxu0 %v9460_v8  ;;  %6966 = vmatprep.subr.bf16.mxu1 %v9462_v2  ;;  %v908_v62 = vld [vmem:[#allocation2 + $0x1928] sm:$0xff]  ;;  %v9499_v8 = vcombine.low %v895_v46, %v899_v47  ;;  %v9501_v2 = vcombine.low %v896_v49, %v900_v50  ;;  %v943_v46 = vld [vmem:[#allocation2 + $0x1a40] sm:$0xff] }
 0x1e8   :  { %v9510_v4 = vcombine.high %v904_v61, %v908_v62  ;;  %v947_v47 = vld [vmem:[#allocation2 + $0x1a60] sm:$0xff]  ;;  %v944_v49 = vld [vmem:[#allocation2 + $0x1a48] sm:$0xff] }
 0x1e9   :  { %v948_v50 = vld [vmem:[#allocation2 + $0x1a68] sm:$0xff] }
 0x1ea   :  { %6639 = vmatpush1.bf16.msra.mxu0 %v9459_v10  ;;  %6967 = vmatpush1.bf16.msra.mxu1 %v9461_v11  ;;  %v916_v10 = vld [vmem:[#allocation2 + $0x1968] sm:$0xff]  ;;  %v9507_v11 = vcombine.low %v903_v57, %v907_v60  ;;  %v951_v57 = vld [vmem:[#allocation2 + $0x1a80] sm:$0xff] }
 0x1eb   :  { %6640 = vmatprep.subr.bf16.mxu0 %v9468_v12  ;;  %6968 = vmatprep.subr.bf16.mxu1 %v9470_v13  ;;  %v9509_v12 = vcombine.low %v904_v61, %v908_v62  ;;  %v9516_v13 = vcombine.high %v911_v31, %v915_v6  ;;  %v9518_v14 = vcombine.high %v912_v7, %v916_v10  ;;  %v955_v60 = vld [vmem:[#allocation2 + $0x1aa0] sm:$0xff]  ;;  %v952_v61 = vld [vmem:[#allocation2 + $0x1a88] sm:$0xff] }
 0x1ec   :  { %v956_v62 = vld [vmem:[#allocation2 + $0x1aa8] sm:$0xff] }
 0x1ee   :  { %6641 = vmatpush1.bf16.msra.mxu0 %v9467_v20  ;;  %6969 = vmatpush1.bf16.msra.mxu1 %v9469_v1  ;;  %v924_v20 = vld [vmem:[#allocation2 + $0x19a8] sm:$0xff]  ;;  %v9515_v1 = vcombine.low %v911_v31, %v915_v6  ;;  %v959_v31 = vld [vmem:[#allocation2 + $0x1ac0] sm:$0xff] }
 0x1ef   :  { %6651 = vmatprep.subr.bf16.mxu0 %v9476_v21  ;;  %6979 = vmatprep.subr.bf16.mxu1 %v9478_v22  ;;  %v9517_v21 = vcombine.low %v912_v7, %v916_v10  ;;  %v9524_v22 = vcombine.high %v919_v15, %v923_v17  ;;  %v9526_v24 = vcombine.high %v920_v18, %v924_v20  ;;  %v963_v6 = vld [vmem:[#allocation2 + $0x1ae0] sm:$0xff]  ;;  %v960_v7 = vld [vmem:[#allocation2 + $0x1ac8] sm:$0xff] }
 0x1f0   :  { %v964_v10 = vld [vmem:[#allocation2 + $0x1ae8] sm:$0xff] }
 0x1f1   :  { %6643 = vmatmul.mubr.bf16.vlgmr.msra.gmra.mrb[0].mxu0 %v10467_v27  ;;  %6971 = vmatmul.mubr.bf16.vlgmr.msra.gmra.mrb[0].mxu1 %v10467_v27 }
 0x1f2   :  { %6652 = vmatpush1.bf16.msra.mxu0 %v9475_v32  ;;  %6980 = vmatpush1.bf16.msra.mxu1 %v9477_v59  ;;  %v9523_v32 = vcombine.low %v919_v15, %v923_v17  ;;  %v9525_v59 = vcombine.low %v920_v18, %v924_v20  ;;  %v967_v15 = vld [vmem:[#allocation2 + $0x1b00] sm:$0xff]  ;;  %v968_v18 = vld [vmem:[#allocation2 + $0x1b08] sm:$0xff] }
 0x1f3   :  { %6653 = vmatprep.subr.bf16.mxu0 %v9484_v33  ;;  %6981 = vmatprep.subr.bf16.mxu1 %v9486_v63  ;;  %v9532_v33 = vcombine.high %v927_v25, %v931_v26  ;;  %v9534_v63 = vcombine.high %v928_v28, %v932_v30  ;;  %v971_v17 = vld [vmem:[#allocation2 + $0x1b20] sm:$0xff]  ;;  %v972_v20 = vld [vmem:[#allocation2 + $0x1b28] sm:$0xff] }
 0x1f4   :  { %6683 = vmatprep.mubr.bf16.mxu0 %v10470_v37  ;;  %7011 = vmatprep.mubr.bf16.mxu1 %v10470_v37 }
 0x1f6   :  { %6654 = vmatpush1.bf16.msra.mxu0 %v9483_v41  ;;  %6982 = vmatpush1.bf16.msra.mxu1 %v9485_v42  ;;  %v9531_v41 = vcombine.low %v927_v25, %v931_v26  ;;  %v9533_v42 = vcombine.low %v928_v28, %v932_v30  ;;  %v975_v25 = vld [vmem:[#allocation2 + $0x1b40] sm:$0xff]  ;;  %v976_v28 = vld [vmem:[#allocation2 + $0x1b48] sm:$0xff] }
 0x1f7   :  { %6655 = vmatprep.subr.bf16.mxu0 %v9492_v44  ;;  %6983 = vmatprep.subr.bf16.mxu1 %v9494_v45  ;;  %v9540_v44 = vcombine.high %v935_v35, %v939_v36  ;;  %v9542_v45 = vcombine.high %v936_v38, %v940_v39  ;;  %v979_v26 = vld [vmem:[#allocation2 + $0x1b60] sm:$0xff]  ;;  %v980_v30 = vld [vmem:[#allocation2 + $0x1b68] sm:$0xff] }
 0x1fa   :  { %6656 = vmatpush1.bf16.msra.mxu0 %v9491_v52  ;;  %6984 = vmatpush1.bf16.msra.mxu1 %v9493_v54  ;;  %v9539_v52 = vcombine.low %v935_v35, %v939_v36  ;;  %v9541_v54 = vcombine.low %v936_v38, %v940_v39  ;;  %v983_v35 = vld [vmem:[#allocation2 + $0x1b80] sm:$0xff]  ;;  %v984_v38 = vld [vmem:[#allocation2 + $0x1b88] sm:$0xff] }
 0x1fb   :  { %6657 = vmatprep.subr.bf16.mxu0 %v9500_v55  ;;  %6985 = vmatprep.subr.bf16.mxu1 %v9502_v56  ;;  %v9548_v55 = vcombine.high %v943_v46, %v947_v47  ;;  %v9550_v56 = vcombine.high %v944_v49, %v948_v50  ;;  %v987_v36 = vld [vmem:[#allocation2 + $0x1ba0] sm:$0xff]  ;;  %v988_v39 = vld [vmem:[#allocation2 + $0x1ba8] sm:$0xff] }
 0x1fe   :  { %6658 = vmatpush1.bf16.msra.mxu0 %v9499_v8  ;;  %6986 = vmatpush1.bf16.msra.mxu1 %v9501_v2  ;;  %v9547_v8 = vcombine.low %v943_v46, %v947_v47  ;;  %v9549_v2 = vcombine.low %v944_v49, %v948_v50  ;;  %v991_v46 = vld [vmem:[#allocation2 + $0x1bc0] sm:$0xff]  ;;  %v992_v49 = vld [vmem:[#allocation2 + $0x1bc8] sm:$0xff] }
 0x1ff   :  { %6659 = vmatprep.subr.bf16.mxu0 %v9508_v3  ;;  %6987 = vmatprep.subr.bf16.mxu1 %v9510_v4  ;;  %v9556_v3 = vcombine.high %v951_v57, %v955_v60  ;;  %v9558_v4 = vcombine.high %v952_v61, %v956_v62  ;;  %v995_v47 = vld [vmem:[#allocation2 + $0x1be0] sm:$0xff]  ;;  %v996_v50 = vld [vmem:[#allocation2 + $0x1be8] sm:$0xff] }
 0x202   :  { %6660 = vmatpush1.bf16.msra.mxu0 %v9507_v11  ;;  %6988 = vmatpush1.bf16.msra.mxu1 %v9509_v12  ;;  %v9555_v11 = vcombine.low %v951_v57, %v955_v60  ;;  %v9557_v12 = vcombine.low %v952_v61, %v956_v62  ;;  %v999_v57 = vld [vmem:[#allocation2 + $0x1c00] sm:$0xff]  ;;  %v1000_v61 = vld [vmem:[#allocation2 + $0x1c08] sm:$0xff] }
 0x203   :  { %6661 = vmatprep.subr.bf16.mxu0 %v9516_v13  ;;  %6989 = vmatprep.subr.bf16.mxu1 %v9518_v14  ;;  %v9564_v13 = vcombine.high %v959_v31, %v963_v6  ;;  %v9566_v14 = vcombine.high %v960_v7, %v964_v10  ;;  %v1003_v60 = vld [vmem:[#allocation2 + $0x1c20] sm:$0xff]  ;;  %v1004_v62 = vld [vmem:[#allocation2 + $0x1c28] sm:$0xff] }
 0x206   :  { %6662 = vmatpush1.bf16.msra.mxu0 %v9515_v1  ;;  %6990 = vmatpush1.bf16.msra.mxu1 %v9517_v21  ;;  %v9563_v1 = vcombine.low %v959_v31, %v963_v6  ;;  %v9565_v21 = vcombine.low %v960_v7, %v964_v10  ;;  %v1007_v31 = vld [vmem:[#allocation2 + $0x1c40] sm:$0xff]  ;;  %v10478_v7 = vrot.slane %v10461_v16, %v10364_v53  ;;  %v1008_v10 = vld [vmem:[#allocation2 + $0x1c48] sm:$0xff] }
 0x207   :  { %6663 = vmatprep.subr.bf16.mxu0 %v9524_v22  ;;  %6991 = vmatprep.subr.bf16.mxu1 %v9526_v24  ;;  %v9572_v22 = vcombine.high %v967_v15, %v971_v17  ;;  %v9574_v24 = vcombine.high %v968_v18, %v972_v20  ;;  %v1011_v6 = vld [vmem:[#allocation2 + $0x1c60] sm:$0xff]  ;;  %v1016_v53 = vld [vmem:[#allocation2 + $0x1c88] sm:$0xff] }
 0x208   :  { %v1020_v16 = vld [vmem:[#allocation2 + $0x1ca8] sm:$0xff] }
 0x20a   :  { %6664 = vmatpush1.bf16.msra.mxu0 %v9523_v32  ;;  %6992 = vmatpush1.bf16.msra.mxu1 %v9525_v59  ;;  %v9571_v32 = vcombine.low %v967_v15, %v971_v17  ;;  %v9573_v59 = vcombine.low %v968_v18, %v972_v20  ;;  %v1015_v17 = vld [vmem:[#allocation2 + $0x1c80] sm:$0xff]  ;;  %v10482_v20 = vcombine.high %v10470_v37, %v10470_v37 }
 0x20b   :  { %6665 = vmatprep.subr.bf16.mxu0 %v9532_v33  ;;  %6993 = vmatprep.subr.bf16.mxu1 %v9534_v63  ;;  %v9580_v33 = vcombine.high %v975_v25, %v979_v26  ;;  %v9582_v63 = vcombine.high %v976_v28, %v980_v30  ;;  %v1019_v18 = vld [vmem:[#allocation2 + $0x1ca0] sm:$0xff] }
 0x20e   :  { %6666 = vmatpush1.bf16.msra.mxu0 %v9531_v41  ;;  %6994 = vmatpush1.bf16.msra.mxu1 %v9533_v42  ;;  %v9579_v41 = vcombine.low %v975_v25, %v979_v26  ;;  %v9581_v42 = vcombine.low %v976_v28, %v980_v30  ;;  %v1023_v25 = vld [vmem:[#allocation2 + $0x1cc0] sm:$0xff]  ;;  %v1024_v28 = vld [vmem:[#allocation2 + $0x1cc8] sm:$0xff] }
 0x20f   :  { %6667 = vmatprep.subr.bf16.mxu0 %v9540_v44  ;;  %6995 = vmatprep.subr.bf16.mxu1 %v9542_v45  ;;  %v9588_v44 = vcombine.high %v983_v35, %v987_v36  ;;  %v9590_v45 = vcombine.high %v984_v38, %v988_v39  ;;  %v1027_v26 = vld [vmem:[#allocation2 + $0x1ce0] sm:$0xff]  ;;  %v1028_v30 = vld [vmem:[#allocation2 + $0x1ce8] sm:$0xff] }
 0x212   :  { %6668 = vmatpush1.bf16.msra.mxu0 %v9539_v52  ;;  %6996 = vmatpush1.bf16.msra.mxu1 %v9541_v54  ;;  %v9587_v52 = vcombine.low %v983_v35, %v987_v36  ;;  %v9589_v54 = vcombine.low %v984_v38, %v988_v39  ;;  %v1031_v35 = vld [vmem:[#allocation2 + $0x1d00] sm:$0xff]  ;;  %v1032_v38 = vld [vmem:[#allocation2 + $0x1d08] sm:$0xff] }
 0x213   :  { %6669 = vmatprep.subr.bf16.mxu0 %v9548_v55  ;;  %6997 = vmatprep.subr.bf16.mxu1 %v9550_v56  ;;  %v9596_v55 = vcombine.high %v991_v46, %v995_v47  ;;  %v9598_v56 = vcombine.high %v992_v49, %v996_v50  ;;  %v1035_v36 = vld [vmem:[#allocation2 + $0x1d20] sm:$0xff]  ;;  %v1036_v39 = vld [vmem:[#allocation2 + $0x1d28] sm:$0xff] }
 0x216   :  { %6670 = vmatpush1.bf16.msra.mxu0 %v9547_v8  ;;  %6998 = vmatpush1.bf16.msra.mxu1 %v9549_v2  ;;  %v9595_v8 = vcombine.low %v991_v46, %v995_v47  ;;  %v9597_v2 = vcombine.low %v992_v49, %v996_v50  ;;  %v1039_v46 = vld [vmem:[#allocation2 + $0x1d40] sm:$0xff]  ;;  %v1040_v49 = vld [vmem:[#allocation2 + $0x1d48] sm:$0xff] }
 0x217   :  { %6671 = vmatprep.subr.bf16.mxu0 %v9556_v3  ;;  %6999 = vmatprep.subr.bf16.mxu1 %v9558_v4  ;;  %v9604_v3 = vcombine.high %v999_v57, %v1003_v60  ;;  %v9606_v4 = vcombine.high %v1000_v61, %v1004_v62  ;;  %v1043_v47 = vld [vmem:[#allocation2 + $0x1d60] sm:$0xff]  ;;  %v1044_v50 = vld [vmem:[#allocation2 + $0x1d68] sm:$0xff] }
 0x21a   :  { %6672 = vmatpush1.bf16.msra.mxu0 %v9555_v11  ;;  %7000 = vmatpush1.bf16.msra.mxu1 %v9557_v12  ;;  %v1012_v11 = vld [vmem:[#allocation2 + $0x1c68] sm:$0xff]  ;;  %v9603_v12 = vcombine.low %v999_v57, %v1003_v60  ;;  %v1047_v57 = vld [vmem:[#allocation2 + $0x1d80] sm:$0xff] }
 0x21b   :  { %6673 = vmatprep.subr.bf16.mxu0 %v9564_v13  ;;  %7001 = vmatprep.subr.bf16.mxu1 %v9566_v14  ;;  %v9605_v13 = vcombine.low %v1000_v61, %v1004_v62  ;;  %v9612_v14 = vcombine.high %v1007_v31, %v1011_v6  ;;  %v9614_v15 = vcombine.high %v1008_v10, %v1012_v11  ;;  %v1051_v60 = vld [vmem:[#allocation2 + $0x1da0] sm:$0xff]  ;;  %v1048_v61 = vld [vmem:[#allocation2 + $0x1d88] sm:$0xff] }
 0x21c   :  { %v1052_v62 = vld [vmem:[#allocation2 + $0x1da8] sm:$0xff] }
 0x21e   :  { %6674 = vmatpush1.bf16.msra.mxu0 %v9563_v1  ;;  %7002 = vmatpush1.bf16.msra.mxu1 %v9565_v21  ;;  %v9611_v1 = vcombine.low %v1007_v31, %v1011_v6  ;;  %v9613_v21 = vcombine.low %v1008_v10, %v1012_v11  ;;  %v1055_v31 = vld [vmem:[#allocation2 + $0x1dc0] sm:$0xff]  ;;  %v1056_v10 = vld [vmem:[#allocation2 + $0x1dc8] sm:$0xff] }
 0x21f   :  { %6675 = vmatprep.subr.bf16.mxu0 %v9572_v22  ;;  %7003 = vmatprep.subr.bf16.mxu1 %v9574_v24  ;;  %v9620_v22 = vcombine.high %v1015_v17, %v1019_v18  ;;  %v9622_v24 = vcombine.high %v1016_v53, %v1020_v16  ;;  %v1059_v6 = vld [vmem:[#allocation2 + $0x1de0] sm:$0xff]  ;;  %v1060_v11 = vld [vmem:[#allocation2 + $0x1de8] sm:$0xff] }
 0x222   :  { %6676 = vmatpush1.bf16.msra.mxu0 %v9571_v32  ;;  %7004 = vmatpush1.bf16.msra.mxu1 %v9573_v59  ;;  %v9619_v32 = vcombine.low %v1015_v17, %v1019_v18  ;;  %v9621_v59 = vcombine.low %v1016_v53, %v1020_v16  ;;  %v1063_v17 = vld [vmem:[#allocation2 + $0x1e00] sm:$0xff]  ;;  %v1064_v53 = vld [vmem:[#allocation2 + $0x1e08] sm:$0xff] }
 0x223   :  { %6677 = vmatprep.subr.bf16.mxu0 %v9580_v33  ;;  %7005 = vmatprep.subr.bf16.mxu1 %v9582_v63  ;;  %v9628_v33 = vcombine.high %v1023_v25, %v1027_v26  ;;  %v9630_v63 = vcombine.high %v1024_v28, %v1028_v30  ;;  %v1067_v18 = vld [vmem:[#allocation2 + $0x1e20] sm:$0xff]  ;;  %v1068_v16 = vld [vmem:[#allocation2 + $0x1e28] sm:$0xff] }
 0x226   :  { %6678 = vmatpush1.bf16.msra.mxu0 %v9579_v41  ;;  %7006 = vmatpush1.bf16.msra.mxu1 %v9581_v42  ;;  %v9627_v41 = vcombine.low %v1023_v25, %v1027_v26  ;;  %v9629_v42 = vcombine.low %v1024_v28, %v1028_v30  ;;  %v1071_v25 = vld [vmem:[#allocation2 + $0x1e40] sm:$0xff]  ;;  %v1072_v28 = vld [vmem:[#allocation2 + $0x1e48] sm:$0xff] }
 0x227   :  { %6679 = vmatprep.subr.bf16.mxu0 %v9588_v44  ;;  %7007 = vmatprep.subr.bf16.mxu1 %v9590_v45  ;;  %v9636_v44 = vcombine.high %v1031_v35, %v1035_v36  ;;  %v9638_v45 = vcombine.high %v1032_v38, %v1036_v39  ;;  %v1075_v26 = vld [vmem:[#allocation2 + $0x1e60] sm:$0xff]  ;;  %v1076_v30 = vld [vmem:[#allocation2 + $0x1e68] sm:$0xff] }
 0x22a   :  { %6680 = vmatpush1.bf16.msra.mxu0 %v9587_v52  ;;  %7008 = vmatpush1.bf16.msra.mxu1 %v9589_v54  ;;  %v9635_v52 = vcombine.low %v1031_v35, %v1035_v36  ;;  %v9637_v54 = vcombine.low %v1032_v38, %v1036_v39  ;;  %v1079_v35 = vld [vmem:[#allocation2 + $0x1e80] sm:$0xff]  ;;  %v1080_v38 = vld [vmem:[#allocation2 + $0x1e88] sm:$0xff] }
 0x22b   :  { %6681 = vmatprep.subr.bf16.mxu0 %v9596_v55  ;;  %7009 = vmatprep.subr.bf16.mxu1 %v9598_v56  ;;  %v9644_v55 = vcombine.high %v1039_v46, %v1043_v47  ;;  %v9646_v56 = vcombine.high %v1040_v49, %v1044_v50  ;;  %v1083_v36 = vld [vmem:[#allocation2 + $0x1ea0] sm:$0xff]  ;;  %v1084_v39 = vld [vmem:[#allocation2 + $0x1ea8] sm:$0xff] }
 0x22e   :  { %6682 = vmatpush1.bf16.msra.mxu0 %v9595_v8  ;;  %7010 = vmatpush1.bf16.msra.mxu1 %v9597_v2  ;;  %v9643_v8 = vcombine.low %v1039_v46, %v1043_v47  ;;  %v9645_v2 = vcombine.low %v1040_v49, %v1044_v50  ;;  %v1087_v46 = vld [vmem:[#allocation2 + $0x1ec0] sm:$0xff]  ;;  %v1088_v49 = vld [vmem:[#allocation2 + $0x1ec8] sm:$0xff] }
 0x22f   :  { %6692 = vmatprep.subr.bf16.mxu0 %v9604_v3  ;;  %7020 = vmatprep.subr.bf16.mxu1 %v9606_v4  ;;  %v9652_v3 = vcombine.high %v1047_v57, %v1051_v60  ;;  %v9654_v4 = vcombine.high %v1048_v61, %v1052_v62  ;;  %v1091_v47 = vld [vmem:[#allocation2 + $0x1ee0] sm:$0xff]  ;;  %v1092_v50 = vld [vmem:[#allocation2 + $0x1ee8] sm:$0xff] }
 0x231   :  { %6684 = vmatmul.mubr.bf16.vlgmr.msra.gmra.mrb[0].mxu0 %v10478_v7  ;;  %7012 = vmatmul.mubr.bf16.vlgmr.msra.gmra.mrb[0].mxu1 %v10478_v7 }
 0x232   :  { %6693 = vmatpush1.bf16.msra.mxu0 %v9603_v12  ;;  %7021 = vmatpush1.bf16.msra.mxu1 %v9605_v13  ;;  %v9651_v12 = vcombine.low %v1047_v57, %v1051_v60  ;;  %v9653_v13 = vcombine.low %v1048_v61, %v1052_v62  ;;  %v1095_v57 = vld [vmem:[#allocation2 + $0x1f00] sm:$0xff]  ;;  %v1096_v61 = vld [vmem:[#allocation2 + $0x1f08] sm:$0xff] }
 0x233   :  { %6694 = vmatprep.subr.bf16.mxu0 %v9612_v14  ;;  %7022 = vmatprep.subr.bf16.mxu1 %v9614_v15  ;;  %v9660_v14 = vcombine.high %v1055_v31, %v1059_v6  ;;  %v9662_v15 = vcombine.high %v1056_v10, %v1060_v11  ;;  %v1099_v60 = vld [vmem:[#allocation2 + $0x1f20] sm:$0xff]  ;;  %v1100_v62 = vld [vmem:[#allocation2 + $0x1f28] sm:$0xff] }
 0x234   :  { %6724 = vmatprep.mubr.bf16.mxu0 %v10482_v20  ;;  %7052 = vmatprep.mubr.bf16.mxu1 %v10482_v20 }
 0x236   :  { %6695 = vmatpush1.bf16.msra.mxu0 %v9611_v1  ;;  %7023 = vmatpush1.bf16.msra.mxu1 %v9613_v21  ;;  %v9659_v1 = vcombine.low %v1055_v31, %v1059_v6  ;;  %v9661_v21 = vcombine.low %v1056_v10, %v1060_v11  ;;  %v1103_v31 = vld [vmem:[#allocation2 + $0x1f40] sm:$0xff]  ;;  %v1104_v10 = vld [vmem:[#allocation2 + $0x1f48] sm:$0xff] }
 0x237   :  { %6696 = vmatprep.subr.bf16.mxu0 %v9620_v22  ;;  %7024 = vmatprep.subr.bf16.mxu1 %v9622_v24  ;;  %v9668_v22 = vcombine.high %v1063_v17, %v1067_v18  ;;  %v9670_v24 = vcombine.high %v1064_v53, %v1068_v16  ;;  %v1107_v6 = vld [vmem:[#allocation2 + $0x1f60] sm:$0xff]  ;;  %v1108_v11 = vld [vmem:[#allocation2 + $0x1f68] sm:$0xff] }
 0x23a   :  { %6697 = vmatpush1.bf16.msra.mxu0 %v9619_v32  ;;  %7025 = vmatpush1.bf16.msra.mxu1 %v9621_v59  ;;  %v9667_v32 = vcombine.low %v1063_v17, %v1067_v18  ;;  %v9669_v59 = vcombine.low %v1064_v53, %v1068_v16  ;;  %v1111_v17 = vld [vmem:[#allocation2 + $0x1f80] sm:$0xff]  ;;  %v1112_v53 = vld [vmem:[#allocation2 + $0x1f88] sm:$0xff] }
 0x23b   :  { %6698 = vmatprep.subr.bf16.mxu0 %v9628_v33  ;;  %7026 = vmatprep.subr.bf16.mxu1 %v9630_v63  ;;  %v9676_v33 = vcombine.high %v1071_v25, %v1075_v26  ;;  %v9678_v63 = vcombine.high %v1072_v28, %v1076_v30  ;;  %v1115_v18 = vld [vmem:[#allocation2 + $0x1fa0] sm:$0xff]  ;;  %v1116_v16 = vld [vmem:[#allocation2 + $0x1fa8] sm:$0xff] }
 0x23e   :  { %6699 = vmatpush1.bf16.msra.mxu0 %v9627_v41  ;;  %7027 = vmatpush1.bf16.msra.mxu1 %v9629_v42  ;;  %v9675_v41 = vcombine.low %v1071_v25, %v1075_v26  ;;  %v9677_v42 = vcombine.low %v1072_v28, %v1076_v30  ;;  %v1119_v25 = vld [vmem:[#allocation2 + $0x1fc0] sm:$0xff]  ;;  %v1120_v28 = vld [vmem:[#allocation2 + $0x1fc8] sm:$0xff] }
 0x23f   :  { %6700 = vmatprep.subr.bf16.mxu0 %v9636_v44  ;;  %7028 = vmatprep.subr.bf16.mxu1 %v9638_v45  ;;  %v9684_v44 = vcombine.high %v1079_v35, %v1083_v36  ;;  %v9686_v45 = vcombine.high %v1080_v38, %v1084_v39  ;;  %v1123_v26 = vld [vmem:[#allocation2 + $0x1fe0] sm:$0xff]  ;;  %v1124_v30 = vld [vmem:[#allocation2 + $0x1fe8] sm:$0xff] }
 0x242   :  { %6701 = vmatpush1.bf16.msra.mxu0 %v9635_v52  ;;  %7029 = vmatpush1.bf16.msra.mxu1 %v9637_v54  ;;  %v9683_v52 = vcombine.low %v1079_v35, %v1083_v36  ;;  %v9685_v54 = vcombine.low %v1080_v38, %v1084_v39  ;;  %v105_v35 = vld [vmem:[#allocation2 + $0x10] sm:$0xff]  ;;  %v106_v38 = vld [vmem:[#allocation2 + $0x18] sm:$0xff] }
 0x243   :  { %6702 = vmatprep.subr.bf16.mxu0 %v9644_v55  ;;  %7030 = vmatprep.subr.bf16.mxu1 %v9646_v56  ;;  %v9692_v55 = vcombine.high %v1087_v46, %v1091_v47  ;;  %v9694_v56 = vcombine.high %v1088_v49, %v1092_v50  ;;  %v109_v36 = vld [vmem:[#allocation2 + $0x30] sm:$0xff]  ;;  %v110_v39 = vld [vmem:[#allocation2 + $0x38] sm:$0xff] }
 0x246   :  { %6703 = vmatpush1.bf16.msra.mxu0 %v9643_v8  ;;  %7031 = vmatpush1.bf16.msra.mxu1 %v9645_v2  ;;  %v9691_v8 = vcombine.low %v1087_v46, %v1091_v47  ;;  %v9693_v2 = vcombine.low %v1088_v49, %v1092_v50  ;;  %v113_v46 = vld [vmem:[#allocation2 + $0x50] sm:$0xff]  ;;  %v10490_v49 = vcombine.high %v10478_v7, %v10478_v7  ;;  %v114_v50 = vld [vmem:[#allocation2 + $0x58] sm:$0xff] }
 0x247   :  { %6704 = vmatprep.subr.bf16.mxu0 %v9652_v3  ;;  %7032 = vmatprep.subr.bf16.mxu1 %v9654_v4  ;;  %v9700_v3 = vcombine.high %v1095_v57, %v1099_v60  ;;  %v9702_v4 = vcombine.high %v1096_v61, %v1100_v62  ;;  %v117_v47 = vld [vmem:[#allocation2 + $0x70] sm:$0xff] }
 0x24a   :  { %6705 = vmatpush1.bf16.msra.mxu0 %v9651_v12  ;;  %7033 = vmatpush1.bf16.msra.mxu1 %v9653_v13  ;;  %v9699_v12 = vcombine.low %v1095_v57, %v1099_v60  ;;  %v9701_v13 = vcombine.low %v1096_v61, %v1100_v62  ;;  %v121_v60 = vld [vmem:[#allocation2 + $0x90] sm:$0xff]  ;;  %v122_v62 = vld [vmem:[#allocation2 + $0x98] sm:$0xff] }
 0x24b   :  { %6706 = vmatprep.subr.bf16.mxu0 %v9660_v14  ;;  %7034 = vmatprep.subr.bf16.mxu1 %v9662_v15  ;;  %v9708_v14 = vcombine.high %v1103_v31, %v1107_v6  ;;  %v9710_v15 = vcombine.high %v1104_v10, %v1108_v11  ;;  %v125_v61 = vld [vmem:[#allocation2 + $0xb0] sm:$0xff] }
 0x24e   :  { %6707 = vmatpush1.bf16.msra.mxu0 %v9659_v1  ;;  %7035 = vmatpush1.bf16.msra.mxu1 %v9661_v21  ;;  %v9707_v1 = vcombine.low %v1103_v31, %v1107_v6  ;;  %v9709_v21 = vcombine.low %v1104_v10, %v1108_v11  ;;  %v129_v6 = vld [vmem:[#allocation2 + $0xd0] sm:$0xff]  ;;  %v130_v11 = vld [vmem:[#allocation2 + $0xd8] sm:$0xff] }
 0x24f   :  { %6708 = vmatprep.subr.bf16.mxu0 %v9668_v22  ;;  %7036 = vmatprep.subr.bf16.mxu1 %v9670_v24  ;;  %v9716_v22 = vcombine.high %v1111_v17, %v1115_v18  ;;  %v9718_v24 = vcombine.high %v1112_v53, %v1116_v16  ;;  %v133_v10 = vld [vmem:[#allocation2 + $0xf0] sm:$0xff] }
 0x252   :  { %6709 = vmatpush1.bf16.msra.mxu0 %v9667_v32  ;;  %7037 = vmatpush1.bf16.msra.mxu1 %v9669_v59  ;;  %v9715_v32 = vcombine.low %v1111_v17, %v1115_v18  ;;  %v9717_v59 = vcombine.low %v1112_v53, %v1116_v16  ;;  %v137_v18 = vld [vmem:[#allocation2 + $0x110] sm:$0xff]  ;;  %v138_v16 = vld [vmem:[#allocation2 + $0x118] sm:$0xff] }
 0x253   :  { %6710 = vmatprep.subr.bf16.mxu0 %v9676_v33  ;;  %7038 = vmatprep.subr.bf16.mxu1 %v9678_v63  ;;  %v9724_v33 = vcombine.high %v1119_v25, %v1123_v26  ;;  %v9726_v63 = vcombine.high %v1120_v28, %v1124_v30  ;;  %v141_v53 = vld [vmem:[#allocation2 + $0x130] sm:$0xff] }
 0x256   :  { %6711 = vmatpush1.bf16.msra.mxu0 %v9675_v41  ;;  %7039 = vmatpush1.bf16.msra.mxu1 %v9677_v42  ;;  %v9723_v41 = vcombine.low %v1119_v25, %v1123_v26  ;;  %v9725_v42 = vcombine.low %v1120_v28, %v1124_v30  ;;  %v145_v25 = vld [vmem:[#allocation2 + $0x150] sm:$0xff]  ;;  %v146_v28 = vld [vmem:[#allocation2 + $0x158] sm:$0xff] }
 0x257   :  { %6712 = vmatprep.subr.bf16.mxu0 %v9684_v44  ;;  %7040 = vmatprep.subr.bf16.mxu1 %v9686_v45  ;;  %v8712_v44 = vcombine.high %v105_v35, %v109_v36  ;;  %v8714_v45 = vcombine.high %v106_v38, %v110_v39  ;;  %v149_v26 = vld [vmem:[#allocation2 + $0x170] sm:$0xff]  ;;  %v150_v30 = vld [vmem:[#allocation2 + $0x178] sm:$0xff] }
 0x25a   :  { %6713 = vmatpush1.bf16.msra.mxu0 %v9683_v52  ;;  %7041 = vmatpush1.bf16.msra.mxu1 %v9685_v54  ;;  %v118_v52 = vld [vmem:[#allocation2 + $0x78] sm:$0xff]  ;;  %v8711_v54 = vcombine.low %v105_v35, %v109_v36  ;;  %v153_v35 = vld [vmem:[#allocation2 + $0x190] sm:$0xff] }
 0x25b   :  { %6714 = vmatprep.subr.bf16.mxu0 %v9692_v55  ;;  %7042 = vmatprep.subr.bf16.mxu1 %v9694_v56  ;;  %v8713_v55 = vcombine.low %v106_v38, %v110_v39  ;;  %v8720_v56 = vcombine.high %v113_v46, %v117_v47  ;;  %v8722_v57 = vcombine.high %v114_v50, %v118_v52  ;;  %v157_v36 = vld [vmem:[#allocation2 + $0x1b0] sm:$0xff]  ;;  %v154_v38 = vld [vmem:[#allocation2 + $0x198] sm:$0xff] }
 0x25c   :  { %v158_v39 = vld [vmem:[#allocation2 + $0x1b8] sm:$0xff] }
 0x25e   :  { %6715 = vmatpush1.bf16.msra.mxu0 %v9691_v8  ;;  %7043 = vmatpush1.bf16.msra.mxu1 %v9693_v2  ;;  %v126_v8 = vld [vmem:[#allocation2 + $0xb8] sm:$0xff]  ;;  %v8719_v2 = vcombine.low %v113_v46, %v117_v47  ;;  %v161_v46 = vld [vmem:[#allocation2 + $0x1d0] sm:$0xff] }
 0x25f   :  { %6716 = vmatprep.subr.bf16.mxu0 %v9700_v3  ;;  %7044 = vmatprep.subr.bf16.mxu1 %v9702_v4  ;;  %v8721_v3 = vcombine.low %v114_v50, %v118_v52  ;;  %v8728_v4 = vcombine.high %v121_v60, %v125_v61  ;;  %v8730_v31 = vcombine.high %v122_v62, %v126_v8  ;;  %v165_v47 = vld [vmem:[#allocation2 + $0x1f0] sm:$0xff]  ;;  %v162_v50 = vld [vmem:[#allocation2 + $0x1d8] sm:$0xff] }
 0x260   :  { %v166_v52 = vld [vmem:[#allocation2 + $0x1f8] sm:$0xff] }
 0x262   :  { %6717 = vmatpush1.bf16.msra.mxu0 %v9699_v12  ;;  %7045 = vmatpush1.bf16.msra.mxu1 %v9701_v13  ;;  %v134_v12 = vld [vmem:[#allocation2 + $0xf8] sm:$0xff]  ;;  %v8727_v13 = vcombine.low %v121_v60, %v125_v61  ;;  %v169_v60 = vld [vmem:[#allocation2 + $0x210] sm:$0xff] }
 0x263   :  { %6718 = vmatprep.subr.bf16.mxu0 %v9708_v14  ;;  %7046 = vmatprep.subr.bf16.mxu1 %v9710_v15  ;;  %v8729_v14 = vcombine.low %v122_v62, %v126_v8  ;;  %v8736_v15 = vcombine.high %v129_v6, %v133_v10  ;;  %v8738_v17 = vcombine.high %v130_v11, %v134_v12  ;;  %v173_v61 = vld [vmem:[#allocation2 + $0x230] sm:$0xff]  ;;  %v170_v62 = vld [vmem:[#allocation2 + $0x218] sm:$0xff] }
 0x264   :  { %v174_v8 = vld [vmem:[#allocation2 + $0x238] sm:$0xff] }
 0x266   :  { %6719 = vmatpush1.bf16.msra.mxu0 %v9707_v1  ;;  %7047 = vmatpush1.bf16.msra.mxu1 %v9709_v21  ;;  %v142_v1 = vld [vmem:[#allocation2 + $0x138] sm:$0xff]  ;;  %v8735_v21 = vcombine.low %v129_v6, %v133_v10  ;;  %v177_v6 = vld [vmem:[#allocation2 + $0x250] sm:$0xff] }
 0x267   :  { %6720 = vmatprep.subr.bf16.mxu0 %v9716_v22  ;;  %7048 = vmatprep.subr.bf16.mxu1 %v9718_v24  ;;  %v8737_v22 = vcombine.low %v130_v11, %v134_v12  ;;  %v8744_v24 = vcombine.high %v137_v18, %v141_v53  ;;  %v181_v10 = vld [vmem:[#allocation2 + $0x270] sm:$0xff]  ;;  %v178_v11 = vld [vmem:[#allocation2 + $0x258] sm:$0xff] }
 0x268   :  { %v182_v12 = vld [vmem:[#allocation2 + $0x278] sm:$0xff] }
 0x26a   :  { %6721 = vmatpush1.bf16.msra.mxu0 %v9715_v32  ;;  %7049 = vmatpush1.bf16.msra.mxu1 %v9717_v59  ;;  %v8743_v32 = vcombine.low %v137_v18, %v141_v53  ;;  %v8745_v59 = vcombine.low %v138_v16, %v142_v1  ;;  %v185_v18 = vld [vmem:[#allocation2 + $0x290] sm:$0xff] }
 0x26b   :  { %6722 = vmatprep.subr.bf16.mxu0 %v9724_v33  ;;  %7050 = vmatprep.subr.bf16.mxu1 %v9726_v63  ;;  %v8752_v33 = vcombine.high %v145_v25, %v149_v26  ;;  %v8754_v63 = vcombine.high %v146_v28, %v150_v30  ;;  %v189_v53 = vld [vmem:[#allocation2 + $0x2b0] sm:$0xff] }
 0x26e   :  { %6723 = vmatpush1.bf16.msra.mxu0 %v9723_v41  ;;  %7051 = vmatpush1.bf16.msra.mxu1 %v9725_v42  ;;  %v8751_v41 = vcombine.low %v145_v25, %v149_v26  ;;  %v8753_v42 = vcombine.low %v146_v28, %v150_v30  ;;  %v193_v25 = vld [vmem:[#allocation2 + $0x2d0] sm:$0xff]  ;;  %v194_v28 = vld [vmem:[#allocation2 + $0x2d8] sm:$0xff] }
 0x26f   :  { %7061 = vmatprep.subr.bf16.mxu0 %v8712_v44  ;;  %7389 = vmatprep.subr.bf16.mxu1 %v8714_v45  ;;  %v8760_v44 = vcombine.high %v153_v35, %v157_v36  ;;  %v8762_v45 = vcombine.high %v154_v38, %v158_v39  ;;  %v197_v26 = vld [vmem:[#allocation2 + $0x2f0] sm:$0xff]  ;;  %v198_v30 = vld [vmem:[#allocation2 + $0x2f8] sm:$0xff] }
 0x271   :  { %6725 = vmatmul.mubr.bf16.vlgmr.msra.gmra.mrb[0].mxu0 %v10490_v49  ;;  %7053 = vmatmul.mubr.bf16.vlgmr.msra.gmra.mrb[0].mxu1 %v10490_v49 }
 0x272   :  { %7062 = vmatpush1.bf16.msra.mxu0 %v8711_v54  ;;  %7390 = vmatpush1.bf16.msra.mxu1 %v8713_v55  ;;  %v8759_v54 = vcombine.low %v153_v35, %v157_v36  ;;  %v8761_v55 = vcombine.low %v154_v38, %v158_v39  ;;  %v201_v35 = vld [vmem:[#allocation2 + $0x310] sm:$0xff]  ;;  %v202_v38 = vld [vmem:[#allocation2 + $0x318] sm:$0xff] }
 0x273   :  { %7063 = vmatprep.subr.bf16.mxu0 %v8720_v56  ;;  %7391 = vmatprep.subr.bf16.mxu1 %v8722_v57  ;;  %v8768_v56 = vcombine.high %v161_v46, %v165_v47  ;;  %v8770_v57 = vcombine.high %v162_v50, %v166_v52  ;;  %v205_v36 = vld [vmem:[#allocation2 + $0x330] sm:$0xff]  ;;  %v206_v39 = vld [vmem:[#allocation2 + $0x338] sm:$0xff] }
 0x274   :  { %7093 = vmatprep.mubr.bf16.mxu0 %v10378_v9  ;;  %7421 = vmatprep.mubr.bf16.mxu1 %v10378_v9  ;;  %v8746_v9 = vcombine.high %v138_v16, %v142_v1  ;;  %v186_v16 = vld [vmem:[#allocation2 + $0x298] sm:$0xff] }
 0x275   :  { %v190_v1 = vld [vmem:[#allocation2 + $0x2b8] sm:$0xff] }
 0x276   :  { %7064 = vmatpush1.bf16.msra.mxu0 %v8719_v2  ;;  %7392 = vmatpush1.bf16.msra.mxu1 %v8721_v3  ;;  %v8767_v2 = vcombine.low %v161_v46, %v165_v47  ;;  %v8769_v3 = vcombine.low %v162_v50, %v166_v52  ;;  %v209_v46 = vld [vmem:[#allocation2 + $0x350] sm:$0xff]  ;;  %v210_v50 = vld [vmem:[#allocation2 + $0x358] sm:$0xff] }
 0x277   :  { %7065 = vmatprep.subr.bf16.mxu0 %v8728_v4  ;;  %7393 = vmatprep.subr.bf16.mxu1 %v8730_v31  ;;  %v8776_v4 = vcombine.high %v169_v60, %v173_v61  ;;  %v8778_v31 = vcombine.high %v170_v62, %v174_v8  ;;  %v213_v47 = vld [vmem:[#allocation2 + $0x370] sm:$0xff]  ;;  %v214_v52 = vld [vmem:[#allocation2 + $0x378] sm:$0xff] }
 0x27a   :  { %7066 = vmatpush1.bf16.msra.mxu0 %v8727_v13  ;;  %7394 = vmatpush1.bf16.msra.mxu1 %v8729_v14  ;;  %v8775_v13 = vcombine.low %v169_v60, %v173_v61  ;;  %v8777_v14 = vcombine.low %v170_v62, %v174_v8  ;;  %v217_v60 = vld [vmem:[#allocation2 + $0x390] sm:$0xff]  ;;  %v218_v62 = vld [vmem:[#allocation2 + $0x398] sm:$0xff] }
 0x27b   :  { %7067 = vmatprep.subr.bf16.mxu0 %v8736_v15  ;;  %7395 = vmatprep.subr.bf16.mxu1 %v8738_v17  ;;  %v8784_v15 = vcombine.high %v177_v6, %v181_v10  ;;  %v8786_v17 = vcombine.high %v178_v11, %v182_v12  ;;  %v221_v61 = vld [vmem:[#allocation2 + $0x3b0] sm:$0xff]  ;;  %v222_v8 = vld [vmem:[#allocation2 + $0x3b8] sm:$0xff] }
 0x27e   :  { %7068 = vmatpush1.bf16.msra.mxu0 %v8735_v21  ;;  %7396 = vmatpush1.bf16.msra.mxu1 %v8737_v22  ;;  %v8783_v21 = vcombine.low %v177_v6, %v181_v10  ;;  %v8785_v22 = vcombine.low %v178_v11, %v182_v12  ;;  %v225_v6 = vld [vmem:[#allocation2 + $0x3d0] sm:$0xff]  ;;  %v226_v11 = vld [vmem:[#allocation2 + $0x3d8] sm:$0xff] }
 0x27f   :  { %7069 = vmatprep.subr.bf16.mxu0 %v8744_v24  ;;  %7397 = vmatprep.subr.bf16.mxu1 %v8746_v9  ;;  %v8792_v24 = vcombine.high %v185_v18, %v189_v53  ;;  %v8794_v9 = vcombine.high %v186_v16, %v190_v1  ;;  %v229_v10 = vld [vmem:[#allocation2 + $0x3f0] sm:$0xff]  ;;  %v230_v12 = vld [vmem:[#allocation2 + $0x3f8] sm:$0xff] }
 0x282   :  { %7070 = vmatpush1.bf16.msra.mxu0 %v8743_v32  ;;  %7398 = vmatpush1.bf16.msra.mxu1 %v8745_v59  ;;  %v8791_v32 = vcombine.low %v185_v18, %v189_v53  ;;  %v8793_v59 = vcombine.low %v186_v16, %v190_v1  ;;  %v233_v18 = vld [vmem:[#allocation2 + $0x410] sm:$0xff]  ;;  %v234_v16 = vld [vmem:[#allocation2 + $0x418] sm:$0xff] }
 0x283   :  { %7071 = vmatprep.subr.bf16.mxu0 %v8752_v33  ;;  %7399 = vmatprep.subr.bf16.mxu1 %v8754_v63  ;;  %v8800_v33 = vcombine.high %v193_v25, %v197_v26  ;;  %v8802_v63 = vcombine.high %v194_v28, %v198_v30  ;;  %v237_v53 = vld [vmem:[#allocation2 + $0x430] sm:$0xff]  ;;  %v238_v1 = vld [vmem:[#allocation2 + $0x438] sm:$0xff] }
 0x286   :  { %7072 = vmatpush1.bf16.msra.mxu0 %v8751_v41  ;;  %7400 = vmatpush1.bf16.msra.mxu1 %v8753_v42  ;;  %v8799_v41 = vcombine.low %v193_v25, %v197_v26  ;;  %v8801_v42 = vcombine.low %v194_v28, %v198_v30  ;;  %v241_v25 = vld [vmem:[#allocation2 + $0x450] sm:$0xff]  ;;  %v242_v28 = vld [vmem:[#allocation2 + $0x458] sm:$0xff] }
 0x287   :  { %7073 = vmatprep.subr.bf16.mxu0 %v8760_v44  ;;  %7401 = vmatprep.subr.bf16.mxu1 %v8762_v45  ;;  %v8808_v44 = vcombine.high %v201_v35, %v205_v36  ;;  %v8810_v45 = vcombine.high %v202_v38, %v206_v39  ;;  %v245_v26 = vld [vmem:[#allocation2 + $0x470] sm:$0xff]  ;;  %v246_v30 = vld [vmem:[#allocation2 + $0x478] sm:$0xff] }
 0x28a   :  { %7074 = vmatpush1.bf16.msra.mxu0 %v8759_v54  ;;  %7402 = vmatpush1.bf16.msra.mxu1 %v8761_v55  ;;  %v8807_v54 = vcombine.low %v201_v35, %v205_v36  ;;  %v8809_v55 = vcombine.low %v202_v38, %v206_v39  ;;  %v249_v35 = vld [vmem:[#allocation2 + $0x490] sm:$0xff]  ;;  %v250_v38 = vld [vmem:[#allocation2 + $0x498] sm:$0xff] }
 0x28b   :  { %7075 = vmatprep.subr.bf16.mxu0 %v8768_v56  ;;  %7403 = vmatprep.subr.bf16.mxu1 %v8770_v57  ;;  %v8816_v56 = vcombine.high %v209_v46, %v213_v47  ;;  %v8818_v57 = vcombine.high %v210_v50, %v214_v52  ;;  %v253_v36 = vld [vmem:[#allocation2 + $0x4b0] sm:$0xff]  ;;  %v254_v39 = vld [vmem:[#allocation2 + $0x4b8] sm:$0xff] }
 0x28e   :  { %7076 = vmatpush1.bf16.msra.mxu0 %v8767_v2  ;;  %7404 = vmatpush1.bf16.msra.mxu1 %v8769_v3  ;;  %v8815_v2 = vcombine.low %v209_v46, %v213_v47  ;;  %v8817_v3 = vcombine.low %v210_v50, %v214_v52  ;;  %v257_v46 = vld [vmem:[#allocation2 + $0x4d0] sm:$0xff]  ;;  %v258_v50 = vld [vmem:[#allocation2 + $0x4d8] sm:$0xff] }
 0x28f   :  { %7077 = vmatprep.subr.bf16.mxu0 %v8776_v4  ;;  %7405 = vmatprep.subr.bf16.mxu1 %v8778_v31  ;;  %v8824_v4 = vcombine.high %v217_v60, %v221_v61  ;;  %v8826_v31 = vcombine.high %v218_v62, %v222_v8  ;;  %v261_v47 = vld [vmem:[#allocation2 + $0x4f0] sm:$0xff]  ;;  %v262_v52 = vld [vmem:[#allocation2 + $0x4f8] sm:$0xff] }
 0x292   :  { %7078 = vmatpush1.bf16.msra.mxu0 %v8775_v13  ;;  %7406 = vmatpush1.bf16.msra.mxu1 %v8777_v14  ;;  %v8823_v13 = vcombine.low %v217_v60, %v221_v61  ;;  %v8825_v14 = vcombine.low %v218_v62, %v222_v8  ;;  %v269_v60 = vld [vmem:[#allocation2 + $0x530] sm:$0xff]  ;;  %v266_v61 = vld [vmem:[#allocation2 + $0x518] sm:$0xff]  ;;  %v8863_v8 = vcombine.low %v257_v46, %v261_v47 }
 0x293   :  { %7079 = vmatprep.subr.bf16.mxu0 %v8784_v15  ;;  %7407 = vmatprep.subr.bf16.mxu1 %v8786_v17  ;;  %v8832_v15 = vcombine.high %v225_v6, %v229_v10  ;;  %v8834_v17 = vcombine.high %v226_v11, %v230_v12  ;;  %v270_v62 = vld [vmem:[#allocation2 + $0x538] sm:$0xff] }
 0x296   :  { %7080 = vmatpush1.bf16.msra.mxu0 %v8783_v21  ;;  %7408 = vmatpush1.bf16.msra.mxu1 %v8785_v22  ;;  %v8831_v21 = vcombine.low %v225_v6, %v229_v10  ;;  %v8833_v22 = vcombine.low %v226_v11, %v230_v12  ;;  %v274_v6 = vld [vmem:[#allocation2 + $0x558] sm:$0xff]  ;;  %v8873_v12 = vcombine.low %v266_v61, %v270_v62 }
 0x297   :  { %7081 = vmatprep.subr.bf16.mxu0 %v8792_v24  ;;  %7409 = vmatprep.subr.bf16.mxu1 %v8794_v9  ;;  %v8840_v24 = vcombine.high %v233_v18, %v237_v53  ;;  %v8842_v9 = vcombine.high %v234_v16, %v238_v1  ;;  %v278_v10 = vld [vmem:[#allocation2 + $0x578] sm:$0xff] }
 0x29a   :  { %7082 = vmatpush1.bf16.msra.mxu0 %v8791_v32  ;;  %7410 = vmatpush1.bf16.msra.mxu1 %v8793_v59  ;;  %v8839_v32 = vcombine.low %v233_v18, %v237_v53  ;;  %v8841_v59 = vcombine.low %v234_v16, %v238_v1  ;;  %v282_v18 = vld [vmem:[#allocation2 + $0x598] sm:$0xff]  ;;  %v8881_v1 = vcombine.low %v274_v6, %v278_v10 }
 0x29b   :  { %7083 = vmatprep.subr.bf16.mxu0 %v8800_v33  ;;  %7411 = vmatprep.subr.bf16.mxu1 %v8802_v63  ;;  %v8848_v33 = vcombine.high %v241_v25, %v245_v26  ;;  %v8850_v63 = vcombine.high %v242_v28, %v246_v30  ;;  %v286_v53 = vld [vmem:[#allocation2 + $0x5b8] sm:$0xff] }
 0x29e   :  { %7084 = vmatpush1.bf16.msra.mxu0 %v8799_v41  ;;  %7412 = vmatpush1.bf16.msra.mxu1 %v8801_v42  ;;  %v8847_v41 = vcombine.low %v241_v25, %v245_v26  ;;  %v8849_v42 = vcombine.low %v242_v28, %v246_v30  ;;  %v290_v25 = vld [vmem:[#allocation2 + $0x5d8] sm:$0xff]  ;;  %v8889_v30 = vcombine.low %v282_v18, %v286_v53 }
 0x29f   :  { %7085 = vmatprep.subr.bf16.mxu0 %v8808_v44  ;;  %7413 = vmatprep.subr.bf16.mxu1 %v8810_v45  ;;  %v8856_v44 = vcombine.high %v249_v35, %v253_v36  ;;  %v8858_v45 = vcombine.high %v250_v38, %v254_v39  ;;  %v294_v26 = vld [vmem:[#allocation2 + $0x5f8] sm:$0xff] }
 0x2a2   :  { %7086 = vmatpush1.bf16.msra.mxu0 %v8807_v54  ;;  %7414 = vmatpush1.bf16.msra.mxu1 %v8809_v55  ;;  %v8855_v54 = vcombine.low %v249_v35, %v253_v36  ;;  %v8864_v55 = vcombine.high %v257_v46, %v261_v47  ;;  %v298_v35 = vld [vmem:[#allocation2 + $0x618] sm:$0xff] }
 0x2a3   :  { %7087 = vmatprep.subr.bf16.mxu0 %v8816_v56  ;;  %7415 = vmatprep.subr.bf16.mxu1 %v8818_v57  ;;  %v8866_v56 = vcombine.high %v258_v50, %v262_v52  ;;  %v265_v57 = vld [vmem:[#allocation2 + $0x510] sm:$0xff]  ;;  %v302_v36 = vld [vmem:[#allocation2 + $0x638] sm:$0xff] }
 0x2a4   :  { %v8871_v11 = vcombine.low %v265_v57, %v269_v60  ;;  %v306_v46 = vld [vmem:[#allocation2 + $0x658] sm:$0xff] }
 0x2a5   :  { %v310_v47 = vld [vmem:[#allocation2 + $0x678] sm:$0xff] }
 0x2a6   :  { %7088 = vmatpush1.bf16.msra.mxu0 %v8815_v2  ;;  %7416 = vmatpush1.bf16.msra.mxu1 %v8817_v3  ;;  %v8865_v2 = vcombine.low %v258_v50, %v262_v52  ;;  %v8872_v3 = vcombine.high %v265_v57, %v269_v60  ;;  %v8905_v52 = vcombine.low %v298_v35, %v302_v36  ;;  %v314_v57 = vld [vmem:[#allocation2 + $0x698] sm:$0xff] }
 0x2a7   :  { %7089 = vmatprep.subr.bf16.mxu0 %v8824_v4  ;;  %7417 = vmatprep.subr.bf16.mxu1 %v8826_v31  ;;  %v273_v4 = vld [vmem:[#allocation2 + $0x550] sm:$0xff]  ;;  %v318_v60 = vld [vmem:[#allocation2 + $0x6b8] sm:$0xff] }
 0x2a8   :  { %v277_v31 = vld [vmem:[#allocation2 + $0x570] sm:$0xff] }
 0x2a9   :  { %v8879_v16 = vcombine.low %v273_v4, %v277_v31 }
 0x2aa   :  { %7090 = vmatpush1.bf16.msra.mxu0 %v8823_v13  ;;  %7418 = vmatpush1.bf16.msra.mxu1 %v8825_v14  ;;  %v8880_v13 = vcombine.high %v273_v4, %v277_v31  ;;  %v8882_v14 = vcombine.high %v274_v6, %v278_v10  ;;  %v322_v4 = vld [vmem:[#allocation2 + $0x6d8] sm:$0xff]  ;;  %v8921_v10 = vcombine.low %v314_v57, %v318_v60 }
 0x2ab   :  { %7091 = vmatprep.subr.bf16.mxu0 %v8832_v15  ;;  %7419 = vmatprep.subr.bf16.mxu1 %v8834_v17  ;;  %v281_v15 = vld [vmem:[#allocation2 + $0x590] sm:$0xff]  ;;  %v326_v31 = vld [vmem:[#allocation2 + $0x6f8] sm:$0xff] }
 0x2ac   :  { %v285_v17 = vld [vmem:[#allocation2 + $0x5b0] sm:$0xff] }
 0x2ad   :  { %v8887_v28 = vcombine.low %v281_v15, %v285_v17 }
 0x2ae   :  { %7092 = vmatpush1.bf16.msra.mxu0 %v8831_v21  ;;  %7420 = vmatpush1.bf16.msra.mxu1 %v8833_v22  ;;  %v8888_v21 = vcombine.high %v281_v15, %v285_v17  ;;  %v8890_v22 = vcombine.high %v282_v18, %v286_v53  ;;  %v330_v15 = vld [vmem:[#allocation2 + $0x718] sm:$0xff]  ;;  %v8929_v53 = vcombine.low %v322_v4, %v326_v31 }
 0x2af   :  { %7102 = vmatprep.subr.bf16.mxu0 %v8840_v24  ;;  %7430 = vmatprep.subr.bf16.mxu1 %v8842_v9  ;;  %v289_v24 = vld [vmem:[#allocation2 + $0x5d0] sm:$0xff]  ;;  %v334_v17 = vld [vmem:[#allocation2 + $0x738] sm:$0xff] }
 0x2b0   :  { %v293_v9 = vld [vmem:[#allocation2 + $0x5f0] sm:$0xff] }
 0x2b1   :  { %7094 = vmatmul.mubr.bf16.vlgmr.msra.gmra.mrb[4].mxu0 %v10384_v23  ;;  %7422 = vmatmul.mubr.bf16.vlgmr.msra.gmra.mrb[4].mxu1 %v10384_v23  ;;  %v8857_v23 = vcombine.low %v250_v38, %v254_v39  ;;  %v8895_v38 = vcombine.low %v289_v24, %v293_v9  ;;  %v8897_v39 = vcombine.low %v290_v25, %v294_v26 }
 0x2b2   :  { %7103 = vmatpush1.bf16.msra.mxu0 %v8839_v32  ;;  %7431 = vmatpush1.bf16.msra.mxu1 %v8841_v59  ;;  %v8896_v32 = vcombine.high %v289_v24, %v293_v9  ;;  %v8898_v59 = vcombine.high %v290_v25, %v294_v26  ;;  %v338_v24 = vld [vmem:[#allocation2 + $0x758] sm:$0xff]  ;;  %v8937_v26 = vcombine.low %v330_v15, %v334_v17 }
 0x2b3   :  { %7104 = vmatprep.subr.bf16.mxu0 %v8848_v33  ;;  %7432 = vmatprep.subr.bf16.mxu1 %v8850_v63  ;;  %v297_v33 = vld [vmem:[#allocation2 + $0x610] sm:$0xff]  ;;  %v342_v9 = vld [vmem:[#allocation2 + $0x778] sm:$0xff] }
 0x2b4   :  { %7134 = vmatprep.mubr.bf16.mxu0 %v10388_v34  ;;  %7462 = vmatprep.mubr.bf16.mxu1 %v10388_v34  ;;  %v8874_v34 = vcombine.high %v266_v61, %v270_v62  ;;  %v301_v63 = vld [vmem:[#allocation2 + $0x630] sm:$0xff]  ;;  %v8913_v62 = vcombine.low %v306_v46, %v310_v47 }
 0x2b5   :  { %v8903_v50 = vcombine.low %v297_v33, %v301_v63 }
 0x2b6   :  { %7105 = vmatpush1.bf16.msra.mxu0 %v8847_v41  ;;  %7433 = vmatpush1.bf16.msra.mxu1 %v8849_v42  ;;  %v8904_v41 = vcombine.high %v297_v33, %v301_v63  ;;  %v8906_v42 = vcombine.high %v298_v35, %v302_v36  ;;  %v346_v33 = vld [vmem:[#allocation2 + $0x798] sm:$0xff]  ;;  %v8945_v36 = vcombine.low %v338_v24, %v342_v9 }
 0x2b7   :  { %7106 = vmatprep.subr.bf16.mxu0 %v8856_v44  ;;  %7434 = vmatprep.subr.bf16.mxu1 %v8858_v45  ;;  %v305_v44 = vld [vmem:[#allocation2 + $0x650] sm:$0xff]  ;;  %v350_v63 = vld [vmem:[#allocation2 + $0x7b8] sm:$0xff] }
 0x2b8   :  { %v309_v45 = vld [vmem:[#allocation2 + $0x670] sm:$0xff] }
 0x2b9   :  { %v8911_v61 = vcombine.low %v305_v44, %v309_v45 }
 0x2ba   :  { %7107 = vmatpush1.bf16.msra.mxu0 %v8855_v54  ;;  %7435 = vmatpush1.bf16.msra.mxu1 %v8857_v23  ;;  %v8912_v54 = vcombine.high %v305_v44, %v309_v45  ;;  %v8914_v23 = vcombine.high %v306_v46, %v310_v47  ;;  %v354_v44 = vld [vmem:[#allocation2 + $0x7d8] sm:$0xff]  ;;  %v8953_v47 = vcombine.low %v346_v33, %v350_v63 }
 0x2bb   :  { %7108 = vmatprep.subr.bf16.mxu0 %v8864_v55  ;;  %7436 = vmatprep.subr.bf16.mxu1 %v8866_v56  ;;  %v313_v55 = vld [vmem:[#allocation2 + $0x690] sm:$0xff]  ;;  %v358_v45 = vld [vmem:[#allocation2 + $0x7f8] sm:$0xff] }
 0x2bc   :  { %v317_v56 = vld [vmem:[#allocation2 + $0x6b0] sm:$0xff] }
 0x2bd   :  { %v8919_v6 = vcombine.low %v313_v55, %v317_v56 }
 0x2be   :  { %7109 = vmatpush1.bf16.msra.mxu0 %v8863_v8  ;;  %7437 = vmatpush1.bf16.msra.mxu1 %v8865_v2  ;;  %v8920_v8 = vcombine.high %v313_v55, %v317_v56  ;;  %v8922_v2 = vcombine.high %v314_v57, %v318_v60  ;;  %v362_v55 = vld [vmem:[#allocation2 + $0x818] sm:$0xff]  ;;  %v8961_v60 = vcombine.low %v354_v44, %v358_v45 }
 0x2bf   :  { %7110 = vmatprep.subr.bf16.mxu0 %v8872_v3  ;;  %7438 = vmatprep.subr.bf16.mxu1 %v8874_v34  ;;  %v321_v3 = vld [vmem:[#allocation2 + $0x6d0] sm:$0xff]  ;;  %v366_v56 = vld [vmem:[#allocation2 + $0x838] sm:$0xff] }
 0x2c0   :  { %v325_v34 = vld [vmem:[#allocation2 + $0x6f0] sm:$0xff] }
 0x2c1   :  { %v8927_v18 = vcombine.low %v321_v3, %v325_v34 }
 0x2c2   :  { %7111 = vmatpush1.bf16.msra.mxu0 %v8871_v11  ;;  %7439 = vmatpush1.bf16.msra.mxu1 %v8873_v12  ;;  %v8928_v11 = vcombine.high %v321_v3, %v325_v34  ;;  %v8930_v12 = vcombine.high %v322_v4, %v326_v31  ;;  %v370_v3 = vld [vmem:[#allocation2 + $0x858] sm:$0xff]  ;;  %v8969_v31 = vcombine.low %v362_v55, %v366_v56 }
 0x2c3   :  { %7112 = vmatprep.subr.bf16.mxu0 %v8880_v13  ;;  %7440 = vmatprep.subr.bf16.mxu1 %v8882_v14  ;;  %v329_v13 = vld [vmem:[#allocation2 + $0x710] sm:$0xff]  ;;  %v374_v34 = vld [vmem:[#allocation2 + $0x878] sm:$0xff] }
 0x2c4   :  { %v333_v14 = vld [vmem:[#allocation2 + $0x730] sm:$0xff] }
 0x2c5   :  { %v8935_v25 = vcombine.low %v329_v13, %v333_v14 }
 0x2c6   :  { %7113 = vmatpush1.bf16.msra.mxu0 %v8879_v16  ;;  %7441 = vmatpush1.bf16.msra.mxu1 %v8881_v1  ;;  %v8936_v16 = vcombine.high %v329_v13, %v333_v14  ;;  %v8938_v1 = vcombine.high %v330_v15, %v334_v17  ;;  %v378_v13 = vld [vmem:[#allocation2 + $0x898] sm:$0xff]  ;;  %v8977_v17 = vcombine.low %v370_v3, %v374_v34 }
 0x2c7   :  { %7114 = vmatprep.subr.bf16.mxu0 %v8888_v21  ;;  %7442 = vmatprep.subr.bf16.mxu1 %v8890_v22  ;;  %v337_v21 = vld [vmem:[#allocation2 + $0x750] sm:$0xff]  ;;  %v382_v14 = vld [vmem:[#allocation2 + $0x8b8] sm:$0xff] }
 0x2c8   :  { %v341_v22 = vld [vmem:[#allocation2 + $0x770] sm:$0xff] }
 0x2c9   :  { %v8943_v35 = vcombine.low %v337_v21, %v341_v22 }
 0x2ca   :  { %7115 = vmatpush1.bf16.msra.mxu0 %v8887_v28  ;;  %7443 = vmatpush1.bf16.msra.mxu1 %v8889_v30  ;;  %v8944_v28 = vcombine.high %v337_v21, %v341_v22  ;;  %v8946_v30 = vcombine.high %v338_v24, %v342_v9  ;;  %v386_v21 = vld [vmem:[#allocation2 + $0x8d8] sm:$0xff] }
 0x2cb   :  { %7116 = vmatprep.subr.bf16.mxu0 %v8896_v32  ;;  %7444 = vmatprep.subr.bf16.mxu1 %v8898_v59  ;;  %v345_v32 = vld [vmem:[#allocation2 + $0x790] sm:$0xff]  ;;  %v390_v22 = vld [vmem:[#allocation2 + $0x8f8] sm:$0xff] }
 0x2cc   :  { %v349_v59 = vld [vmem:[#allocation2 + $0x7b0] sm:$0xff] }
 0x2cd   :  { %v8951_v46 = vcombine.low %v345_v32, %v349_v59 }
 0x2ce   :  { %7117 = vmatpush1.bf16.msra.mxu0 %v8895_v38  ;;  %7445 = vmatpush1.bf16.msra.mxu1 %v8897_v39  ;;  %v8952_v38 = vcombine.high %v345_v32, %v349_v59  ;;  %v8954_v39 = vcombine.high %v346_v33, %v350_v63  ;;  %v398_v32 = vld [vmem:[#allocation2 + $0x938] sm:$0xff]  ;;  %v8993_v33 = vcombine.low %v386_v21, %v390_v22 }
 0x2cf   :  { %7118 = vmatprep.subr.bf16.mxu0 %v8904_v41  ;;  %7446 = vmatprep.subr.bf16.mxu1 %v8906_v42  ;;  %v353_v41 = vld [vmem:[#allocation2 + $0x7d0] sm:$0xff] }
 0x2d0   :  { %v357_v42 = vld [vmem:[#allocation2 + $0x7f0] sm:$0xff] }
 0x2d1   :  { %v8959_v57 = vcombine.low %v353_v41, %v357_v42 }
 0x2d2   :  { %7119 = vmatpush1.bf16.msra.mxu0 %v8903_v50  ;;  %7447 = vmatpush1.bf16.msra.mxu1 %v8905_v52  ;;  %v8960_v50 = vcombine.high %v353_v41, %v357_v42  ;;  %v8962_v52 = vcombine.high %v354_v44, %v358_v45 }
 0x2d3   :  { %7120 = vmatprep.subr.bf16.mxu0 %v8912_v54  ;;  %7448 = vmatprep.subr.bf16.mxu1 %v8914_v23  ;;  %v361_v54 = vld [vmem:[#allocation2 + $0x810] sm:$0xff] }
 0x2d4   :  { %v365_v23 = vld [vmem:[#allocation2 + $0x830] sm:$0xff] }
 0x2d5   :  { %v8967_v4 = vcombine.low %v361_v54, %v365_v23 }
 0x2d6   :  { %7121 = vmatpush1.bf16.msra.mxu0 %v8911_v61  ;;  %7449 = vmatpush1.bf16.msra.mxu1 %v8913_v62  ;;  %v8968_v61 = vcombine.high %v361_v54, %v365_v23  ;;  %v8970_v62 = vcombine.high %v362_v55, %v366_v56 }
 0x2d7   :  { %7122 = vmatprep.subr.bf16.mxu0 %v8920_v8  ;;  %7450 = vmatprep.subr.bf16.mxu1 %v8922_v2  ;;  %v369_v8 = vld [vmem:[#allocation2 + $0x850] sm:$0xff] }
 0x2d8   :  { %v373_v2 = vld [vmem:[#allocation2 + $0x870] sm:$0xff] }
 0x2d9   :  { %v8975_v15 = vcombine.low %v369_v8, %v373_v2 }
 0x2da   :  { %7123 = vmatpush1.bf16.msra.mxu0 %v8919_v6  ;;  %7451 = vmatpush1.bf16.msra.mxu1 %v8921_v10  ;;  %v8976_v6 = vcombine.high %v369_v8, %v373_v2  ;;  %v8978_v10 = vcombine.high %v370_v3, %v374_v34 }
 0x2db   :  { %7124 = vmatprep.subr.bf16.mxu0 %v8928_v11  ;;  %7452 = vmatprep.subr.bf16.mxu1 %v8930_v12  ;;  %v377_v11 = vld [vmem:[#allocation2 + $0x890] sm:$0xff] }
 0x2dc   :  { %v381_v12 = vld [vmem:[#allocation2 + $0x8b0] sm:$0xff] }
 0x2dd   :  { %v8983_v24 = vcombine.low %v377_v11, %v381_v12 }
 0x2de   :  { %7125 = vmatpush1.bf16.msra.mxu0 %v8927_v18  ;;  %7453 = vmatpush1.bf16.msra.mxu1 %v8929_v53  ;;  %v8984_v18 = vcombine.high %v377_v11, %v381_v12  ;;  %v8986_v53 = vcombine.high %v378_v13, %v382_v14 }
 0x2df   :  { %7126 = vmatprep.subr.bf16.mxu0 %v8936_v16  ;;  %7454 = vmatprep.subr.bf16.mxu1 %v8938_v1  ;;  %v385_v16 = vld [vmem:[#allocation2 + $0x8d0] sm:$0xff] }
 0x2e0   :  { %v389_v1 = vld [vmem:[#allocation2 + $0x8f0] sm:$0xff] }
 0x2e1   :  { %v8992_v9 = vcombine.high %v385_v16, %v389_v1  ;;  %v8991_v59 = vcombine.low %v385_v16, %v389_v1 }
 0x2e2   :  { %7127 = vmatpush1.bf16.msra.mxu0 %v8935_v25  ;;  %7455 = vmatpush1.bf16.msra.mxu1 %v8937_v26  ;;  %v8994_v25 = vcombine.high %v386_v21, %v390_v22  ;;  %v393_v26 = vld [vmem:[#allocation2 + $0x910] sm:$0xff] }
 0x2e3   :  { %7128 = vmatprep.subr.bf16.mxu0 %v8944_v28  ;;  %7456 = vmatprep.subr.bf16.mxu1 %v8946_v30  ;;  %v397_v28 = vld [vmem:[#allocation2 + $0x930] sm:$0xff]  ;;  %v394_v30 = vld [vmem:[#allocation2 + $0x918] sm:$0xff] }
 0x2e4   :  { %v9000_v63 = vcombine.high %v393_v26, %v397_v28  ;;  %v8999_v41 = vcombine.low %v393_v26, %v397_v28  ;;  %v9001_v42 = vcombine.low %v394_v30, %v398_v32 }
 0x2e6   :  { %7129 = vmatpush1.bf16.msra.mxu0 %v8943_v35  ;;  %7457 = vmatpush1.bf16.msra.mxu1 %v8945_v36  ;;  %v401_v35 = vld [vmem:[#allocation2 + $0x950] sm:$0xff] }
 0x2e7   :  { %7130 = vmatprep.subr.bf16.mxu0 %v8952_v38  ;;  %7458 = vmatprep.subr.bf16.mxu1 %v8954_v39  ;;  %v405_v36 = vld [vmem:[#allocation2 + $0x970] sm:$0xff]  ;;  %v402_v38 = vld [vmem:[#allocation2 + $0x958] sm:$0xff] }
 0x2e8   :  { %v406_v39 = vld [vmem:[#allocation2 + $0x978] sm:$0xff]  ;;  %v9008_v44 = vcombine.high %v401_v35, %v405_v36  ;;  %v9007_v54 = vcombine.low %v401_v35, %v405_v36 }
 0x2e9   :  { %v9010_v45 = vcombine.high %v402_v38, %v406_v39  ;;  %v9009_v23 = vcombine.low %v402_v38, %v406_v39 }
 0x2ea   :  { %7131 = vmatpush1.bf16.msra.mxu0 %v8951_v46  ;;  %7459 = vmatpush1.bf16.msra.mxu1 %v8953_v47  ;;  %v409_v46 = vld [vmem:[#allocation2 + $0x990] sm:$0xff] }
 0x2eb   :  { %7132 = vmatprep.subr.bf16.mxu0 %v8960_v50  ;;  %7460 = vmatprep.subr.bf16.mxu1 %v8962_v52  ;;  %v413_v47 = vld [vmem:[#allocation2 + $0x9b0] sm:$0xff]  ;;  %v410_v50 = vld [vmem:[#allocation2 + $0x998] sm:$0xff] }
 0x2ec   :  { %v414_v52 = vld [vmem:[#allocation2 + $0x9b8] sm:$0xff]  ;;  %v9016_v55 = vcombine.high %v409_v46, %v413_v47  ;;  %v9015_v8 = vcombine.low %v409_v46, %v413_v47 }
 0x2ed   :  { %v9018_v56 = vcombine.high %v410_v50, %v414_v52  ;;  %v9017_v2 = vcombine.low %v410_v50, %v414_v52 }
 0x2ee   :  { %7133 = vmatpush1.bf16.msra.mxu0 %v8959_v57  ;;  %7461 = vmatpush1.bf16.msra.mxu1 %v8961_v60  ;;  %v417_v57 = vld [vmem:[#allocation2 + $0x9d0] sm:$0xff] }
 0x2ef   :  { %7143 = vmatprep.subr.bf16.mxu0 %v8968_v61  ;;  %7471 = vmatprep.subr.bf16.mxu1 %v8970_v62  ;;  %v421_v60 = vld [vmem:[#allocation2 + $0x9f0] sm:$0xff]  ;;  %v418_v61 = vld [vmem:[#allocation2 + $0x9d8] sm:$0xff] }
 0x2f0   :  { %v422_v62 = vld [vmem:[#allocation2 + $0x9f8] sm:$0xff]  ;;  %v9024_v3 = vcombine.high %v417_v57, %v421_v60  ;;  %v9023_v11 = vcombine.low %v417_v57, %v421_v60 }
 0x2f1   :  { %7135 = vmatmul.mubr.bf16.vlgmr.msra.gmra.mrb[4].mxu0 %v10403_v40  ;;  %7463 = vmatmul.mubr.bf16.vlgmr.msra.gmra.mrb[4].mxu1 %v10403_v40  ;;  %v8985_v40 = vcombine.low %v378_v13, %v382_v14  ;;  %v9026_v34 = vcombine.high %v418_v61, %v422_v62  ;;  %v9025_v12 = vcombine.low %v418_v61, %v422_v62 }
 0x2f2   :  { %7144 = vmatpush1.bf16.msra.mxu0 %v8967_v4  ;;  %7472 = vmatpush1.bf16.msra.mxu1 %v8969_v31  ;;  %v425_v4 = vld [vmem:[#allocation2 + $0xa10] sm:$0xff] }
 0x2f3   :  { %7145 = vmatprep.subr.bf16.mxu0 %v8976_v6  ;;  %7473 = vmatprep.subr.bf16.mxu1 %v8978_v10  ;;  %v429_v31 = vld [vmem:[#allocation2 + $0xa30] sm:$0xff]  ;;  %v426_v6 = vld [vmem:[#allocation2 + $0xa18] sm:$0xff] }
 0x2f4   :  { %7175 = vmatprep.mubr.bf16.mxu0 %v10406_v48  ;;  %7503 = vmatprep.mubr.bf16.mxu1 %v10406_v48  ;;  %v9002_v48 = vcombine.high %v394_v30, %v398_v32  ;;  %v430_v10 = vld [vmem:[#allocation2 + $0xa38] sm:$0xff]  ;;  %v9032_v13 = vcombine.high %v425_v4, %v429_v31  ;;  %v9031_v16 = vcombine.low %v425_v4, %v429_v31 }
 0x2f5   :  { %v9034_v14 = vcombine.high %v426_v6, %v430_v10  ;;  %v9033_v1 = vcombine.low %v426_v6, %v430_v10 }
 0x2f6   :  { %7146 = vmatpush1.bf16.msra.mxu0 %v8975_v15  ;;  %7474 = vmatpush1.bf16.msra.mxu1 %v8977_v17  ;;  %v433_v15 = vld [vmem:[#allocation2 + $0xa50] sm:$0xff] }
 0x2f7   :  { %7147 = vmatprep.subr.bf16.mxu0 %v8984_v18  ;;  %7475 = vmatprep.subr.bf16.mxu1 %v8986_v53  ;;  %v437_v17 = vld [vmem:[#allocation2 + $0xa70] sm:$0xff]  ;;  %v434_v18 = vld [vmem:[#allocation2 + $0xa58] sm:$0xff] }
 0x2f8   :  { %v438_v53 = vld [vmem:[#allocation2 + $0xa78] sm:$0xff]  ;;  %v9040_v21 = vcombine.high %v433_v15, %v437_v17  ;;  %v9039_v26 = vcombine.low %v433_v15, %v437_v17 }
 0x2f9   :  { %v9042_v22 = vcombine.high %v434_v18, %v438_v53  ;;  %v9041_v28 = vcombine.low %v434_v18, %v438_v53 }
 0x2fa   :  { %7148 = vmatpush1.bf16.msra.mxu0 %v8983_v24  ;;  %7476 = vmatpush1.bf16.msra.mxu1 %v8985_v40  ;;  %v441_v24 = vld [vmem:[#allocation2 + $0xa90] sm:$0xff] }
 0x2fb   :  { %7149 = vmatprep.subr.bf16.mxu0 %v8992_v9  ;;  %7477 = vmatprep.subr.bf16.mxu1 %v8994_v25  ;;  %v445_v40 = vld [vmem:[#allocation2 + $0xab0] sm:$0xff]  ;;  %v442_v9 = vld [vmem:[#allocation2 + $0xa98] sm:$0xff] }
 0x2fc   :  { %v446_v25 = vld [vmem:[#allocation2 + $0xab8] sm:$0xff]  ;;  %v9048_v30 = vcombine.high %v441_v24, %v445_v40  ;;  %v9047_v35 = vcombine.low %v441_v24, %v445_v40 }
 0x2fd   :  { %v9050_v32 = vcombine.high %v442_v9, %v446_v25  ;;  %v9049_v36 = vcombine.low %v442_v9, %v446_v25 }
 0x2fe   :  { %7150 = vmatpush1.bf16.msra.mxu0 %v8991_v59  ;;  %7478 = vmatpush1.bf16.msra.mxu1 %v8993_v33  ;;  %v449_v59 = vld [vmem:[#allocation2 + $0xad0] sm:$0xff] }
 0x2ff   :  { %7151 = vmatprep.subr.bf16.mxu0 %v9000_v63  ;;  %7479 = vmatprep.subr.bf16.mxu1 %v9002_v48  ;;  %v453_v33 = vld [vmem:[#allocation2 + $0xaf0] sm:$0xff]  ;;  %v450_v63 = vld [vmem:[#allocation2 + $0xad8] sm:$0xff] }
 0x300   :  { %v454_v48 = vld [vmem:[#allocation2 + $0xaf8] sm:$0xff]  ;;  %v9056_v38 = vcombine.high %v449_v59, %v453_v33  ;;  %v9055_v46 = vcombine.low %v449_v59, %v453_v33 }
 0x301   :  { %v9058_v39 = vcombine.high %v450_v63, %v454_v48  ;;  %v9057_v47 = vcombine.low %v450_v63, %v454_v48 }
 0x302   :  { %7152 = vmatpush1.bf16.msra.mxu0 %v8999_v41  ;;  %7480 = vmatpush1.bf16.msra.mxu1 %v9001_v42  ;;  %v457_v41 = vld [vmem:[#allocation2 + $0xb10] sm:$0xff] }
 0x303   :  { %7153 = vmatprep.subr.bf16.mxu0 %v9008_v44  ;;  %7481 = vmatprep.subr.bf16.mxu1 %v9010_v45  ;;  %v461_v42 = vld [vmem:[#allocation2 + $0xb30] sm:$0xff]  ;;  %v458_v44 = vld [vmem:[#allocation2 + $0xb18] sm:$0xff] }
 0x304   :  { %v462_v45 = vld [vmem:[#allocation2 + $0xb38] sm:$0xff]  ;;  %v9064_v50 = vcombine.high %v457_v41, %v461_v42  ;;  %v9063_v57 = vcombine.low %v457_v41, %v461_v42 }
 0x305   :  { %v9066_v52 = vcombine.high %v458_v44, %v462_v45  ;;  %v9065_v60 = vcombine.low %v458_v44, %v462_v45 }
 0x306   :  { %7154 = vmatpush1.bf16.msra.mxu0 %v9007_v54  ;;  %7482 = vmatpush1.bf16.msra.mxu1 %v9009_v23  ;;  %v465_v54 = vld [vmem:[#allocation2 + $0xb50] sm:$0xff] }
 0x307   :  { %7155 = vmatprep.subr.bf16.mxu0 %v9016_v55  ;;  %7483 = vmatprep.subr.bf16.mxu1 %v9018_v56  ;;  %v469_v23 = vld [vmem:[#allocation2 + $0xb70] sm:$0xff]  ;;  %v466_v55 = vld [vmem:[#allocation2 + $0xb58] sm:$0xff] }
 0x308   :  { %v470_v56 = vld [vmem:[#allocation2 + $0xb78] sm:$0xff]  ;;  %v9072_v61 = vcombine.high %v465_v54, %v469_v23  ;;  %v9071_v4 = vcombine.low %v465_v54, %v469_v23 }
 0x309   :  { %v9074_v62 = vcombine.high %v466_v55, %v470_v56  ;;  %v9073_v31 = vcombine.low %v466_v55, %v470_v56  ;;  %v521_v56 = vld [vmem:[#allocation2 + $0xd10] sm:$0xff] }
 0x30a   :  { %7156 = vmatpush1.bf16.msra.mxu0 %v9015_v8  ;;  %7484 = vmatpush1.bf16.msra.mxu1 %v9017_v2  ;;  %v473_v8 = vld [vmem:[#allocation2 + $0xb90] sm:$0xff] }
 0x30b   :  { %7157 = vmatprep.subr.bf16.mxu0 %v9024_v3  ;;  %7485 = vmatprep.subr.bf16.mxu1 %v9026_v34  ;;  %v477_v2 = vld [vmem:[#allocation2 + $0xbb0] sm:$0xff]  ;;  %v474_v3 = vld [vmem:[#allocation2 + $0xb98] sm:$0xff] }
 0x30c   :  { %v478_v34 = vld [vmem:[#allocation2 + $0xbb8] sm:$0xff]  ;;  %v9080_v6 = vcombine.high %v473_v8, %v477_v2  ;;  %v9079_v15 = vcombine.low %v473_v8, %v477_v2 }
 0x30d   :  { %v9082_v10 = vcombine.high %v474_v3, %v478_v34  ;;  %v9081_v17 = vcombine.low %v474_v3, %v478_v34  ;;  %v529_v3 = vld [vmem:[#allocation2 + $0xd50] sm:$0xff] }
 0x30e   :  { %7158 = vmatpush1.bf16.msra.mxu0 %v9023_v11  ;;  %7486 = vmatpush1.bf16.msra.mxu1 %v9025_v12  ;;  %v481_v11 = vld [vmem:[#allocation2 + $0xbd0] sm:$0xff] }
 0x30f   :  { %7159 = vmatprep.subr.bf16.mxu0 %v9032_v13  ;;  %7487 = vmatprep.subr.bf16.mxu1 %v9034_v14  ;;  %v485_v12 = vld [vmem:[#allocation2 + $0xbf0] sm:$0xff]  ;;  %v482_v13 = vld [vmem:[#allocation2 + $0xbd8] sm:$0xff] }
 0x310   :  { %v486_v14 = vld [vmem:[#allocation2 + $0xbf8] sm:$0xff]  ;;  %v9088_v18 = vcombine.high %v481_v11, %v485_v12  ;;  %v9087_v24 = vcombine.low %v481_v11, %v485_v12  ;;  %v533_v34 = vld [vmem:[#allocation2 + $0xd70] sm:$0xff] }
 0x311   :  { %v9090_v53 = vcombine.high %v482_v13, %v486_v14  ;;  %v9089_v40 = vcombine.low %v482_v13, %v486_v14  ;;  %v9136_v11 = vcombine.high %v529_v3, %v533_v34  ;;  %v537_v13 = vld [vmem:[#allocation2 + $0xd90] sm:$0xff] }
 0x312   :  { %7160 = vmatpush1.bf16.msra.mxu0 %v9031_v16  ;;  %7488 = vmatpush1.bf16.msra.mxu1 %v9033_v1  ;;  %v489_v16 = vld [vmem:[#allocation2 + $0xc10] sm:$0xff] }
 0x313   :  { %7161 = vmatprep.subr.bf16.mxu0 %v9040_v21  ;;  %7489 = vmatprep.subr.bf16.mxu1 %v9042_v22  ;;  %v493_v1 = vld [vmem:[#allocation2 + $0xc30] sm:$0xff]  ;;  %v490_v21 = vld [vmem:[#allocation2 + $0xc18] sm:$0xff] }
 0x314   :  { %v494_v22 = vld [vmem:[#allocation2 + $0xc38] sm:$0xff]  ;;  %v9096_v9 = vcombine.high %v489_v16, %v493_v1  ;;  %v9095_v59 = vcombine.low %v489_v16, %v493_v1  ;;  %v541_v14 = vld [vmem:[#allocation2 + $0xdb0] sm:$0xff] }
 0x315   :  { %v9098_v25 = vcombine.high %v490_v21, %v494_v22  ;;  %v9097_v33 = vcombine.low %v490_v21, %v494_v22  ;;  %v9144_v16 = vcombine.high %v537_v13, %v541_v14  ;;  %v545_v22 = vld [vmem:[#allocation2 + $0xdd0] sm:$0xff] }
 0x316   :  { %7162 = vmatpush1.bf16.msra.mxu0 %v9039_v26  ;;  %7490 = vmatpush1.bf16.msra.mxu1 %v9041_v28  ;;  %v497_v26 = vld [vmem:[#allocation2 + $0xc50] sm:$0xff] }
 0x317   :  { %7163 = vmatprep.subr.bf16.mxu0 %v9048_v30  ;;  %7491 = vmatprep.subr.bf16.mxu1 %v9050_v32  ;;  %v501_v28 = vld [vmem:[#allocation2 + $0xc70] sm:$0xff]  ;;  %v498_v30 = vld [vmem:[#allocation2 + $0xc58] sm:$0xff] }
 0x318   :  { %v502_v32 = vld [vmem:[#allocation2 + $0xc78] sm:$0xff]  ;;  %v9104_v63 = vcombine.high %v497_v26, %v501_v28  ;;  %v9103_v41 = vcombine.low %v497_v26, %v501_v28 }
 0x319   :  { %v9106_v48 = vcombine.high %v498_v30, %v502_v32  ;;  %v9105_v42 = vcombine.low %v498_v30, %v502_v32  ;;  %v550_v26 = vld [vmem:[#allocation2 + $0xdf8] sm:$0xff]  ;;  %v9143_v32 = vcombine.low %v537_v13, %v541_v14 }
 0x31a   :  { %7164 = vmatpush1.bf16.msra.mxu0 %v9047_v35  ;;  %7492 = vmatpush1.bf16.msra.mxu1 %v9049_v36  ;;  %v505_v35 = vld [vmem:[#allocation2 + $0xc90] sm:$0xff] }
 0x31b   :  { %7165 = vmatprep.subr.bf16.mxu0 %v9056_v38  ;;  %7493 = vmatprep.subr.bf16.mxu1 %v9058_v39  ;;  %v509_v36 = vld [vmem:[#allocation2 + $0xcb0] sm:$0xff]  ;;  %v506_v38 = vld [vmem:[#allocation2 + $0xc98] sm:$0xff] }
 0x31c   :  { %v510_v39 = vld [vmem:[#allocation2 + $0xcb8] sm:$0xff]  ;;  %v9112_v44 = vcombine.high %v505_v35, %v509_v36  ;;  %v9111_v54 = vcombine.low %v505_v35, %v509_v36 }
 0x31d   :  { %v9114_v45 = vcombine.high %v506_v38, %v510_v39 }
 0x31e   :  { %7166 = vmatpush1.bf16.msra.mxu0 %v9055_v46  ;;  %7494 = vmatpush1.bf16.msra.mxu1 %v9057_v47  ;;  %v513_v46 = vld [vmem:[#allocation2 + $0xcd0] sm:$0xff] }
 0x31f   :  { %7167 = vmatprep.subr.bf16.mxu0 %v9064_v50  ;;  %7495 = vmatprep.subr.bf16.mxu1 %v9066_v52  ;;  %v517_v47 = vld [vmem:[#allocation2 + $0xcf0] sm:$0xff]  ;;  %v514_v50 = vld [vmem:[#allocation2 + $0xcd8] sm:$0xff] }
 0x320   :  { %v518_v52 = vld [vmem:[#allocation2 + $0xcf8] sm:$0xff]  ;;  %v9120_v23 = vcombine.high %v513_v46, %v517_v47 }
 0x321   :  { %v9122_v55 = vcombine.high %v514_v50, %v518_v52  ;;  %v9121_v8 = vcombine.low %v514_v50, %v518_v52  ;;  %v561_v50 = vld [vmem:[#allocation2 + $0xe50] sm:$0xff] }
 0x322   :  { %7168 = vmatpush1.bf16.msra.mxu0 %v9063_v57  ;;  %7496 = vmatpush1.bf16.msra.mxu1 %v9065_v60  ;;  %v525_v57 = vld [vmem:[#allocation2 + $0xd30] sm:$0xff]  ;;  %v522_v60 = vld [vmem:[#allocation2 + $0xd18] sm:$0xff] }
 0x323   :  { %7169 = vmatprep.subr.bf16.mxu0 %v9072_v61  ;;  %7497 = vmatprep.subr.bf16.mxu1 %v9074_v62  ;;  %v526_v61 = vld [vmem:[#allocation2 + $0xd38] sm:$0xff]  ;;  %v9119_v62 = vcombine.low %v513_v46, %v517_v47  ;;  %v9128_v2 = vcombine.high %v521_v56, %v525_v57  ;;  %v565_v52 = vld [vmem:[#allocation2 + $0xe70] sm:$0xff] }
 0x326   :  { %7170 = vmatpush1.bf16.msra.mxu0 %v9071_v4  ;;  %7498 = vmatpush1.bf16.msra.mxu1 %v9073_v31  ;;  %v530_v4 = vld [vmem:[#allocation2 + $0xd58] sm:$0xff] }
 0x327   :  { %7171 = vmatprep.subr.bf16.mxu0 %v9080_v6  ;;  %7499 = vmatprep.subr.bf16.mxu1 %v9082_v10  ;;  %v534_v31 = vld [vmem:[#allocation2 + $0xd78] sm:$0xff]  ;;  %v9127_v6 = vcombine.low %v521_v56, %v525_v57  ;;  %v9129_v10 = vcombine.low %v522_v60, %v526_v61  ;;  %v9168_v56 = vcombine.high %v561_v50, %v565_v52 }
 0x328   :  { %v9138_v12 = vcombine.high %v530_v4, %v534_v31 }
 0x32a   :  { %7172 = vmatpush1.bf16.msra.mxu0 %v9079_v15  ;;  %7500 = vmatpush1.bf16.msra.mxu1 %v9081_v17  ;;  %v538_v15 = vld [vmem:[#allocation2 + $0xd98] sm:$0xff] }
 0x32b   :  { %7173 = vmatprep.subr.bf16.mxu0 %v9088_v18  ;;  %7501 = vmatprep.subr.bf16.mxu1 %v9090_v53  ;;  %v542_v17 = vld [vmem:[#allocation2 + $0xdb8] sm:$0xff]  ;;  %v9135_v18 = vcombine.low %v529_v3, %v533_v34  ;;  %v9137_v53 = vcombine.low %v530_v4, %v534_v31  ;;  %v577_v4 = vld [vmem:[#allocation2 + $0xed0] sm:$0xff] }
 0x32c   :  { %v9146_v21 = vcombine.high %v538_v15, %v542_v17  ;;  %v581_v31 = vld [vmem:[#allocation2 + $0xef0] sm:$0xff] }
 0x32d   :  { %v9184_v13 = vcombine.high %v577_v4, %v581_v31 }
 0x32e   :  { %7174 = vmatpush1.bf16.msra.mxu0 %v9087_v24  ;;  %7502 = vmatpush1.bf16.msra.mxu1 %v9089_v40  ;;  %v549_v24 = vld [vmem:[#allocation2 + $0xdf0] sm:$0xff] }
 0x32f   :  { %7184 = vmatprep.subr.bf16.mxu0 %v9096_v9  ;;  %7512 = vmatprep.subr.bf16.mxu1 %v9098_v25  ;;  %v546_v25 = vld [vmem:[#allocation2 + $0xdd8] sm:$0xff] }
 0x330   :  { %v9154_v36 = vcombine.high %v546_v25, %v550_v26 }
 0x331   :  { %7176 = vmatmul.mubr.bf16.vlgmr.msra.gmra.mrb[4].mxu0 %v10414_v58  ;;  %7504 = vmatmul.mubr.bf16.vlgmr.msra.gmra.mrb[4].mxu1 %v10414_v58  ;;  %v9113_v58 = vcombine.low %v506_v38, %v510_v39  ;;  %v553_v38 = vld [vmem:[#allocation2 + $0xe10] sm:$0xff] }
 0x332   :  { %7185 = vmatpush1.bf16.msra.mxu0 %v9095_v59  ;;  %7513 = vmatpush1.bf16.msra.mxu1 %v9097_v33  ;;  %v557_v39 = vld [vmem:[#allocation2 + $0xe30] sm:$0xff] }
 0x333   :  { %7186 = vmatprep.subr.bf16.mxu0 %v9104_v63  ;;  %7514 = vmatprep.subr.bf16.mxu1 %v9106_v48  ;;  %v9145_v63 = vcombine.low %v538_v15, %v542_v17  ;;  %v9152_v48 = vcombine.high %v545_v22, %v549_v24  ;;  %v9160_v46 = vcombine.high %v553_v38, %v557_v39  ;;  %v585_v15 = vld [vmem:[#allocation2 + $0xf10] sm:$0xff] }
 0x334   :  { %7216 = vmatprep.mubr.bf16.mxu0 %v10418_v5  ;;  %7544 = vmatprep.mubr.bf16.mxu1 %v10418_v5  ;;  %v9130_v5 = vcombine.high %v522_v60, %v526_v61  ;;  %v569_v60 = vld [vmem:[#allocation2 + $0xe90] sm:$0xff] }
 0x335   :  { %v573_v61 = vld [vmem:[#allocation2 + $0xeb0] sm:$0xff] }
 0x336   :  { %7187 = vmatpush1.bf16.msra.mxu0 %v9103_v41  ;;  %7515 = vmatpush1.bf16.msra.mxu1 %v9105_v42  ;;  %v554_v41 = vld [vmem:[#allocation2 + $0xe18] sm:$0xff]  ;;  %v9176_v3 = vcombine.high %v569_v60, %v573_v61  ;;  %v589_v17 = vld [vmem:[#allocation2 + $0xf30] sm:$0xff] }
 0x337   :  { %7188 = vmatprep.subr.bf16.mxu0 %v9112_v44  ;;  %7516 = vmatprep.subr.bf16.mxu1 %v9114_v45  ;;  %v558_v42 = vld [vmem:[#allocation2 + $0xe38] sm:$0xff]  ;;  %v9151_v44 = vcombine.low %v545_v22, %v549_v24  ;;  %v9153_v45 = vcombine.low %v546_v25, %v550_v26  ;;  %v9192_v22 = vcombine.high %v585_v15, %v589_v17  ;;  %v593_v25 = vld [vmem:[#allocation2 + $0xf50] sm:$0xff] }
 0x338   :  { %v9162_v47 = vcombine.high %v554_v41, %v558_v42  ;;  %v597_v26 = vld [vmem:[#allocation2 + $0xf70] sm:$0xff] }
 0x33a   :  { %7189 = vmatpush1.bf16.msra.mxu0 %v9111_v54  ;;  %7517 = vmatpush1.bf16.msra.mxu1 %v9113_v58  ;;  %v562_v54 = vld [vmem:[#allocation2 + $0xe58] sm:$0xff] }
 0x33b   :  { %7190 = vmatprep.subr.bf16.mxu0 %v9120_v23  ;;  %7518 = vmatprep.subr.bf16.mxu1 %v9122_v55  ;;  %v566_v58 = vld [vmem:[#allocation2 + $0xe78] sm:$0xff]  ;;  %v9159_v23 = vcombine.low %v553_v38, %v557_v39  ;;  %v9161_v55 = vcombine.low %v554_v41, %v558_v42  ;;  %v9199_v41 = vcombine.low %v593_v25, %v597_v26 }
 0x33c   :  { %v9170_v57 = vcombine.high %v562_v54, %v566_v58  ;;  %v602_v38 = vld [vmem:[#allocation2 + $0xf98] sm:$0xff] }
 0x33d   :  { %v606_v39 = vld [vmem:[#allocation2 + $0xfb8] sm:$0xff] }
 0x33e   :  { %7191 = vmatpush1.bf16.msra.mxu0 %v9119_v62  ;;  %7519 = vmatpush1.bf16.msra.mxu1 %v9121_v8  ;;  %v570_v62 = vld [vmem:[#allocation2 + $0xe98] sm:$0xff] }
 0x33f   :  { %7192 = vmatprep.subr.bf16.mxu0 %v9128_v2  ;;  %7520 = vmatprep.subr.bf16.mxu1 %v9130_v5  ;;  %v574_v8 = vld [vmem:[#allocation2 + $0xeb8] sm:$0xff]  ;;  %v9167_v2 = vcombine.low %v561_v50, %v565_v52  ;;  %v9169_v5 = vcombine.low %v562_v54, %v566_v58  ;;  %v9209_v58 = vcombine.low %v602_v38, %v606_v39 }
 0x340   :  { %v9178_v34 = vcombine.high %v570_v62, %v574_v8  ;;  %v610_v50 = vld [vmem:[#allocation2 + $0xfd8] sm:$0xff] }
 0x341   :  { %v614_v52 = vld [vmem:[#allocation2 + $0xff8] sm:$0xff] }
 0x342   :  { %7193 = vmatpush1.bf16.msra.mxu0 %v9127_v6  ;;  %7521 = vmatpush1.bf16.msra.mxu1 %v9129_v10  ;;  %v578_v6 = vld [vmem:[#allocation2 + $0xed8] sm:$0xff] }
 0x343   :  { %7194 = vmatprep.subr.bf16.mxu0 %v9136_v11  ;;  %7522 = vmatprep.subr.bf16.mxu1 %v9138_v12  ;;  %v582_v10 = vld [vmem:[#allocation2 + $0xef8] sm:$0xff]  ;;  %v9175_v11 = vcombine.low %v569_v60, %v573_v61  ;;  %v9177_v12 = vcombine.low %v570_v62, %v574_v8  ;;  %v9217_v8 = vcombine.low %v610_v50, %v614_v52 }
 0x344   :  { %v10508_v1 = vpop.f32.mrb[0].mxu0  ;;  %v10510_v40 = vpop.f32.mrb[0].mxu1  ;;  %v9186_v14 = vcombine.high %v578_v6, %v582_v10  ;;  %v618_v60 = vld [vmem:[#allocation2 + $0x1018] sm:$0xff] }
 0x345   :  { %v10512_v9 = vpop.f32.mrb[1].mxu0  ;;  %v10514_v28 = vpop.f32.mrb[1].mxu1  ;;  %v622_v61 = vld [vmem:[#allocation2 + $0x1038] sm:$0xff] }
 0x346   :  { %v6730_v30 = vpop.f32.mrb[2].mxu0  ;;  %7195 = vmatpush1.bf16.msra.mxu0 %v9135_v18  ;;  %v7058_v59 = vpop.f32.mrb[2].mxu1  ;;  %7523 = vmatpush1.bf16.msra.mxu1 %v9137_v53  ;;  %v586_v18 = vld [vmem:[#allocation2 + $0xf18] sm:$0xff] }
 0x347   :  { %v6731_v33 = vpop.f32.mrb[3].mxu0  ;;  %7196 = vmatprep.subr.bf16.mxu0 %v9144_v16  ;;  %v7059_v35 = vpop.f32.mrb[3].mxu1  ;;  %7524 = vmatprep.subr.bf16.mxu1 %v9146_v21  ;;  %v590_v53 = vld [vmem:[#allocation2 + $0xf38] sm:$0xff]  ;;  %v9183_v16 = vcombine.low %v577_v4, %v581_v31  ;;  %v9185_v21 = vcombine.low %v578_v6, %v582_v10  ;;  %v9191_v59 = vcombine.low %v585_v15, %v589_v17 }
 0x348   :  { %v9194_v24 = vcombine.high %v586_v18, %v590_v53  ;;  %v594_v30 = vld [vmem:[#allocation2 + $0xf58] sm:$0xff]  ;;  %v9193_v33 = vcombine.low %v586_v18, %v590_v53  ;;  %v601_v35 = vld [vmem:[#allocation2 + $0xf90] sm:$0xff]  ;;  %v9225_v10 = vcombine.low %v618_v60, %v622_v61 }
 0x349   :  { %v626_v4 = vld [vmem:[#allocation2 + $0x1058] sm:$0xff] }
 0x34a   :  { %7197 = vmatpush1.bf16.msra.mxu0 %v9143_v32  ;;  %7525 = vmatpush1.bf16.msra.mxu1 %v9145_v63  ;;  %v598_v32 = vld [vmem:[#allocation2 + $0xf78] sm:$0xff]  ;;  %v9200_v63 = vcombine.high %v593_v25, %v597_v26 }
 0x34b   :  { %7198 = vmatprep.subr.bf16.mxu0 %v9152_v48  ;;  %7526 = vmatprep.subr.bf16.mxu1 %v9154_v36  ;;  %v9202_v48 = vcombine.high %v594_v30, %v598_v32  ;;  %v605_v36 = vld [vmem:[#allocation2 + $0xfb0] sm:$0xff]  ;;  %v9201_v42 = vcombine.low %v594_v30, %v598_v32  ;;  %v630_v31 = vld [vmem:[#allocation2 + $0x1078] sm:$0xff] }
 0x34c   :  { %v9207_v54 = vcombine.low %v601_v35, %v605_v36  ;;  %v634_v15 = vld [vmem:[#allocation2 + $0x1098] sm:$0xff]  ;;  %v9233_v53 = vcombine.low %v626_v4, %v630_v31 }
 0x34d   :  { %v638_v17 = vld [vmem:[#allocation2 + $0x10b8] sm:$0xff] }
 0x34e   :  { %7199 = vmatpush1.bf16.msra.mxu0 %v9151_v44  ;;  %7527 = vmatpush1.bf16.msra.mxu1 %v9153_v45  ;;  %v9208_v44 = vcombine.high %v601_v35, %v605_v36  ;;  %v9210_v45 = vcombine.high %v602_v38, %v606_v39  ;;  %v642_v25 = vld [vmem:[#allocation2 + $0x10d8] sm:$0xff] }
 0x34f   :  { %7200 = vmatprep.subr.bf16.mxu0 %v9160_v46  ;;  %7528 = vmatprep.subr.bf16.mxu1 %v9162_v47  ;;  %v609_v46 = vld [vmem:[#allocation2 + $0xfd0] sm:$0xff]  ;;  %v646_v26 = vld [vmem:[#allocation2 + $0x10f8] sm:$0xff] }
 0x350   :  { %v613_v47 = vld [vmem:[#allocation2 + $0xff0] sm:$0xff]  ;;  %v654_v35 = vld [vmem:[#allocation2 + $0x1138] sm:$0xff]  ;;  %v9249_v38 = vcombine.low %v642_v25, %v646_v26 }
 0x351   :  { %v9215_v62 = vcombine.low %v609_v46, %v613_v47 }
 0x352   :  { %7201 = vmatpush1.bf16.msra.mxu0 %v9159_v23  ;;  %7529 = vmatpush1.bf16.msra.mxu1 %v9161_v55  ;;  %v9216_v23 = vcombine.high %v609_v46, %v613_v47  ;;  %v9218_v55 = vcombine.high %v610_v50, %v614_v52 }
 0x353   :  { %7202 = vmatprep.subr.bf16.mxu0 %v9168_v56  ;;  %7530 = vmatprep.subr.bf16.mxu1 %v9170_v57  ;;  %v617_v56 = vld [vmem:[#allocation2 + $0x1010] sm:$0xff] }
 0x354   :  { %v621_v57 = vld [vmem:[#allocation2 + $0x1030] sm:$0xff] }
 0x355   :  { %v9223_v6 = vcombine.low %v617_v56, %v621_v57 }
 0x356   :  { %7203 = vmatpush1.bf16.msra.mxu0 %v9167_v2  ;;  %7531 = vmatpush1.bf16.msra.mxu1 %v9169_v5  ;;  %v9224_v2 = vcombine.high %v617_v56, %v621_v57  ;;  %v9226_v5 = vcombine.high %v618_v60, %v622_v61 }
 0x357   :  { %7204 = vmatprep.subr.bf16.mxu0 %v9176_v3  ;;  %7532 = vmatprep.subr.bf16.mxu1 %v9178_v34  ;;  %v625_v3 = vld [vmem:[#allocation2 + $0x1050] sm:$0xff] }
 0x358   :  { %v629_v34 = vld [vmem:[#allocation2 + $0x1070] sm:$0xff] }
 0x359   :  { %v9231_v18 = vcombine.low %v625_v3, %v629_v34 }
 0x35a   :  { %7205 = vmatpush1.bf16.msra.mxu0 %v9175_v11  ;;  %7533 = vmatpush1.bf16.msra.mxu1 %v9177_v12  ;;  %v9232_v11 = vcombine.high %v625_v3, %v629_v34  ;;  %v9234_v12 = vcombine.high %v626_v4, %v630_v31 }
 0x35b   :  { %7206 = vmatprep.subr.bf16.mxu0 %v9184_v13  ;;  %7534 = vmatprep.subr.bf16.mxu1 %v9186_v14  ;;  %v633_v13 = vld [vmem:[#allocation2 + $0x1090] sm:$0xff] }
 0x35c   :  { %v637_v14 = vld [vmem:[#allocation2 + $0x10b0] sm:$0xff] }
 0x35d   :  { %v9239_v30 = vcombine.low %v633_v13, %v637_v14 }
 0x35e   :  { %7207 = vmatpush1.bf16.msra.mxu0 %v9183_v16  ;;  %7535 = vmatpush1.bf16.msra.mxu1 %v9185_v21  ;;  %v9240_v16 = vcombine.high %v633_v13, %v637_v14  ;;  %v9242_v21 = vcombine.high %v634_v15, %v638_v17 }
 0x35f   :  { %7208 = vmatprep.subr.bf16.mxu0 %v9192_v22  ;;  %7536 = vmatprep.subr.bf16.mxu1 %v9194_v24  ;;  %v641_v22 = vld [vmem:[#allocation2 + $0x10d0] sm:$0xff] }
 0x360   :  { %v645_v24 = vld [vmem:[#allocation2 + $0x10f0] sm:$0xff] }
 0x361   :  { %v9248_v32 = vcombine.high %v641_v22, %v645_v24  ;;  %v9247_v36 = vcombine.low %v641_v22, %v645_v24 }
 0x362   :  { %7209 = vmatpush1.bf16.msra.mxu0 %v9191_v59  ;;  %7537 = vmatpush1.bf16.msra.mxu1 %v9193_v33  ;;  %v9250_v59 = vcombine.high %v642_v25, %v646_v26  ;;  %v649_v33 = vld [vmem:[#allocation2 + $0x1110] sm:$0xff] }
 0x363   :  { %7210 = vmatprep.subr.bf16.mxu0 %v9200_v63  ;;  %7538 = vmatprep.subr.bf16.mxu1 %v9202_v48  ;;  %v653_v63 = vld [vmem:[#allocation2 + $0x1130] sm:$0xff]  ;;  %v650_v48 = vld [vmem:[#allocation2 + $0x1118] sm:$0xff] }
 0x364   :  { %v9256_v39 = vcombine.high %v649_v33, %v653_v63  ;;  %v9255_v46 = vcombine.low %v649_v33, %v653_v63  ;;  %v9257_v47 = vcombine.low %v650_v48, %v654_v35 }
 0x366   :  { %7211 = vmatpush1.bf16.msra.mxu0 %v9199_v41  ;;  %7539 = vmatpush1.bf16.msra.mxu1 %v9201_v42  ;;  %v657_v41 = vld [vmem:[#allocation2 + $0x1150] sm:$0xff] }
 0x367   :  { %7212 = vmatprep.subr.bf16.mxu0 %v9208_v44  ;;  %7540 = vmatprep.subr.bf16.mxu1 %v9210_v45  ;;  %v661_v42 = vld [vmem:[#allocation2 + $0x1170] sm:$0xff]  ;;  %v658_v44 = vld [vmem:[#allocation2 + $0x1158] sm:$0xff] }
 0x368   :  { %v662_v45 = vld [vmem:[#allocation2 + $0x1178] sm:$0xff]  ;;  %v9264_v50 = vcombine.high %v657_v41, %v661_v42  ;;  %v9263_v56 = vcombine.low %v657_v41, %v661_v42 }
 0x369   :  { %v9266_v52 = vcombine.high %v658_v44, %v662_v45  ;;  %v9265_v57 = vcombine.low %v658_v44, %v662_v45 }
 0x36a   :  { %7213 = vmatpush1.bf16.msra.mxu0 %v9207_v54  ;;  %7541 = vmatpush1.bf16.msra.mxu1 %v9209_v58  ;;  %v665_v54 = vld [vmem:[#allocation2 + $0x1190] sm:$0xff] }
 0x36b   :  { %7214 = vmatprep.subr.bf16.mxu0 %v9216_v23  ;;  %7542 = vmatprep.subr.bf16.mxu1 %v9218_v55  ;;  %v669_v58 = vld [vmem:[#allocation2 + $0x11b0] sm:$0xff]  ;;  %v666_v23 = vld [vmem:[#allocation2 + $0x1198] sm:$0xff] }
 0x36c   :  { %v670_v55 = vld [vmem:[#allocation2 + $0x11b8] sm:$0xff]  ;;  %v9272_v60 = vcombine.high %v665_v54, %v669_v58  ;;  %v9271_v3 = vcombine.low %v665_v54, %v669_v58 }
 0x36d   :  { %v9274_v61 = vcombine.high %v666_v23, %v670_v55  ;;  %v9273_v34 = vcombine.low %v666_v23, %v670_v55 }
 0x36e   :  { %7215 = vmatpush1.bf16.msra.mxu0 %v9215_v62  ;;  %7543 = vmatpush1.bf16.msra.mxu1 %v9217_v8  ;;  %v673_v62 = vld [vmem:[#allocation2 + $0x11d0] sm:$0xff] }
 0x36f   :  { %7225 = vmatprep.subr.bf16.mxu0 %v9224_v2  ;;  %7553 = vmatprep.subr.bf16.mxu1 %v9226_v5  ;;  %v677_v8 = vld [vmem:[#allocation2 + $0x11f0] sm:$0xff]  ;;  %v674_v2 = vld [vmem:[#allocation2 + $0x11d8] sm:$0xff] }
 0x370   :  { %v678_v5 = vld [vmem:[#allocation2 + $0x11f8] sm:$0xff]  ;;  %v9280_v4 = vcombine.high %v673_v62, %v677_v8  ;;  %v9279_v13 = vcombine.low %v673_v62, %v677_v8 }
 0x371   :  { %7217 = vmatmul.mubr.bf16.vlgmr.msra.gmra.mrb[4].mxu0 %v10437_v19  ;;  %7545 = vmatmul.mubr.bf16.vlgmr.msra.gmra.mrb[4].mxu1 %v10437_v19  ;;  %v9241_v19 = vcombine.low %v634_v15, %v638_v17  ;;  %v9282_v31 = vcombine.high %v674_v2, %v678_v5  ;;  %v9281_v14 = vcombine.low %v674_v2, %v678_v5 }
 0x372   :  { %7226 = vmatpush1.bf16.msra.mxu0 %v9223_v6  ;;  %7554 = vmatpush1.bf16.msra.mxu1 %v9225_v10  ;;  %v681_v6 = vld [vmem:[#allocation2 + $0x1210] sm:$0xff] }
 0x373   :  { %7227 = vmatprep.subr.bf16.mxu0 %v9232_v11  ;;  %7555 = vmatprep.subr.bf16.mxu1 %v9234_v12  ;;  %v685_v10 = vld [vmem:[#allocation2 + $0x1230] sm:$0xff]  ;;  %v682_v11 = vld [vmem:[#allocation2 + $0x1218] sm:$0xff] }
 0x374   :  { %7257 = vmatprep.mubr.bf16.mxu0 %v10440_v29  ;;  %7585 = vmatprep.mubr.bf16.mxu1 %v10440_v29  ;;  %v9258_v29 = vcombine.high %v650_v48, %v654_v35  ;;  %v686_v12 = vld [vmem:[#allocation2 + $0x1238] sm:$0xff]  ;;  %v9288_v15 = vcombine.high %v681_v6, %v685_v10  ;;  %v9287_v22 = vcombine.low %v681_v6, %v685_v10 }
 0x375   :  { %v9290_v17 = vcombine.high %v682_v11, %v686_v12  ;;  %v9289_v24 = vcombine.low %v682_v11, %v686_v12 }
 0x376   :  { %7228 = vmatpush1.bf16.msra.mxu0 %v9231_v18  ;;  %7556 = vmatpush1.bf16.msra.mxu1 %v9233_v53  ;;  %v689_v18 = vld [vmem:[#allocation2 + $0x1250] sm:$0xff] }
 0x377   :  { %7229 = vmatprep.subr.bf16.mxu0 %v9240_v16  ;;  %7557 = vmatprep.subr.bf16.mxu1 %v9242_v21  ;;  %v693_v53 = vld [vmem:[#allocation2 + $0x1270] sm:$0xff]  ;;  %v690_v16 = vld [vmem:[#allocation2 + $0x1258] sm:$0xff] }
 0x378   :  { %v694_v21 = vld [vmem:[#allocation2 + $0x1278] sm:$0xff]  ;;  %v9296_v25 = vcombine.high %v689_v18, %v693_v53  ;;  %v9295_v33 = vcombine.low %v689_v18, %v693_v53 }
 0x379   :  { %v9298_v26 = vcombine.high %v690_v16, %v694_v21  ;;  %v9297_v63 = vcombine.low %v690_v16, %v694_v21 }
 0x37a   :  { %7230 = vmatpush1.bf16.msra.mxu0 %v9239_v30  ;;  %7558 = vmatpush1.bf16.msra.mxu1 %v9241_v19  ;;  %v697_v30 = vld [vmem:[#allocation2 + $0x1290] sm:$0xff] }
 0x37b   :  { %7231 = vmatprep.subr.bf16.mxu0 %v9248_v32  ;;  %7559 = vmatprep.subr.bf16.mxu1 %v9250_v59  ;;  %v701_v19 = vld [vmem:[#allocation2 + $0x12b0] sm:$0xff]  ;;  %v698_v32 = vld [vmem:[#allocation2 + $0x1298] sm:$0xff] }
 0x37c   :  { %v702_v59 = vld [vmem:[#allocation2 + $0x12b8] sm:$0xff]  ;;  %v9304_v48 = vcombine.high %v697_v30, %v701_v19  ;;  %v9303_v41 = vcombine.low %v697_v30, %v701_v19 }
 0x37d   :  { %v9306_v35 = vcombine.high %v698_v32, %v702_v59  ;;  %v9305_v42 = vcombine.low %v698_v32, %v702_v59 }
 0x37e   :  { %7232 = vmatpush1.bf16.msra.mxu0 %v9247_v36  ;;  %7560 = vmatpush1.bf16.msra.mxu1 %v9249_v38  ;;  %v705_v36 = vld [vmem:[#allocation2 + $0x12d0] sm:$0xff] }
 0x37f   :  { %7233 = vmatprep.subr.bf16.mxu0 %v9256_v39  ;;  %7561 = vmatprep.subr.bf16.mxu1 %v9258_v29  ;;  %v709_v38 = vld [vmem:[#allocation2 + $0x12f0] sm:$0xff]  ;;  %v706_v39 = vld [vmem:[#allocation2 + $0x12d8] sm:$0xff] }
 0x380   :  { %v710_v29 = vld [vmem:[#allocation2 + $0x12f8] sm:$0xff]  ;;  %v9312_v44 = vcombine.high %v705_v36, %v709_v38  ;;  %v9311_v54 = vcombine.low %v705_v36, %v709_v38 }
 0x381   :  { %v9314_v45 = vcombine.high %v706_v39, %v710_v29  ;;  %v9313_v58 = vcombine.low %v706_v39, %v710_v29 }
 0x382   :  { %7234 = vmatpush1.bf16.msra.mxu0 %v9255_v46  ;;  %7562 = vmatpush1.bf16.msra.mxu1 %v9257_v47  ;;  %v713_v46 = vld [vmem:[#allocation2 + $0x1310] sm:$0xff] }
 0x383   :  { %7235 = vmatprep.subr.bf16.mxu0 %v9264_v50  ;;  %7563 = vmatprep.subr.bf16.mxu1 %v9266_v52  ;;  %v717_v47 = vld [vmem:[#allocation2 + $0x1330] sm:$0xff]  ;;  %v714_v50 = vld [vmem:[#allocation2 + $0x1318] sm:$0xff] }
 0x384   :  { %v718_v52 = vld [vmem:[#allocation2 + $0x1338] sm:$0xff]  ;;  %v9320_v23 = vcombine.high %v713_v46, %v717_v47  ;;  %v9319_v62 = vcombine.low %v713_v46, %v717_v47 }
 0x385   :  { %v9322_v55 = vcombine.high %v714_v50, %v718_v52  ;;  %v9321_v8 = vcombine.low %v714_v50, %v718_v52 }
 0x386   :  { %7236 = vmatpush1.bf16.msra.mxu0 %v9263_v56  ;;  %7564 = vmatpush1.bf16.msra.mxu1 %v9265_v57  ;;  %v721_v56 = vld [vmem:[#allocation2 + $0x1350] sm:$0xff] }
 0x387   :  { %7237 = vmatprep.subr.bf16.mxu0 %v9272_v60  ;;  %7565 = vmatprep.subr.bf16.mxu1 %v9274_v61  ;;  %v725_v57 = vld [vmem:[#allocation2 + $0x1370] sm:$0xff]  ;;  %v722_v60 = vld [vmem:[#allocation2 + $0x1358] sm:$0xff] }
 0x388   :  { %v726_v61 = vld [vmem:[#allocation2 + $0x1378] sm:$0xff]  ;;  %v9328_v2 = vcombine.high %v721_v56, %v725_v57  ;;  %v9327_v6 = vcombine.low %v721_v56, %v725_v57 }
 0x389   :  { %v9330_v5 = vcombine.high %v722_v60, %v726_v61  ;;  %v9329_v10 = vcombine.low %v722_v60, %v726_v61  ;;  %v777_v61 = vld [vmem:[#allocation2 + $0x1510] sm:$0xff] }
 0x38a   :  { %7238 = vmatpush1.bf16.msra.mxu0 %v9271_v3  ;;  %7566 = vmatpush1.bf16.msra.mxu1 %v9273_v34  ;;  %v729_v3 = vld [vmem:[#allocation2 + $0x1390] sm:$0xff] }
 0x38b   :  { %7239 = vmatprep.subr.bf16.mxu0 %v9280_v4  ;;  %7567 = vmatprep.subr.bf16.mxu1 %v9282_v31  ;;  %v733_v34 = vld [vmem:[#allocation2 + $0x13b0] sm:$0xff]  ;;  %v730_v4 = vld [vmem:[#allocation2 + $0x1398] sm:$0xff] }
 0x38c   :  { %v734_v31 = vld [vmem:[#allocation2 + $0x13b8] sm:$0xff]  ;;  %v9336_v11 = vcombine.high %v729_v3, %v733_v34  ;;  %v9335_v18 = vcombine.low %v729_v3, %v733_v34 }
 0x38d   :  { %v9338_v12 = vcombine.high %v730_v4, %v734_v31  ;;  %v9337_v53 = vcombine.low %v730_v4, %v734_v31  ;;  %v785_v4 = vld [vmem:[#allocation2 + $0x1550] sm:$0xff] }
 0x38e   :  { %7240 = vmatpush1.bf16.msra.mxu0 %v9279_v13  ;;  %7568 = vmatpush1.bf16.msra.mxu1 %v9281_v14  ;;  %v737_v13 = vld [vmem:[#allocation2 + $0x13d0] sm:$0xff] }
 0x38f   :  { %7241 = vmatprep.subr.bf16.mxu0 %v9288_v15  ;;  %7569 = vmatprep.subr.bf16.mxu1 %v9290_v17  ;;  %v741_v14 = vld [vmem:[#allocation2 + $0x13f0] sm:$0xff]  ;;  %v738_v15 = vld [vmem:[#allocation2 + $0x13d8] sm:$0xff] }
 0x390   :  { %v742_v17 = vld [vmem:[#allocation2 + $0x13f8] sm:$0xff]  ;;  %v9344_v16 = vcombine.high %v737_v13, %v741_v14  ;;  %v9343_v30 = vcombine.low %v737_v13, %v741_v14  ;;  %v789_v31 = vld [vmem:[#allocation2 + $0x1570] sm:$0xff] }
 0x391   :  { %v9346_v21 = vcombine.high %v738_v15, %v742_v17  ;;  %v9345_v19 = vcombine.low %v738_v15, %v742_v17  ;;  %v9392_v13 = vcombine.high %v785_v4, %v789_v31  ;;  %v793_v15 = vld [vmem:[#allocation2 + $0x1590] sm:$0xff] }
 0x392   :  { %7242 = vmatpush1.bf16.msra.mxu0 %v9287_v22  ;;  %7570 = vmatpush1.bf16.msra.mxu1 %v9289_v24  ;;  %v745_v22 = vld [vmem:[#allocation2 + $0x1410] sm:$0xff] }
 0x393   :  { %7243 = vmatprep.subr.bf16.mxu0 %v9296_v25  ;;  %7571 = vmatprep.subr.bf16.mxu1 %v9298_v26  ;;  %v749_v24 = vld [vmem:[#allocation2 + $0x1430] sm:$0xff]  ;;  %v746_v25 = vld [vmem:[#allocation2 + $0x1418] sm:$0xff] }
 0x394   :  { %v750_v26 = vld [vmem:[#allocation2 + $0x1438] sm:$0xff]  ;;  %v9352_v32 = vcombine.high %v745_v22, %v749_v24  ;;  %v9351_v36 = vcombine.low %v745_v22, %v749_v24  ;;  %v797_v17 = vld [vmem:[#allocation2 + $0x15b0] sm:$0xff] }
 0x395   :  { %v9354_v59 = vcombine.high %v746_v25, %v750_v26  ;;  %v9353_v38 = vcombine.low %v746_v25, %v750_v26  ;;  %v9400_v22 = vcombine.high %v793_v15, %v797_v17  ;;  %v801_v25 = vld [vmem:[#allocation2 + $0x15d0] sm:$0xff] }
 0x396   :  { %7244 = vmatpush1.bf16.msra.mxu0 %v9295_v33  ;;  %7572 = vmatpush1.bf16.msra.mxu1 %v9297_v63  ;;  %v753_v33 = vld [vmem:[#allocation2 + $0x1450] sm:$0xff] }
 0x397   :  { %7245 = vmatprep.subr.bf16.mxu0 %v9304_v48  ;;  %7573 = vmatprep.subr.bf16.mxu1 %v9306_v35  ;;  %v757_v63 = vld [vmem:[#allocation2 + $0x1470] sm:$0xff]  ;;  %v754_v48 = vld [vmem:[#allocation2 + $0x1458] sm:$0xff] }
 0x398   :  { %v758_v35 = vld [vmem:[#allocation2 + $0x1478] sm:$0xff]  ;;  %v9360_v39 = vcombine.high %v753_v33, %v757_v63  ;;  %v9359_v46 = vcombine.low %v753_v33, %v757_v63  ;;  %v805_v26 = vld [vmem:[#allocation2 + $0x15f0] sm:$0xff] }
 0x399   :  { %v9362_v29 = vcombine.high %v754_v48, %v758_v35  ;;  %v9361_v47 = vcombine.low %v754_v48, %v758_v35  ;;  %v9408_v33 = vcombine.high %v801_v25, %v805_v26  ;;  %v809_v48 = vld [vmem:[#allocation2 + $0x1610] sm:$0xff] }
 0x39a   :  { %7246 = vmatpush1.bf16.msra.mxu0 %v9303_v41  ;;  %7574 = vmatpush1.bf16.msra.mxu1 %v9305_v42  ;;  %v761_v41 = vld [vmem:[#allocation2 + $0x1490] sm:$0xff] }
 0x39b   :  { %7247 = vmatprep.subr.bf16.mxu0 %v9312_v44  ;;  %7575 = vmatprep.subr.bf16.mxu1 %v9314_v45  ;;  %v765_v42 = vld [vmem:[#allocation2 + $0x14b0] sm:$0xff]  ;;  %v762_v44 = vld [vmem:[#allocation2 + $0x1498] sm:$0xff] }
 0x39c   :  { %v766_v45 = vld [vmem:[#allocation2 + $0x14b8] sm:$0xff]  ;;  %v9368_v50 = vcombine.high %v761_v41, %v765_v42  ;;  %v9367_v56 = vcombine.low %v761_v41, %v765_v42  ;;  %v813_v35 = vld [vmem:[#allocation2 + $0x1630] sm:$0xff] }
 0x39d   :  { %v9370_v52 = vcombine.high %v762_v44, %v766_v45  ;;  %v9416_v41 = vcombine.high %v809_v48, %v813_v35 }
 0x39e   :  { %7248 = vmatpush1.bf16.msra.mxu0 %v9311_v54  ;;  %7576 = vmatpush1.bf16.msra.mxu1 %v9313_v58  ;;  %v769_v54 = vld [vmem:[#allocation2 + $0x14d0] sm:$0xff] }
 0x39f   :  { %7249 = vmatprep.subr.bf16.mxu0 %v9320_v23  ;;  %7577 = vmatprep.subr.bf16.mxu1 %v9322_v55  ;;  %v773_v58 = vld [vmem:[#allocation2 + $0x14f0] sm:$0xff]  ;;  %v770_v23 = vld [vmem:[#allocation2 + $0x14d8] sm:$0xff] }
 0x3a0   :  { %v774_v55 = vld [vmem:[#allocation2 + $0x14f8] sm:$0xff]  ;;  %v9376_v57 = vcombine.high %v769_v54, %v773_v58 }
 0x3a1   :  { %v9378_v60 = vcombine.high %v770_v23, %v774_v55  ;;  %v9377_v3 = vcombine.low %v770_v23, %v774_v55  ;;  %v825_v23 = vld [vmem:[#allocation2 + $0x1690] sm:$0xff] }
 0x3a2   :  { %7250 = vmatpush1.bf16.msra.mxu0 %v9319_v62  ;;  %7578 = vmatpush1.bf16.msra.mxu1 %v9321_v8  ;;  %v781_v62 = vld [vmem:[#allocation2 + $0x1530] sm:$0xff]  ;;  %v778_v8 = vld [vmem:[#allocation2 + $0x1518] sm:$0xff] }
 0x3a3   :  { %7251 = vmatprep.subr.bf16.mxu0 %v9328_v2  ;;  %7579 = vmatprep.subr.bf16.mxu1 %v9330_v5  ;;  %v782_v2 = vld [vmem:[#allocation2 + $0x1538] sm:$0xff]  ;;  %v9375_v5 = vcombine.low %v769_v54, %v773_v58  ;;  %v9384_v34 = vcombine.high %v777_v61, %v781_v62  ;;  %v829_v55 = vld [vmem:[#allocation2 + $0x16b0] sm:$0xff] }
 0x3a6   :  { %7252 = vmatpush1.bf16.msra.mxu0 %v9327_v6  ;;  %7580 = vmatpush1.bf16.msra.mxu1 %v9329_v10  ;;  %v786_v6 = vld [vmem:[#allocation2 + $0x1558] sm:$0xff] }
 0x3a7   :  { %7253 = vmatprep.subr.bf16.mxu0 %v9336_v11  ;;  %7581 = vmatprep.subr.bf16.mxu1 %v9338_v12  ;;  %v790_v10 = vld [vmem:[#allocation2 + $0x1578] sm:$0xff]  ;;  %v9383_v11 = vcombine.low %v777_v61, %v781_v62  ;;  %v9385_v12 = vcombine.low %v778_v8, %v782_v2  ;;  %v9432_v61 = vcombine.high %v825_v23, %v829_v55 }
 0x3a8   :  { %v9394_v14 = vcombine.high %v786_v6, %v790_v10 }
 0x3aa   :  { %7254 = vmatpush1.bf16.msra.mxu0 %v9335_v18  ;;  %7582 = vmatpush1.bf16.msra.mxu1 %v9337_v53  ;;  %v794_v18 = vld [vmem:[#allocation2 + $0x1598] sm:$0xff] }
 0x3ab   :  { %7255 = vmatprep.subr.bf16.mxu0 %v9344_v16  ;;  %7583 = vmatprep.subr.bf16.mxu1 %v9346_v21  ;;  %v798_v53 = vld [vmem:[#allocation2 + $0x15b8] sm:$0xff]  ;;  %v9391_v16 = vcombine.low %v785_v4, %v789_v31  ;;  %v9393_v21 = vcombine.low %v786_v6, %v790_v10  ;;  %v841_v6 = vld [vmem:[#allocation2 + $0x1710] sm:$0xff] }
 0x3ac   :  { %v9402_v24 = vcombine.high %v794_v18, %v798_v53  ;;  %v845_v10 = vld [vmem:[#allocation2 + $0x1730] sm:$0xff] }
 0x3ae   :  { %7256 = vmatpush1.bf16.msra.mxu0 %v9343_v30  ;;  %7584 = vmatpush1.bf16.msra.mxu1 %v9345_v19  ;;  %v802_v30 = vld [vmem:[#allocation2 + $0x15d8] sm:$0xff] }
 0x3af   :  { %7266 = vmatprep.subr.bf16.mxu0 %v9352_v32  ;;  %7594 = vmatprep.subr.bf16.mxu1 %v9354_v59  ;;  %v806_v19 = vld [vmem:[#allocation2 + $0x15f8] sm:$0xff]  ;;  %v9399_v32 = vcombine.low %v793_v15, %v797_v17  ;;  %v9401_v59 = vcombine.low %v794_v18, %v798_v53  ;;  %v9448_v15 = vcombine.high %v841_v6, %v845_v10  ;;  %v849_v18 = vld [vmem:[#allocation2 + $0x1750] sm:$0xff] }
 0x3b0   :  { %v9410_v63 = vcombine.high %v802_v30, %v806_v19  ;;  %v853_v53 = vld [vmem:[#allocation2 + $0x1770] sm:$0xff] }
 0x3b1   :  { %7258 = vmatmul.mubr.bf16.vlgmr.msra.gmra.mrb[4].mxu0 %v10448_v51  ;;  %7586 = vmatmul.mubr.bf16.vlgmr.msra.gmra.mrb[4].mxu1 %v10448_v51  ;;  %v9369_v51 = vcombine.low %v762_v44, %v766_v45  ;;  %v817_v44 = vld [vmem:[#allocation2 + $0x1650] sm:$0xff] }
 0x3b2   :  { %7267 = vmatpush1.bf16.msra.mxu0 %v9351_v36  ;;  %7595 = vmatpush1.bf16.msra.mxu1 %v9353_v38  ;;  %v810_v36 = vld [vmem:[#allocation2 + $0x1618] sm:$0xff]  ;;  %v821_v45 = vld [vmem:[#allocation2 + $0x1670] sm:$0xff] }
 0x3b3   :  { %7268 = vmatprep.subr.bf16.mxu0 %v9360_v39  ;;  %7596 = vmatprep.subr.bf16.mxu1 %v9362_v29  ;;  %v814_v38 = vld [vmem:[#allocation2 + $0x1638] sm:$0xff]  ;;  %v9407_v39 = vcombine.low %v801_v25, %v805_v26  ;;  %v9409_v29 = vcombine.low %v802_v30, %v806_v19  ;;  %v9424_v54 = vcombine.high %v817_v44, %v821_v45  ;;  %v857_v30 = vld [vmem:[#allocation2 + $0x1790] sm:$0xff] }
 0x3b4   :  { %7298 = vmatprep.mubr.bf16.mxu0 %v10452_v0  ;;  %7626 = vmatprep.mubr.bf16.mxu1 %v10452_v0  ;;  %v9386_v0 = vcombine.high %v778_v8, %v782_v2  ;;  %v9418_v42 = vcombine.high %v810_v36, %v814_v38  ;;  %v833_v8 = vld [vmem:[#allocation2 + $0x16d0] sm:$0xff]  ;;  %v9456_v25 = vcombine.high %v849_v18, %v853_v53 }
 0x3b5   :  { %v837_v2 = vld [vmem:[#allocation2 + $0x16f0] sm:$0xff] }
 0x3b6   :  { %7269 = vmatpush1.bf16.msra.mxu0 %v9359_v46  ;;  %7597 = vmatpush1.bf16.msra.mxu1 %v9361_v47  ;;  %v818_v46 = vld [vmem:[#allocation2 + $0x1658] sm:$0xff]  ;;  %v9440_v4 = vcombine.high %v833_v8, %v837_v2  ;;  %v861_v19 = vld [vmem:[#allocation2 + $0x17b0] sm:$0xff] }
 0x3b7   :  { %7270 = vmatprep.subr.bf16.mxu0 %v9368_v50  ;;  %7598 = vmatprep.subr.bf16.mxu1 %v9370_v52  ;;  %v822_v47 = vld [vmem:[#allocation2 + $0x1678] sm:$0xff]  ;;  %v9415_v50 = vcombine.low %v809_v48, %v813_v35  ;;  %v9417_v52 = vcombine.low %v810_v36, %v814_v38  ;;  %v9464_v48 = vcombine.high %v857_v30, %v861_v19  ;;  %v865_v36 = vld [vmem:[#allocation2 + $0x17d0] sm:$0xff] }
 0x3b8   :  { %v9426_v58 = vcombine.high %v818_v46, %v822_v47  ;;  %v869_v38 = vld [vmem:[#allocation2 + $0x17f0] sm:$0xff] }
 0x3ba   :  { %7271 = vmatpush1.bf16.msra.mxu0 %v9367_v56  ;;  %7599 = vmatpush1.bf16.msra.mxu1 %v9369_v51  ;;  %v826_v56 = vld [vmem:[#allocation2 + $0x1698] sm:$0xff] }
 0x3bb   :  { %7272 = vmatprep.subr.bf16.mxu0 %v9376_v57  ;;  %7600 = vmatprep.subr.bf16.mxu1 %v9378_v60  ;;  %v830_v51 = vld [vmem:[#allocation2 + $0x16b8] sm:$0xff]  ;;  %v9423_v57 = vcombine.low %v817_v44, %v821_v45  ;;  %v9425_v60 = vcombine.low %v818_v46, %v822_v47  ;;  %v9472_v44 = vcombine.high %v865_v36, %v869_v38  ;;  %v873_v46 = vld [vmem:[#allocation2 + $0x1810] sm:$0xff] }
 0x3bc   :  { %v9434_v62 = vcombine.high %v826_v56, %v830_v51  ;;  %v877_v47 = vld [vmem:[#allocation2 + $0x1830] sm:$0xff] }
 0x3be   :  { %7273 = vmatpush1.bf16.msra.mxu0 %v9375_v5  ;;  %7601 = vmatpush1.bf16.msra.mxu1 %v9377_v3  ;;  %v834_v5 = vld [vmem:[#allocation2 + $0x16d8] sm:$0xff] }
 0x3bf   :  { %7274 = vmatprep.subr.bf16.mxu0 %v9384_v34  ;;  %7602 = vmatprep.subr.bf16.mxu1 %v9386_v0  ;;  %v838_v3 = vld [vmem:[#allocation2 + $0x16f8] sm:$0xff]  ;;  %v9431_v34 = vcombine.low %v825_v23, %v829_v55  ;;  %v9433_v0 = vcombine.low %v826_v56, %v830_v51  ;;  %v9480_v23 = vcombine.high %v873_v46, %v877_v47  ;;  %v881_v56 = vld [vmem:[#allocation2 + $0x1850] sm:$0xff] }
 0x3c0   :  { %v9442_v31 = vcombine.high %v834_v5, %v838_v3  ;;  %v885_v51 = vld [vmem:[#allocation2 + $0x1870] sm:$0xff] }
 0x3c2   :  { %7275 = vmatpush1.bf16.msra.mxu0 %v9383_v11  ;;  %7603 = vmatpush1.bf16.msra.mxu1 %v9385_v12  ;;  %v842_v11 = vld [vmem:[#allocation2 + $0x1718] sm:$0xff] }
 0x3c3   :  { %7276 = vmatprep.subr.bf16.mxu0 %v9392_v13  ;;  %7604 = vmatprep.subr.bf16.mxu1 %v9394_v14  ;;  %v846_v12 = vld [vmem:[#allocation2 + $0x1738] sm:$0xff]  ;;  %v9439_v13 = vcombine.low %v833_v8, %v837_v2  ;;  %v9441_v14 = vcombine.low %v834_v5, %v838_v3  ;;  %v9488_v8 = vcombine.high %v881_v56, %v885_v51  ;;  %v889_v5 = vld [vmem:[#allocation2 + $0x1890] sm:$0xff] }
 0x3c4   :  { %v9450_v17 = vcombine.high %v842_v11, %v846_v12  ;;  %v893_v3 = vld [vmem:[#allocation2 + $0x18b0] sm:$0xff] }
 0x3c6   :  { %7277 = vmatpush1.bf16.msra.mxu0 %v9391_v16  ;;  %7605 = vmatpush1.bf16.msra.mxu1 %v9393_v21  ;;  %v850_v16 = vld [vmem:[#allocation2 + $0x1758] sm:$0xff] }
 0x3c7   :  { %7278 = vmatprep.subr.bf16.mxu0 %v9400_v22  ;;  %7606 = vmatprep.subr.bf16.mxu1 %v9402_v24  ;;  %v854_v21 = vld [vmem:[#allocation2 + $0x1778] sm:$0xff]  ;;  %v9447_v22 = vcombine.low %v841_v6, %v845_v10  ;;  %v9449_v24 = vcombine.low %v842_v11, %v846_v12  ;;  %v9496_v6 = vcombine.high %v889_v5, %v893_v3  ;;  %v897_v11 = vld [vmem:[#allocation2 + $0x18d0] sm:$0xff] }
 0x3c8   :  { %v9458_v26 = vcombine.high %v850_v16, %v854_v21  ;;  %v901_v12 = vld [vmem:[#allocation2 + $0x18f0] sm:$0xff] }
 0x3ca   :  { %7279 = vmatpush1.bf16.msra.mxu0 %v9399_v32  ;;  %7607 = vmatpush1.bf16.msra.mxu1 %v9401_v59  ;;  %v858_v32 = vld [vmem:[#allocation2 + $0x1798] sm:$0xff] }
 0x3cb   :  { %7280 = vmatprep.subr.bf16.mxu0 %v9408_v33  ;;  %7608 = vmatprep.subr.bf16.mxu1 %v9410_v63  ;;  %v862_v59 = vld [vmem:[#allocation2 + $0x17b8] sm:$0xff]  ;;  %v9455_v33 = vcombine.low %v849_v18, %v853_v53  ;;  %v9457_v63 = vcombine.low %v850_v16, %v854_v21  ;;  %v905_v53 = vld [vmem:[#allocation2 + $0x1910] sm:$0xff] }
 0x3cc   :  { %v9466_v35 = vcombine.high %v858_v32, %v862_v59  ;;  %v909_v16 = vld [vmem:[#allocation2 + $0x1930] sm:$0xff]  ;;  %v906_v21 = vld [vmem:[#allocation2 + $0x1918] sm:$0xff] }
 0x3ce   :  { %7281 = vmatpush1.bf16.msra.mxu0 %v9407_v39  ;;  %7609 = vmatpush1.bf16.msra.mxu1 %v9409_v29  ;;  %v866_v39 = vld [vmem:[#allocation2 + $0x17d8] sm:$0xff] }
 0x3cf   :  { %7282 = vmatprep.subr.bf16.mxu0 %v9416_v41  ;;  %7610 = vmatprep.subr.bf16.mxu1 %v9418_v42  ;;  %v870_v29 = vld [vmem:[#allocation2 + $0x17f8] sm:$0xff]  ;;  %v9463_v41 = vcombine.low %v857_v30, %v861_v19  ;;  %v9465_v42 = vcombine.low %v858_v32, %v862_v59  ;;  %v10531_v30 = vld [vmem:[#allocation4] sm:$0xff]  ;;  %v10534_v19 = vsub.s32 3, %v10361_v43  ;;  %v913_v59 = vld [vmem:[#allocation2 + $0x1950] sm:$0xff] }
 0x3d0   :  { %v9474_v45 = vcombine.high %v866_v39, %v870_v29 }
 0x3d2   :  { %7283 = vmatpush1.bf16.msra.mxu0 %v9415_v50  ;;  %7611 = vmatpush1.bf16.msra.mxu1 %v9417_v52  ;;  %v874_v50 = vld [vmem:[#allocation2 + $0x1818] sm:$0xff] }
 0x3d3   :  { %7284 = vmatprep.subr.bf16.mxu0 %v9424_v54  ;;  %7612 = vmatprep.subr.bf16.mxu1 %v9426_v58  ;;  %v878_v52 = vld [vmem:[#allocation2 + $0x1838] sm:$0xff]  ;;  %v9471_v54 = vcombine.low %v865_v36, %v869_v38  ;;  %v9473_v58 = vcombine.low %v866_v39, %v870_v29  ;;  %v1144_v29 = vrot.slane %v10531_v30, %v10534_v19 }
 0x3d4   :  { %v9482_v55 = vcombine.high %v874_v50, %v878_v52 }
 0x3d6   :  { %7285 = vmatpush1.bf16.msra.mxu0 %v9423_v57  ;;  %7613 = vmatpush1.bf16.msra.mxu1 %v9425_v60  ;;  %v882_v57 = vld [vmem:[#allocation2 + $0x1858] sm:$0xff] }
 0x3d7   :  { %7286 = vmatprep.subr.bf16.mxu0 %v9432_v61  ;;  %7614 = vmatprep.subr.bf16.mxu1 %v9434_v62  ;;  %v886_v60 = vld [vmem:[#allocation2 + $0x1878] sm:$0xff]  ;;  %v9479_v61 = vcombine.low %v873_v46, %v877_v47  ;;  %v9481_v62 = vcombine.low %v874_v50, %v878_v52 }
 0x3d8   :  { %v9490_v2 = vcombine.high %v882_v57, %v886_v60  ;;  %v926_v46 = vld [vmem:[#allocation2 + $0x19b8] sm:$0xff] }
 0x3da   :  { %7287 = vmatpush1.bf16.msra.mxu0 %v9431_v34  ;;  %7615 = vmatpush1.bf16.msra.mxu1 %v9433_v0  ;;  %v890_v34 = vld [vmem:[#allocation2 + $0x1898] sm:$0xff] }
 0x3db   :  { %7288 = vmatprep.subr.bf16.mxu0 %v9440_v4  ;;  %7616 = vmatprep.subr.bf16.mxu1 %v9442_v31  ;;  %v894_v0 = vld [vmem:[#allocation2 + $0x18b8] sm:$0xff]  ;;  %v9487_v4 = vcombine.low %v881_v56, %v885_v51  ;;  %v9489_v31 = vcombine.low %v882_v57, %v886_v60  ;;  %v933_v56 = vld [vmem:[#allocation2 + $0x19f0] sm:$0xff] }
 0x3dc   :  { %v9498_v10 = vcombine.high %v890_v34, %v894_v0  ;;  %v930_v51 = vld [vmem:[#allocation2 + $0x19d8] sm:$0xff] }
 0x3dd   :  { %v934_v57 = vld [vmem:[#allocation2 + $0x19f8] sm:$0xff] }
 0x3de   :  { %7289 = vmatpush1.bf16.msra.mxu0 %v9439_v13  ;;  %7617 = vmatpush1.bf16.msra.mxu1 %v9441_v14  ;;  %v898_v13 = vld [vmem:[#allocation2 + $0x18d8] sm:$0xff] }
 0x3df   :  { %7290 = vmatprep.subr.bf16.mxu0 %v9448_v15  ;;  %7618 = vmatprep.subr.bf16.mxu1 %v9450_v17  ;;  %v902_v14 = vld [vmem:[#allocation2 + $0x18f8] sm:$0xff]  ;;  %v9495_v15 = vcombine.low %v889_v5, %v893_v3  ;;  %v9504_v17 = vcombine.high %v897_v11, %v901_v12  ;;  %v941_v5 = vld [vmem:[#allocation2 + $0x1a30] sm:$0xff] }
 0x3e0   :  { %v9506_v18 = vcombine.high %v898_v13, %v902_v14  ;;  %v938_v3 = vld [vmem:[#allocation2 + $0x1a18] sm:$0xff] }
 0x3e2   :  { %7291 = vmatpush1.bf16.msra.mxu0 %v9447_v22  ;;  %7619 = vmatpush1.bf16.msra.mxu1 %v9449_v24  ;;  %v910_v22 = vld [vmem:[#allocation2 + $0x1938] sm:$0xff]  ;;  %v9503_v24 = vcombine.low %v897_v11, %v901_v12  ;;  %v945_v12 = vld [vmem:[#allocation2 + $0x1a50] sm:$0xff] }
 0x3e3   :  { %7292 = vmatprep.subr.bf16.mxu0 %v9456_v25  ;;  %7620 = vmatprep.subr.bf16.mxu1 %v9458_v26  ;;  %v10529_v25 = vsub.s32 1, %v10361_v43  ;;  %v9512_v26 = vcombine.high %v905_v53, %v909_v16  ;;  %v9514_v32 = vcombine.high %v906_v21, %v910_v22  ;;  %v9513_v38 = vcombine.low %v906_v21, %v910_v22  ;;  %v953_v22 = vld [vmem:[#allocation2 + $0x1a90] sm:$0xff] }
 0x3e5   :  { %v1136_v36 = vrot.slane %v10531_v30, %v10529_v25 }
 0x3e6   :  { %7293 = vmatpush1.bf16.msra.mxu0 %v9455_v33  ;;  %7621 = vmatpush1.bf16.msra.mxu1 %v9457_v63  ;;  %v917_v33 = vld [vmem:[#allocation2 + $0x1970] sm:$0xff]  ;;  %v914_v63 = vld [vmem:[#allocation2 + $0x1958] sm:$0xff] }
 0x3e7   :  { %7294 = vmatprep.subr.bf16.mxu0 %v9464_v48  ;;  %7622 = vmatprep.subr.bf16.mxu1 %v9466_v35  ;;  %v918_v48 = vld [vmem:[#allocation2 + $0x1978] sm:$0xff]  ;;  %v9511_v35 = vcombine.low %v905_v53, %v909_v16  ;;  %v9520_v39 = vcombine.high %v913_v59, %v917_v33  ;;  %v9519_v47 = vcombine.low %v913_v59, %v917_v33 }
 0x3e8   :  { %v10541_v50 = vadd.f32 %v10512_v9, %v1136_v36  ;;  %v9521_v52 = vcombine.low %v914_v63, %v918_v48  ;;  %v961_v36 = vld [vmem:[#allocation2 + $0x1ad0] sm:$0xff] }
 0x3ea   :  { %7295 = vmatpush1.bf16.msra.mxu0 %v9463_v41  ;;  %7623 = vmatpush1.bf16.msra.mxu1 %v9465_v42  ;;  %v9522_v41 = vcombine.high %v914_v63, %v918_v48  ;;  %v921_v42 = vld [vmem:[#allocation2 + $0x1990] sm:$0xff]  ;;  %v7725_v9 = vsel %vm7717_vm0, %v10541_v50, 0.0 }
 0x3eb   :  { %7296 = vmatprep.subr.bf16.mxu0 %v9472_v44  ;;  %7624 = vmatprep.subr.bf16.mxu1 %v9474_v45  ;;  %v925_v44 = vld [vmem:[#allocation2 + $0x19b0] sm:$0xff]  ;;  %v922_v45 = vld [vmem:[#allocation2 + $0x1998] sm:$0xff] }
 0x3ec   :  { %v9527_v60 = vcombine.low %v921_v42, %v925_v44 }
 0x3ee   :  { %7297 = vmatpush1.bf16.msra.mxu0 %v9471_v54  ;;  %7625 = vmatpush1.bf16.msra.mxu1 %v9473_v58  ;;  %v9528_v54 = vcombine.high %v921_v42, %v925_v44  ;;  %v10544_v58 = vadd.f32 %v10514_v28, %v1144_v29  ;;  %v9538_v28 = vcombine.high %v930_v51, %v934_v57  ;;  %v966_v29 = vld [vmem:[#allocation2 + $0x1af8] sm:$0xff] }
 0x3ef   :  { %7307 = vmatprep.subr.bf16.mxu0 %v9480_v23  ;;  %7635 = vmatprep.subr.bf16.mxu1 %v9482_v55  ;;  %v9530_v23 = vcombine.high %v922_v45, %v926_v46  ;;  %v929_v55 = vld [vmem:[#allocation2 + $0x19d0] sm:$0xff] }
 0x3f1   :  { %7299 = vmatmul.mubr.bf16.vlgmr.msra.gmra.mrb[4].mxu0 %v10467_v27  ;;  %7627 = vmatmul.mubr.bf16.vlgmr.msra.gmra.mrb[4].mxu1 %v10467_v27  ;;  %v9497_v27 = vcombine.low %v890_v34, %v894_v0  ;;  %v942_v34 = vld [vmem:[#allocation2 + $0x1a38] sm:$0xff]  ;;  %v7726_v0 = vrot.slane %v7725_v9, 4 }
 0x3f2   :  { %7308 = vmatpush1.bf16.msra.mxu0 %v9479_v61  ;;  %7636 = vmatpush1.bf16.msra.mxu1 %v9481_v62  ;;  %v9529_v61 = vcombine.low %v922_v45, %v926_v46  ;;  %v9536_v62 = vcombine.high %v929_v55, %v933_v56  ;;  %v9546_v11 = vcombine.high %v938_v3, %v942_v34 }
 0x3f3   :  { %7309 = vmatprep.subr.bf16.mxu0 %v9488_v8  ;;  %7637 = vmatprep.subr.bf16.mxu1 %v9490_v2  ;;  %v7739_v8 = vsel %vm7717_vm0, %v10544_v58, 0.0  ;;  %v937_v2 = vld [vmem:[#allocation2 + $0x1a10] sm:$0xff]  ;;  %v9545_v53 = vcombine.low %v938_v3, %v942_v34  ;;  %v978_v3 = vld [vmem:[#allocation2 + $0x1b58] sm:$0xff] }
 0x3f4   :  { %7339 = vmatprep.mubr.bf16.mxu0 %v10470_v37  ;;  %7667 = vmatprep.mubr.bf16.mxu1 %v10470_v37  ;;  %v9505_v37 = vcombine.low %v898_v13, %v902_v14  ;;  %v949_v13 = vld [vmem:[#allocation2 + $0x1a70] sm:$0xff]  ;;  %v946_v14 = vld [vmem:[#allocation2 + $0x1a58] sm:$0xff] }
 0x3f5   :  { %v9552_v16 = vcombine.high %v945_v12, %v949_v13  ;;  %v9551_v59 = vcombine.low %v945_v12, %v949_v13  ;;  %v982_v34 = vld [vmem:[#allocation2 + $0x1b78] sm:$0xff] }
 0x3f6   :  { %7310 = vmatpush1.bf16.msra.mxu0 %v9487_v4  ;;  %7638 = vmatpush1.bf16.msra.mxu1 %v9489_v31  ;;  %v9535_v4 = vcombine.low %v929_v55, %v933_v56  ;;  %v7740_v31 = vrot.slane %v7739_v8, 4  ;;  %v970_v55 = vld [vmem:[#allocation2 + $0x1b18] sm:$0xff]  ;;  %v9586_v13 = vcombine.high %v978_v3, %v982_v34 }
 0x3f7   :  { %7311 = vmatprep.subr.bf16.mxu0 %v9496_v6  ;;  %7639 = vmatprep.subr.bf16.mxu1 %v9498_v10  ;;  %v9537_v6 = vcombine.low %v930_v51, %v934_v57  ;;  %v9544_v10 = vcombine.high %v937_v2, %v941_v5  ;;  %v974_v56 = vld [vmem:[#allocation2 + $0x1b38] sm:$0xff]  ;;  %v10556_v57 = vsub.s32 2, %v10361_v43 }
 0x3fa   :  { %7312 = vmatpush1.bf16.msra.mxu0 %v9495_v15  ;;  %7640 = vmatpush1.bf16.msra.mxu1 %v9497_v27  ;;  %v950_v15 = vld [vmem:[#allocation2 + $0x1a78] sm:$0xff]  ;;  %v7727_v27 = vadd.f32 %v7726_v0, %v7725_v9 }
 0x3fb   :  { %7313 = vmatprep.subr.bf16.mxu0 %v9504_v17  ;;  %7641 = vmatprep.subr.bf16.mxu1 %v9506_v18  ;;  %v9543_v17 = vcombine.low %v937_v2, %v941_v5  ;;  %v7741_v18 = vadd.f32 %v7740_v31, %v7739_v8  ;;  %v9554_v21 = vcombine.high %v946_v14, %v950_v15  ;;  %v977_v2 = vld [vmem:[#allocation2 + $0x1b50] sm:$0xff] }
 0x3fc   :  { %v9553_v63 = vcombine.low %v946_v14, %v950_v15  ;;  %v981_v5 = vld [vmem:[#allocation2 + $0x1b70] sm:$0xff] }
 0x3fd   :  { %v7742_v33 = vrot.slane %v7741_v18, 2  ;;  %v9584_v12 = vcombine.high %v977_v2, %v981_v5  ;;  %v985_v14 = vld [vmem:[#allocation2 + $0x1b90] sm:$0xff] }
 0x3fe   :  { %7314 = vmatpush1.bf16.msra.mxu0 %v9503_v24  ;;  %7642 = vmatpush1.bf16.msra.mxu1 %v9505_v37  ;;  %v957_v24 = vld [vmem:[#allocation2 + $0x1ab0] sm:$0xff]  ;;  %v954_v37 = vld [vmem:[#allocation2 + $0x1a98] sm:$0xff] }
 0x3ff   :  { %7315 = vmatprep.subr.bf16.mxu0 %v9512_v26  ;;  %7643 = vmatprep.subr.bf16.mxu1 %v9514_v32  ;;  %v958_v26 = vld [vmem:[#allocation2 + $0x1ab8] sm:$0xff]  ;;  %v7728_v32 = vrot.slane %v7727_v27, 2  ;;  %v9560_v48 = vcombine.high %v953_v22, %v957_v24  ;;  %v9559_v44 = vcombine.low %v953_v22, %v957_v24  ;;  %v7743_v45 = vadd.f32 %v7742_v33, %v7741_v18  ;;  %v989_v15 = vld [vmem:[#allocation2 + $0x1bb0] sm:$0xff] }
 0x400   :  { %v9561_v46 = vcombine.low %v954_v37, %v958_v26  ;;  %v9592_v22 = vcombine.high %v985_v14, %v989_v15 }
 0x401   :  { %v7729_v42 = vadd.f32 %v7728_v32, %v7727_v27  ;;  %v986_v27 = vld [vmem:[#allocation2 + $0x1b98] sm:$0xff] }
 0x402   :  { %7316 = vmatpush1.bf16.msra.mxu0 %v9511_v35  ;;  %7644 = vmatpush1.bf16.msra.mxu1 %v9513_v38  ;;  %v9562_v35 = vcombine.high %v954_v37, %v958_v26  ;;  %v965_v38 = vld [vmem:[#allocation2 + $0x1af0] sm:$0xff]  ;;  %v994_v32 = vld [vmem:[#allocation2 + $0x1bd8] sm:$0xff] }
 0x403   :  { %7317 = vmatprep.subr.bf16.mxu0 %v9520_v39  ;;  %7645 = vmatprep.subr.bf16.mxu1 %v9522_v41  ;;  %v962_v39 = vld [vmem:[#allocation2 + $0x1ad8] sm:$0xff]  ;;  %v10551_v41 = vsub.s32 0, %v10361_v43  ;;  %v9567_v9 = vcombine.low %v961_v36, %v965_v38  ;;  %v993_v37 = vld [vmem:[#allocation2 + $0x1bd0] sm:$0xff] }
 0x404   :  { %v997_v26 = vld [vmem:[#allocation2 + $0x1bf0] sm:$0xff] }
 0x405   :  { %v1132_v51 = vrot.slane %v10531_v30, %v10551_v41 }
 0x406   :  { %7318 = vmatpush1.bf16.msra.mxu0 %v9519_v47  ;;  %7646 = vmatpush1.bf16.msra.mxu1 %v9521_v52  ;;  %v9568_v47 = vcombine.high %v961_v36, %v965_v38  ;;  %v9570_v52 = vcombine.high %v962_v39, %v966_v29  ;;  %v9600_v38 = vcombine.high %v993_v37, %v997_v26 }
 0x407   :  { %7319 = vmatprep.subr.bf16.mxu0 %v9528_v54  ;;  %7647 = vmatprep.subr.bf16.mxu1 %v9530_v23  ;;  %v969_v54 = vld [vmem:[#allocation2 + $0x1b10] sm:$0xff]  ;;  %v10559_v0 = vadd.f32 %v10508_v1, %v1132_v51 }
 0x408   :  { %v973_v23 = vld [vmem:[#allocation2 + $0x1b30] sm:$0xff] }
 0x409   :  { %v9576_v8 = vcombine.high %v969_v54, %v973_v23  ;;  %v1013_v51 = vld [vmem:[#allocation2 + $0x1c70] sm:$0xff] }
 0x40a   :  { %7320 = vmatpush1.bf16.msra.mxu0 %v9527_v60  ;;  %7648 = vmatpush1.bf16.msra.mxu1 %v9529_v61  ;;  %v7730_v60 = vrot.slane %v7729_v42, 1  ;;  %v7744_v61 = vrot.slane %v7743_v45, 1 }
 0x40b   :  { %7321 = vmatprep.subr.bf16.mxu0 %v9536_v62  ;;  %7649 = vmatprep.subr.bf16.mxu1 %v9538_v28  ;;  %v9569_v62 = vcombine.low %v962_v39, %v966_v29  ;;  %v9578_v28 = vcombine.high %v970_v55, %v974_v56  ;;  %v1001_v29 = vld [vmem:[#allocation2 + $0x1c10] sm:$0xff] }
 0x40c   :  { %v7731_v31 = vadd.f32 %v7730_v60, %v7729_v42  ;;  %v1005_v42 = vld [vmem:[#allocation2 + $0x1c30] sm:$0xff] }
 0x40e   :  { %7322 = vmatpush1.bf16.msra.mxu0 %v9535_v4  ;;  %7650 = vmatpush1.bf16.msra.mxu1 %v9537_v6  ;;  %v1140_v4 = vrot.slane %v10531_v30, %v10556_v57  ;;  %v9575_v6 = vcombine.low %v969_v54, %v973_v23  ;;  %v7776_v18 = vmul.f32 0.5, %v7731_v31  ;;  %v9583_v30 = vcombine.low %v977_v2, %v981_v5  ;;  %v1021_v31 = vld [vmem:[#allocation2 + $0x1cb0] sm:$0xff] }
 0x40f   :  { %7323 = vmatprep.subr.bf16.mxu0 %v9544_v10  ;;  %7651 = vmatprep.subr.bf16.mxu1 %v9546_v11  ;;  %v7745_v10 = vadd.f32 %v7744_v61, %v7743_v45  ;;  %v9577_v11 = vcombine.low %v970_v55, %v974_v56  ;;  %v1002_v45 = vld [vmem:[#allocation2 + $0x1c18] sm:$0xff]  ;;  %v9608_v23 = vcombine.high %v1001_v29, %v1005_v42  ;;  %v1009_v56 = vld [vmem:[#allocation2 + $0x1c50] sm:$0xff] }
 0x410   :  { %v10564_v1 = vadd.f32 %v10510_v40, %v1140_v4  ;;  %v1014_v61 = vld [vmem:[#allocation2 + $0x1c78] sm:$0xff]  ;;  %v1017_v4 = vld [vmem:[#allocation2 + $0x1c90] sm:$0xff] }
 0x412   :  { %7324 = vmatpush1.bf16.msra.mxu0 %v9543_v17  ;;  %7652 = vmatpush1.bf16.msra.mxu1 %v9545_v53  ;;  %v990_v17 = vld [vmem:[#allocation2 + $0x1bb8] sm:$0xff]  ;;  %v7718_v53 = vsel %vm7717_vm0, %v10559_v0, 0.0  ;;  %v7732_v40 = vsel %vm7717_vm0, %v10564_v1, 0.0 }
 0x413   :  { %7325 = vmatprep.subr.bf16.mxu0 %v9552_v16  ;;  %7653 = vmatprep.subr.bf16.mxu1 %v9554_v21  ;;  %v7778_v16 = vmul.f32 0.5, %v7745_v10  ;;  %v9585_v21 = vcombine.low %v978_v3, %v982_v34  ;;  %v9594_v24 = vcombine.high %v986_v27, %v990_v17  ;;  %v7719_v33 = vrot.slane %v7718_v53, 4 }
 0x414   :  { %v9593_v36 = vcombine.low %v986_v27, %v990_v17  ;;  %v9616_v3 = vcombine.high %v1009_v56, %v1013_v51  ;;  %v9624_v17 = vcombine.high %v1017_v4, %v1021_v31 }
 0x416   :  { %7326 = vmatpush1.bf16.msra.mxu0 %v9551_v59  ;;  %7654 = vmatpush1.bf16.msra.mxu1 %v9553_v63  ;;  %v998_v59 = vld [vmem:[#allocation2 + $0x1bf8] sm:$0xff]  ;;  %v10571_v63 = vsub.f32 %v10541_v50, %v7776_v18 }
 0x417   :  { %7327 = vmatprep.subr.bf16.mxu0 %v9560_v48  ;;  %7655 = vmatprep.subr.bf16.mxu1 %v9562_v35  ;;  %v9591_v48 = vcombine.low %v985_v14, %v989_v15  ;;  %v10574_v35 = vsub.f32 %v10544_v58, %v7778_v16  ;;  %v9602_v39 = vcombine.high %v994_v32, %v998_v59 }
 0x418   :  { %v7792_v50 = vmul.f32 %v10571_v63, %v10571_v63  ;;  %v9601_v54 = vcombine.low %v994_v32, %v998_v59  ;;  %v9615_v14 = vcombine.low %v1009_v56, %v1013_v51 }
 0x419   :  { %v7794_v58 = vmul.f32 %v10574_v35, %v10574_v35 }
 0x41a   :  { %7328 = vmatpush1.bf16.msra.mxu0 %v9559_v44  ;;  %7656 = vmatpush1.bf16.msra.mxu1 %v9561_v46  ;;  %v7733_v44 = vrot.slane %v7732_v40, 4  ;;  %v1006_v46 = vld [vmem:[#allocation2 + $0x1c38] sm:$0xff] }
 0x41b   :  { %7329 = vmatprep.subr.bf16.mxu0 %v9568_v47  ;;  %7657 = vmatprep.subr.bf16.mxu1 %v9570_v52  ;;  %v7720_v47 = vadd.f32 %v7719_v33, %v7718_v53  ;;  %v9599_v52 = vcombine.low %v993_v37, %v997_v26  ;;  %v9610_v55 = vcombine.high %v1002_v45, %v1006_v46  ;;  %v7820_v2 = vsel %vm7717_vm0, %v7794_v58, 0.0  ;;  %v1029_v53 = vld [vmem:[#allocation2 + $0x1cf0] sm:$0xff] }
 0x41c   :  { %v7734_v60 = vadd.f32 %v7733_v44, %v7732_v40  ;;  %v9609_v5 = vcombine.low %v1002_v45, %v1006_v46  ;;  %v1033_v40 = vld [vmem:[#allocation2 + $0x1d10] sm:$0xff] }
 0x41e   :  { %7330 = vmatpush1.bf16.msra.mxu0 %v9567_v9  ;;  %7658 = vmatpush1.bf16.msra.mxu1 %v9569_v62  ;;  %v1010_v9 = vld [vmem:[#allocation2 + $0x1c58] sm:$0xff]  ;;  %v7806_v62 = vsel %vm7717_vm0, %v7792_v50, 0.0  ;;  %v1041_v50 = vld [vmem:[#allocation2 + $0x1d50] sm:$0xff] }
 0x41f   :  { %7331 = vmatprep.subr.bf16.mxu0 %v9576_v8  ;;  %7659 = vmatprep.subr.bf16.mxu1 %v9578_v28  ;;  %v9607_v8 = vcombine.low %v1001_v29, %v1005_v42  ;;  %v7721_v28 = vrot.slane %v7720_v47, 2  ;;  %v9618_v34 = vcombine.high %v1010_v9, %v1014_v61  ;;  %v7807_v10 = vrot.slane %v7806_v62, 4  ;;  %v1038_v29 = vld [vmem:[#allocation2 + $0x1d38] sm:$0xff] }
 0x420   :  { %v9617_v27 = vcombine.low %v1010_v9, %v1014_v61 }
 0x421   :  { %v7722_v15 = vadd.f32 %v7721_v28, %v7720_v47  ;;  %v1053_v28 = vld [vmem:[#allocation2 + $0x1db0] sm:$0xff] }
 0x422   :  { %7332 = vmatpush1.bf16.msra.mxu0 %v9575_v6  ;;  %7660 = vmatpush1.bf16.msra.mxu1 %v9577_v11  ;;  %v7735_v6 = vrot.slane %v7734_v60, 2  ;;  %v1018_v11 = vld [vmem:[#allocation2 + $0x1c98] sm:$0xff] }
 0x423   :  { %7333 = vmatprep.subr.bf16.mxu0 %v9584_v12  ;;  %7661 = vmatprep.subr.bf16.mxu1 %v9586_v13  ;;  %v1022_v12 = vld [vmem:[#allocation2 + $0x1cb8] sm:$0xff]  ;;  %v7821_v13 = vrot.slane %v7820_v2, 4  ;;  %v7723_v26 = vrot.slane %v7722_v15, 1 }
 0x424   :  { %v9626_v18 = vcombine.high %v1018_v11, %v1022_v12  ;;  %v7736_v16 = vadd.f32 %v7735_v6, %v7734_v60  ;;  %v9625_v32 = vcombine.low %v1018_v11, %v1022_v12 }
 0x425   :  { %v7822_v37 = vadd.f32 %v7821_v13, %v7820_v2  ;;  %v1057_v13 = vld [vmem:[#allocation2 + $0x1dd0] sm:$0xff] }
 0x426   :  { %7334 = vmatpush1.bf16.msra.mxu0 %v9583_v30  ;;  %7662 = vmatpush1.bf16.msra.mxu1 %v9585_v21  ;;  %v1025_v30 = vld [vmem:[#allocation2 + $0x1cd0] sm:$0xff]  ;;  %v7808_v21 = vadd.f32 %v7807_v10, %v7806_v62 }
 0x427   :  { %7335 = vmatprep.subr.bf16.mxu0 %v9592_v22  ;;  %7663 = vmatprep.subr.bf16.mxu1 %v9594_v24  ;;  %v1026_v22 = vld [vmem:[#allocation2 + $0x1cd8] sm:$0xff]  ;;  %v9632_v59 = vcombine.high %v1025_v30, %v1029_v53  ;;  %v7823_v42 = vrot.slane %v7822_v37, 2  ;;  %v9631_v44 = vcombine.low %v1025_v30, %v1029_v53 }
 0x428   :  { %v1030_v24 = vld [vmem:[#allocation2 + $0x1cf8] sm:$0xff] }
 0x429   :  { %v9634_v33 = vcombine.high %v1026_v22, %v1030_v24  ;;  %v9633_v45 = vcombine.low %v1026_v22, %v1030_v24  ;;  %v7824_v56 = vadd.f32 %v7823_v42, %v7822_v37  ;;  %v1065_v24 = vld [vmem:[#allocation2 + $0x1e10] sm:$0xff] }
 0x42a   :  { %7336 = vmatpush1.bf16.msra.mxu0 %v9591_v48  ;;  %7664 = vmatpush1.bf16.msra.mxu1 %v9593_v36  ;;  %v1037_v48 = vld [vmem:[#allocation2 + $0x1d30] sm:$0xff]  ;;  %v7737_v36 = vrot.slane %v7736_v16, 1 }
 0x42b   :  { %7337 = vmatprep.subr.bf16.mxu0 %v9600_v38  ;;  %7665 = vmatprep.subr.bf16.mxu1 %v9602_v39  ;;  %v7809_v38 = vrot.slane %v7808_v21, 2  ;;  %v1034_v39 = vld [vmem:[#allocation2 + $0x1d18] sm:$0xff]  ;;  %v9640_v46 = vcombine.high %v1033_v40, %v1037_v48  ;;  %v9639_v51 = vcombine.low %v1033_v40, %v1037_v48  ;;  %v1069_v37 = vld [vmem:[#allocation2 + $0x1e30] sm:$0xff] }
 0x42c   :  { %v9642_v47 = vcombine.high %v1034_v39, %v1038_v29  ;;  %v7738_v58 = vadd.f32 %v7737_v36, %v7736_v16  ;;  %v9641_v9 = vcombine.low %v1034_v39, %v1038_v29  ;;  %v9672_v36 = vcombine.high %v1065_v24, %v1069_v37  ;;  %v1073_v39 = vld [vmem:[#allocation2 + $0x1e50] sm:$0xff] }
 0x42d   :  { %v1077_v29 = vld [vmem:[#allocation2 + $0x1e70] sm:$0xff] }
 0x42e   :  { %7338 = vmatpush1.bf16.msra.mxu0 %v9599_v52  ;;  %7666 = vmatpush1.bf16.msra.mxu1 %v9601_v54  ;;  %v1045_v52 = vld [vmem:[#allocation2 + $0x1d70] sm:$0xff]  ;;  %v7810_v54 = vadd.f32 %v7809_v38, %v7808_v21  ;;  %v7777_v2 = vmul.f32 0.5, %v7738_v58  ;;  %v9680_v58 = vcombine.high %v1073_v39, %v1077_v29 }
 0x42f   :  { %7348 = vmatprep.subr.bf16.mxu0 %v9608_v23  ;;  %7676 = vmatprep.subr.bf16.mxu1 %v9610_v55  ;;  %v1042_v23 = vld [vmem:[#allocation2 + $0x1d58] sm:$0xff]  ;;  %v9648_v61 = vcombine.high %v1041_v50, %v1045_v52 }
 0x430   :  { %v1046_v55 = vld [vmem:[#allocation2 + $0x1d78] sm:$0xff] }
 0x431   :  { %7340 = vmatmul.mubr.bf16.vlgmr.msra.gmra.mrb[4].mxu0 %v10478_v7  ;;  %7668 = vmatmul.mubr.bf16.vlgmr.msra.gmra.mrb[4].mxu1 %v10478_v7  ;;  %v9623_v7 = vcombine.low %v1017_v4, %v1021_v31  ;;  %v9650_v62 = vcombine.high %v1042_v23, %v1046_v55  ;;  %v7825_v4 = vrot.slane %v7824_v56, 1  ;;  %v9647_v31 = vcombine.low %v1041_v50, %v1045_v52 }
 0x432   :  { %7349 = vmatpush1.bf16.msra.mxu0 %v9607_v8  ;;  %7677 = vmatpush1.bf16.msra.mxu1 %v9609_v5  ;;  %v1049_v8 = vld [vmem:[#allocation2 + $0x1d90] sm:$0xff]  ;;  %v7811_v5 = vrot.slane %v7810_v54, 1  ;;  %v9649_v10 = vcombine.low %v1042_v23, %v1046_v55  ;;  %v9671_v50 = vcombine.low %v1065_v24, %v1069_v37 }
 0x433   :  { %7350 = vmatprep.subr.bf16.mxu0 %v9616_v3  ;;  %7678 = vmatprep.subr.bf16.mxu1 %v9618_v34  ;;  %v1050_v3 = vld [vmem:[#allocation2 + $0x1d98] sm:$0xff]  ;;  %v9656_v11 = vcombine.high %v1049_v8, %v1053_v28  ;;  %v7826_v30 = vadd.f32 %v7825_v4, %v7824_v56  ;;  %v9655_v53 = vcombine.low %v1049_v8, %v1053_v28  ;;  %v1081_v55 = vld [vmem:[#allocation2 + $0x1e90] sm:$0xff] }
 0x434   :  { %7380 = vmatprep.mubr.bf16.mxu0 %v10482_v20  ;;  %7708 = vmatprep.mubr.bf16.mxu1 %v10482_v20  ;;  %v7724_v20 = vadd.f32 %v7723_v26, %v7722_v15  ;;  %v1054_v34 = vld [vmem:[#allocation2 + $0x1db8] sm:$0xff]  ;;  %v10590_v15 = vsub.f32 %v10564_v1, %v7777_v2  ;;  %v1085_v56 = vld [vmem:[#allocation2 + $0x1eb0] sm:$0xff] }
 0x435   :  { %v9658_v12 = vcombine.high %v1050_v3, %v1054_v34  ;;  %v9657_v16 = vcombine.low %v1050_v3, %v1054_v34  ;;  %v1066_v26 = vld [vmem:[#allocation2 + $0x1e18] sm:$0xff]  ;;  %v9688_v8 = vcombine.high %v1081_v55, %v1085_v56  ;;  %v1093_v3 = vld [vmem:[#allocation2 + $0x1ef0] sm:$0xff] }
 0x436   :  { %7351 = vmatpush1.bf16.msra.mxu0 %v9615_v14  ;;  %7679 = vmatpush1.bf16.msra.mxu1 %v9617_v27  ;;  %v7775_v60 = vmul.f32 0.5, %v7724_v20  ;;  %v1061_v14 = vld [vmem:[#allocation2 + $0x1df0] sm:$0xff]  ;;  %v7812_v27 = vadd.f32 %v7811_v5, %v7810_v54  ;;  %v7793_v1 = vmul.f32 %v10590_v15, %v10590_v15  ;;  %v1074_v20 = vld [vmem:[#allocation2 + $0x1e58] sm:$0xff] }
 0x437   :  { %7352 = vmatprep.subr.bf16.mxu0 %v9624_v17  ;;  %7680 = vmatprep.subr.bf16.mxu1 %v9626_v18  ;;  %v1058_v17 = vld [vmem:[#allocation2 + $0x1dd8] sm:$0xff]  ;;  %v9664_v21 = vcombine.high %v1057_v13, %v1061_v14  ;;  %v1089_v5 = vld [vmem:[#allocation2 + $0x1ed0] sm:$0xff] }
 0x438   :  { %v10587_v6 = vsub.f32 %v10559_v0, %v7775_v60  ;;  %v1062_v18 = vld [vmem:[#allocation2 + $0x1df8] sm:$0xff]  ;;  %v7813_v42 = vsel %vm7717_vm0, %v7793_v1, 0.0 }
 0x439   :  { %v9666_v22 = vcombine.high %v1058_v17, %v1062_v18  ;;  %v9665_v48 = vcombine.low %v1058_v17, %v1062_v18  ;;  %v7814_v54 = vrot.slane %v7813_v42, 4  ;;  %v1086_v60 = vld [vmem:[#allocation2 + $0x1eb8] sm:$0xff]  ;;  %v1101_v17 = vld [vmem:[#allocation2 + $0x1f30] sm:$0xff] }
 0x43a   :  { %7353 = vmatpush1.bf16.msra.mxu0 %v9623_v7  ;;  %7681 = vmatpush1.bf16.msra.mxu1 %v9625_v32  ;;  %v7791_v0 = vmul.f32 %v10587_v6, %v10587_v6  ;;  %v7856_v7 = vmul.f32 0.5, %v7812_v27  ;;  %v1070_v32 = vld [vmem:[#allocation2 + $0x1e38] sm:$0xff]  ;;  %v1097_v27 = vld [vmem:[#allocation2 + $0x1f10] sm:$0xff] }
 0x43b   :  { %7354 = vmatprep.subr.bf16.mxu0 %v9632_v59  ;;  %7682 = vmatprep.subr.bf16.mxu1 %v9634_v33  ;;  %v7858_v59 = vmul.f32 0.5, %v7826_v30  ;;  %v9663_v33 = vcombine.low %v1057_v13, %v1061_v14  ;;  %v9674_v38 = vcombine.high %v1066_v26, %v1070_v32  ;;  %v9673_v52 = vcombine.low %v1066_v26, %v1070_v32  ;;  %v1090_v34 = vld [vmem:[#allocation2 + $0x1ed8] sm:$0xff]  ;;  %v1105_v26 = vld [vmem:[#allocation2 + $0x1f50] sm:$0xff] }
 0x43c   :  { %v7799_v40 = vsel %vm7717_vm0, %v7791_v0, 0.0  ;;  %v7815_v28 = vadd.f32 %v7814_v54, %v7813_v42  ;;  %v1094_v4 = vld [vmem:[#allocation2 + $0x1ef8] sm:$0xff]  ;;  %v10598_v0 = vld [vmem:[#allocation6] sm:$0xff]  ;;  %v9704_v24 = vcombine.high %v1097_v27, %v1101_v17  ;;  %v1109_v32 = vld [vmem:[#allocation2 + $0x1f70] sm:$0xff] }
 0x43d   :  { %v9698_v14 = vcombine.high %v1090_v34, %v1094_v4  ;;  %v1098_v18 = vld [vmem:[#allocation2 + $0x1f18] sm:$0xff] }
 0x43e   :  { %7355 = vmatpush1.bf16.msra.mxu0 %v9631_v44  ;;  %7683 = vmatpush1.bf16.msra.mxu1 %v9633_v45  ;;  %v7864_v44 = vadd.f32 1e-05, %v7856_v7  ;;  %v1078_v45 = vld [vmem:[#allocation2 + $0x1e78] sm:$0xff]  ;;  %v7816_v13 = vrot.slane %v7815_v28, 2 }
 0x43f   :  { %7356 = vmatprep.subr.bf16.mxu0 %v9640_v46  ;;  %7684 = vmatprep.subr.bf16.mxu1 %v9642_v47  ;;  %v7800_v46 = vrot.slane %v7799_v40, 4  ;;  %v7866_v47 = vadd.f32 1e-05, %v7858_v59  ;;  %v9682_v23 = vcombine.high %v1074_v20, %v1078_v45  ;;  %v1102_v30 = vld [vmem:[#allocation2 + $0x1f38] sm:$0xff]  ;;  %v7896_v59 = vrot.slane %v10598_v0, %v10529_v25 }
 0x440   :  { %10081 = vrsqrt.f32 %v7864_v44  ;;  %v7817_v1 = vadd.f32 %v7816_v13, %v7815_v28  ;;  %v9706_v7 = vcombine.high %v1098_v18, %v1102_v30  ;;  %v9705_v44 = vcombine.low %v1098_v18, %v1102_v30  ;;  %v1126_v28 = vld [vmem:[#allocation2 + $0x1ff8] sm:$0xff] }
 0x441   :  { %10083 = vrsqrt.f32 %v7866_v47  ;;  %v1113_v47 = vld [vmem:[#allocation2 + $0x1f90] sm:$0xff]  ;;  %v10018_v30 = vld [vmem:[#allocation9 + $0xc0] sm:$0xff]  }
 0x442   :  { %7357 = vmatpush1.bf16.msra.mxu0 %v9639_v51  ;;  %7685 = vmatpush1.bf16.msra.mxu1 %v9641_v9  ;;  %v1082_v51 = vld [vmem:[#allocation2 + $0x1e98] sm:$0xff]  ;;  %v7801_v9 = vadd.f32 %v7800_v46, %v7799_v40 }
 0x443   :  { %7358 = vmatprep.subr.bf16.mxu0 %v9648_v61  ;;  %7686 = vmatprep.subr.bf16.mxu1 %v9650_v62  ;;  %v9679_v61 = vcombine.low %v1073_v39, %v1077_v29  ;;  %v9681_v62 = vcombine.low %v1074_v20, %v1078_v45  ;;  %v9690_v2 = vcombine.high %v1082_v51, %v1086_v60  ;;  %v1110_v40 = vld [vmem:[#allocation2 + $0x1f78] sm:$0xff]  ;;  %v7818_v45 = vrot.slane %v7817_v1, 1 }
 0x444   :  { %v7904_v39 = vrot.slane %v10598_v0, %v10534_v19  ;;  %v9703_v29 = vcombine.low %v1097_v27, %v1101_v17  ;;  %v9712_v20 = vcombine.high %v1105_v26, %v1109_v32  ;;  %v10017_v27 = vld [vmem:[#allocation9 + $0x40] sm:$0xff]  }
 0x446   :  { %7359 = vmatpush1.bf16.msra.mxu0 %v9647_v31  ;;  %7687 = vmatpush1.bf16.msra.mxu1 %v9649_v10  ;;  %v7802_v31 = vrot.slane %v7801_v9, 2  ;;  %v9687_v10 = vcombine.low %v1081_v55, %v1085_v56 }
 0x447   :  { %7360 = vmatprep.subr.bf16.mxu0 %v9656_v11  ;;  %7688 = vmatprep.subr.bf16.mxu1 %v9658_v12  ;;  %v9689_v11 = vcombine.low %v1082_v51, %v1086_v60  ;;  %v9696_v12 = vcombine.high %v1089_v5, %v1093_v3 }
 0x44a   :  { %7361 = vmatpush1.bf16.msra.mxu0 %v9655_v53  ;;  %7689 = vmatpush1.bf16.msra.mxu1 %v9657_v16  ;;  %v7803_v53 = vadd.f32 %v7802_v31, %v7801_v9  ;;  %v9695_v16 = vcombine.low %v1089_v5, %v1093_v3  ;;  %v7819_v9 = vadd.f32 %v7818_v45, %v7817_v1  ;;  %v10022_v1 = vld [vmem:[#allocation9 + $0xc8] sm:$0xff]  }
 0x44b   :  { %7362 = vmatprep.subr.bf16.mxu0 %v9664_v21  ;;  %7690 = vmatprep.subr.bf16.mxu1 %v9666_v22  ;;  %v10082_v21 = vpop.eup %10081  ;;  %v9697_v22 = vcombine.low %v1090_v34, %v1094_v4 }
 0x44c   :  { %v10084_v37 = vpop.eup %10083  ;;  %v7857_v31 = vmul.f32 0.5, %v7819_v9 }
 0x44d   :  { %v7882_v42 = vmul.f32 %v10084_v37, %v10574_v35  ;;  %v9711_v35 = vcombine.low %v1105_v26, %v1109_v32  ;;  %v10023_v26 = vld [vmem:[#allocation9 + $0x8] sm:$0xff]  }
 0x44e   :  { %7363 = vmatpush1.bf16.msra.mxu0 %v9663_v33  ;;  %7691 = vmatpush1.bf16.msra.mxu1 %v9665_v48  ;;  %v1106_v33 = vld [vmem:[#allocation2 + $0x1f58] sm:$0xff]  ;;  %v7804_v48 = vrot.slane %v7803_v53, 1  ;;  %v7865_v18 = vadd.f32 1e-05, %v7857_v31  ;;  %v10024_v32 = vld [vmem:[#allocation9 + $0x88] sm:$0xff]  }
 0x44f   :  { %7364 = vmatprep.subr.bf16.mxu0 %v9672_v36  ;;  %7692 = vmatprep.subr.bf16.mxu1 %v9674_v38  ;;  %v10602_v36 = vld [vmem:[#allocation7] sm:$0xff]  ;;  %v7880_v38 = vmul.f32 %v10082_v21, %v10571_v63  ;;  %v9714_v46 = vcombine.high %v1106_v33, %v1110_v40  ;;  %v1114_v63 = vld [vmem:[#allocation2 + $0x1f98] sm:$0xff]  ;;  %v7932_v56 = vmul.f32 %v7904_v39, %v7882_v42 }
 0x450   :  { %v7805_v54 = vadd.f32 %v7804_v48, %v7803_v53  ;;  %v7954_v55 = vrot.slane %v10602_v36, %v10534_v19  ;;  %v9713_v51 = vcombine.low %v1106_v33, %v1110_v40  ;;  %v10019_v53 = vld [vmem:[#allocation9] sm:$0xff]   ;;  %v10026_v33 = vld [vmem:[#allocation9 + $0xd0] sm:$0xff]   ;;  %v10030_v39 = vld [vmem:[#allocation9 + $0xd8] sm:$0xff]  }
 0x451   :  { %v10020_v21 = vld [vmem:[#allocation9 + $0x80] sm:$0xff]   ;;  %v10027_v40 = vld [vmem:[#allocation9 + $0x10] sm:$0xff]   ;;  %v10031_v42 = vld [vmem:[#allocation9 + $0x18] sm:$0xff]  }
 0x452   :  { %7365 = vmatpush1.bf16.msra.mxu0 %v9671_v50  ;;  %7693 = vmatpush1.bf16.msra.mxu1 %v9673_v52  ;;  %v1117_v50 = vld [vmem:[#allocation2 + $0x1fb0] sm:$0xff]  ;;  %v7946_v52 = vrot.slane %v10602_v36, %v10529_v25  ;;  %v1122_v25 = vld [vmem:[#allocation2 + $0x1fd8] sm:$0xff]  ;;  %v7855_v3 = vmul.f32 0.5, %v7805_v54  ;;  %v7982_v34 = vadd.f32 %v7954_v55, %v7932_v56  ;;  %v10028_v48 = vld [vmem:[#allocation9 + $0x90] sm:$0xff]   ;;  %v7950_v56 = vrot.slane %v10602_v36, %v10556_v57 }
 0x453   :  { %7366 = vmatprep.subr.bf16.mxu0 %v9680_v58  ;;  %7694 = vmatprep.subr.bf16.mxu1 %v9682_v23  ;;  %v1118_v58 = vld [vmem:[#allocation2 + $0x1fb8] sm:$0xff]  ;;  %v7930_v23 = vmul.f32 %v7896_v59, %v7880_v38  ;;  %v9720_v60 = vcombine.high %v1113_v47, %v1117_v50  ;;  %v9719_v5 = vcombine.low %v1113_v47, %v1117_v50  ;;  %v10025_v59 = vld [vmem:[#allocation9 + $0x50] sm:$0xff]   ;;  %v10029_v38 = vld [vmem:[#allocation9 + $0x58] sm:$0xff]  }
 0x454   :  { %v9721_v19 = vcombine.low %v1114_v63, %v1118_v58  ;;  %v7863_v13 = vadd.f32 1e-05, %v7855_v3  ;;  %v7998_v17 = vmul.f32 0.2, %v7982_v34  ;;  %vm7990_vm2 = vcmp.ge.f32.partialorder %v7982_v34, 0.0  ;;  %v10034_v47 = vld [vmem:[#allocation9 + $0xe0] sm:$0xff]  }
 0x455   :  { %v10037_v54 = vld [vmem:[#allocation9 + $0x68] sm:$0xff]   ;;  %v10048_v3 = vld [vmem:[#allocation9 + $0xb8] sm:$0xff]  }
 0x456   :  { %7367 = vmatpush1.bf16.msra.mxu0 %v9679_v61  ;;  %7695 = vmatpush1.bf16.msra.mxu1 %v9681_v62  ;;  %v9722_v61 = vcombine.high %v1114_v63, %v1118_v58  ;;  %v1121_v62 = vld [vmem:[#allocation2 + $0x1fd0] sm:$0xff]  ;;  %10085 = vrsqrt.f32 %v7863_v13  ;;  %v10035_v63 = vld [vmem:[#allocation9 + $0x20] sm:$0xff]   ;;  %v10038_v55 = vld [vmem:[#allocation9 + $0xe8] sm:$0xff]  }
 0x457   :  { %7368 = vmatprep.subr.bf16.mxu0 %v9688_v8  ;;  %7696 = vmatprep.subr.bf16.mxu1 %v9690_v2  ;;  %v1125_v8 = vld [vmem:[#allocation2 + $0x1ff0] sm:$0xff]  ;;  %v7980_v2 = vadd.f32 %v7946_v52, %v7930_v23  ;;  %10087 = vrsqrt.f32 %v7865_v18  ;;  %v7900_v52 = vrot.slane %v10598_v0, %v10556_v57  ;;  %v10036_v58 = vld [vmem:[#allocation9 + $0xa0] sm:$0xff]   ;;  %v10056_v18 = vld [vmem:[#allocation9 + $0x188] sm:$0xff]  }
 0x458   :  { %v9728_v4 = vcombine.high %v1121_v62, %v1125_v8  ;;  %v10052_v13 = vld [vmem:[#allocation9 + $0x180] sm:$0xff]  }
 0x459   :  { %vm7988_vm1 = vcmp.ge.f32.partialorder %v7980_v2, 0.0 }
 0x45a   :  { %7369 = vmatpush1.bf16.msra.mxu0 %v9687_v10  ;;  %7697 = vmatpush1.bf16.msra.mxu1 %v9689_v11  ;;  %v9730_v10 = vcombine.high %v1122_v25, %v1126_v28  ;;  %v9727_v11 = vcombine.low %v1121_v62, %v1125_v8  ;;  %v10043_v8 = vld [vmem:[#allocation9 + $0x30] sm:$0xff]  }
 0x45b   :  { %7370 = vmatprep.subr.bf16.mxu0 %v9696_v12  ;;  %7698 = vmatprep.subr.bf16.mxu1 %v9698_v14  ;;  %v7996_v12 = vmul.f32 0.2, %v7980_v2  ;;  %v9729_v14 = vcombine.low %v1122_v25, %v1126_v28  ;;  %v10045_v25 = vld [vmem:[#allocation9 + $0x78] sm:$0xff]  }
 0x45c   :  { %v10046_v28 = vld [vmem:[#allocation9 + $0xf8] sm:$0xff]  }
 0x45e   :  { %7371 = vmatpush1.bf16.msra.mxu0 %v9695_v16  ;;  %7699 = vmatpush1.bf16.msra.mxu1 %v9697_v22  ;;  %v8004_v16 = vsel %vm7988_vm1, %v7980_v2, %v7996_v12  ;;  %v8006_v22 = vsel %vm7990_vm2, %v7982_v34, %v7998_v17  ;;  %v10051_v12 = vld [vmem:[#allocation9 + $0x100] sm:$0xff]   ;;  %v10055_v17 = vld [vmem:[#allocation9 + $0x108] sm:$0xff]  }
 0x45f   :  { %7372 = vmatprep.subr.bf16.mxu0 %v9704_v24  ;;  %7700 = vmatprep.subr.bf16.mxu1 %v9706_v7  ;;  %v10021_v24 = vld [vmem:[#allocation9 + $0x48] sm:$0xff]   ;;  %v8012_v37 = vpack.c.bf16 %v8004_v16, %v8004_v16  ;;  %v8014_v7 = vpack.c.bf16 %v8006_v22, %v8006_v22  ;;  %v10059_v16 = vld [vmem:[#allocation9 + $0x110] sm:$0xff]   ;;  %v10061_v22 = vld [vmem:[#allocation9 + $0x158] sm:$0xff]  }
 0x462   :  { %7373 = vmatpush1.bf16.msra.mxu0 %v9703_v29  ;;  %7701 = vmatpush1.bf16.msra.mxu1 %v9705_v44  ;;  %v10032_v44 = vld [vmem:[#allocation9 + $0x98] sm:$0xff]  }
 0x463   :  { %7374 = vmatprep.subr.bf16.mxu0 %v9712_v20  ;;  %7702 = vmatprep.subr.bf16.mxu1 %v9714_v46  ;;  %v10033_v20 = vld [vmem:[#allocation9 + $0x60] sm:$0xff]   ;;  %v7892_v46 = vrot.slane %v10598_v0, %v10551_v41 }
 0x466   :  { %7375 = vmatpush1.bf16.msra.mxu0 %v9711_v35  ;;  %7703 = vmatpush1.bf16.msra.mxu1 %v9713_v51  ;;  %v10040_v51 = vld [vmem:[#allocation9 + $0xa8] sm:$0xff]  }
 0x467   :  { %7376 = vmatprep.subr.bf16.mxu0 %v9720_v60  ;;  %7704 = vmatprep.subr.bf16.mxu1 %v9722_v61  ;;  %v10041_v60 = vld [vmem:[#allocation9 + $0x70] sm:$0xff]  }
 0x468   :  { %v10042_v61 = vld [vmem:[#allocation9 + $0xf0] sm:$0xff]  }
 0x46a   :  { %7377 = vmatpush1.bf16.msra.mxu0 %v9719_v5  ;;  %7705 = vmatpush1.bf16.msra.mxu1 %v9721_v19  ;;  %v10047_v5 = vld [vmem:[#allocation9 + $0x38] sm:$0xff]  }
 0x46b   :  { %7378 = vmatprep.subr.bf16.mxu0 %v9728_v4  ;;  %7706 = vmatprep.subr.bf16.mxu1 %v9730_v10  ;;  %v10049_v10 = vld [vmem:[#allocation9 + $0x140] sm:$0xff]  }
 0x46e   :  { %7379 = vmatpush1.bf16.msra.mxu0 %v9727_v11  ;;  %7707 = vmatpush1.bf16.msra.mxu1 %v9729_v14  ;;  %v10050_v11 = vld [vmem:[#allocation9 + $0x1c0] sm:$0xff]   ;;  %v10053_v14 = vld [vmem:[#allocation9 + $0x148] sm:$0xff]  }
 0x46f   :  { %9796 = vmatprep.subr.bf16.mxu0 %v10017_v27  ;;  %9818 = vmatprep.subr.bf16.mxu1 %v10018_v30  ;;  %v10054_v27 = vld [vmem:[#allocation9 + $0x1c8] sm:$0xff]   ;;  %v10057_v30 = vld [vmem:[#allocation9 + $0x150] sm:$0xff]  }
 0x471   :  { %7381 = vmatmul.mubr.bf16.vlgmr.msra.gmra.mrb[4].mxu0 %v10490_v49  ;;  %7709 = vmatmul.mubr.bf16.vlgmr.msra.gmra.mrb[4].mxu1 %v10490_v49  ;;  %v10086_v49 = vpop.eup %10085 }
 0x472   :  { %9797 = vmatpush3.bf16.msra.mxu0 %v10019_v53  ;;  %8570 = vmatprep.mubr.bf16.mxu0 %v8012_v37  ;;  %v10088_v29 = vpop.eup %10087  ;;  %v7879_v45 = vmul.f32 %v10086_v49, %v10587_v6  ;;  %v7942_v6 = vrot.slane %v10602_v36, %v10551_v41  ;;  %v10044_v41 = vld [vmem:[#allocation9 + $0xb0] sm:$0xff]   ;;  %v10063_v37 = vld [vmem:[#allocation9 + $0x118] sm:$0xff]  }
 0x473   :  { %9819 = vmatpush3.bf16.msra.mxu1 %v10020_v21  ;;  %8610 = vmatprep.mubr.bf16.mxu1 %v8014_v7  ;;  %v7881_v50 = vmul.f32 %v10088_v29, %v10590_v15  ;;  %v10039_v15 = vld [vmem:[#allocation9 + $0x28] sm:$0xff]   ;;  %v10058_v53 = vld [vmem:[#allocation9 + $0x1d0] sm:$0xff]   ;;  %v10065_v7 = vld [vmem:[#allocation9 + $0x160] sm:$0xff]  }
 0x474   :  { %9798 = vmatprep.subr.bf16.mxu0 %v10021_v24  ;;  %9820 = vmatprep.subr.bf16.mxu1 %v10022_v1  ;;  %v7929_v23 = vmul.f32 %v7892_v46, %v7879_v45  ;;  %v10060_v21 = vld [vmem:[#allocation9 + $0x190] sm:$0xff]   ;;  %v10062_v24 = vld [vmem:[#allocation9 + $0x1d8] sm:$0xff]  }
 0x475   :  { %v7931_v35 = vmul.f32 %v7900_v52, %v7881_v50  ;;  %v10064_v1 = vld [vmem:[#allocation9 + $0x198] sm:$0xff]   ;;  %v10074_v49 = vld [vmem:[#allocation9 + $0x1f0] sm:$0xff]   ;;  %v10628_v50 = vsub.s32 6, %v10361_v43  ;;  %v10631_v52 = vsub.s32 5, %v10361_v43 }
 0x476   :  { %9799 = vmatpush3.bf16.msra.mxu0 %v10023_v26  ;;  %v7979_v9 = vadd.f32 %v7942_v6, %v7929_v23  ;;  %v10066_v26 = vld [vmem:[#allocation9 + $0x1e0] sm:$0xff]   ;;  %v10075_v29 = vld [vmem:[#allocation9 + $0x130] sm:$0xff]   ;;  %v10079_v45 = vld [vmem:[#allocation9 + $0x138] sm:$0xff]  }
 0x477   :  { %9821 = vmatpush3.bf16.msra.mxu1 %v10024_v32  ;;  %9800 = vmatprep.subr.bf16.mxu0 %v10025_v59  ;;  %v7981_v62 = vadd.f32 %v7950_v56, %v7931_v35  ;;  %v10067_v32 = vld [vmem:[#allocation9 + $0x120] sm:$0xff]   ;;  %v10080_v46 = vld [vmem:[#allocation9 + $0x1b8] sm:$0xff]  }
 0x478   :  { %9822 = vmatprep.subr.bf16.mxu1 %v10026_v33  ;;  %v7995_v2 = vmul.f32 0.2, %v7979_v9  ;;  %vm7987_vm3 = vcmp.ge.f32.partialorder %v7979_v9, 0.0  ;;  %v10068_v59 = vld [vmem:[#allocation9 + $0x1a0] sm:$0xff]   ;;  %v10069_v33 = vld [vmem:[#allocation9 + $0x168] sm:$0xff]  }
 0x479   :  { %v7997_v57 = vmul.f32 0.2, %v7981_v62  ;;  %vm7989_vm4 = vcmp.ge.f32.partialorder %v7981_v62, 0.0 }
 0x47a   :  { %9801 = vmatpush3.bf16.msra.mxu0 %v10027_v40  ;;  %v8003_v34 = vsel %vm7987_vm3, %v7979_v9, %v7995_v2  ;;  %v10070_v40 = vld [vmem:[#allocation9 + $0x1e8] sm:$0xff]  }
 0x47b   :  { %9823 = vmatpush3.bf16.msra.mxu1 %v10028_v48  ;;  %9802 = vmatprep.subr.bf16.mxu0 %v10029_v38  ;;  %v8005_v19 = vsel %vm7989_vm4, %v7981_v62, %v7997_v57  ;;  %v8011_v4 = vpack.c.bf16 %v8003_v34, %v8003_v34  ;;  %v10071_v48 = vld [vmem:[#allocation9 + $0x128] sm:$0xff]  }
 0x47c   :  { %9824 = vmatprep.subr.bf16.mxu1 %v10030_v39  ;;  %v8013_v31 = vpack.c.bf16 %v8005_v19, %v8005_v19  ;;  %v10072_v38 = vld [vmem:[#allocation9 + $0x1a8] sm:$0xff]   ;;  %v10073_v39 = vld [vmem:[#allocation9 + $0x170] sm:$0xff]  }
 0x47e   :  { %9803 = vmatpush3.bf16.msra.mxu0 %v10031_v42  ;;  %v10076_v42 = vld [vmem:[#allocation9 + $0x1b0] sm:$0xff]  }
 0x47f   :  { %9825 = vmatpush3.bf16.msra.mxu1 %v10032_v44  ;;  %9804 = vmatprep.subr.bf16.mxu0 %v10033_v20  ;;  %v10077_v44 = vld [vmem:[#allocation9 + $0x178] sm:$0xff]  }
 0x480   :  { %9826 = vmatprep.subr.bf16.mxu1 %v10034_v47  ;;  %v10078_v20 = vld [vmem:[#allocation9 + $0x1f8] sm:$0xff]   ;;  %v10625_v47 = vsub.s32 4, %v10361_v43 }
 0x482   :  { %9805 = vmatpush3.bf16.msra.mxu0 %v10035_v63  ;;  %v10634_v63 = vsub.s32 7, %v10361_v43 }
 0x483   :  { %9827 = vmatpush3.bf16.msra.mxu1 %v10036_v58  ;;  %9806 = vmatprep.subr.bf16.mxu0 %v10037_v54  ;;  %v10097_v58 = vld [vmem:[#allocation4] sm:$0xff] }
 0x484   :  { %9828 = vmatprep.subr.bf16.mxu1 %v10038_v55  ;;  %v1148_v54 = vrot.slane %v10097_v58, %v10625_v47  ;;  %v1156_v23 = vrot.slane %v10097_v58, %v10628_v50  ;;  %v1152_v6 = vrot.slane %v10097_v58, %v10631_v52  ;;  %v1160_v55 = vrot.slane %v10097_v58, %v10634_v63 }
 0x486   :  { %9807 = vmatpush3.bf16.msra.mxu0 %v10039_v15 }
 0x487   :  { %9829 = vmatpush3.bf16.msra.mxu1 %v10040_v51  ;;  %9808 = vmatprep.subr.bf16.mxu0 %v10041_v60 }
 0x488   :  { %9830 = vmatprep.subr.bf16.mxu1 %v10042_v61 }
 0x48a   :  { %9809 = vmatpush3.bf16.msra.mxu0 %v10043_v8 }
 0x48b   :  { %9831 = vmatpush3.bf16.msra.mxu1 %v10044_v41  ;;  %9810 = vmatprep.subr.bf16.mxu0 %v10045_v25 }
 0x48c   :  { %9832 = vmatprep.subr.bf16.mxu1 %v10046_v28 }
 0x48e   :  { %9811 = vmatpush3.bf16.msra.mxu0 %v10047_v5 }
 0x48f   :  { %9833 = vmatpush3.bf16.msra.mxu1 %v10048_v3  ;;  %9840 = vmatprep.subr.bf16.mxu0 %v10049_v10 }
 0x490   :  { %9862 = vmatprep.subr.bf16.mxu1 %v10050_v11 }
 0x491   :  { %8571 = vmatmul.mubr.bf16.vlgmr.msra.gmra.mrb[8].mxu0 %v8011_v4 }
 0x492   :  { %8611 = vmatmul.mubr.bf16.vlgmr.msra.gmra.mrb[8].mxu1 %v8013_v31  ;;  %9841 = vmatpush3.bf16.msra.mxu0 %v10051_v12 }
 0x493   :  { %9863 = vmatpush3.bf16.msra.mxu1 %v10052_v13  ;;  %9842 = vmatprep.subr.bf16.mxu0 %v10053_v14 }
 0x494   :  { %9864 = vmatprep.subr.bf16.mxu1 %v10054_v27 }
 0x496   :  { %9843 = vmatpush3.bf16.msra.mxu0 %v10055_v17 }
 0x497   :  { %9865 = vmatpush3.bf16.msra.mxu1 %v10056_v18  ;;  %9844 = vmatprep.subr.bf16.mxu0 %v10057_v30 }
 0x498   :  { %9866 = vmatprep.subr.bf16.mxu1 %v10058_v53 }
 0x49a   :  { %9845 = vmatpush3.bf16.msra.mxu0 %v10059_v16 }
 0x49b   :  { %9867 = vmatpush3.bf16.msra.mxu1 %v10060_v21  ;;  %9846 = vmatprep.subr.bf16.mxu0 %v10061_v22 }
 0x49c   :  { %9868 = vmatprep.subr.bf16.mxu1 %v10062_v24 }
 0x49e   :  { %9847 = vmatpush3.bf16.msra.mxu0 %v10063_v37 }
 0x49f   :  { %9869 = vmatpush3.bf16.msra.mxu1 %v10064_v1  ;;  %9848 = vmatprep.subr.bf16.mxu0 %v10065_v7 }
 0x4a0   :  { %9870 = vmatprep.subr.bf16.mxu1 %v10066_v26 }
 0x4a2   :  { %9849 = vmatpush3.bf16.msra.mxu0 %v10067_v32 }
 0x4a3   :  { %9871 = vmatpush3.bf16.msra.mxu1 %v10068_v59  ;;  %9850 = vmatprep.subr.bf16.mxu0 %v10069_v33 }
 0x4a4   :  { %9872 = vmatprep.subr.bf16.mxu1 %v10070_v40 }
 0x4a6   :  { %9851 = vmatpush3.bf16.msra.mxu0 %v10071_v48 }
 0x4a7   :  { %9873 = vmatpush3.bf16.msra.mxu1 %v10072_v38  ;;  %9852 = vmatprep.subr.bf16.mxu0 %v10073_v39 }
 0x4a8   :  { %9874 = vmatprep.subr.bf16.mxu1 %v10074_v49 }
 0x4aa   :  { %9853 = vmatpush3.bf16.msra.mxu0 %v10075_v29 }
 0x4ab   :  { %9875 = vmatpush3.bf16.msra.mxu1 %v10076_v42  ;;  %9854 = vmatprep.subr.bf16.mxu0 %v10077_v44 }
 0x4ac   :  { %9876 = vmatprep.subr.bf16.mxu1 %v10078_v20 }
 0x4ae   :  { %9855 = vmatpush3.bf16.msra.mxu0 %v10079_v45 }
 0x4af   :  { %9877 = vmatpush3.bf16.msra.mxu1 %v10080_v46 }
 0x544   :  { %v7382_v35 = vpop.f32.mrb[4].mxu0  ;;  %v7710_v15 = vpop.f32.mrb[4].mxu1 }
 0x545   :  { %v9888_v56 = vadd.f32 %v7382_v35, %v1148_v54  ;;  %v7384_v51 = vpop.f32.mrb[5].mxu0  ;;  %v9890_v60 = vadd.f32 %v7710_v15, %v1156_v23  ;;  %v7712_v61 = vpop.f32.mrb[5].mxu1 }
 0x546   :  { %v9889_v9 = vadd.f32 %v7384_v51, %v1152_v6  ;;  %v7386_v62 = vpop.f32.mrb[6].mxu0  ;;  %v9891_v8 = vadd.f32 %v7712_v61, %v1160_v55  ;;  %v7714_v41 = vpop.f32.mrb[6].mxu1 }
 0x547   :  { %v7746_v43 = vsel %vm7717_vm0, %v9888_v56, 0.0  ;;  %v7387_v25 = vpop.f32.mrb[7].mxu0  ;;  %v7760_v2 = vsel %vm7717_vm0, %v9890_v60, 0.0  ;;  %v7715_v5 = vpop.f32.mrb[7].mxu1 }
 0x548   :  { %v7747_v28 = vrot.slane %v7746_v43, 4  ;;  %v7753_v57 = vsel %vm7717_vm0, %v9889_v9, 0.0  ;;  %v7761_v3 = vrot.slane %v7760_v2, 4  ;;  %v7767_v19 = vsel %vm7717_vm0, %v9891_v8, 0.0 }
 0x549   :  { %v7754_v34 = vrot.slane %v7753_v57, 4  ;;  %v7768_v31 = vrot.slane %v7767_v19, 4 }
 0x54a   :  { %v7748_v4 = vadd.f32 %v7747_v28, %v7746_v43  ;;  %v7762_v10 = vadd.f32 %v7761_v3, %v7760_v2 }
 0x54b   :  { %v7755_v11 = vadd.f32 %v7754_v34, %v7753_v57  ;;  %v7769_v13 = vadd.f32 %v7768_v31, %v7767_v19 }
 0x54c   :  { %v7749_v12 = vrot.slane %v7748_v4, 2  ;;  %v7763_v14 = vrot.slane %v7762_v10, 2 }
 0x54d   :  { %v7756_v27 = vrot.slane %v7755_v11, 2  ;;  %v7770_v18 = vrot.slane %v7769_v13, 2 }
 0x54e   :  { %v7750_v17 = vadd.f32 %v7749_v12, %v7748_v4  ;;  %v7764_v30 = vadd.f32 %v7763_v14, %v7762_v10  ;;  %v9731_v10 = vld [vmem:[#allocation10] ss:$0 sm:$0xff] }
 0x54f   :  { %v7757_v53 = vadd.f32 %v7756_v27, %v7755_v11  ;;  %v7771_v21 = vadd.f32 %v7770_v18, %v7769_v13 }
 0x550   :  { %v7751_v16 = vrot.slane %v7750_v17, 1  ;;  %v7765_v22 = vrot.slane %v7764_v30, 1 }
 0x551   :  { %v7758_v24 = vrot.slane %v7757_v53, 1  ;;  %v7772_v1 = vrot.slane %v7771_v21, 1 }
 0x552   :  { %v7752_v37 = vadd.f32 %v7751_v16, %v7750_v17  ;;  %v7766_v7 = vadd.f32 %v7765_v22, %v7764_v30 }
 0x553   :  { %v7759_v26 = vadd.f32 %v7758_v24, %v7757_v53  ;;  %v7773_v59 = vadd.f32 %v7772_v1, %v7771_v21 }
 0x554   :  { %v7779_v32 = vmul.f32 0.5, %v7752_v37  ;;  %v7781_v33 = vmul.f32 0.5, %v7766_v7 }
 0x555   :  { %v7780_v40 = vmul.f32 0.5, %v7759_v26  ;;  %v7782_v38 = vmul.f32 0.5, %v7773_v59 }
 0x556   :  { %v10644_v48 = vsub.f32 %v9888_v56, %v7779_v32  ;;  %v10646_v39 = vsub.f32 %v9890_v60, %v7781_v33 }
 0x557   :  { %v10648_v49 = vsub.f32 %v9889_v9, %v7780_v40  ;;  %v10652_v42 = vsub.f32 %v9891_v8, %v7782_v38  ;;  %v7908_v38 = vrot.slane %v10598_v0, %v10625_v47 }
 0x558   :  { %v7795_v29 = vmul.f32 %v10644_v48, %v10644_v48  ;;  %v7797_v44 = vmul.f32 %v10646_v39, %v10646_v39 }
 0x559   :  { %v7796_v20 = vmul.f32 %v10648_v49, %v10648_v49  ;;  %v7798_v46 = vmul.f32 %v10652_v42, %v10652_v42 }
 0x55a   :  { %v7827_v45 = vsel %vm7717_vm0, %v7795_v29, 0.0  ;;  %v7841_v54 = vsel %vm7717_vm0, %v7797_v44, 0.0  ;;  %v7916_v44 = vrot.slane %v10598_v0, %v10628_v50 }
 0x55b   :  { %v7828_v58 = vrot.slane %v7827_v45, 4  ;;  %v7834_v23 = vsel %vm7717_vm0, %v7796_v20, 0.0  ;;  %v7842_v6 = vrot.slane %v7841_v54, 4  ;;  %v7848_v35 = vsel %vm7717_vm0, %v7798_v46, 0.0 }
 0x55c   :  { %v7835_v55 = vrot.slane %v7834_v23, 4  ;;  %v7849_v15 = vrot.slane %v7848_v35, 4  ;;  %v7958_v46 = vrot.slane %v10602_v36, %v10625_v47 }
 0x55d   :  { %v7829_v56 = vadd.f32 %v7828_v58, %v7827_v45  ;;  %v7843_v51 = vadd.f32 %v7842_v6, %v7841_v54  ;;  %v7912_v58 = vrot.slane %v10598_v0, %v10631_v52  ;;  %v7966_v6 = vrot.slane %v10602_v36, %v10628_v50 }
 0x55e   :  { %v7836_v60 = vadd.f32 %v7835_v55, %v7834_v23  ;;  %v7850_v61 = vadd.f32 %v7849_v15, %v7848_v35  ;;  %v7920_v55 = vrot.slane %v10598_v0, %v10634_v63 }
 0x55f   :  { %v7830_v9 = vrot.slane %v7829_v56, 2  ;;  %v7844_v62 = vrot.slane %v7843_v51, 2 }
 0x560   :  { %v7837_v43 = vrot.slane %v7836_v60, 2  ;;  %v7851_v41 = vrot.slane %v7850_v61, 2 }
 0x561   :  { %v7831_v8 = vadd.f32 %v7830_v9, %v7829_v56  ;;  %v7845_v25 = vadd.f32 %v7844_v62, %v7843_v51 }
 0x562   :  { %v7838_v28 = vadd.f32 %v7837_v43, %v7836_v60  ;;  %v7852_v57 = vadd.f32 %v7851_v41, %v7850_v61  ;;  %v7970_v60 = vrot.slane %v10602_v36, %v10634_v63 }
 0x563   :  { %v7832_v2 = vrot.slane %v7831_v8, 1  ;;  %v7846_v5 = vrot.slane %v7845_v25, 1 }
 0x564   :  { %v7839_v3 = vrot.slane %v7838_v28, 1  ;;  %v9812_v34 = vpop.f32.mrb[8].mxu0  ;;  %v7853_v4 = vrot.slane %v7852_v57, 1 }
 0x565   :  { %v7833_v19 = vadd.f32 %v7832_v2, %v7831_v8  ;;  %v9834_v31 = vpop.f32.mrb[8].mxu1  ;;  %v9813_v11 = vpop.f32.mrb[9].mxu0  ;;  %v7847_v12 = vadd.f32 %v7846_v5, %v7845_v25 }
 0x566   :  { %v7840_v13 = vadd.f32 %v7839_v3, %v7838_v28  ;;  %v9814_v14 = vadd.f32 %v9813_v11, %v9812_v34  ;;  %v9835_v27 = vpop.f32.mrb[9].mxu1  ;;  %v9815_v17 = vpop.f32.mrb[10].mxu0  ;;  %v7854_v30 = vadd.f32 %v7853_v4, %v7852_v57 }
 0x567   :  { %v7859_v18 = vmul.f32 0.5, %v7833_v19  ;;  %v9836_v53 = vadd.f32 %v9835_v27, %v9834_v31  ;;  %v9837_v16 = vpop.f32.mrb[10].mxu1  ;;  %v9816_v21 = vpop.f32.mrb[11].mxu0  ;;  %v7861_v22 = vmul.f32 0.5, %v7847_v12 }
 0x568   :  { %v7860_v24 = vmul.f32 0.5, %v7840_v13  ;;  %v8573_v37 = vadd.f32 %v9814_v14, %v9731_v10  ;;  %v9838_v1 = vpop.f32.mrb[11].mxu1  ;;  %v7862_v26 = vmul.f32 0.5, %v7854_v30 }
 0x569   :  { %v7867_v7 = vadd.f32 1e-05, %v7859_v18  ;;  %v7869_v32 = vadd.f32 1e-05, %v7861_v22 }
 0x56a   :  { %v7868_v59 = vadd.f32 1e-05, %v7860_v24  ;;  %v8613_v33 = vadd.f32 %v9836_v53, %v8573_v37  ;;  %v7870_v40 = vadd.f32 1e-05, %v7862_v26 }
 0x56b   :  { %10089 = vrsqrt.f32 %v7867_v7 }
 0x56c   :  { %10091 = vrsqrt.f32 %v7869_v32 }
 0x56d   :  { %10093 = vrsqrt.f32 %v7868_v59 }
 0x56e   :  { %10095 = vrsqrt.f32 %v7870_v40 }
 0x575   :  { %v10090_v29 = vpop.eup %10089 }
 0x576   :  { %v10092_v20 = vpop.eup %10091  ;;  %v7883_v45 = vmul.f32 %v10090_v29, %v10644_v48  ;;  %v7962_v48 = vrot.slane %v10602_v36, %v10631_v52 }
 0x577   :  { %v10094_v54 = vpop.eup %10093  ;;  %v7885_v23 = vmul.f32 %v10092_v20, %v10646_v39 }
 0x578   :  { %v10096_v35 = vpop.eup %10095  ;;  %v7933_v56 = vmul.f32 %v7908_v38, %v7883_v45  ;;  %v7884_v15 = vmul.f32 %v10094_v54, %v10648_v49 }
 0x579   :  { %v7935_v47 = vmul.f32 %v7916_v44, %v7885_v23  ;;  %v7886_v51 = vmul.f32 %v10096_v35, %v10652_v42 }
 0x57a   :  { %v7983_v39 = vadd.f32 %v7958_v46, %v7933_v56  ;;  %v7934_v9 = vmul.f32 %v7912_v58, %v7884_v15 }
 0x57b   :  { %v7985_v61 = vadd.f32 %v7966_v6, %v7935_v47  ;;  %v7936_v50 = vmul.f32 %v7920_v55, %v7886_v51 }
 0x57c   :  { %v7984_v62 = vadd.f32 %v7962_v48, %v7934_v9  ;;  %vm7991_vm5 = vcmp.ge.f32.partialorder %v7983_v39, 0.0  ;;  %v7999_v0 = vmul.f32 0.2, %v7983_v39 }
 0x57d   :  { %v7986_v43 = vadd.f32 %v7970_v60, %v7936_v50  ;;  %vm7993_vm6 = vcmp.ge.f32.partialorder %v7985_v61, 0.0  ;;  %v8001_v8 = vmul.f32 0.2, %v7985_v61 }
 0x57e   :  { %vm7992_vm7 = vcmp.ge.f32.partialorder %v7984_v62, 0.0  ;;  %v8000_v49 = vmul.f32 0.2, %v7984_v62  ;;  %v8007_v41 = vsel %vm7991_vm5, %v7983_v39, %v7999_v0 }
 0x57f   :  { %vm7994_vm8 = vcmp.ge.f32.partialorder %v7986_v43, 0.0  ;;  %v8002_v52 = vmul.f32 0.2, %v7986_v43  ;;  %v8009_v42 = vsel %vm7993_vm6, %v7985_v61, %v8001_v8  ;;  %v8015_v63 = vpack.c.bf16 %v8007_v41, %v8007_v41 }
 0x580   :  { %v8008_v25 = vsel %vm7992_vm7, %v7984_v62, %v8000_v49  ;;  %v8017_v57 = vpack.c.bf16 %v8009_v42, %v8009_v42 }
 0x581   :  { %v8016_v28 = vpack.c.bf16 %v8008_v25, %v8008_v25  ;;  %v8010_v2 = vsel %vm7994_vm8, %v7986_v43, %v8002_v52 }
 0x582   :  { %v8018_v36 = vpack.c.bf16 %v8010_v2, %v8010_v2 }
 0x583   :  { %8650 = vmatprep.mubr.bf16.mxu0 %v8016_v28 }
 0x584   :  { %8690 = vmatprep.mubr.bf16.mxu1 %v8018_v36  ;;  %8651 = vmatmul.mubr.bf16.vlgmr.msra.gmra.mrb[12].mxu0 %v8015_v63 }
 0x585   :  { %8691 = vmatmul.mubr.bf16.vlgmr.msra.gmra.mrb[12].mxu1 %v8017_v57 }
 0x657   :  { %v9856_v5 = vpop.f32.mrb[12].mxu0 }
 0x658   :  { %v9878_v3 = vpop.f32.mrb[12].mxu1  ;;  %v9857_v34 = vpop.f32.mrb[13].mxu0 }
 0x659   :  { %v9858_v19 = vadd.f32 %v9857_v34, %v9856_v5  ;;  %v9879_v4 = vpop.f32.mrb[13].mxu1  ;;  %v9859_v31 = vpop.f32.mrb[14].mxu0 }
 0x65a   :  { %v9880_v10 = vadd.f32 %v9879_v4, %v9878_v3  ;;  %v9881_v11 = vpop.f32.mrb[14].mxu1  ;;  %v9860_v12 = vpop.f32.mrb[15].mxu0 }
 0x65b   :  { %v8653_v13 = vadd.f32 %v9858_v19, %v8613_v33  ;;  %v9882_v14 = vpop.f32.mrb[15].mxu1 }
 0x65d   :  { %v8693_v27 = vadd.f32 %v9880_v10, %v8653_v13 }
 0x65f   :  { %8698 = vst [vmem:[%s10694_s7] sm:$0x3] %v8693_v27 }
 0x660   :  { %8703 = vsyncpa [#allocation3], 1 }
 0x661   :  { %8704 = vsyncpa [#allocation5], 1 }
 0x662   :  { %8705 = vsyncpa [#allocation8], 1 }
 0x663   :  { %8706 = vsyncpa [#allocation11], 1 }

</bundles_post_ra>
